<compile_context>
chip_gen: v6e
topology: v6e:2x2x1
jax: 0.10.0
libtpu: 0.0.40
codegen_flags: <defaults>
</compile_context>

<pallas_src>
import functools

import jax
import jax.numpy as jnp
from jax import lax
from jax.experimental import pallas as pl
from jax.experimental.pallas import tpu as pltpu

VMEM_SPEC = pl.BlockSpec(memory_space=pltpu.MemorySpace.VMEM)
LN_EPS = 1e-5


def _sigmoid(x):
    # 1 / (1 + exp(-x)) with the reciprocal on the (otherwise idle) EUP slot.
    return pl.reciprocal(1.0 + jnp.exp(-x), approx=True)


def _layer_norm(x, g, b):
    mu = jnp.mean(x, axis=-1, keepdims=True)
    var = jnp.mean(jnp.square(x - mu), axis=-1, keepdims=True)
    return (x - mu) * lax.rsqrt(var + LN_EPS) * g + b


def _mha(x_q, x_kv, w_in, b_in, w_out, b_out, nhead, self_attn):
    """nn.MultiheadAttention (eval) with fused projections.

    x_q: (B, T, d) f32, x_kv: (B, S, d) f32.
    w_in: (d, 3d) bf16 (in_proj_weight^T), b_in: (1, 3d) f32.
    w_out: (d, d) bf16 (out_proj.weight^T), b_out: (1, d) f32.
    """
    B, T, d = x_q.shape
    S = x_kv.shape[1]
    hd = d // nhead
    scale = 1.0 / jnp.sqrt(jnp.float32(hd))

    xq = x_q.astype(jnp.bfloat16)
    if self_attn:
        # one fused QKV matmul, bias added once
        qkv = jnp.einsum('btd,de->bte', xq, w_in,
                         preferred_element_type=jnp.float32) + b_in
        q = qkv[..., :d]
        k = qkv[..., d:2 * d]
        v = qkv[..., 2 * d:]
    else:
        # query from x_q, fused K/V matmul from the memory
        q = jnp.einsum('btd,de->bte', xq, w_in[:, :d],
                       preferred_element_type=jnp.float32) + b_in[:, :d]
        kv = jnp.einsum('bsd,de->bse', x_kv.astype(jnp.bfloat16), w_in[:, d:],
                        preferred_element_type=jnp.float32) + b_in[:, d:]
        k = kv[..., :d]
        v = kv[..., d:]

    # per-head scaled dot-product attention (static loop, hd-wide lane slices)
    ctx = []
    for h in range(nhead):
        sl = slice(h * hd, (h + 1) * hd)
        s = jnp.einsum('btk,bsk->bts',
                       q[..., sl].astype(jnp.bfloat16),
                       k[..., sl].astype(jnp.bfloat16),
                       preferred_element_type=jnp.float32) * scale
        s = s - jnp.max(s, axis=-1, keepdims=True)
        p = jnp.exp(s)
        p = p * pl.reciprocal(jnp.sum(p, axis=-1, keepdims=True), approx=True)
        ctx.append(jnp.einsum('bts,bsk->btk',
                              p.astype(jnp.bfloat16),
                              v[..., sl].astype(jnp.bfloat16),
                              preferred_element_type=jnp.float32))
    ctx = jnp.concatenate(ctx, axis=-1)                       # (B, T, d)

    # single output projection on the concatenated heads
    return jnp.einsum('btd,de->bte', ctx.astype(jnp.bfloat16), w_out,
                      preferred_element_type=jnp.float32) + b_out


def fused_forward_kernel(nhead,
                         tgt_ref, x_ref,
                         gwi_ref, gwh_ref, gbi_ref, gbh_ref,
                         sa_win_ref, sa_bin_ref, sa_wo_ref, sa_bo_ref,
                         ca_win_ref, ca_bin_ref, ca_wo_ref, ca_bo_ref,
                         w1_ref, b1_ref, w2_ref, b2_ref,
                         g1_ref, be1_ref, g2_ref, be2_ref, g3_ref, be3_ref,
                         fcw_ref, fcb_ref,
                         out_ref, mem_ref):
    B, n, _ = x_ref.shape
    H = gwh_ref.shape[1]
    S = mem_ref.shape[1]            # n // 2 (MaxPool1d(2,2) drops a trailing odd step)
    L = w1_ref.shape[0]

    # ------------------ GRU (batch_first) fused with MaxPool1d(2, 2) ------------------
    x = x_ref[...].astype(jnp.bfloat16)                       # (B, n, D)

    # Hoisted input projection: ONE matmul per gate over the whole sequence.
    gi_r = jnp.einsum('bnd,dh->bnh', x, gwi_ref[0],
                      preferred_element_type=jnp.float32) + gbi_ref[0]
    gi_z = jnp.einsum('bnd,dh->bnh', x, gwi_ref[1],
                      preferred_element_type=jnp.float32) + gbi_ref[1]
    gi_n = jnp.einsum('bnd,dh->bnh', x, gwi_ref[2],
                      preferred_element_type=jnp.float32) + gbi_ref[2]

    wh_r, wh_z, wh_n = gwh_ref[0], gwh_ref[1], gwh_ref[2]
    bh_r, bh_z, bh_n = gbh_ref[0], gbh_ref[1], gbh_ref[2]

    def gru_step(h, t):
        hb = h.astype(jnp.bfloat16)
        gh_r = jnp.dot(hb, wh_r, preferred_element_type=jnp.float32) + bh_r
        gh_z = jnp.dot(hb, wh_z, preferred_element_type=jnp.float32) + bh_z
        gh_n = jnp.dot(hb, wh_n, preferred_element_type=jnp.float32) + bh_n
        r = _sigmoid(gi_r[:, t, :] + gh_r)
        z = _sigmoid(gi_z[:, t, :] + gh_z)
        c = jnp.tanh(gi_n[:, t, :] + r * gh_n)
        return (1.0 - z) * c + z * h

    h = jnp.zeros((B, H), jnp.float32)
    for p in range(S):              # static trip count -> fully unrolled recurrence
        h1 = gru_step(h, 2 * p)
        h2 = gru_step(h1, 2 * p + 1)
        mem_ref[:, p, :] = jnp.maximum(h1, h2)   # MaxPool over the time axis
        h = h2

    memory = mem_ref[...]           # (B, S, H) == (B, S, d_model); dropout = identity

    # ----------------------------- transformer decoder stack --------------------------
    xd = tgt_ref[...]               # (B, T, d) f32
    for l in range(L):              # static, small layer count
        sa = _mha(xd, xd, sa_win_ref[l], sa_bin_ref[l],
                  sa_wo_ref[l], sa_bo_ref[l], nhead, self_attn=True)
        xd = _layer_norm(xd + sa, g1_ref[l], be1_ref[l])

        ca = _mha(xd, memory, ca_win_ref[l], ca_bin_ref[l],
                  ca_wo_ref[l], ca_bo_ref[l], nhead, self_attn=False)
        xd = _layer_norm(xd + ca, g2_ref[l], be2_ref[l])

        hid = jnp.einsum('btd,df->btf', xd.astype(jnp.bfloat16), w1_ref[l],
                         preferred_element_type=jnp.float32) + b1_ref[l]
        hid = jnp.maximum(hid, 0.0)
        ff = jnp.einsum('btf,fd->btd', hid.astype(jnp.bfloat16), w2_ref[l],
                        preferred_element_type=jnp.float32) + b2_ref[l]
        xd = _layer_norm(xd + ff, g3_ref[l], be3_ref[l])

    # --------------------------------- fc_out projection ------------------------------
    out_ref[...] = jnp.einsum('btd,dv->btv', xd.astype(jnp.bfloat16),
                              fcw_ref[...],
                              preferred_element_type=jnp.float32) + fcb_ref[...]


# --------------------------------------------------------------------------------------
# Parameter init (deterministic, synthetic).  MXU weights in bf16, biases/LN in f32.
# --------------------------------------------------------------------------------------
def init_params(key, input_dim, hidden, d_model, nhead, num_layers, dff, vocab,
                max_pos=1024):
    keys = iter(jax.random.split(key, 64))

    def rnd(shape, scale=0.05, dtype=jnp.float32):
        return (scale * jax.random.normal(next(keys), shape, jnp.float32)).astype(dtype)

    L = num_layers
    p = {
        'tgt_emb': rnd((vocab, d_model), 0.1),                 # nn.Embedding(vocab, d)
        'pos_emb': rnd((max_pos, d_model), 0.1),               # nn.Embedding(1024, d)
        # GRU, per-gate [r, z, n]; weights pre-transposed vs PyTorch, bf16 for MXU.
        'gru_wi': rnd((3, input_dim, hidden), dtype=jnp.bfloat16),
        'gru_wh': rnd((3, hidden, hidden), dtype=jnp.bfloat16),
        'gru_bi': rnd((3, 1, hidden)),
        'gru_bh': rnd((3, 1, hidden)),
        'fc_w': rnd((d_model, vocab), dtype=jnp.bfloat16),     # fc_out.weight^T
        'fc_b': rnd((1, vocab)),
    }
    for pfx in ('sa', 'ca'):                                   # self- / cross-attention
        p[pfx + '_w_in'] = rnd((L, d_model, 3 * d_model), dtype=jnp.bfloat16)
        p[pfx + '_b_in'] = rnd((L, 1, 3 * d_model))
        p[pfx + '_w_out'] = rnd((L, d_model, d_model), dtype=jnp.bfloat16)
        p[pfx + '_b_out'] = rnd((L, 1, d_model))
    p['w1'] = rnd((L, d_model, dff), dtype=jnp.bfloat16)
    p['b1'] = rnd((L, 1, dff))
    p['w2'] = rnd((L, dff, d_model), dtype=jnp.bfloat16)
    p['b2'] = rnd((L, 1, d_model))
    for i in ('1', '2', '3'):
        p['g' + i] = jnp.ones((L, 1, d_model), jnp.float32)
        p['be' + i] = jnp.zeros((L, 1, d_model), jnp.float32)
    return p


# --------------------------------------------------------------------------------------
# Forward pass: embedding gather in plain JAX, everything else in ONE Pallas kernel.
# --------------------------------------------------------------------------------------
@functools.partial(jax.jit, static_argnums=(3,))
def forward(params, tgt, x, nhead):
    B, n_tgt = tgt.shape
    _, n, _ = x.shape
    d_model = params['tgt_emb'].shape[1]
    hidden = params['gru_wh'].shape[1]
    vocab = params['fc_w'].shape[1]
    S = n // 2

    if n_tgt > params['pos_emb'].shape[0]:
        raise ValueError("n_tgt exceeds positional-encoding table size (1024)")
    if hidden != d_model:
        raise ValueError("gru_hidden_dim must equal transformer_d_model")

    # tgt embedding + positional encoding (gather is glue, not the hot path)
    tgt_emb = (params['tgt_emb'][tgt]
               + params['pos_emb'][:n_tgt][None, :, :]).astype(jnp.float32)

    kernel = functools.partial(fused_forward_kernel, nhead)
    return pl.pallas_call(
        kernel,
        out_shape=jax.ShapeDtypeStruct((B, n_tgt, vocab), jnp.float32),
        in_specs=[VMEM_SPEC] * 26,
        out_specs=VMEM_SPEC,
        scratch_shapes=[pltpu.VMEM((B, S, hidden), jnp.float32)],
        compiler_params=pltpu.CompilerParams(
            vmem_limit_bytes=32 * 1024 * 1024),   # explicit; safe on v5e/v6e/v7x
    )(tgt_emb, x.astype(jnp.float32),
      params['gru_wi'], params['gru_wh'], params['gru_bi'], params['gru_bh'],
      params['sa_w_in'], params['sa_b_in'], params['sa_w_out'], params['sa_b_out'],
      params['ca_w_in'], params['ca_b_in'], params['ca_w_out'], params['ca_b_out'],
      params['w1'], params['b1'], params['w2'], params['b2'],
      params['g1'], params['be1'], params['g2'], params['be2'],
      params['g3'], params['be3'],
      params['fc_w'], params['fc_b'])              # (B, T, vocab)


if __name__ == "__main__":
    # small shapes consistent with the module's forward()
    B, n, input_dim = 2, 8, 16
    n_tgt = 8
    gru_hidden_dim = transformer_d_model = 32    # must match for cross-attention
    num_heads = 4
    num_decoder_layers = 2
    dim_feedforward = 2048                       # PyTorch TransformerDecoderLayer default
    vocab_size = 128                             # synthetic, lane-dense (multiple of 128)
    # TODO(synk): BertModel is instantiated in __init__ but never used in forward();
    # only its config.vocab_size (30522) would size fc_out — a small synthetic,
    # lane-aligned vocab is used here instead.

    key = jax.random.PRNGKey(0)
    kp, kx, kt = jax.random.split(key, 3)
    params = init_params(kp, input_dim, gru_hidden_dim, transformer_d_model,
                         num_heads, num_decoder_layers, dim_feedforward,
                         vocab_size)
    x = jax.random.normal(kx, (B, n, input_dim), jnp.float32)
    tgt = jax.random.randint(kt, (B, n_tgt), 0, vocab_size)

    out = forward(params, tgt, x, num_heads)
    out = jax.block_until_ready(out)
    assert out.shape == (B, n_tgt, vocab_size), out.shape
    assert bool(jnp.all(jnp.isfinite(out)))
    print("KERNEL_OK")
</pallas_src>

<mosaic_0001>
module attributes {stable_mosaic.version = 11 : i64} {
  func.func @fused_forward_kernel(%arg0: memref<2x8x32xf32, #tpu.memory_space<vmem>>, %arg1: memref<2x8x16xf32, #tpu.memory_space<vmem>>, %arg2: memref<3x16x32xbf16, #tpu.memory_space<vmem>>, %arg3: memref<3x32x32xbf16, #tpu.memory_space<vmem>>, %arg4: memref<3x1x32xf32, #tpu.memory_space<vmem>>, %arg5: memref<3x1x32xf32, #tpu.memory_space<vmem>>, %arg6: memref<2x32x96xbf16, #tpu.memory_space<vmem>>, %arg7: memref<2x1x96xf32, #tpu.memory_space<vmem>>, %arg8: memref<2x32x32xbf16, #tpu.memory_space<vmem>>, %arg9: memref<2x1x32xf32, #tpu.memory_space<vmem>>, %arg10: memref<2x32x96xbf16, #tpu.memory_space<vmem>>, %arg11: memref<2x1x96xf32, #tpu.memory_space<vmem>>, %arg12: memref<2x32x32xbf16, #tpu.memory_space<vmem>>, %arg13: memref<2x1x32xf32, #tpu.memory_space<vmem>>, %arg14: memref<2x32x2048xbf16, #tpu.memory_space<vmem>>, %arg15: memref<2x1x2048xf32, #tpu.memory_space<vmem>>, %arg16: memref<2x2048x32xbf16, #tpu.memory_space<vmem>>, %arg17: memref<2x1x32xf32, #tpu.memory_space<vmem>>, %arg18: memref<2x1x32xf32, #tpu.memory_space<vmem>>, %arg19: memref<2x1x32xf32, #tpu.memory_space<vmem>>, %arg20: memref<2x1x32xf32, #tpu.memory_space<vmem>>, %arg21: memref<2x1x32xf32, #tpu.memory_space<vmem>>, %arg22: memref<2x1x32xf32, #tpu.memory_space<vmem>>, %arg23: memref<2x1x32xf32, #tpu.memory_space<vmem>>, %arg24: memref<32x128xbf16, #tpu.memory_space<vmem>>, %arg25: memref<1x128xf32, #tpu.memory_space<vmem>>, %arg26: memref<2x8x128xf32, #tpu.memory_space<vmem>>, %arg27: memref<2x4x32xf32, #tpu.memory_space<vmem>>) attributes {dimension_semantics = [], scalar_prefetch = 0 : i64, scratch_operands = 1 : i64, tpu.core_type = #tpu.core_type<tc>} {
    %c0 = arith.constant 0 : index
    %c0_0 = arith.constant 0 : index
    %c0_1 = arith.constant 0 : index
    %0 = vector.load %arg1[%c0, %c0_0, %c0_1] : memref<2x8x16xf32, #tpu.memory_space<vmem>>, vector<2x8x16xf32>
    %1 = arith.truncf %0 : vector<2x8x16xf32> to vector<2x8x16xbf16>
    %c0_2 = arith.constant 0 : index
    %c0_3 = arith.constant 0 : index
    %c0_4 = arith.constant 0 : index
    %2 = vector.load %arg2[%c0_2, %c0_3, %c0_4] : memref<3x16x32xbf16, #tpu.memory_space<vmem>>, vector<1x16x32xbf16>
    %3 = vector.shape_cast %2 : vector<1x16x32xbf16> to vector<16x32xbf16>
    "tpu.trace_start"() <{level = 10 : i32, message = "bnd,dh->bnh"}> : () -> ()
    %cst = arith.constant dense<0.000000e+00> : vector<2x8x32xf32>
    %4 = tpu.matmul %1, %3, %cst {dimension_numbers = #tpu.dot_dimension_numbers<[2], [0], [0, 1], [1], [0, 0, 0, 1, 1, 1], [], []>} : vector<2x8x16xbf16>, vector<16x32xbf16>, vector<2x8x32xf32> -> vector<2x8x32xf32>
    "tpu.trace_stop"() : () -> ()
    %c0_5 = arith.constant 0 : index
    %c0_6 = arith.constant 0 : index
    %c0_7 = arith.constant 0 : index
    %5 = vector.load %arg4[%c0_5, %c0_6, %c0_7] : memref<3x1x32xf32, #tpu.memory_space<vmem>>, vector<1x1x32xf32>
    %6 = vector.shape_cast %5 : vector<1x1x32xf32> to vector<1x32xf32>
    %7 = vector.shape_cast %6 : vector<1x32xf32> to vector<1x1x32xf32>
    %8 = vector.broadcast %7 : vector<1x1x32xf32> to vector<2x8x32xf32>
    %9 = arith.addf %4, %8 : vector<2x8x32xf32>
    %c1 = arith.constant 1 : index
    %c0_8 = arith.constant 0 : index
    %c0_9 = arith.constant 0 : index
    %10 = vector.load %arg2[%c1, %c0_8, %c0_9] : memref<3x16x32xbf16, #tpu.memory_space<vmem>>, vector<1x16x32xbf16>
    %11 = vector.shape_cast %10 : vector<1x16x32xbf16> to vector<16x32xbf16>
    "tpu.trace_start"() <{level = 10 : i32, message = "bnd,dh->bnh"}> : () -> ()
    %cst_10 = arith.constant dense<0.000000e+00> : vector<2x8x32xf32>
    %12 = tpu.matmul %1, %11, %cst_10 {dimension_numbers = #tpu.dot_dimension_numbers<[2], [0], [0, 1], [1], [0, 0, 0, 1, 1, 1], [], []>} : vector<2x8x16xbf16>, vector<16x32xbf16>, vector<2x8x32xf32> -> vector<2x8x32xf32>
    "tpu.trace_stop"() : () -> ()
    %c1_11 = arith.constant 1 : index
    %c0_12 = arith.constant 0 : index
    %c0_13 = arith.constant 0 : index
    %13 = vector.load %arg4[%c1_11, %c0_12, %c0_13] : memref<3x1x32xf32, #tpu.memory_space<vmem>>, vector<1x1x32xf32>
    %14 = vector.shape_cast %13 : vector<1x1x32xf32> to vector<1x32xf32>
    %15 = vector.shape_cast %14 : vector<1x32xf32> to vector<1x1x32xf32>
    %16 = vector.broadcast %15 : vector<1x1x32xf32> to vector<2x8x32xf32>
    %17 = arith.addf %12, %16 : vector<2x8x32xf32>
    %c2 = arith.constant 2 : index
    %c0_14 = arith.constant 0 : index
    %c0_15 = arith.constant 0 : index
    %18 = vector.load %arg2[%c2, %c0_14, %c0_15] : memref<3x16x32xbf16, #tpu.memory_space<vmem>>, vector<1x16x32xbf16>
    %19 = vector.shape_cast %18 : vector<1x16x32xbf16> to vector<16x32xbf16>
    "tpu.trace_start"() <{level = 10 : i32, message = "bnd,dh->bnh"}> : () -> ()
    %cst_16 = arith.constant dense<0.000000e+00> : vector<2x8x32xf32>
    %20 = tpu.matmul %1, %19, %cst_16 {dimension_numbers = #tpu.dot_dimension_numbers<[2], [0], [0, 1], [1], [0, 0, 0, 1, 1, 1], [], []>} : vector<2x8x16xbf16>, vector<16x32xbf16>, vector<2x8x32xf32> -> vector<2x8x32xf32>
    "tpu.trace_stop"() : () -> ()
    %c2_17 = arith.constant 2 : index
    %c0_18 = arith.constant 0 : index
    %c0_19 = arith.constant 0 : index
    %21 = vector.load %arg4[%c2_17, %c0_18, %c0_19] : memref<3x1x32xf32, #tpu.memory_space<vmem>>, vector<1x1x32xf32>
    %22 = vector.shape_cast %21 : vector<1x1x32xf32> to vector<1x32xf32>
    %23 = vector.shape_cast %22 : vector<1x32xf32> to vector<1x1x32xf32>
    %24 = vector.broadcast %23 : vector<1x1x32xf32> to vector<2x8x32xf32>
    %25 = arith.addf %20, %24 : vector<2x8x32xf32>
    %c0_20 = arith.constant 0 : index
    %c0_21 = arith.constant 0 : index
    %c0_22 = arith.constant 0 : index
    %26 = vector.load %arg3[%c0_20, %c0_21, %c0_22] : memref<3x32x32xbf16, #tpu.memory_space<vmem>>, vector<1x32x32xbf16>
    %27 = vector.shape_cast %26 : vector<1x32x32xbf16> to vector<32x32xbf16>
    %c1_23 = arith.constant 1 : index
    %c0_24 = arith.constant 0 : index
    %c0_25 = arith.constant 0 : index
    %28 = vector.load %arg3[%c1_23, %c0_24, %c0_25] : memref<3x32x32xbf16, #tpu.memory_space<vmem>>, vector<1x32x32xbf16>
    %29 = vector.shape_cast %28 : vector<1x32x32xbf16> to vector<32x32xbf16>
    %c2_26 = arith.constant 2 : index
    %c0_27 = arith.constant 0 : index
    %c0_28 = arith.constant 0 : index
    %30 = vector.load %arg3[%c2_26, %c0_27, %c0_28] : memref<3x32x32xbf16, #tpu.memory_space<vmem>>, vector<1x32x32xbf16>
    %31 = vector.shape_cast %30 : vector<1x32x32xbf16> to vector<32x32xbf16>
    %c0_29 = arith.constant 0 : index
    %c0_30 = arith.constant 0 : index
    %c0_31 = arith.constant 0 : index
    %32 = vector.load %arg5[%c0_29, %c0_30, %c0_31] : memref<3x1x32xf32, #tpu.memory_space<vmem>>, vector<1x1x32xf32>
    %33 = vector.shape_cast %32 : vector<1x1x32xf32> to vector<1x32xf32>
    %c1_32 = arith.constant 1 : index
    %c0_33 = arith.constant 0 : index
    %c0_34 = arith.constant 0 : index
    %34 = vector.load %arg5[%c1_32, %c0_33, %c0_34] : memref<3x1x32xf32, #tpu.memory_space<vmem>>, vector<1x1x32xf32>
    %35 = vector.shape_cast %34 : vector<1x1x32xf32> to vector<1x32xf32>
    %c2_35 = arith.constant 2 : index
    %c0_36 = arith.constant 0 : index
    %c0_37 = arith.constant 0 : index
    %36 = vector.load %arg5[%c2_35, %c0_36, %c0_37] : memref<3x1x32xf32, #tpu.memory_space<vmem>>, vector<1x1x32xf32>
    %37 = vector.shape_cast %36 : vector<1x1x32xf32> to vector<1x32xf32>
    %cst_38 = arith.constant 0.000000e+00 : f32
    %38 = vector.broadcast %cst_38 : f32 to vector<2x32xf32>
    %39 = arith.truncf %38 : vector<2x32xf32> to vector<2x32xbf16>
    %cst_39 = arith.constant dense<0.000000e+00> : vector<2x32xf32>
    %40 = tpu.matmul %39, %27, %cst_39 {dimension_numbers = #tpu.dot_dimension_numbers<[1], [0], [0], [1], [0, 0, 1, 1], [], []>} : vector<2x32xbf16>, vector<32x32xbf16>, vector<2x32xf32> -> vector<2x32xf32>
    %41 = vector.broadcast %33 : vector<1x32xf32> to vector<2x32xf32>
    %42 = arith.addf %40, %41 : vector<2x32xf32>
    %cst_40 = arith.constant dense<0.000000e+00> : vector<2x32xf32>
    %43 = tpu.matmul %39, %29, %cst_40 {dimension_numbers = #tpu.dot_dimension_numbers<[1], [0], [0], [1], [0, 0, 1, 1], [], []>} : vector<2x32xbf16>, vector<32x32xbf16>, vector<2x32xf32> -> vector<2x32xf32>
    %44 = vector.broadcast %35 : vector<1x32xf32> to vector<2x32xf32>
    %45 = arith.addf %43, %44 : vector<2x32xf32>
    %cst_41 = arith.constant dense<0.000000e+00> : vector<2x32xf32>
    %46 = tpu.matmul %39, %31, %cst_41 {dimension_numbers = #tpu.dot_dimension_numbers<[1], [0], [0], [1], [0, 0, 1, 1], [], []>} : vector<2x32xbf16>, vector<32x32xbf16>, vector<2x32xf32> -> vector<2x32xf32>
    %47 = vector.broadcast %37 : vector<1x32xf32> to vector<2x32xf32>
    %48 = arith.addf %46, %47 : vector<2x32xf32>
    %49 = vector.extract_strided_slice %9 {offsets = [0, 0, 0], sizes = [2, 1, 32], strides = [1, 1, 1]} : vector<2x8x32xf32> to vector<2x1x32xf32>
    %50 = vector.shape_cast %49 : vector<2x1x32xf32> to vector<2x32xf32>
    %51 = arith.addf %50, %42 : vector<2x32xf32>
    %cst_42 = arith.constant 0.000000e+00 : f32
    %52 = vector.broadcast %cst_42 : f32 to vector<2x32xf32>
    %53 = arith.subf %52, %51 : vector<2x32xf32>
    %54 = math.exp %53 : vector<2x32xf32>
    %cst_43 = arith.constant 1.000000e+00 : f32
    %55 = vector.broadcast %cst_43 : f32 to vector<2x32xf32>
    %56 = arith.addf %55, %54 : vector<2x32xf32>
    %57 = tpu.reciprocal %56 {approx = true} : vector<2x32xf32> -> vector<2x32xf32>
    %58 = vector.extract_strided_slice %17 {offsets = [0, 0, 0], sizes = [2, 1, 32], strides = [1, 1, 1]} : vector<2x8x32xf32> to vector<2x1x32xf32>
    %59 = vector.shape_cast %58 : vector<2x1x32xf32> to vector<2x32xf32>
    %60 = arith.addf %59, %45 : vector<2x32xf32>
    %cst_44 = arith.constant 0.000000e+00 : f32
    %61 = vector.broadcast %cst_44 : f32 to vector<2x32xf32>
    %62 = arith.subf %61, %60 : vector<2x32xf32>
    %63 = math.exp %62 : vector<2x32xf32>
    %cst_45 = arith.constant 1.000000e+00 : f32
    %64 = vector.broadcast %cst_45 : f32 to vector<2x32xf32>
    %65 = arith.addf %64, %63 : vector<2x32xf32>
    %66 = tpu.reciprocal %65 {approx = true} : vector<2x32xf32> -> vector<2x32xf32>
    %67 = vector.extract_strided_slice %25 {offsets = [0, 0, 0], sizes = [2, 1, 32], strides = [1, 1, 1]} : vector<2x8x32xf32> to vector<2x1x32xf32>
    %68 = vector.shape_cast %67 : vector<2x1x32xf32> to vector<2x32xf32>
    %69 = arith.mulf %57, %48 : vector<2x32xf32>
    %70 = arith.addf %68, %69 : vector<2x32xf32>
    %71 = math.tanh %70 : vector<2x32xf32>
    %cst_46 = arith.constant 1.000000e+00 : f32
    %72 = vector.broadcast %cst_46 : f32 to vector<2x32xf32>
    %73 = arith.subf %72, %66 : vector<2x32xf32>
    %74 = arith.mulf %73, %71 : vector<2x32xf32>
    %75 = arith.mulf %66, %38 : vector<2x32xf32>
    %76 = arith.addf %74, %75 : vector<2x32xf32>
    %77 = arith.truncf %76 : vector<2x32xf32> to vector<2x32xbf16>
    %cst_47 = arith.constant dense<0.000000e+00> : vector<2x32xf32>
    %78 = tpu.matmul %77, %27, %cst_47 {dimension_numbers = #tpu.dot_dimension_numbers<[1], [0], [0], [1], [0, 0, 1, 1], [], []>} : vector<2x32xbf16>, vector<32x32xbf16>, vector<2x32xf32> -> vector<2x32xf32>
    %79 = vector.broadcast %33 : vector<1x32xf32> to vector<2x32xf32>
    %80 = arith.addf %78, %79 : vector<2x32xf32>
    %cst_48 = arith.constant dense<0.000000e+00> : vector<2x32xf32>
    %81 = tpu.matmul %77, %29, %cst_48 {dimension_numbers = #tpu.dot_dimension_numbers<[1], [0], [0], [1], [0, 0, 1, 1], [], []>} : vector<2x32xbf16>, vector<32x32xbf16>, vector<2x32xf32> -> vector<2x32xf32>
    %82 = vector.broadcast %35 : vector<1x32xf32> to vector<2x32xf32>
    %83 = arith.addf %81, %82 : vector<2x32xf32>
    %cst_49 = arith.constant dense<0.000000e+00> : vector<2x32xf32>
    %84 = tpu.matmul %77, %31, %cst_49 {dimension_numbers = #tpu.dot_dimension_numbers<[1], [0], [0], [1], [0, 0, 1, 1], [], []>} : vector<2x32xbf16>, vector<32x32xbf16>, vector<2x32xf32> -> vector<2x32xf32>
    %85 = vector.broadcast %37 : vector<1x32xf32> to vector<2x32xf32>
    %86 = arith.addf %84, %85 : vector<2x32xf32>
    %87 = vector.extract_strided_slice %9 {offsets = [0, 1, 0], sizes = [2, 1, 32], strides = [1, 1, 1]} : vector<2x8x32xf32> to vector<2x1x32xf32>
    %88 = vector.shape_cast %87 : vector<2x1x32xf32> to vector<2x32xf32>
    %89 = arith.addf %88, %80 : vector<2x32xf32>
    %cst_50 = arith.constant 0.000000e+00 : f32
    %90 = vector.broadcast %cst_50 : f32 to vector<2x32xf32>
    %91 = arith.subf %90, %89 : vector<2x32xf32>
    %92 = math.exp %91 : vector<2x32xf32>
    %cst_51 = arith.constant 1.000000e+00 : f32
    %93 = vector.broadcast %cst_51 : f32 to vector<2x32xf32>
    %94 = arith.addf %93, %92 : vector<2x32xf32>
    %95 = tpu.reciprocal %94 {approx = true} : vector<2x32xf32> -> vector<2x32xf32>
    %96 = vector.extract_strided_slice %17 {offsets = [0, 1, 0], sizes = [2, 1, 32], strides = [1, 1, 1]} : vector<2x8x32xf32> to vector<2x1x32xf32>
    %97 = vector.shape_cast %96 : vector<2x1x32xf32> to vector<2x32xf32>
    %98 = arith.addf %97, %83 : vector<2x32xf32>
    %cst_52 = arith.constant 0.000000e+00 : f32
    %99 = vector.broadcast %cst_52 : f32 to vector<2x32xf32>
    %100 = arith.subf %99, %98 : vector<2x32xf32>
    %101 = math.exp %100 : vector<2x32xf32>
    %cst_53 = arith.constant 1.000000e+00 : f32
    %102 = vector.broadcast %cst_53 : f32 to vector<2x32xf32>
    %103 = arith.addf %102, %101 : vector<2x32xf32>
    %104 = tpu.reciprocal %103 {approx = true} : vector<2x32xf32> -> vector<2x32xf32>
    %105 = vector.extract_strided_slice %25 {offsets = [0, 1, 0], sizes = [2, 1, 32], strides = [1, 1, 1]} : vector<2x8x32xf32> to vector<2x1x32xf32>
    %106 = vector.shape_cast %105 : vector<2x1x32xf32> to vector<2x32xf32>
    %107 = arith.mulf %95, %86 : vector<2x32xf32>
    %108 = arith.addf %106, %107 : vector<2x32xf32>
    %109 = math.tanh %108 : vector<2x32xf32>
    %cst_54 = arith.constant 1.000000e+00 : f32
    %110 = vector.broadcast %cst_54 : f32 to vector<2x32xf32>
    %111 = arith.subf %110, %104 : vector<2x32xf32>
    %112 = arith.mulf %111, %109 : vector<2x32xf32>
    %113 = arith.mulf %104, %76 : vector<2x32xf32>
    %114 = arith.addf %112, %113 : vector<2x32xf32>
    %115 = arith.maximumf %76, %114 : vector<2x32xf32>
    %c0_55 = arith.constant 0 : index
    %c0_56 = arith.constant 0 : index
    %c0_57 = arith.constant 0 : index
    %116 = vector.load %arg27[%c0_55, %c0_56, %c0_57] : memref<2x4x32xf32, #tpu.memory_space<vmem>>, vector<2x1x32xf32>
    %117 = vector.shape_cast %116 : vector<2x1x32xf32> to vector<2x32xf32>
    %118 = vector.shape_cast %115 : vector<2x32xf32> to vector<2x1x32xf32>
    tpu.vector_store %arg27[%c0_55, %c0_56, %c0_57], %118 {strides = array<i32>} : memref<2x4x32xf32, #tpu.memory_space<vmem>>, vector<2x1x32xf32>,
    %119 = arith.truncf %114 : vector<2x32xf32> to vector<2x32xbf16>
    %cst_58 = arith.constant dense<0.000000e+00> : vector<2x32xf32>
    %120 = tpu.matmul %119, %27, %cst_58 {dimension_numbers = #tpu.dot_dimension_numbers<[1], [0], [0], [1], [0, 0, 1, 1], [], []>} : vector<2x32xbf16>, vector<32x32xbf16>, vector<2x32xf32> -> vector<2x32xf32>
    %121 = vector.broadcast %33 : vector<1x32xf32> to vector<2x32xf32>
    %122 = arith.addf %120, %121 : vector<2x32xf32>
    %cst_59 = arith.constant dense<0.000000e+00> : vector<2x32xf32>
    %123 = tpu.matmul %119, %29, %cst_59 {dimension_numbers = #tpu.dot_dimension_numbers<[1], [0], [0], [1], [0, 0, 1, 1], [], []>} : vector<2x32xbf16>, vector<32x32xbf16>, vector<2x32xf32> -> vector<2x32xf32>
    %124 = vector.broadcast %35 : vector<1x32xf32> to vector<2x32xf32>
    %125 = arith.addf %123, %124 : vector<2x32xf32>
    %cst_60 = arith.constant dense<0.000000e+00> : vector<2x32xf32>
    %126 = tpu.matmul %119, %31, %cst_60 {dimension_numbers = #tpu.dot_dimension_numbers<[1], [0], [0], [1], [0, 0, 1, 1], [], []>} : vector<2x32xbf16>, vector<32x32xbf16>, vector<2x32xf32> -> vector<2x32xf32>
    %127 = vector.broadcast %37 : vector<1x32xf32> to vector<2x32xf32>
    %128 = arith.addf %126, %127 : vector<2x32xf32>
    %129 = vector.extract_strided_slice %9 {offsets = [0, 2, 0], sizes = [2, 1, 32], strides = [1, 1, 1]} : vector<2x8x32xf32> to vector<2x1x32xf32>
    %130 = vector.shape_cast %129 : vector<2x1x32xf32> to vector<2x32xf32>
    %131 = arith.addf %130, %122 : vector<2x32xf32>
    %cst_61 = arith.constant 0.000000e+00 : f32
    %132 = vector.broadcast %cst_61 : f32 to vector<2x32xf32>
    %133 = arith.subf %132, %131 : vector<2x32xf32>
    %134 = math.exp %133 : vector<2x32xf32>
    %cst_62 = arith.constant 1.000000e+00 : f32
    %135 = vector.broadcast %cst_62 : f32 to vector<2x32xf32>
    %136 = arith.addf %135, %134 : vector<2x32xf32>
    %137 = tpu.reciprocal %136 {approx = true} : vector<2x32xf32> -> vector<2x32xf32>
    %138 = vector.extract_strided_slice %17 {offsets = [0, 2, 0], sizes = [2, 1, 32], strides = [1, 1, 1]} : vector<2x8x32xf32> to vector<2x1x32xf32>
    %139 = vector.shape_cast %138 : vector<2x1x32xf32> to vector<2x32xf32>
    %140 = arith.addf %139, %125 : vector<2x32xf32>
    %cst_63 = arith.constant 0.000000e+00 : f32
    %141 = vector.broadcast %cst_63 : f32 to vector<2x32xf32>
    %142 = arith.subf %141, %140 : vector<2x32xf32>
    %143 = math.exp %142 : vector<2x32xf32>
    %cst_64 = arith.constant 1.000000e+00 : f32
    %144 = vector.broadcast %cst_64 : f32 to vector<2x32xf32>
    %145 = arith.addf %144, %143 : vector<2x32xf32>
    %146 = tpu.reciprocal %145 {approx = true} : vector<2x32xf32> -> vector<2x32xf32>
    %147 = vector.extract_strided_slice %25 {offsets = [0, 2, 0], sizes = [2, 1, 32], strides = [1, 1, 1]} : vector<2x8x32xf32> to vector<2x1x32xf32>
    %148 = vector.shape_cast %147 : vector<2x1x32xf32> to vector<2x32xf32>
    %149 = arith.mulf %137, %128 : vector<2x32xf32>
    %150 = arith.addf %148, %149 : vector<2x32xf32>
    %151 = math.tanh %150 : vector<2x32xf32>
    %cst_65 = arith.constant 1.000000e+00 : f32
    %152 = vector.broadcast %cst_65 : f32 to vector<2x32xf32>
    %153 = arith.subf %152, %146 : vector<2x32xf32>
    %154 = arith.mulf %153, %151 : vector<2x32xf32>
    %155 = arith.mulf %146, %114 : vector<2x32xf32>
    %156 = arith.addf %154, %155 : vector<2x32xf32>
    %157 = arith.truncf %156 : vector<2x32xf32> to vector<2x32xbf16>
    %cst_66 = arith.constant dense<0.000000e+00> : vector<2x32xf32>
    %158 = tpu.matmul %157, %27, %cst_66 {dimension_numbers = #tpu.dot_dimension_numbers<[1], [0], [0], [1], [0, 0, 1, 1], [], []>} : vector<2x32xbf16>, vector<32x32xbf16>, vector<2x32xf32> -> vector<2x32xf32>
    %159 = vector.broadcast %33 : vector<1x32xf32> to vector<2x32xf32>
    %160 = arith.addf %158, %159 : vector<2x32xf32>
    %cst_67 = arith.constant dense<0.000000e+00> : vector<2x32xf32>
    %161 = tpu.matmul %157, %29, %cst_67 {dimension_numbers = #tpu.dot_dimension_numbers<[1], [0], [0], [1], [0, 0, 1, 1], [], []>} : vector<2x32xbf16>, vector<32x32xbf16>, vector<2x32xf32> -> vector<2x32xf32>
    %162 = vector.broadcast %35 : vector<1x32xf32> to vector<2x32xf32>
    %163 = arith.addf %161, %162 : vector<2x32xf32>
    %cst_68 = arith.constant dense<0.000000e+00> : vector<2x32xf32>
    %164 = tpu.matmul %157, %31, %cst_68 {dimension_numbers = #tpu.dot_dimension_numbers<[1], [0], [0], [1], [0, 0, 1, 1], [], []>} : vector<2x32xbf16>, vector<32x32xbf16>, vector<2x32xf32> -> vector<2x32xf32>
    %165 = vector.broadcast %37 : vector<1x32xf32> to vector<2x32xf32>
    %166 = arith.addf %164, %165 : vector<2x32xf32>
    %167 = vector.extract_strided_slice %9 {offsets = [0, 3, 0], sizes = [2, 1, 32], strides = [1, 1, 1]} : vector<2x8x32xf32> to vector<2x1x32xf32>
    %168 = vector.shape_cast %167 : vector<2x1x32xf32> to vector<2x32xf32>
    %169 = arith.addf %168, %160 : vector<2x32xf32>
    %cst_69 = arith.constant 0.000000e+00 : f32
    %170 = vector.broadcast %cst_69 : f32 to vector<2x32xf32>
    %171 = arith.subf %170, %169 : vector<2x32xf32>
    %172 = math.exp %171 : vector<2x32xf32>
    %cst_70 = arith.constant 1.000000e+00 : f32
    %173 = vector.broadcast %cst_70 : f32 to vector<2x32xf32>
    %174 = arith.addf %173, %172 : vector<2x32xf32>
    %175 = tpu.reciprocal %174 {approx = true} : vector<2x32xf32> -> vector<2x32xf32>
    %176 = vector.extract_strided_slice %17 {offsets = [0, 3, 0], sizes = [2, 1, 32], strides = [1, 1, 1]} : vector<2x8x32xf32> to vector<2x1x32xf32>
    %177 = vector.shape_cast %176 : vector<2x1x32xf32> to vector<2x32xf32>
    %178 = arith.addf %177, %163 : vector<2x32xf32>
    %cst_71 = arith.constant 0.000000e+00 : f32
    %179 = vector.broadcast %cst_71 : f32 to vector<2x32xf32>
    %180 = arith.subf %179, %178 : vector<2x32xf32>
    %181 = math.exp %180 : vector<2x32xf32>
    %cst_72 = arith.constant 1.000000e+00 : f32
    %182 = vector.broadcast %cst_72 : f32 to vector<2x32xf32>
    %183 = arith.addf %182, %181 : vector<2x32xf32>
    %184 = tpu.reciprocal %183 {approx = true} : vector<2x32xf32> -> vector<2x32xf32>
    %185 = vector.extract_strided_slice %25 {offsets = [0, 3, 0], sizes = [2, 1, 32], strides = [1, 1, 1]} : vector<2x8x32xf32> to vector<2x1x32xf32>
    %186 = vector.shape_cast %185 : vector<2x1x32xf32> to vector<2x32xf32>
    %187 = arith.mulf %175, %166 : vector<2x32xf32>
    %188 = arith.addf %186, %187 : vector<2x32xf32>
    %189 = math.tanh %188 : vector<2x32xf32>
    %cst_73 = arith.constant 1.000000e+00 : f32
    %190 = vector.broadcast %cst_73 : f32 to vector<2x32xf32>
    %191 = arith.subf %190, %184 : vector<2x32xf32>
    %192 = arith.mulf %191, %189 : vector<2x32xf32>
    %193 = arith.mulf %184, %156 : vector<2x32xf32>
    %194 = arith.addf %192, %193 : vector<2x32xf32>
    %195 = arith.maximumf %156, %194 : vector<2x32xf32>
    %c0_74 = arith.constant 0 : index
    %c1_75 = arith.constant 1 : index
    %c0_76 = arith.constant 0 : index
    %196 = vector.load %arg27[%c0_74, %c1_75, %c0_76] : memref<2x4x32xf32, #tpu.memory_space<vmem>>, vector<2x1x32xf32>
    %197 = vector.shape_cast %196 : vector<2x1x32xf32> to vector<2x32xf32>
    %198 = vector.shape_cast %195 : vector<2x32xf32> to vector<2x1x32xf32>
    tpu.vector_store %arg27[%c0_74, %c1_75, %c0_76], %198 {strides = array<i32>} : memref<2x4x32xf32, #tpu.memory_space<vmem>>, vector<2x1x32xf32>,
    %199 = arith.truncf %194 : vector<2x32xf32> to vector<2x32xbf16>
    %cst_77 = arith.constant dense<0.000000e+00> : vector<2x32xf32>
    %200 = tpu.matmul %199, %27, %cst_77 {dimension_numbers = #tpu.dot_dimension_numbers<[1], [0], [0], [1], [0, 0, 1, 1], [], []>} : vector<2x32xbf16>, vector<32x32xbf16>, vector<2x32xf32> -> vector<2x32xf32>
    %201 = vector.broadcast %33 : vector<1x32xf32> to vector<2x32xf32>
    %202 = arith.addf %200, %201 : vector<2x32xf32>
    %cst_78 = arith.constant dense<0.000000e+00> : vector<2x32xf32>
    %203 = tpu.matmul %199, %29, %cst_78 {dimension_numbers = #tpu.dot_dimension_numbers<[1], [0], [0], [1], [0, 0, 1, 1], [], []>} : vector<2x32xbf16>, vector<32x32xbf16>, vector<2x32xf32> -> vector<2x32xf32>
    %204 = vector.broadcast %35 : vector<1x32xf32> to vector<2x32xf32>
    %205 = arith.addf %203, %204 : vector<2x32xf32>
    %cst_79 = arith.constant dense<0.000000e+00> : vector<2x32xf32>
    %206 = tpu.matmul %199, %31, %cst_79 {dimension_numbers = #tpu.dot_dimension_numbers<[1], [0], [0], [1], [0, 0, 1, 1], [], []>} : vector<2x32xbf16>, vector<32x32xbf16>, vector<2x32xf32> -> vector<2x32xf32>
    %207 = vector.broadcast %37 : vector<1x32xf32> to vector<2x32xf32>
    %208 = arith.addf %206, %207 : vector<2x32xf32>
    %209 = vector.extract_strided_slice %9 {offsets = [0, 4, 0], sizes = [2, 1, 32], strides = [1, 1, 1]} : vector<2x8x32xf32> to vector<2x1x32xf32>
    %210 = vector.shape_cast %209 : vector<2x1x32xf32> to vector<2x32xf32>
    %211 = arith.addf %210, %202 : vector<2x32xf32>
    %cst_80 = arith.constant 0.000000e+00 : f32
    %212 = vector.broadcast %cst_80 : f32 to vector<2x32xf32>
    %213 = arith.subf %212, %211 : vector<2x32xf32>
    %214 = math.exp %213 : vector<2x32xf32>
    %cst_81 = arith.constant 1.000000e+00 : f32
    %215 = vector.broadcast %cst_81 : f32 to vector<2x32xf32>
    %216 = arith.addf %215, %214 : vector<2x32xf32>
    %217 = tpu.reciprocal %216 {approx = true} : vector<2x32xf32> -> vector<2x32xf32>
    %218 = vector.extract_strided_slice %17 {offsets = [0, 4, 0], sizes = [2, 1, 32], strides = [1, 1, 1]} : vector<2x8x32xf32> to vector<2x1x32xf32>
    %219 = vector.shape_cast %218 : vector<2x1x32xf32> to vector<2x32xf32>
    %220 = arith.addf %219, %205 : vector<2x32xf32>
    %cst_82 = arith.constant 0.000000e+00 : f32
    %221 = vector.broadcast %cst_82 : f32 to vector<2x32xf32>
    %222 = arith.subf %221, %220 : vector<2x32xf32>
    %223 = math.exp %222 : vector<2x32xf32>
    %cst_83 = arith.constant 1.000000e+00 : f32
    %224 = vector.broadcast %cst_83 : f32 to vector<2x32xf32>
    %225 = arith.addf %224, %223 : vector<2x32xf32>
    %226 = tpu.reciprocal %225 {approx = true} : vector<2x32xf32> -> vector<2x32xf32>
    %227 = vector.extract_strided_slice %25 {offsets = [0, 4, 0], sizes = [2, 1, 32], strides = [1, 1, 1]} : vector<2x8x32xf32> to vector<2x1x32xf32>
    %228 = vector.shape_cast %227 : vector<2x1x32xf32> to vector<2x32xf32>
    %229 = arith.mulf %217, %208 : vector<2x32xf32>
    %230 = arith.addf %228, %229 : vector<2x32xf32>
    %231 = math.tanh %230 : vector<2x32xf32>
    %cst_84 = arith.constant 1.000000e+00 : f32
    %232 = vector.broadcast %cst_84 : f32 to vector<2x32xf32>
    %233 = arith.subf %232, %226 : vector<2x32xf32>
    %234 = arith.mulf %233, %231 : vector<2x32xf32>
    %235 = arith.mulf %226, %194 : vector<2x32xf32>
    %236 = arith.addf %234, %235 : vector<2x32xf32>
    %237 = arith.truncf %236 : vector<2x32xf32> to vector<2x32xbf16>
    %cst_85 = arith.constant dense<0.000000e+00> : vector<2x32xf32>
    %238 = tpu.matmul %237, %27, %cst_85 {dimension_numbers = #tpu.dot_dimension_numbers<[1], [0], [0], [1], [0, 0, 1, 1], [], []>} : vector<2x32xbf16>, vector<32x32xbf16>, vector<2x32xf32> -> vector<2x32xf32>
    %239 = vector.broadcast %33 : vector<1x32xf32> to vector<2x32xf32>
    %240 = arith.addf %238, %239 : vector<2x32xf32>
    %cst_86 = arith.constant dense<0.000000e+00> : vector<2x32xf32>
    %241 = tpu.matmul %237, %29, %cst_86 {dimension_numbers = #tpu.dot_dimension_numbers<[1], [0], [0], [1], [0, 0, 1, 1], [], []>} : vector<2x32xbf16>, vector<32x32xbf16>, vector<2x32xf32> -> vector<2x32xf32>
    %242 = vector.broadcast %35 : vector<1x32xf32> to vector<2x32xf32>
    %243 = arith.addf %241, %242 : vector<2x32xf32>
    %cst_87 = arith.constant dense<0.000000e+00> : vector<2x32xf32>
    %244 = tpu.matmul %237, %31, %cst_87 {dimension_numbers = #tpu.dot_dimension_numbers<[1], [0], [0], [1], [0, 0, 1, 1], [], []>} : vector<2x32xbf16>, vector<32x32xbf16>, vector<2x32xf32> -> vector<2x32xf32>
    %245 = vector.broadcast %37 : vector<1x32xf32> to vector<2x32xf32>
    %246 = arith.addf %244, %245 : vector<2x32xf32>
    %247 = vector.extract_strided_slice %9 {offsets = [0, 5, 0], sizes = [2, 1, 32], strides = [1, 1, 1]} : vector<2x8x32xf32> to vector<2x1x32xf32>
    %248 = vector.shape_cast %247 : vector<2x1x32xf32> to vector<2x32xf32>
    %249 = arith.addf %248, %240 : vector<2x32xf32>
    %cst_88 = arith.constant 0.000000e+00 : f32
    %250 = vector.broadcast %cst_88 : f32 to vector<2x32xf32>
    %251 = arith.subf %250, %249 : vector<2x32xf32>
    %252 = math.exp %251 : vector<2x32xf32>
    %cst_89 = arith.constant 1.000000e+00 : f32
    %253 = vector.broadcast %cst_89 : f32 to vector<2x32xf32>
    %254 = arith.addf %253, %252 : vector<2x32xf32>
    %255 = tpu.reciprocal %254 {approx = true} : vector<2x32xf32> -> vector<2x32xf32>
    %256 = vector.extract_strided_slice %17 {offsets = [0, 5, 0], sizes = [2, 1, 32], strides = [1, 1, 1]} : vector<2x8x32xf32> to vector<2x1x32xf32>
    %257 = vector.shape_cast %256 : vector<2x1x32xf32> to vector<2x32xf32>
    %258 = arith.addf %257, %243 : vector<2x32xf32>
    %cst_90 = arith.constant 0.000000e+00 : f32
    %259 = vector.broadcast %cst_90 : f32 to vector<2x32xf32>
    %260 = arith.subf %259, %258 : vector<2x32xf32>
    %261 = math.exp %260 : vector<2x32xf32>
    %cst_91 = arith.constant 1.000000e+00 : f32
    %262 = vector.broadcast %cst_91 : f32 to vector<2x32xf32>
    %263 = arith.addf %262, %261 : vector<2x32xf32>
    %264 = tpu.reciprocal %263 {approx = true} : vector<2x32xf32> -> vector<2x32xf32>
    %265 = vector.extract_strided_slice %25 {offsets = [0, 5, 0], sizes = [2, 1, 32], strides = [1, 1, 1]} : vector<2x8x32xf32> to vector<2x1x32xf32>
    %266 = vector.shape_cast %265 : vector<2x1x32xf32> to vector<2x32xf32>
    %267 = arith.mulf %255, %246 : vector<2x32xf32>
    %268 = arith.addf %266, %267 : vector<2x32xf32>
    %269 = math.tanh %268 : vector<2x32xf32>
    %cst_92 = arith.constant 1.000000e+00 : f32
    %270 = vector.broadcast %cst_92 : f32 to vector<2x32xf32>
    %271 = arith.subf %270, %264 : vector<2x32xf32>
    %272 = arith.mulf %271, %269 : vector<2x32xf32>
    %273 = arith.mulf %264, %236 : vector<2x32xf32>
    %274 = arith.addf %272, %273 : vector<2x32xf32>
    %275 = arith.maximumf %236, %274 : vector<2x32xf32>
    %c0_93 = arith.constant 0 : index
    %c2_94 = arith.constant 2 : index
    %c0_95 = arith.constant 0 : index
    %276 = vector.load %arg27[%c0_93, %c2_94, %c0_95] : memref<2x4x32xf32, #tpu.memory_space<vmem>>, vector<2x1x32xf32>
    %277 = vector.shape_cast %276 : vector<2x1x32xf32> to vector<2x32xf32>
    %278 = vector.shape_cast %275 : vector<2x32xf32> to vector<2x1x32xf32>
    tpu.vector_store %arg27[%c0_93, %c2_94, %c0_95], %278 {strides = array<i32>} : memref<2x4x32xf32, #tpu.memory_space<vmem>>, vector<2x1x32xf32>,
    %279 = arith.truncf %274 : vector<2x32xf32> to vector<2x32xbf16>
    %cst_96 = arith.constant dense<0.000000e+00> : vector<2x32xf32>
    %280 = tpu.matmul %279, %27, %cst_96 {dimension_numbers = #tpu.dot_dimension_numbers<[1], [0], [0], [1], [0, 0, 1, 1], [], []>} : vector<2x32xbf16>, vector<32x32xbf16>, vector<2x32xf32> -> vector<2x32xf32>
    %281 = vector.broadcast %33 : vector<1x32xf32> to vector<2x32xf32>
    %282 = arith.addf %280, %281 : vector<2x32xf32>
    %cst_97 = arith.constant dense<0.000000e+00> : vector<2x32xf32>
    %283 = tpu.matmul %279, %29, %cst_97 {dimension_numbers = #tpu.dot_dimension_numbers<[1], [0], [0], [1], [0, 0, 1, 1], [], []>} : vector<2x32xbf16>, vector<32x32xbf16>, vector<2x32xf32> -> vector<2x32xf32>
    %284 = vector.broadcast %35 : vector<1x32xf32> to vector<2x32xf32>
    %285 = arith.addf %283, %284 : vector<2x32xf32>
    %cst_98 = arith.constant dense<0.000000e+00> : vector<2x32xf32>
    %286 = tpu.matmul %279, %31, %cst_98 {dimension_numbers = #tpu.dot_dimension_numbers<[1], [0], [0], [1], [0, 0, 1, 1], [], []>} : vector<2x32xbf16>, vector<32x32xbf16>, vector<2x32xf32> -> vector<2x32xf32>
    %287 = vector.broadcast %37 : vector<1x32xf32> to vector<2x32xf32>
    %288 = arith.addf %286, %287 : vector<2x32xf32>
    %289 = vector.extract_strided_slice %9 {offsets = [0, 6, 0], sizes = [2, 1, 32], strides = [1, 1, 1]} : vector<2x8x32xf32> to vector<2x1x32xf32>
    %290 = vector.shape_cast %289 : vector<2x1x32xf32> to vector<2x32xf32>
    %291 = arith.addf %290, %282 : vector<2x32xf32>
    %cst_99 = arith.constant 0.000000e+00 : f32
    %292 = vector.broadcast %cst_99 : f32 to vector<2x32xf32>
    %293 = arith.subf %292, %291 : vector<2x32xf32>
    %294 = math.exp %293 : vector<2x32xf32>
    %cst_100 = arith.constant 1.000000e+00 : f32
    %295 = vector.broadcast %cst_100 : f32 to vector<2x32xf32>
    %296 = arith.addf %295, %294 : vector<2x32xf32>
    %297 = tpu.reciprocal %296 {approx = true} : vector<2x32xf32> -> vector<2x32xf32>
    %298 = vector.extract_strided_slice %17 {offsets = [0, 6, 0], sizes = [2, 1, 32], strides = [1, 1, 1]} : vector<2x8x32xf32> to vector<2x1x32xf32>
    %299 = vector.shape_cast %298 : vector<2x1x32xf32> to vector<2x32xf32>
    %300 = arith.addf %299, %285 : vector<2x32xf32>
    %cst_101 = arith.constant 0.000000e+00 : f32
    %301 = vector.broadcast %cst_101 : f32 to vector<2x32xf32>
    %302 = arith.subf %301, %300 : vector<2x32xf32>
    %303 = math.exp %302 : vector<2x32xf32>
    %cst_102 = arith.constant 1.000000e+00 : f32
    %304 = vector.broadcast %cst_102 : f32 to vector<2x32xf32>
    %305 = arith.addf %304, %303 : vector<2x32xf32>
    %306 = tpu.reciprocal %305 {approx = true} : vector<2x32xf32> -> vector<2x32xf32>
    %307 = vector.extract_strided_slice %25 {offsets = [0, 6, 0], sizes = [2, 1, 32], strides = [1, 1, 1]} : vector<2x8x32xf32> to vector<2x1x32xf32>
    %308 = vector.shape_cast %307 : vector<2x1x32xf32> to vector<2x32xf32>
    %309 = arith.mulf %297, %288 : vector<2x32xf32>
    %310 = arith.addf %308, %309 : vector<2x32xf32>
    %311 = math.tanh %310 : vector<2x32xf32>
    %cst_103 = arith.constant 1.000000e+00 : f32
    %312 = vector.broadcast %cst_103 : f32 to vector<2x32xf32>
    %313 = arith.subf %312, %306 : vector<2x32xf32>
    %314 = arith.mulf %313, %311 : vector<2x32xf32>
    %315 = arith.mulf %306, %274 : vector<2x32xf32>
    %316 = arith.addf %314, %315 : vector<2x32xf32>
    %317 = arith.truncf %316 : vector<2x32xf32> to vector<2x32xbf16>
    %cst_104 = arith.constant dense<0.000000e+00> : vector<2x32xf32>
    %318 = tpu.matmul %317, %27, %cst_104 {dimension_numbers = #tpu.dot_dimension_numbers<[1], [0], [0], [1], [0, 0, 1, 1], [], []>} : vector<2x32xbf16>, vector<32x32xbf16>, vector<2x32xf32> -> vector<2x32xf32>
    %319 = vector.broadcast %33 : vector<1x32xf32> to vector<2x32xf32>
    %320 = arith.addf %318, %319 : vector<2x32xf32>
    %cst_105 = arith.constant dense<0.000000e+00> : vector<2x32xf32>
    %321 = tpu.matmul %317, %29, %cst_105 {dimension_numbers = #tpu.dot_dimension_numbers<[1], [0], [0], [1], [0, 0, 1, 1], [], []>} : vector<2x32xbf16>, vector<32x32xbf16>, vector<2x32xf32> -> vector<2x32xf32>
    %322 = vector.broadcast %35 : vector<1x32xf32> to vector<2x32xf32>
    %323 = arith.addf %321, %322 : vector<2x32xf32>
    %cst_106 = arith.constant dense<0.000000e+00> : vector<2x32xf32>
    %324 = tpu.matmul %317, %31, %cst_106 {dimension_numbers = #tpu.dot_dimension_numbers<[1], [0], [0], [1], [0, 0, 1, 1], [], []>} : vector<2x32xbf16>, vector<32x32xbf16>, vector<2x32xf32> -> vector<2x32xf32>
    %325 = vector.broadcast %37 : vector<1x32xf32> to vector<2x32xf32>
    %326 = arith.addf %324, %325 : vector<2x32xf32>
    %327 = vector.extract_strided_slice %9 {offsets = [0, 7, 0], sizes = [2, 1, 32], strides = [1, 1, 1]} : vector<2x8x32xf32> to vector<2x1x32xf32>
    %328 = vector.shape_cast %327 : vector<2x1x32xf32> to vector<2x32xf32>
    %329 = arith.addf %328, %320 : vector<2x32xf32>
    %cst_107 = arith.constant 0.000000e+00 : f32
    %330 = vector.broadcast %cst_107 : f32 to vector<2x32xf32>
    %331 = arith.subf %330, %329 : vector<2x32xf32>
    %332 = math.exp %331 : vector<2x32xf32>
    %cst_108 = arith.constant 1.000000e+00 : f32
    %333 = vector.broadcast %cst_108 : f32 to vector<2x32xf32>
    %334 = arith.addf %333, %332 : vector<2x32xf32>
    %335 = tpu.reciprocal %334 {approx = true} : vector<2x32xf32> -> vector<2x32xf32>
    %336 = vector.extract_strided_slice %17 {offsets = [0, 7, 0], sizes = [2, 1, 32], strides = [1, 1, 1]} : vector<2x8x32xf32> to vector<2x1x32xf32>
    %337 = vector.shape_cast %336 : vector<2x1x32xf32> to vector<2x32xf32>
    %338 = arith.addf %337, %323 : vector<2x32xf32>
    %cst_109 = arith.constant 0.000000e+00 : f32
    %339 = vector.broadcast %cst_109 : f32 to vector<2x32xf32>
    %340 = arith.subf %339, %338 : vector<2x32xf32>
    %341 = math.exp %340 : vector<2x32xf32>
    %cst_110 = arith.constant 1.000000e+00 : f32
    %342 = vector.broadcast %cst_110 : f32 to vector<2x32xf32>
    %343 = arith.addf %342, %341 : vector<2x32xf32>
    %344 = tpu.reciprocal %343 {approx = true} : vector<2x32xf32> -> vector<2x32xf32>
    %345 = vector.extract_strided_slice %25 {offsets = [0, 7, 0], sizes = [2, 1, 32], strides = [1, 1, 1]} : vector<2x8x32xf32> to vector<2x1x32xf32>
    %346 = vector.shape_cast %345 : vector<2x1x32xf32> to vector<2x32xf32>
    %347 = arith.mulf %335, %326 : vector<2x32xf32>
    %348 = arith.addf %346, %347 : vector<2x32xf32>
    %349 = math.tanh %348 : vector<2x32xf32>
    %cst_111 = arith.constant 1.000000e+00 : f32
    %350 = vector.broadcast %cst_111 : f32 to vector<2x32xf32>
    %351 = arith.subf %350, %344 : vector<2x32xf32>
    %352 = arith.mulf %351, %349 : vector<2x32xf32>
    %353 = arith.mulf %344, %316 : vector<2x32xf32>
    %354 = arith.addf %352, %353 : vector<2x32xf32>
    %355 = arith.maximumf %316, %354 : vector<2x32xf32>
    %c0_112 = arith.constant 0 : index
    %c3 = arith.constant 3 : index
    %c0_113 = arith.constant 0 : index
    %356 = vector.load %arg27[%c0_112, %c3, %c0_113] : memref<2x4x32xf32, #tpu.memory_space<vmem>>, vector<2x1x32xf32>
    %357 = vector.shape_cast %356 : vector<2x1x32xf32> to vector<2x32xf32>
    %358 = vector.shape_cast %355 : vector<2x32xf32> to vector<2x1x32xf32>
    tpu.vector_store %arg27[%c0_112, %c3, %c0_113], %358 {strides = array<i32>} : memref<2x4x32xf32, #tpu.memory_space<vmem>>, vector<2x1x32xf32>,
    %c0_114 = arith.constant 0 : index
    %c0_115 = arith.constant 0 : index
    %c0_116 = arith.constant 0 : index
    %359 = vector.load %arg27[%c0_114, %c0_115, %c0_116] : memref<2x4x32xf32, #tpu.memory_space<vmem>>, vector<2x4x32xf32>
    %c0_117 = arith.constant 0 : index
    %c0_118 = arith.constant 0 : index
    %c0_119 = arith.constant 0 : index
    %360 = vector.load %arg0[%c0_117, %c0_118, %c0_119] : memref<2x8x32xf32, #tpu.memory_space<vmem>>, vector<2x8x32xf32>
    %c0_120 = arith.constant 0 : index
    %c0_121 = arith.constant 0 : index
    %c0_122 = arith.constant 0 : index
    %361 = vector.load %arg6[%c0_120, %c0_121, %c0_122] : memref<2x32x96xbf16, #tpu.memory_space<vmem>>, vector<1x32x96xbf16>
    %362 = vector.shape_cast %361 : vector<1x32x96xbf16> to vector<32x96xbf16>
    %c0_123 = arith.constant 0 : index
    %c0_124 = arith.constant 0 : index
    %c0_125 = arith.constant 0 : index
    %363 = vector.load %arg7[%c0_123, %c0_124, %c0_125] : memref<2x1x96xf32, #tpu.memory_space<vmem>>, vector<1x1x96xf32>
    %364 = vector.shape_cast %363 : vector<1x1x96xf32> to vector<1x96xf32>
    %c0_126 = arith.constant 0 : index
    %c0_127 = arith.constant 0 : index
    %c0_128 = arith.constant 0 : index
    %365 = vector.load %arg8[%c0_126, %c0_127, %c0_128] : memref<2x32x32xbf16, #tpu.memory_space<vmem>>, vector<1x32x32xbf16>
    %366 = vector.shape_cast %365 : vector<1x32x32xbf16> to vector<32x32xbf16>
    %c0_129 = arith.constant 0 : index
    %c0_130 = arith.constant 0 : index
    %c0_131 = arith.constant 0 : index
    %367 = vector.load %arg9[%c0_129, %c0_130, %c0_131] : memref<2x1x32xf32, #tpu.memory_space<vmem>>, vector<1x1x32xf32>
    %368 = vector.shape_cast %367 : vector<1x1x32xf32> to vector<1x32xf32>
    %cst_132 = arith.constant 8.000000e+00 : f32
    %369 = math.sqrt %cst_132 : f32
    %cst_133 = arith.constant 1.000000e+00 : f32
    %370 = arith.divf %cst_133, %369 : f32
    %371 = arith.truncf %360 : vector<2x8x32xf32> to vector<2x8x32xbf16>
    "tpu.trace_start"() <{level = 10 : i32, message = "btd,de->bte"}> : () -> ()
    %cst_134 = arith.constant dense<0.000000e+00> : vector<2x8x96xf32>
    %372 = tpu.matmul %371, %362, %cst_134 {dimension_numbers = #tpu.dot_dimension_numbers<[2], [0], [0, 1], [1], [0, 0, 0, 1, 1, 1], [], []>} : vector<2x8x32xbf16>, vector<32x96xbf16>, vector<2x8x96xf32> -> vector<2x8x96xf32>
    "tpu.trace_stop"() : () -> ()
    %373 = vector.shape_cast %364 : vector<1x96xf32> to vector<1x1x96xf32>
    %374 = vector.broadcast %373 : vector<1x1x96xf32> to vector<2x8x96xf32>
    %375 = arith.addf %372, %374 : vector<2x8x96xf32>
    %376 = vector.extract_strided_slice %375 {offsets = [0, 0, 0], sizes = [2, 8, 32], strides = [1, 1, 1]} : vector<2x8x96xf32> to vector<2x8x32xf32>
    %377 = vector.extract_strided_slice %375 {offsets = [0, 0, 32], sizes = [2, 8, 32], strides = [1, 1, 1]} : vector<2x8x96xf32> to vector<2x8x32xf32>
    %378 = vector.extract_strided_slice %375 {offsets = [0, 0, 64], sizes = [2, 8, 32], strides = [1, 1, 1]} : vector<2x8x96xf32> to vector<2x8x32xf32>
    %379 = vector.extract_strided_slice %376 {offsets = [0, 0, 0], sizes = [2, 8, 8], strides = [1, 1, 1]} : vector<2x8x32xf32> to vector<2x8x8xf32>
    %380 = arith.truncf %379 : vector<2x8x8xf32> to vector<2x8x8xbf16>
    %381 = vector.extract_strided_slice %377 {offsets = [0, 0, 0], sizes = [2, 8, 8], strides = [1, 1, 1]} : vector<2x8x32xf32> to vector<2x8x8xf32>
    %382 = arith.truncf %381 : vector<2x8x8xf32> to vector<2x8x8xbf16>
    "tpu.trace_start"() <{level = 10 : i32, message = "btk,bsk->bts"}> : () -> ()
    %cst_135 = arith.constant dense<0.000000e+00> : vector<2x8x8xf32>
    %383 = tpu.matmul %380, %382, %cst_135 {dimension_numbers = #tpu.dot_dimension_numbers<[2], [2], [1], [1], [0, 0, 0, 1, 1, 1], [0], [0]>} : vector<2x8x8xbf16>, vector<2x8x8xbf16>, vector<2x8x8xf32> -> vector<2x8x8xf32>
    "tpu.trace_stop"() : () -> ()
    %384 = vector.broadcast %370 : f32 to vector<2x8x8xf32>
    %385 = arith.mulf %383, %384 : vector<2x8x8xf32>
    %cst_136 = arith.constant dense<0xFF800000> : vector<2x8xf32>
    %386 = vector.multi_reduction <maximumf>, %385, %cst_136 [2] : vector<2x8x8xf32> to vector<2x8xf32>
    %387 = vector.shape_cast %386 : vector<2x8xf32> to vector<2x8x1xf32>
    %388 = vector.broadcast %387 : vector<2x8x1xf32> to vector<2x8x8xf32>
    %389 = arith.subf %385, %388 : vector<2x8x8xf32>
    %390 = math.exp %389 : vector<2x8x8xf32>
    %cst_137 = arith.constant dense<0.000000e+00> : vector<2x8xf32>
    %391 = vector.multi_reduction <add>, %390, %cst_137 [2] : vector<2x8x8xf32> to vector<2x8xf32>
    %392 = vector.shape_cast %391 : vector<2x8xf32> to vector<2x8x1xf32>
    %393 = tpu.reciprocal %392 {approx = true} : vector<2x8x1xf32> -> vector<2x8x1xf32>
    %394 = vector.broadcast %393 : vector<2x8x1xf32> to vector<2x8x8xf32>
    %395 = arith.mulf %390, %394 : vector<2x8x8xf32>
    %396 = arith.truncf %395 : vector<2x8x8xf32> to vector<2x8x8xbf16>
    %397 = vector.extract_strided_slice %378 {offsets = [0, 0, 0], sizes = [2, 8, 8], strides = [1, 1, 1]} : vector<2x8x32xf32> to vector<2x8x8xf32>
    %398 = arith.truncf %397 : vector<2x8x8xf32> to vector<2x8x8xbf16>
    "tpu.trace_start"() <{level = 10 : i32, message = "bts,bsk->btk"}> : () -> ()
    %cst_138 = arith.constant dense<0.000000e+00> : vector<2x8x8xf32>
    %399 = tpu.matmul %396, %398, %cst_138 {dimension_numbers = #tpu.dot_dimension_numbers<[2], [1], [1], [2], [0, 0, 0, 1, 1, 2], [0], [0]>} : vector<2x8x8xbf16>, vector<2x8x8xbf16>, vector<2x8x8xf32> -> vector<2x8x8xf32>
    "tpu.trace_stop"() : () -> ()
    %400 = vector.extract_strided_slice %376 {offsets = [0, 0, 8], sizes = [2, 8, 8], strides = [1, 1, 1]} : vector<2x8x32xf32> to vector<2x8x8xf32>
    %401 = arith.truncf %400 : vector<2x8x8xf32> to vector<2x8x8xbf16>
    %402 = vector.extract_strided_slice %377 {offsets = [0, 0, 8], sizes = [2, 8, 8], strides = [1, 1, 1]} : vector<2x8x32xf32> to vector<2x8x8xf32>
    %403 = arith.truncf %402 : vector<2x8x8xf32> to vector<2x8x8xbf16>
    "tpu.trace_start"() <{level = 10 : i32, message = "btk,bsk->bts"}> : () -> ()
    %cst_139 = arith.constant dense<0.000000e+00> : vector<2x8x8xf32>
    %404 = tpu.matmul %401, %403, %cst_139 {dimension_numbers = #tpu.dot_dimension_numbers<[2], [2], [1], [1], [0, 0, 0, 1, 1, 1], [0], [0]>} : vector<2x8x8xbf16>, vector<2x8x8xbf16>, vector<2x8x8xf32> -> vector<2x8x8xf32>
    "tpu.trace_stop"() : () -> ()
    %405 = vector.broadcast %370 : f32 to vector<2x8x8xf32>
    %406 = arith.mulf %404, %405 : vector<2x8x8xf32>
    %cst_140 = arith.constant dense<0xFF800000> : vector<2x8xf32>
    %407 = vector.multi_reduction <maximumf>, %406, %cst_140 [2] : vector<2x8x8xf32> to vector<2x8xf32>
    %408 = vector.shape_cast %407 : vector<2x8xf32> to vector<2x8x1xf32>
    %409 = vector.broadcast %408 : vector<2x8x1xf32> to vector<2x8x8xf32>
    %410 = arith.subf %406, %409 : vector<2x8x8xf32>
    %411 = math.exp %410 : vector<2x8x8xf32>
    %cst_141 = arith.constant dense<0.000000e+00> : vector<2x8xf32>
    %412 = vector.multi_reduction <add>, %411, %cst_141 [2] : vector<2x8x8xf32> to vector<2x8xf32>
    %413 = vector.shape_cast %412 : vector<2x8xf32> to vector<2x8x1xf32>
    %414 = tpu.reciprocal %413 {approx = true} : vector<2x8x1xf32> -> vector<2x8x1xf32>
    %415 = vector.broadcast %414 : vector<2x8x1xf32> to vector<2x8x8xf32>
    %416 = arith.mulf %411, %415 : vector<2x8x8xf32>
    %417 = arith.truncf %416 : vector<2x8x8xf32> to vector<2x8x8xbf16>
    %418 = vector.extract_strided_slice %378 {offsets = [0, 0, 8], sizes = [2, 8, 8], strides = [1, 1, 1]} : vector<2x8x32xf32> to vector<2x8x8xf32>
    %419 = arith.truncf %418 : vector<2x8x8xf32> to vector<2x8x8xbf16>
    "tpu.trace_start"() <{level = 10 : i32, message = "bts,bsk->btk"}> : () -> ()
    %cst_142 = arith.constant dense<0.000000e+00> : vector<2x8x8xf32>
    %420 = tpu.matmul %417, %419, %cst_142 {dimension_numbers = #tpu.dot_dimension_numbers<[2], [1], [1], [2], [0, 0, 0, 1, 1, 2], [0], [0]>} : vector<2x8x8xbf16>, vector<2x8x8xbf16>, vector<2x8x8xf32> -> vector<2x8x8xf32>
    "tpu.trace_stop"() : () -> ()
    %421 = vector.extract_strided_slice %376 {offsets = [0, 0, 16], sizes = [2, 8, 8], strides = [1, 1, 1]} : vector<2x8x32xf32> to vector<2x8x8xf32>
    %422 = arith.truncf %421 : vector<2x8x8xf32> to vector<2x8x8xbf16>
    %423 = vector.extract_strided_slice %377 {offsets = [0, 0, 16], sizes = [2, 8, 8], strides = [1, 1, 1]} : vector<2x8x32xf32> to vector<2x8x8xf32>
    %424 = arith.truncf %423 : vector<2x8x8xf32> to vector<2x8x8xbf16>
    "tpu.trace_start"() <{level = 10 : i32, message = "btk,bsk->bts"}> : () -> ()
    %cst_143 = arith.constant dense<0.000000e+00> : vector<2x8x8xf32>
    %425 = tpu.matmul %422, %424, %cst_143 {dimension_numbers = #tpu.dot_dimension_numbers<[2], [2], [1], [1], [0, 0, 0, 1, 1, 1], [0], [0]>} : vector<2x8x8xbf16>, vector<2x8x8xbf16>, vector<2x8x8xf32> -> vector<2x8x8xf32>
    "tpu.trace_stop"() : () -> ()
    %426 = vector.broadcast %370 : f32 to vector<2x8x8xf32>
    %427 = arith.mulf %425, %426 : vector<2x8x8xf32>
    %cst_144 = arith.constant dense<0xFF800000> : vector<2x8xf32>
    %428 = vector.multi_reduction <maximumf>, %427, %cst_144 [2] : vector<2x8x8xf32> to vector<2x8xf32>
    %429 = vector.shape_cast %428 : vector<2x8xf32> to vector<2x8x1xf32>
    %430 = vector.broadcast %429 : vector<2x8x1xf32> to vector<2x8x8xf32>
    %431 = arith.subf %427, %430 : vector<2x8x8xf32>
    %432 = math.exp %431 : vector<2x8x8xf32>
    %cst_145 = arith.constant dense<0.000000e+00> : vector<2x8xf32>
    %433 = vector.multi_reduction <add>, %432, %cst_145 [2] : vector<2x8x8xf32> to vector<2x8xf32>
    %434 = vector.shape_cast %433 : vector<2x8xf32> to vector<2x8x1xf32>
    %435 = tpu.reciprocal %434 {approx = true} : vector<2x8x1xf32> -> vector<2x8x1xf32>
    %436 = vector.broadcast %435 : vector<2x8x1xf32> to vector<2x8x8xf32>
    %437 = arith.mulf %432, %436 : vector<2x8x8xf32>
    %438 = arith.truncf %437 : vector<2x8x8xf32> to vector<2x8x8xbf16>
    %439 = vector.extract_strided_slice %378 {offsets = [0, 0, 16], sizes = [2, 8, 8], strides = [1, 1, 1]} : vector<2x8x32xf32> to vector<2x8x8xf32>
    %440 = arith.truncf %439 : vector<2x8x8xf32> to vector<2x8x8xbf16>
    "tpu.trace_start"() <{level = 10 : i32, message = "bts,bsk->btk"}> : () -> ()
    %cst_146 = arith.constant dense<0.000000e+00> : vector<2x8x8xf32>
    %441 = tpu.matmul %438, %440, %cst_146 {dimension_numbers = #tpu.dot_dimension_numbers<[2], [1], [1], [2], [0, 0, 0, 1, 1, 2], [0], [0]>} : vector<2x8x8xbf16>, vector<2x8x8xbf16>, vector<2x8x8xf32> -> vector<2x8x8xf32>
    "tpu.trace_stop"() : () -> ()
    %442 = vector.extract_strided_slice %376 {offsets = [0, 0, 24], sizes = [2, 8, 8], strides = [1, 1, 1]} : vector<2x8x32xf32> to vector<2x8x8xf32>
    %443 = arith.truncf %442 : vector<2x8x8xf32> to vector<2x8x8xbf16>
    %444 = vector.extract_strided_slice %377 {offsets = [0, 0, 24], sizes = [2, 8, 8], strides = [1, 1, 1]} : vector<2x8x32xf32> to vector<2x8x8xf32>
    %445 = arith.truncf %444 : vector<2x8x8xf32> to vector<2x8x8xbf16>
    "tpu.trace_start"() <{level = 10 : i32, message = "btk,bsk->bts"}> : () -> ()
    %cst_147 = arith.constant dense<0.000000e+00> : vector<2x8x8xf32>
    %446 = tpu.matmul %443, %445, %cst_147 {dimension_numbers = #tpu.dot_dimension_numbers<[2], [2], [1], [1], [0, 0, 0, 1, 1, 1], [0], [0]>} : vector<2x8x8xbf16>, vector<2x8x8xbf16>, vector<2x8x8xf32> -> vector<2x8x8xf32>
    "tpu.trace_stop"() : () -> ()
    %447 = vector.broadcast %370 : f32 to vector<2x8x8xf32>
    %448 = arith.mulf %446, %447 : vector<2x8x8xf32>
    %cst_148 = arith.constant dense<0xFF800000> : vector<2x8xf32>
    %449 = vector.multi_reduction <maximumf>, %448, %cst_148 [2] : vector<2x8x8xf32> to vector<2x8xf32>
    %450 = vector.shape_cast %449 : vector<2x8xf32> to vector<2x8x1xf32>
    %451 = vector.broadcast %450 : vector<2x8x1xf32> to vector<2x8x8xf32>
    %452 = arith.subf %448, %451 : vector<2x8x8xf32>
    %453 = math.exp %452 : vector<2x8x8xf32>
    %cst_149 = arith.constant dense<0.000000e+00> : vector<2x8xf32>
    %454 = vector.multi_reduction <add>, %453, %cst_149 [2] : vector<2x8x8xf32> to vector<2x8xf32>
    %455 = vector.shape_cast %454 : vector<2x8xf32> to vector<2x8x1xf32>
    %456 = tpu.reciprocal %455 {approx = true} : vector<2x8x1xf32> -> vector<2x8x1xf32>
    %457 = vector.broadcast %456 : vector<2x8x1xf32> to vector<2x8x8xf32>
    %458 = arith.mulf %453, %457 : vector<2x8x8xf32>
    %459 = arith.truncf %458 : vector<2x8x8xf32> to vector<2x8x8xbf16>
    %460 = vector.extract_strided_slice %378 {offsets = [0, 0, 24], sizes = [2, 8, 8], strides = [1, 1, 1]} : vector<2x8x32xf32> to vector<2x8x8xf32>
    %461 = arith.truncf %460 : vector<2x8x8xf32> to vector<2x8x8xbf16>
    "tpu.trace_start"() <{level = 10 : i32, message = "bts,bsk->btk"}> : () -> ()
    %cst_150 = arith.constant dense<0.000000e+00> : vector<2x8x8xf32>
    %462 = tpu.matmul %459, %461, %cst_150 {dimension_numbers = #tpu.dot_dimension_numbers<[2], [1], [1], [2], [0, 0, 0, 1, 1, 2], [0], [0]>} : vector<2x8x8xbf16>, vector<2x8x8xbf16>, vector<2x8x8xf32> -> vector<2x8x8xf32>
    "tpu.trace_stop"() : () -> ()
    %463 = tpu.concatenate %399, %420, %441, %462 in 2 : vector<2x8x8xf32>, vector<2x8x8xf32>, vector<2x8x8xf32>, vector<2x8x8xf32> -> vector<2x8x32xf32>
    %464 = arith.truncf %463 : vector<2x8x32xf32> to vector<2x8x32xbf16>
    "tpu.trace_start"() <{level = 10 : i32, message = "btd,de->bte"}> : () -> ()
    %cst_151 = arith.constant dense<0.000000e+00> : vector<2x8x32xf32>
    %465 = tpu.matmul %464, %366, %cst_151 {dimension_numbers = #tpu.dot_dimension_numbers<[2], [0], [0, 1], [1], [0, 0, 0, 1, 1, 1], [], []>} : vector<2x8x32xbf16>, vector<32x32xbf16>, vector<2x8x32xf32> -> vector<2x8x32xf32>
    "tpu.trace_stop"() : () -> ()
    %466 = vector.shape_cast %368 : vector<1x32xf32> to vector<1x1x32xf32>
    %467 = vector.broadcast %466 : vector<1x1x32xf32> to vector<2x8x32xf32>
    %468 = arith.addf %465, %467 : vector<2x8x32xf32>
    %469 = arith.addf %360, %468 : vector<2x8x32xf32>
    %c0_152 = arith.constant 0 : index
    %c0_153 = arith.constant 0 : index
    %c0_154 = arith.constant 0 : index
    %470 = vector.load %arg18[%c0_152, %c0_153, %c0_154] : memref<2x1x32xf32, #tpu.memory_space<vmem>>, vector<1x1x32xf32>
    %471 = vector.shape_cast %470 : vector<1x1x32xf32> to vector<1x32xf32>
    %c0_155 = arith.constant 0 : index
    %c0_156 = arith.constant 0 : index
    %c0_157 = arith.constant 0 : index
    %472 = vector.load %arg19[%c0_155, %c0_156, %c0_157] : memref<2x1x32xf32, #tpu.memory_space<vmem>>, vector<1x1x32xf32>
    %473 = vector.shape_cast %472 : vector<1x1x32xf32> to vector<1x32xf32>
    %cst_158 = arith.constant dense<0.000000e+00> : vector<2x8xf32>
    %474 = vector.multi_reduction <add>, %469, %cst_158 [2] : vector<2x8x32xf32> to vector<2x8xf32>
    %475 = vector.shape_cast %474 : vector<2x8xf32> to vector<2x8x1xf32>
    %cst_159 = arith.constant 3.200000e+01 : f32
    %476 = vector.broadcast %cst_159 : f32 to vector<2x8x1xf32>
    %477 = arith.divf %475, %476 : vector<2x8x1xf32>
    %478 = vector.broadcast %477 : vector<2x8x1xf32> to vector<2x8x32xf32>
    %479 = arith.subf %469, %478 : vector<2x8x32xf32>
    %480 = arith.mulf %479, %479 : vector<2x8x32xf32>
    %cst_160 = arith.constant dense<0.000000e+00> : vector<2x8xf32>
    %481 = vector.multi_reduction <add>, %480, %cst_160 [2] : vector<2x8x32xf32> to vector<2x8xf32>
    %482 = vector.shape_cast %481 : vector<2x8xf32> to vector<2x8x1xf32>
    %cst_161 = arith.constant 3.200000e+01 : f32
    %483 = vector.broadcast %cst_161 : f32 to vector<2x8x1xf32>
    %484 = arith.divf %482, %483 : vector<2x8x1xf32>
    %485 = vector.broadcast %477 : vector<2x8x1xf32> to vector<2x8x32xf32>
    %486 = arith.subf %469, %485 : vector<2x8x32xf32>
    %cst_162 = arith.constant 9.99999974E-6 : f32
    %487 = vector.broadcast %cst_162 : f32 to vector<2x8x1xf32>
    %488 = arith.addf %484, %487 : vector<2x8x1xf32>
    %489 = math.rsqrt %488 : vector<2x8x1xf32>
    %490 = vector.broadcast %489 : vector<2x8x1xf32> to vector<2x8x32xf32>
    %491 = arith.mulf %486, %490 : vector<2x8x32xf32>
    %492 = vector.shape_cast %471 : vector<1x32xf32> to vector<1x1x32xf32>
    %493 = vector.broadcast %492 : vector<1x1x32xf32> to vector<2x8x32xf32>
    %494 = arith.mulf %491, %493 : vector<2x8x32xf32>
    %495 = vector.shape_cast %473 : vector<1x32xf32> to vector<1x1x32xf32>
    %496 = vector.broadcast %495 : vector<1x1x32xf32> to vector<2x8x32xf32>
    %497 = arith.addf %494, %496 : vector<2x8x32xf32>
    %c0_163 = arith.constant 0 : index
    %c0_164 = arith.constant 0 : index
    %c0_165 = arith.constant 0 : index
    %498 = vector.load %arg10[%c0_163, %c0_164, %c0_165] : memref<2x32x96xbf16, #tpu.memory_space<vmem>>, vector<1x32x96xbf16>
    %499 = vector.shape_cast %498 : vector<1x32x96xbf16> to vector<32x96xbf16>
    %c0_166 = arith.constant 0 : index
    %c0_167 = arith.constant 0 : index
    %c0_168 = arith.constant 0 : index
    %500 = vector.load %arg11[%c0_166, %c0_167, %c0_168] : memref<2x1x96xf32, #tpu.memory_space<vmem>>, vector<1x1x96xf32>
    %501 = vector.shape_cast %500 : vector<1x1x96xf32> to vector<1x96xf32>
    %c0_169 = arith.constant 0 : index
    %c0_170 = arith.constant 0 : index
    %c0_171 = arith.constant 0 : index
    %502 = vector.load %arg12[%c0_169, %c0_170, %c0_171] : memref<2x32x32xbf16, #tpu.memory_space<vmem>>, vector<1x32x32xbf16>
    %503 = vector.shape_cast %502 : vector<1x32x32xbf16> to vector<32x32xbf16>
    %c0_172 = arith.constant 0 : index
    %c0_173 = arith.constant 0 : index
    %c0_174 = arith.constant 0 : index
    %504 = vector.load %arg13[%c0_172, %c0_173, %c0_174] : memref<2x1x32xf32, #tpu.memory_space<vmem>>, vector<1x1x32xf32>
    %505 = vector.shape_cast %504 : vector<1x1x32xf32> to vector<1x32xf32>
    %cst_175 = arith.constant 8.000000e+00 : f32
    %506 = math.sqrt %cst_175 : f32
    %cst_176 = arith.constant 1.000000e+00 : f32
    %507 = arith.divf %cst_176, %506 : f32
    %508 = arith.truncf %497 : vector<2x8x32xf32> to vector<2x8x32xbf16>
    %509 = vector.extract_strided_slice %499 {offsets = [0, 0], sizes = [32, 32], strides = [1, 1]} : vector<32x96xbf16> to vector<32x32xbf16>
    "tpu.trace_start"() <{level = 10 : i32, message = "btd,de->bte"}> : () -> ()
    %cst_177 = arith.constant dense<0.000000e+00> : vector<2x8x32xf32>
    %510 = tpu.matmul %508, %509, %cst_177 {dimension_numbers = #tpu.dot_dimension_numbers<[2], [0], [0, 1], [1], [0, 0, 0, 1, 1, 1], [], []>} : vector<2x8x32xbf16>, vector<32x32xbf16>, vector<2x8x32xf32> -> vector<2x8x32xf32>
    "tpu.trace_stop"() : () -> ()
    %511 = vector.extract_strided_slice %501 {offsets = [0, 0], sizes = [1, 32], strides = [1, 1]} : vector<1x96xf32> to vector<1x32xf32>
    %512 = vector.shape_cast %511 : vector<1x32xf32> to vector<1x1x32xf32>
    %513 = vector.broadcast %512 : vector<1x1x32xf32> to vector<2x8x32xf32>
    %514 = arith.addf %510, %513 : vector<2x8x32xf32>
    %515 = arith.truncf %359 : vector<2x4x32xf32> to vector<2x4x32xbf16>
    %516 = vector.extract_strided_slice %499 {offsets = [0, 32], sizes = [32, 64], strides = [1, 1]} : vector<32x96xbf16> to vector<32x64xbf16>
    "tpu.trace_start"() <{level = 10 : i32, message = "bsd,de->bse"}> : () -> ()
    %cst_178 = arith.constant dense<0.000000e+00> : vector<2x4x64xf32>
    %517 = tpu.matmul %515, %516, %cst_178 {dimension_numbers = #tpu.dot_dimension_numbers<[2], [0], [0, 1], [1], [0, 0, 0, 1, 1, 1], [], []>} : vector<2x4x32xbf16>, vector<32x64xbf16>, vector<2x4x64xf32> -> vector<2x4x64xf32>
    "tpu.trace_stop"() : () -> ()
    %518 = vector.extract_strided_slice %501 {offsets = [0, 32], sizes = [1, 64], strides = [1, 1]} : vector<1x96xf32> to vector<1x64xf32>
    %519 = vector.shape_cast %518 : vector<1x64xf32> to vector<1x1x64xf32>
    %520 = vector.broadcast %519 : vector<1x1x64xf32> to vector<2x4x64xf32>
    %521 = arith.addf %517, %520 : vector<2x4x64xf32>
    %522 = vector.extract_strided_slice %521 {offsets = [0, 0, 0], sizes = [2, 4, 32], strides = [1, 1, 1]} : vector<2x4x64xf32> to vector<2x4x32xf32>
    %523 = vector.extract_strided_slice %521 {offsets = [0, 0, 32], sizes = [2, 4, 32], strides = [1, 1, 1]} : vector<2x4x64xf32> to vector<2x4x32xf32>
    %524 = vector.extract_strided_slice %514 {offsets = [0, 0, 0], sizes = [2, 8, 8], strides = [1, 1, 1]} : vector<2x8x32xf32> to vector<2x8x8xf32>
    %525 = arith.truncf %524 : vector<2x8x8xf32> to vector<2x8x8xbf16>
    %526 = vector.extract_strided_slice %522 {offsets = [0, 0, 0], sizes = [2, 4, 8], strides = [1, 1, 1]} : vector<2x4x32xf32> to vector<2x4x8xf32>
    %527 = arith.truncf %526 : vector<2x4x8xf32> to vector<2x4x8xbf16>
    "tpu.trace_start"() <{level = 10 : i32, message = "btk,bsk->bts"}> : () -> ()
    %cst_179 = arith.constant dense<0.000000e+00> : vector<2x8x4xf32>
    %528 = tpu.matmul %525, %527, %cst_179 {dimension_numbers = #tpu.dot_dimension_numbers<[2], [2], [1], [1], [0, 0, 0, 1, 1, 1], [0], [0]>} : vector<2x8x8xbf16>, vector<2x4x8xbf16>, vector<2x8x4xf32> -> vector<2x8x4xf32>
    "tpu.trace_stop"() : () -> ()
    %529 = vector.broadcast %507 : f32 to vector<2x8x4xf32>
    %530 = arith.mulf %528, %529 : vector<2x8x4xf32>
    %cst_180 = arith.constant dense<0xFF800000> : vector<2x8xf32>
    %531 = vector.multi_reduction <maximumf>, %530, %cst_180 [2] : vector<2x8x4xf32> to vector<2x8xf32>
    %532 = vector.shape_cast %531 : vector<2x8xf32> to vector<2x8x1xf32>
    %533 = vector.broadcast %532 : vector<2x8x1xf32> to vector<2x8x4xf32>
    %534 = arith.subf %530, %533 : vector<2x8x4xf32>
    %535 = math.exp %534 : vector<2x8x4xf32>
    %cst_181 = arith.constant dense<0.000000e+00> : vector<2x8xf32>
    %536 = vector.multi_reduction <add>, %535, %cst_181 [2] : vector<2x8x4xf32> to vector<2x8xf32>
    %537 = vector.shape_cast %536 : vector<2x8xf32> to vector<2x8x1xf32>
    %538 = tpu.reciprocal %537 {approx = true} : vector<2x8x1xf32> -> vector<2x8x1xf32>
    %539 = vector.broadcast %538 : vector<2x8x1xf32> to vector<2x8x4xf32>
    %540 = arith.mulf %535, %539 : vector<2x8x4xf32>
    %541 = arith.truncf %540 : vector<2x8x4xf32> to vector<2x8x4xbf16>
    %542 = vector.extract_strided_slice %523 {offsets = [0, 0, 0], sizes = [2, 4, 8], strides = [1, 1, 1]} : vector<2x4x32xf32> to vector<2x4x8xf32>
    %543 = arith.truncf %542 : vector<2x4x8xf32> to vector<2x4x8xbf16>
    "tpu.trace_start"() <{level = 10 : i32, message = "bts,bsk->btk"}> : () -> ()
    %cst_182 = arith.constant dense<0.000000e+00> : vector<2x8x8xf32>
    %544 = tpu.matmul %541, %543, %cst_182 {dimension_numbers = #tpu.dot_dimension_numbers<[2], [1], [1], [2], [0, 0, 0, 1, 1, 2], [0], [0]>} : vector<2x8x4xbf16>, vector<2x4x8xbf16>, vector<2x8x8xf32> -> vector<2x8x8xf32>
    "tpu.trace_stop"() : () -> ()
    %545 = vector.extract_strided_slice %514 {offsets = [0, 0, 8], sizes = [2, 8, 8], strides = [1, 1, 1]} : vector<2x8x32xf32> to vector<2x8x8xf32>
    %546 = arith.truncf %545 : vector<2x8x8xf32> to vector<2x8x8xbf16>
    %547 = vector.extract_strided_slice %522 {offsets = [0, 0, 8], sizes = [2, 4, 8], strides = [1, 1, 1]} : vector<2x4x32xf32> to vector<2x4x8xf32>
    %548 = arith.truncf %547 : vector<2x4x8xf32> to vector<2x4x8xbf16>
    "tpu.trace_start"() <{level = 10 : i32, message = "btk,bsk->bts"}> : () -> ()
    %cst_183 = arith.constant dense<0.000000e+00> : vector<2x8x4xf32>
    %549 = tpu.matmul %546, %548, %cst_183 {dimension_numbers = #tpu.dot_dimension_numbers<[2], [2], [1], [1], [0, 0, 0, 1, 1, 1], [0], [0]>} : vector<2x8x8xbf16>, vector<2x4x8xbf16>, vector<2x8x4xf32> -> vector<2x8x4xf32>
    "tpu.trace_stop"() : () -> ()
    %550 = vector.broadcast %507 : f32 to vector<2x8x4xf32>
    %551 = arith.mulf %549, %550 : vector<2x8x4xf32>
    %cst_184 = arith.constant dense<0xFF800000> : vector<2x8xf32>
    %552 = vector.multi_reduction <maximumf>, %551, %cst_184 [2] : vector<2x8x4xf32> to vector<2x8xf32>
    %553 = vector.shape_cast %552 : vector<2x8xf32> to vector<2x8x1xf32>
    %554 = vector.broadcast %553 : vector<2x8x1xf32> to vector<2x8x4xf32>
    %555 = arith.subf %551, %554 : vector<2x8x4xf32>
    %556 = math.exp %555 : vector<2x8x4xf32>
    %cst_185 = arith.constant dense<0.000000e+00> : vector<2x8xf32>
    %557 = vector.multi_reduction <add>, %556, %cst_185 [2] : vector<2x8x4xf32> to vector<2x8xf32>
    %558 = vector.shape_cast %557 : vector<2x8xf32> to vector<2x8x1xf32>
    %559 = tpu.reciprocal %558 {approx = true} : vector<2x8x1xf32> -> vector<2x8x1xf32>
    %560 = vector.broadcast %559 : vector<2x8x1xf32> to vector<2x8x4xf32>
    %561 = arith.mulf %556, %560 : vector<2x8x4xf32>
    %562 = arith.truncf %561 : vector<2x8x4xf32> to vector<2x8x4xbf16>
    %563 = vector.extract_strided_slice %523 {offsets = [0, 0, 8], sizes = [2, 4, 8], strides = [1, 1, 1]} : vector<2x4x32xf32> to vector<2x4x8xf32>
    %564 = arith.truncf %563 : vector<2x4x8xf32> to vector<2x4x8xbf16>
    "tpu.trace_start"() <{level = 10 : i32, message = "bts,bsk->btk"}> : () -> ()
    %cst_186 = arith.constant dense<0.000000e+00> : vector<2x8x8xf32>
    %565 = tpu.matmul %562, %564, %cst_186 {dimension_numbers = #tpu.dot_dimension_numbers<[2], [1], [1], [2], [0, 0, 0, 1, 1, 2], [0], [0]>} : vector<2x8x4xbf16>, vector<2x4x8xbf16>, vector<2x8x8xf32> -> vector<2x8x8xf32>
    "tpu.trace_stop"() : () -> ()
    %566 = vector.extract_strided_slice %514 {offsets = [0, 0, 16], sizes = [2, 8, 8], strides = [1, 1, 1]} : vector<2x8x32xf32> to vector<2x8x8xf32>
    %567 = arith.truncf %566 : vector<2x8x8xf32> to vector<2x8x8xbf16>
    %568 = vector.extract_strided_slice %522 {offsets = [0, 0, 16], sizes = [2, 4, 8], strides = [1, 1, 1]} : vector<2x4x32xf32> to vector<2x4x8xf32>
    %569 = arith.truncf %568 : vector<2x4x8xf32> to vector<2x4x8xbf16>
    "tpu.trace_start"() <{level = 10 : i32, message = "btk,bsk->bts"}> : () -> ()
    %cst_187 = arith.constant dense<0.000000e+00> : vector<2x8x4xf32>
    %570 = tpu.matmul %567, %569, %cst_187 {dimension_numbers = #tpu.dot_dimension_numbers<[2], [2], [1], [1], [0, 0, 0, 1, 1, 1], [0], [0]>} : vector<2x8x8xbf16>, vector<2x4x8xbf16>, vector<2x8x4xf32> -> vector<2x8x4xf32>
    "tpu.trace_stop"() : () -> ()
    %571 = vector.broadcast %507 : f32 to vector<2x8x4xf32>
    %572 = arith.mulf %570, %571 : vector<2x8x4xf32>
    %cst_188 = arith.constant dense<0xFF800000> : vector<2x8xf32>
    %573 = vector.multi_reduction <maximumf>, %572, %cst_188 [2] : vector<2x8x4xf32> to vector<2x8xf32>
    %574 = vector.shape_cast %573 : vector<2x8xf32> to vector<2x8x1xf32>
    %575 = vector.broadcast %574 : vector<2x8x1xf32> to vector<2x8x4xf32>
    %576 = arith.subf %572, %575 : vector<2x8x4xf32>
    %577 = math.exp %576 : vector<2x8x4xf32>
    %cst_189 = arith.constant dense<0.000000e+00> : vector<2x8xf32>
    %578 = vector.multi_reduction <add>, %577, %cst_189 [2] : vector<2x8x4xf32> to vector<2x8xf32>
    %579 = vector.shape_cast %578 : vector<2x8xf32> to vector<2x8x1xf32>
    %580 = tpu.reciprocal %579 {approx = true} : vector<2x8x1xf32> -> vector<2x8x1xf32>
    %581 = vector.broadcast %580 : vector<2x8x1xf32> to vector<2x8x4xf32>
    %582 = arith.mulf %577, %581 : vector<2x8x4xf32>
    %583 = arith.truncf %582 : vector<2x8x4xf32> to vector<2x8x4xbf16>
    %584 = vector.extract_strided_slice %523 {offsets = [0, 0, 16], sizes = [2, 4, 8], strides = [1, 1, 1]} : vector<2x4x32xf32> to vector<2x4x8xf32>
    %585 = arith.truncf %584 : vector<2x4x8xf32> to vector<2x4x8xbf16>
    "tpu.trace_start"() <{level = 10 : i32, message = "bts,bsk->btk"}> : () -> ()
    %cst_190 = arith.constant dense<0.000000e+00> : vector<2x8x8xf32>
    %586 = tpu.matmul %583, %585, %cst_190 {dimension_numbers = #tpu.dot_dimension_numbers<[2], [1], [1], [2], [0, 0, 0, 1, 1, 2], [0], [0]>} : vector<2x8x4xbf16>, vector<2x4x8xbf16>, vector<2x8x8xf32> -> vector<2x8x8xf32>
    "tpu.trace_stop"() : () -> ()
    %587 = vector.extract_strided_slice %514 {offsets = [0, 0, 24], sizes = [2, 8, 8], strides = [1, 1, 1]} : vector<2x8x32xf32> to vector<2x8x8xf32>
    %588 = arith.truncf %587 : vector<2x8x8xf32> to vector<2x8x8xbf16>
    %589 = vector.extract_strided_slice %522 {offsets = [0, 0, 24], sizes = [2, 4, 8], strides = [1, 1, 1]} : vector<2x4x32xf32> to vector<2x4x8xf32>
    %590 = arith.truncf %589 : vector<2x4x8xf32> to vector<2x4x8xbf16>
    "tpu.trace_start"() <{level = 10 : i32, message = "btk,bsk->bts"}> : () -> ()
    %cst_191 = arith.constant dense<0.000000e+00> : vector<2x8x4xf32>
    %591 = tpu.matmul %588, %590, %cst_191 {dimension_numbers = #tpu.dot_dimension_numbers<[2], [2], [1], [1], [0, 0, 0, 1, 1, 1], [0], [0]>} : vector<2x8x8xbf16>, vector<2x4x8xbf16>, vector<2x8x4xf32> -> vector<2x8x4xf32>
    "tpu.trace_stop"() : () -> ()
    %592 = vector.broadcast %507 : f32 to vector<2x8x4xf32>
    %593 = arith.mulf %591, %592 : vector<2x8x4xf32>
    %cst_192 = arith.constant dense<0xFF800000> : vector<2x8xf32>
    %594 = vector.multi_reduction <maximumf>, %593, %cst_192 [2] : vector<2x8x4xf32> to vector<2x8xf32>
    %595 = vector.shape_cast %594 : vector<2x8xf32> to vector<2x8x1xf32>
    %596 = vector.broadcast %595 : vector<2x8x1xf32> to vector<2x8x4xf32>
    %597 = arith.subf %593, %596 : vector<2x8x4xf32>
    %598 = math.exp %597 : vector<2x8x4xf32>
    %cst_193 = arith.constant dense<0.000000e+00> : vector<2x8xf32>
    %599 = vector.multi_reduction <add>, %598, %cst_193 [2] : vector<2x8x4xf32> to vector<2x8xf32>
    %600 = vector.shape_cast %599 : vector<2x8xf32> to vector<2x8x1xf32>
    %601 = tpu.reciprocal %600 {approx = true} : vector<2x8x1xf32> -> vector<2x8x1xf32>
    %602 = vector.broadcast %601 : vector<2x8x1xf32> to vector<2x8x4xf32>
    %603 = arith.mulf %598, %602 : vector<2x8x4xf32>
    %604 = arith.truncf %603 : vector<2x8x4xf32> to vector<2x8x4xbf16>
    %605 = vector.extract_strided_slice %523 {offsets = [0, 0, 24], sizes = [2, 4, 8], strides = [1, 1, 1]} : vector<2x4x32xf32> to vector<2x4x8xf32>
    %606 = arith.truncf %605 : vector<2x4x8xf32> to vector<2x4x8xbf16>
    "tpu.trace_start"() <{level = 10 : i32, message = "bts,bsk->btk"}> : () -> ()
    %cst_194 = arith.constant dense<0.000000e+00> : vector<2x8x8xf32>
    %607 = tpu.matmul %604, %606, %cst_194 {dimension_numbers = #tpu.dot_dimension_numbers<[2], [1], [1], [2], [0, 0, 0, 1, 1, 2], [0], [0]>} : vector<2x8x4xbf16>, vector<2x4x8xbf16>, vector<2x8x8xf32> -> vector<2x8x8xf32>
    "tpu.trace_stop"() : () -> ()
    %608 = tpu.concatenate %544, %565, %586, %607 in 2 : vector<2x8x8xf32>, vector<2x8x8xf32>, vector<2x8x8xf32>, vector<2x8x8xf32> -> vector<2x8x32xf32>
    %609 = arith.truncf %608 : vector<2x8x32xf32> to vector<2x8x32xbf16>
    "tpu.trace_start"() <{level = 10 : i32, message = "btd,de->bte"}> : () -> ()
    %cst_195 = arith.constant dense<0.000000e+00> : vector<2x8x32xf32>
    %610 = tpu.matmul %609, %503, %cst_195 {dimension_numbers = #tpu.dot_dimension_numbers<[2], [0], [0, 1], [1], [0, 0, 0, 1, 1, 1], [], []>} : vector<2x8x32xbf16>, vector<32x32xbf16>, vector<2x8x32xf32> -> vector<2x8x32xf32>
    "tpu.trace_stop"() : () -> ()
    %611 = vector.shape_cast %505 : vector<1x32xf32> to vector<1x1x32xf32>
    %612 = vector.broadcast %611 : vector<1x1x32xf32> to vector<2x8x32xf32>
    %613 = arith.addf %610, %612 : vector<2x8x32xf32>
    %614 = arith.addf %497, %613 : vector<2x8x32xf32>
    %c0_196 = arith.constant 0 : index
    %c0_197 = arith.constant 0 : index
    %c0_198 = arith.constant 0 : index
    %615 = vector.load %arg20[%c0_196, %c0_197, %c0_198] : memref<2x1x32xf32, #tpu.memory_space<vmem>>, vector<1x1x32xf32>
    %616 = vector.shape_cast %615 : vector<1x1x32xf32> to vector<1x32xf32>
    %c0_199 = arith.constant 0 : index
    %c0_200 = arith.constant 0 : index
    %c0_201 = arith.constant 0 : index
    %617 = vector.load %arg21[%c0_199, %c0_200, %c0_201] : memref<2x1x32xf32, #tpu.memory_space<vmem>>, vector<1x1x32xf32>
    %618 = vector.shape_cast %617 : vector<1x1x32xf32> to vector<1x32xf32>
    %cst_202 = arith.constant dense<0.000000e+00> : vector<2x8xf32>
    %619 = vector.multi_reduction <add>, %614, %cst_202 [2] : vector<2x8x32xf32> to vector<2x8xf32>
    %620 = vector.shape_cast %619 : vector<2x8xf32> to vector<2x8x1xf32>
    %cst_203 = arith.constant 3.200000e+01 : f32
    %621 = vector.broadcast %cst_203 : f32 to vector<2x8x1xf32>
    %622 = arith.divf %620, %621 : vector<2x8x1xf32>
    %623 = vector.broadcast %622 : vector<2x8x1xf32> to vector<2x8x32xf32>
    %624 = arith.subf %614, %623 : vector<2x8x32xf32>
    %625 = arith.mulf %624, %624 : vector<2x8x32xf32>
    %cst_204 = arith.constant dense<0.000000e+00> : vector<2x8xf32>
    %626 = vector.multi_reduction <add>, %625, %cst_204 [2] : vector<2x8x32xf32> to vector<2x8xf32>
    %627 = vector.shape_cast %626 : vector<2x8xf32> to vector<2x8x1xf32>
    %cst_205 = arith.constant 3.200000e+01 : f32
    %628 = vector.broadcast %cst_205 : f32 to vector<2x8x1xf32>
    %629 = arith.divf %627, %628 : vector<2x8x1xf32>
    %630 = vector.broadcast %622 : vector<2x8x1xf32> to vector<2x8x32xf32>
    %631 = arith.subf %614, %630 : vector<2x8x32xf32>
    %cst_206 = arith.constant 9.99999974E-6 : f32
    %632 = vector.broadcast %cst_206 : f32 to vector<2x8x1xf32>
    %633 = arith.addf %629, %632 : vector<2x8x1xf32>
    %634 = math.rsqrt %633 : vector<2x8x1xf32>
    %635 = vector.broadcast %634 : vector<2x8x1xf32> to vector<2x8x32xf32>
    %636 = arith.mulf %631, %635 : vector<2x8x32xf32>
    %637 = vector.shape_cast %616 : vector<1x32xf32> to vector<1x1x32xf32>
    %638 = vector.broadcast %637 : vector<1x1x32xf32> to vector<2x8x32xf32>
    %639 = arith.mulf %636, %638 : vector<2x8x32xf32>
    %640 = vector.shape_cast %618 : vector<1x32xf32> to vector<1x1x32xf32>
    %641 = vector.broadcast %640 : vector<1x1x32xf32> to vector<2x8x32xf32>
    %642 = arith.addf %639, %641 : vector<2x8x32xf32>
    %643 = arith.truncf %642 : vector<2x8x32xf32> to vector<2x8x32xbf16>
    %c0_207 = arith.constant 0 : index
    %c0_208 = arith.constant 0 : index
    %c0_209 = arith.constant 0 : index
    %644 = vector.load %arg14[%c0_207, %c0_208, %c0_209] : memref<2x32x2048xbf16, #tpu.memory_space<vmem>>, vector<1x32x2048xbf16>
    %645 = vector.shape_cast %644 : vector<1x32x2048xbf16> to vector<32x2048xbf16>
    "tpu.trace_start"() <{level = 10 : i32, message = "btd,df->btf"}> : () -> ()
    %cst_210 = arith.constant dense<0.000000e+00> : vector<2x8x2048xf32>
    %646 = tpu.matmul %643, %645, %cst_210 {dimension_numbers = #tpu.dot_dimension_numbers<[2], [0], [0, 1], [1], [0, 0, 0, 1, 1, 1], [], []>} : vector<2x8x32xbf16>, vector<32x2048xbf16>, vector<2x8x2048xf32> -> vector<2x8x2048xf32>
    "tpu.trace_stop"() : () -> ()
    %c0_211 = arith.constant 0 : index
    %c0_212 = arith.constant 0 : index
    %c0_213 = arith.constant 0 : index
    %647 = vector.load %arg15[%c0_211, %c0_212, %c0_213] : memref<2x1x2048xf32, #tpu.memory_space<vmem>>, vector<1x1x2048xf32>
    %648 = vector.shape_cast %647 : vector<1x1x2048xf32> to vector<1x2048xf32>
    %649 = vector.shape_cast %648 : vector<1x2048xf32> to vector<1x1x2048xf32>
    %650 = vector.broadcast %649 : vector<1x1x2048xf32> to vector<2x8x2048xf32>
    %651 = arith.addf %646, %650 : vector<2x8x2048xf32>
    %cst_214 = arith.constant 0.000000e+00 : f32
    %652 = vector.broadcast %cst_214 : f32 to vector<2x8x2048xf32>
    %653 = arith.maximumf %651, %652 : vector<2x8x2048xf32>
    %654 = arith.truncf %653 : vector<2x8x2048xf32> to vector<2x8x2048xbf16>
    %c0_215 = arith.constant 0 : index
    %c0_216 = arith.constant 0 : index
    %c0_217 = arith.constant 0 : index
    %655 = vector.load %arg16[%c0_215, %c0_216, %c0_217] : memref<2x2048x32xbf16, #tpu.memory_space<vmem>>, vector<1x2048x32xbf16>
    %656 = vector.shape_cast %655 : vector<1x2048x32xbf16> to vector<2048x32xbf16>
    "tpu.trace_start"() <{level = 10 : i32, message = "btf,fd->btd"}> : () -> ()
    %cst_218 = arith.constant dense<0.000000e+00> : vector<2x8x32xf32>
    %657 = tpu.matmul %654, %656, %cst_218 {dimension_numbers = #tpu.dot_dimension_numbers<[2], [0], [0, 1], [1], [0, 0, 0, 1, 1, 1], [], []>} : vector<2x8x2048xbf16>, vector<2048x32xbf16>, vector<2x8x32xf32> -> vector<2x8x32xf32>
    "tpu.trace_stop"() : () -> ()
    %c0_219 = arith.constant 0 : index
    %c0_220 = arith.constant 0 : index
    %c0_221 = arith.constant 0 : index
    %658 = vector.load %arg17[%c0_219, %c0_220, %c0_221] : memref<2x1x32xf32, #tpu.memory_space<vmem>>, vector<1x1x32xf32>
    %659 = vector.shape_cast %658 : vector<1x1x32xf32> to vector<1x32xf32>
    %660 = vector.shape_cast %659 : vector<1x32xf32> to vector<1x1x32xf32>
    %661 = vector.broadcast %660 : vector<1x1x32xf32> to vector<2x8x32xf32>
    %662 = arith.addf %657, %661 : vector<2x8x32xf32>
    %663 = arith.addf %642, %662 : vector<2x8x32xf32>
    %c0_222 = arith.constant 0 : index
    %c0_223 = arith.constant 0 : index
    %c0_224 = arith.constant 0 : index
    %664 = vector.load %arg22[%c0_222, %c0_223, %c0_224] : memref<2x1x32xf32, #tpu.memory_space<vmem>>, vector<1x1x32xf32>
    %665 = vector.shape_cast %664 : vector<1x1x32xf32> to vector<1x32xf32>
    %c0_225 = arith.constant 0 : index
    %c0_226 = arith.constant 0 : index
    %c0_227 = arith.constant 0 : index
    %666 = vector.load %arg23[%c0_225, %c0_226, %c0_227] : memref<2x1x32xf32, #tpu.memory_space<vmem>>, vector<1x1x32xf32>
    %667 = vector.shape_cast %666 : vector<1x1x32xf32> to vector<1x32xf32>
    %cst_228 = arith.constant dense<0.000000e+00> : vector<2x8xf32>
    %668 = vector.multi_reduction <add>, %663, %cst_228 [2] : vector<2x8x32xf32> to vector<2x8xf32>
    %669 = vector.shape_cast %668 : vector<2x8xf32> to vector<2x8x1xf32>
    %cst_229 = arith.constant 3.200000e+01 : f32
    %670 = vector.broadcast %cst_229 : f32 to vector<2x8x1xf32>
    %671 = arith.divf %669, %670 : vector<2x8x1xf32>
    %672 = vector.broadcast %671 : vector<2x8x1xf32> to vector<2x8x32xf32>
    %673 = arith.subf %663, %672 : vector<2x8x32xf32>
    %674 = arith.mulf %673, %673 : vector<2x8x32xf32>
    %cst_230 = arith.constant dense<0.000000e+00> : vector<2x8xf32>
    %675 = vector.multi_reduction <add>, %674, %cst_230 [2] : vector<2x8x32xf32> to vector<2x8xf32>
    %676 = vector.shape_cast %675 : vector<2x8xf32> to vector<2x8x1xf32>
    %cst_231 = arith.constant 3.200000e+01 : f32
    %677 = vector.broadcast %cst_231 : f32 to vector<2x8x1xf32>
    %678 = arith.divf %676, %677 : vector<2x8x1xf32>
    %679 = vector.broadcast %671 : vector<2x8x1xf32> to vector<2x8x32xf32>
    %680 = arith.subf %663, %679 : vector<2x8x32xf32>
    %cst_232 = arith.constant 9.99999974E-6 : f32
    %681 = vector.broadcast %cst_232 : f32 to vector<2x8x1xf32>
    %682 = arith.addf %678, %681 : vector<2x8x1xf32>
    %683 = math.rsqrt %682 : vector<2x8x1xf32>
    %684 = vector.broadcast %683 : vector<2x8x1xf32> to vector<2x8x32xf32>
    %685 = arith.mulf %680, %684 : vector<2x8x32xf32>
    %686 = vector.shape_cast %665 : vector<1x32xf32> to vector<1x1x32xf32>
    %687 = vector.broadcast %686 : vector<1x1x32xf32> to vector<2x8x32xf32>
    %688 = arith.mulf %685, %687 : vector<2x8x32xf32>
    %689 = vector.shape_cast %667 : vector<1x32xf32> to vector<1x1x32xf32>
    %690 = vector.broadcast %689 : vector<1x1x32xf32> to vector<2x8x32xf32>
    %691 = arith.addf %688, %690 : vector<2x8x32xf32>
    %c1_233 = arith.constant 1 : index
    %c0_234 = arith.constant 0 : index
    %c0_235 = arith.constant 0 : index
    %692 = vector.load %arg6[%c1_233, %c0_234, %c0_235] : memref<2x32x96xbf16, #tpu.memory_space<vmem>>, vector<1x32x96xbf16>
    %693 = vector.shape_cast %692 : vector<1x32x96xbf16> to vector<32x96xbf16>
    %c1_236 = arith.constant 1 : index
    %c0_237 = arith.constant 0 : index
    %c0_238 = arith.constant 0 : index
    %694 = vector.load %arg7[%c1_236, %c0_237, %c0_238] : memref<2x1x96xf32, #tpu.memory_space<vmem>>, vector<1x1x96xf32>
    %695 = vector.shape_cast %694 : vector<1x1x96xf32> to vector<1x96xf32>
    %c1_239 = arith.constant 1 : index
    %c0_240 = arith.constant 0 : index
    %c0_241 = arith.constant 0 : index
    %696 = vector.load %arg8[%c1_239, %c0_240, %c0_241] : memref<2x32x32xbf16, #tpu.memory_space<vmem>>, vector<1x32x32xbf16>
    %697 = vector.shape_cast %696 : vector<1x32x32xbf16> to vector<32x32xbf16>
    %c1_242 = arith.constant 1 : index
    %c0_243 = arith.constant 0 : index
    %c0_244 = arith.constant 0 : index
    %698 = vector.load %arg9[%c1_242, %c0_243, %c0_244] : memref<2x1x32xf32, #tpu.memory_space<vmem>>, vector<1x1x32xf32>
    %699 = vector.shape_cast %698 : vector<1x1x32xf32> to vector<1x32xf32>
    %cst_245 = arith.constant 8.000000e+00 : f32
    %700 = math.sqrt %cst_245 : f32
    %cst_246 = arith.constant 1.000000e+00 : f32
    %701 = arith.divf %cst_246, %700 : f32
    %702 = arith.truncf %691 : vector<2x8x32xf32> to vector<2x8x32xbf16>
    "tpu.trace_start"() <{level = 10 : i32, message = "btd,de->bte"}> : () -> ()
    %cst_247 = arith.constant dense<0.000000e+00> : vector<2x8x96xf32>
    %703 = tpu.matmul %702, %693, %cst_247 {dimension_numbers = #tpu.dot_dimension_numbers<[2], [0], [0, 1], [1], [0, 0, 0, 1, 1, 1], [], []>} : vector<2x8x32xbf16>, vector<32x96xbf16>, vector<2x8x96xf32> -> vector<2x8x96xf32>
    "tpu.trace_stop"() : () -> ()
    %704 = vector.shape_cast %695 : vector<1x96xf32> to vector<1x1x96xf32>
    %705 = vector.broadcast %704 : vector<1x1x96xf32> to vector<2x8x96xf32>
    %706 = arith.addf %703, %705 : vector<2x8x96xf32>
    %707 = vector.extract_strided_slice %706 {offsets = [0, 0, 0], sizes = [2, 8, 32], strides = [1, 1, 1]} : vector<2x8x96xf32> to vector<2x8x32xf32>
    %708 = vector.extract_strided_slice %706 {offsets = [0, 0, 32], sizes = [2, 8, 32], strides = [1, 1, 1]} : vector<2x8x96xf32> to vector<2x8x32xf32>
    %709 = vector.extract_strided_slice %706 {offsets = [0, 0, 64], sizes = [2, 8, 32], strides = [1, 1, 1]} : vector<2x8x96xf32> to vector<2x8x32xf32>
    %710 = vector.extract_strided_slice %707 {offsets = [0, 0, 0], sizes = [2, 8, 8], strides = [1, 1, 1]} : vector<2x8x32xf32> to vector<2x8x8xf32>
    %711 = arith.truncf %710 : vector<2x8x8xf32> to vector<2x8x8xbf16>
    %712 = vector.extract_strided_slice %708 {offsets = [0, 0, 0], sizes = [2, 8, 8], strides = [1, 1, 1]} : vector<2x8x32xf32> to vector<2x8x8xf32>
    %713 = arith.truncf %712 : vector<2x8x8xf32> to vector<2x8x8xbf16>
    "tpu.trace_start"() <{level = 10 : i32, message = "btk,bsk->bts"}> : () -> ()
    %cst_248 = arith.constant dense<0.000000e+00> : vector<2x8x8xf32>
    %714 = tpu.matmul %711, %713, %cst_248 {dimension_numbers = #tpu.dot_dimension_numbers<[2], [2], [1], [1], [0, 0, 0, 1, 1, 1], [0], [0]>} : vector<2x8x8xbf16>, vector<2x8x8xbf16>, vector<2x8x8xf32> -> vector<2x8x8xf32>
    "tpu.trace_stop"() : () -> ()
    %715 = vector.broadcast %701 : f32 to vector<2x8x8xf32>
    %716 = arith.mulf %714, %715 : vector<2x8x8xf32>
    %cst_249 = arith.constant dense<0xFF800000> : vector<2x8xf32>
    %717 = vector.multi_reduction <maximumf>, %716, %cst_249 [2] : vector<2x8x8xf32> to vector<2x8xf32>
    %718 = vector.shape_cast %717 : vector<2x8xf32> to vector<2x8x1xf32>
    %719 = vector.broadcast %718 : vector<2x8x1xf32> to vector<2x8x8xf32>
    %720 = arith.subf %716, %719 : vector<2x8x8xf32>
    %721 = math.exp %720 : vector<2x8x8xf32>
    %cst_250 = arith.constant dense<0.000000e+00> : vector<2x8xf32>
    %722 = vector.multi_reduction <add>, %721, %cst_250 [2] : vector<2x8x8xf32> to vector<2x8xf32>
    %723 = vector.shape_cast %722 : vector<2x8xf32> to vector<2x8x1xf32>
    %724 = tpu.reciprocal %723 {approx = true} : vector<2x8x1xf32> -> vector<2x8x1xf32>
    %725 = vector.broadcast %724 : vector<2x8x1xf32> to vector<2x8x8xf32>
    %726 = arith.mulf %721, %725 : vector<2x8x8xf32>
    %727 = arith.truncf %726 : vector<2x8x8xf32> to vector<2x8x8xbf16>
    %728 = vector.extract_strided_slice %709 {offsets = [0, 0, 0], sizes = [2, 8, 8], strides = [1, 1, 1]} : vector<2x8x32xf32> to vector<2x8x8xf32>
    %729 = arith.truncf %728 : vector<2x8x8xf32> to vector<2x8x8xbf16>
    "tpu.trace_start"() <{level = 10 : i32, message = "bts,bsk->btk"}> : () -> ()
    %cst_251 = arith.constant dense<0.000000e+00> : vector<2x8x8xf32>
    %730 = tpu.matmul %727, %729, %cst_251 {dimension_numbers = #tpu.dot_dimension_numbers<[2], [1], [1], [2], [0, 0, 0, 1, 1, 2], [0], [0]>} : vector<2x8x8xbf16>, vector<2x8x8xbf16>, vector<2x8x8xf32> -> vector<2x8x8xf32>
    "tpu.trace_stop"() : () -> ()
    %731 = vector.extract_strided_slice %707 {offsets = [0, 0, 8], sizes = [2, 8, 8], strides = [1, 1, 1]} : vector<2x8x32xf32> to vector<2x8x8xf32>
    %732 = arith.truncf %731 : vector<2x8x8xf32> to vector<2x8x8xbf16>
    %733 = vector.extract_strided_slice %708 {offsets = [0, 0, 8], sizes = [2, 8, 8], strides = [1, 1, 1]} : vector<2x8x32xf32> to vector<2x8x8xf32>
    %734 = arith.truncf %733 : vector<2x8x8xf32> to vector<2x8x8xbf16>
    "tpu.trace_start"() <{level = 10 : i32, message = "btk,bsk->bts"}> : () -> ()
    %cst_252 = arith.constant dense<0.000000e+00> : vector<2x8x8xf32>
    %735 = tpu.matmul %732, %734, %cst_252 {dimension_numbers = #tpu.dot_dimension_numbers<[2], [2], [1], [1], [0, 0, 0, 1, 1, 1], [0], [0]>} : vector<2x8x8xbf16>, vector<2x8x8xbf16>, vector<2x8x8xf32> -> vector<2x8x8xf32>
    "tpu.trace_stop"() : () -> ()
    %736 = vector.broadcast %701 : f32 to vector<2x8x8xf32>
    %737 = arith.mulf %735, %736 : vector<2x8x8xf32>
    %cst_253 = arith.constant dense<0xFF800000> : vector<2x8xf32>
    %738 = vector.multi_reduction <maximumf>, %737, %cst_253 [2] : vector<2x8x8xf32> to vector<2x8xf32>
    %739 = vector.shape_cast %738 : vector<2x8xf32> to vector<2x8x1xf32>
    %740 = vector.broadcast %739 : vector<2x8x1xf32> to vector<2x8x8xf32>
    %741 = arith.subf %737, %740 : vector<2x8x8xf32>
    %742 = math.exp %741 : vector<2x8x8xf32>
    %cst_254 = arith.constant dense<0.000000e+00> : vector<2x8xf32>
    %743 = vector.multi_reduction <add>, %742, %cst_254 [2] : vector<2x8x8xf32> to vector<2x8xf32>
    %744 = vector.shape_cast %743 : vector<2x8xf32> to vector<2x8x1xf32>
    %745 = tpu.reciprocal %744 {approx = true} : vector<2x8x1xf32> -> vector<2x8x1xf32>
    %746 = vector.broadcast %745 : vector<2x8x1xf32> to vector<2x8x8xf32>
    %747 = arith.mulf %742, %746 : vector<2x8x8xf32>
    %748 = arith.truncf %747 : vector<2x8x8xf32> to vector<2x8x8xbf16>
    %749 = vector.extract_strided_slice %709 {offsets = [0, 0, 8], sizes = [2, 8, 8], strides = [1, 1, 1]} : vector<2x8x32xf32> to vector<2x8x8xf32>
    %750 = arith.truncf %749 : vector<2x8x8xf32> to vector<2x8x8xbf16>
    "tpu.trace_start"() <{level = 10 : i32, message = "bts,bsk->btk"}> : () -> ()
    %cst_255 = arith.constant dense<0.000000e+00> : vector<2x8x8xf32>
    %751 = tpu.matmul %748, %750, %cst_255 {dimension_numbers = #tpu.dot_dimension_numbers<[2], [1], [1], [2], [0, 0, 0, 1, 1, 2], [0], [0]>} : vector<2x8x8xbf16>, vector<2x8x8xbf16>, vector<2x8x8xf32> -> vector<2x8x8xf32>
    "tpu.trace_stop"() : () -> ()
    %752 = vector.extract_strided_slice %707 {offsets = [0, 0, 16], sizes = [2, 8, 8], strides = [1, 1, 1]} : vector<2x8x32xf32> to vector<2x8x8xf32>
    %753 = arith.truncf %752 : vector<2x8x8xf32> to vector<2x8x8xbf16>
    %754 = vector.extract_strided_slice %708 {offsets = [0, 0, 16], sizes = [2, 8, 8], strides = [1, 1, 1]} : vector<2x8x32xf32> to vector<2x8x8xf32>
    %755 = arith.truncf %754 : vector<2x8x8xf32> to vector<2x8x8xbf16>
    "tpu.trace_start"() <{level = 10 : i32, message = "btk,bsk->bts"}> : () -> ()
    %cst_256 = arith.constant dense<0.000000e+00> : vector<2x8x8xf32>
    %756 = tpu.matmul %753, %755, %cst_256 {dimension_numbers = #tpu.dot_dimension_numbers<[2], [2], [1], [1], [0, 0, 0, 1, 1, 1], [0], [0]>} : vector<2x8x8xbf16>, vector<2x8x8xbf16>, vector<2x8x8xf32> -> vector<2x8x8xf32>
    "tpu.trace_stop"() : () -> ()
    %757 = vector.broadcast %701 : f32 to vector<2x8x8xf32>
    %758 = arith.mulf %756, %757 : vector<2x8x8xf32>
    %cst_257 = arith.constant dense<0xFF800000> : vector<2x8xf32>
    %759 = vector.multi_reduction <maximumf>, %758, %cst_257 [2] : vector<2x8x8xf32> to vector<2x8xf32>
    %760 = vector.shape_cast %759 : vector<2x8xf32> to vector<2x8x1xf32>
    %761 = vector.broadcast %760 : vector<2x8x1xf32> to vector<2x8x8xf32>
    %762 = arith.subf %758, %761 : vector<2x8x8xf32>
    %763 = math.exp %762 : vector<2x8x8xf32>
    %cst_258 = arith.constant dense<0.000000e+00> : vector<2x8xf32>
    %764 = vector.multi_reduction <add>, %763, %cst_258 [2] : vector<2x8x8xf32> to vector<2x8xf32>
    %765 = vector.shape_cast %764 : vector<2x8xf32> to vector<2x8x1xf32>
    %766 = tpu.reciprocal %765 {approx = true} : vector<2x8x1xf32> -> vector<2x8x1xf32>
    %767 = vector.broadcast %766 : vector<2x8x1xf32> to vector<2x8x8xf32>
    %768 = arith.mulf %763, %767 : vector<2x8x8xf32>
    %769 = arith.truncf %768 : vector<2x8x8xf32> to vector<2x8x8xbf16>
    %770 = vector.extract_strided_slice %709 {offsets = [0, 0, 16], sizes = [2, 8, 8], strides = [1, 1, 1]} : vector<2x8x32xf32> to vector<2x8x8xf32>
    %771 = arith.truncf %770 : vector<2x8x8xf32> to vector<2x8x8xbf16>
    "tpu.trace_start"() <{level = 10 : i32, message = "bts,bsk->btk"}> : () -> ()
    %cst_259 = arith.constant dense<0.000000e+00> : vector<2x8x8xf32>
    %772 = tpu.matmul %769, %771, %cst_259 {dimension_numbers = #tpu.dot_dimension_numbers<[2], [1], [1], [2], [0, 0, 0, 1, 1, 2], [0], [0]>} : vector<2x8x8xbf16>, vector<2x8x8xbf16>, vector<2x8x8xf32> -> vector<2x8x8xf32>
    "tpu.trace_stop"() : () -> ()
    %773 = vector.extract_strided_slice %707 {offsets = [0, 0, 24], sizes = [2, 8, 8], strides = [1, 1, 1]} : vector<2x8x32xf32> to vector<2x8x8xf32>
    %774 = arith.truncf %773 : vector<2x8x8xf32> to vector<2x8x8xbf16>
    %775 = vector.extract_strided_slice %708 {offsets = [0, 0, 24], sizes = [2, 8, 8], strides = [1, 1, 1]} : vector<2x8x32xf32> to vector<2x8x8xf32>
    %776 = arith.truncf %775 : vector<2x8x8xf32> to vector<2x8x8xbf16>
    "tpu.trace_start"() <{level = 10 : i32, message = "btk,bsk->bts"}> : () -> ()
    %cst_260 = arith.constant dense<0.000000e+00> : vector<2x8x8xf32>
    %777 = tpu.matmul %774, %776, %cst_260 {dimension_numbers = #tpu.dot_dimension_numbers<[2], [2], [1], [1], [0, 0, 0, 1, 1, 1], [0], [0]>} : vector<2x8x8xbf16>, vector<2x8x8xbf16>, vector<2x8x8xf32> -> vector<2x8x8xf32>
    "tpu.trace_stop"() : () -> ()
    %778 = vector.broadcast %701 : f32 to vector<2x8x8xf32>
    %779 = arith.mulf %777, %778 : vector<2x8x8xf32>
    %cst_261 = arith.constant dense<0xFF800000> : vector<2x8xf32>
    %780 = vector.multi_reduction <maximumf>, %779, %cst_261 [2] : vector<2x8x8xf32> to vector<2x8xf32>
    %781 = vector.shape_cast %780 : vector<2x8xf32> to vector<2x8x1xf32>
    %782 = vector.broadcast %781 : vector<2x8x1xf32> to vector<2x8x8xf32>
    %783 = arith.subf %779, %782 : vector<2x8x8xf32>
    %784 = math.exp %783 : vector<2x8x8xf32>
    %cst_262 = arith.constant dense<0.000000e+00> : vector<2x8xf32>
    %785 = vector.multi_reduction <add>, %784, %cst_262 [2] : vector<2x8x8xf32> to vector<2x8xf32>
    %786 = vector.shape_cast %785 : vector<2x8xf32> to vector<2x8x1xf32>
    %787 = tpu.reciprocal %786 {approx = true} : vector<2x8x1xf32> -> vector<2x8x1xf32>
    %788 = vector.broadcast %787 : vector<2x8x1xf32> to vector<2x8x8xf32>
    %789 = arith.mulf %784, %788 : vector<2x8x8xf32>
    %790 = arith.truncf %789 : vector<2x8x8xf32> to vector<2x8x8xbf16>
    %791 = vector.extract_strided_slice %709 {offsets = [0, 0, 24], sizes = [2, 8, 8], strides = [1, 1, 1]} : vector<2x8x32xf32> to vector<2x8x8xf32>
    %792 = arith.truncf %791 : vector<2x8x8xf32> to vector<2x8x8xbf16>
    "tpu.trace_start"() <{level = 10 : i32, message = "bts,bsk->btk"}> : () -> ()
    %cst_263 = arith.constant dense<0.000000e+00> : vector<2x8x8xf32>
    %793 = tpu.matmul %790, %792, %cst_263 {dimension_numbers = #tpu.dot_dimension_numbers<[2], [1], [1], [2], [0, 0, 0, 1, 1, 2], [0], [0]>} : vector<2x8x8xbf16>, vector<2x8x8xbf16>, vector<2x8x8xf32> -> vector<2x8x8xf32>
    "tpu.trace_stop"() : () -> ()
    %794 = tpu.concatenate %730, %751, %772, %793 in 2 : vector<2x8x8xf32>, vector<2x8x8xf32>, vector<2x8x8xf32>, vector<2x8x8xf32> -> vector<2x8x32xf32>
    %795 = arith.truncf %794 : vector<2x8x32xf32> to vector<2x8x32xbf16>
    "tpu.trace_start"() <{level = 10 : i32, message = "btd,de->bte"}> : () -> ()
    %cst_264 = arith.constant dense<0.000000e+00> : vector<2x8x32xf32>
    %796 = tpu.matmul %795, %697, %cst_264 {dimension_numbers = #tpu.dot_dimension_numbers<[2], [0], [0, 1], [1], [0, 0, 0, 1, 1, 1], [], []>} : vector<2x8x32xbf16>, vector<32x32xbf16>, vector<2x8x32xf32> -> vector<2x8x32xf32>
    "tpu.trace_stop"() : () -> ()
    %797 = vector.shape_cast %699 : vector<1x32xf32> to vector<1x1x32xf32>
    %798 = vector.broadcast %797 : vector<1x1x32xf32> to vector<2x8x32xf32>
    %799 = arith.addf %796, %798 : vector<2x8x32xf32>
    %800 = arith.addf %691, %799 : vector<2x8x32xf32>
    %c1_265 = arith.constant 1 : index
    %c0_266 = arith.constant 0 : index
    %c0_267 = arith.constant 0 : index
    %801 = vector.load %arg18[%c1_265, %c0_266, %c0_267] : memref<2x1x32xf32, #tpu.memory_space<vmem>>, vector<1x1x32xf32>
    %802 = vector.shape_cast %801 : vector<1x1x32xf32> to vector<1x32xf32>
    %c1_268 = arith.constant 1 : index
    %c0_269 = arith.constant 0 : index
    %c0_270 = arith.constant 0 : index
    %803 = vector.load %arg19[%c1_268, %c0_269, %c0_270] : memref<2x1x32xf32, #tpu.memory_space<vmem>>, vector<1x1x32xf32>
    %804 = vector.shape_cast %803 : vector<1x1x32xf32> to vector<1x32xf32>
    %cst_271 = arith.constant dense<0.000000e+00> : vector<2x8xf32>
    %805 = vector.multi_reduction <add>, %800, %cst_271 [2] : vector<2x8x32xf32> to vector<2x8xf32>
    %806 = vector.shape_cast %805 : vector<2x8xf32> to vector<2x8x1xf32>
    %cst_272 = arith.constant 3.200000e+01 : f32
    %807 = vector.broadcast %cst_272 : f32 to vector<2x8x1xf32>
    %808 = arith.divf %806, %807 : vector<2x8x1xf32>
    %809 = vector.broadcast %808 : vector<2x8x1xf32> to vector<2x8x32xf32>
    %810 = arith.subf %800, %809 : vector<2x8x32xf32>
    %811 = arith.mulf %810, %810 : vector<2x8x32xf32>
    %cst_273 = arith.constant dense<0.000000e+00> : vector<2x8xf32>
    %812 = vector.multi_reduction <add>, %811, %cst_273 [2] : vector<2x8x32xf32> to vector<2x8xf32>
    %813 = vector.shape_cast %812 : vector<2x8xf32> to vector<2x8x1xf32>
    %cst_274 = arith.constant 3.200000e+01 : f32
    %814 = vector.broadcast %cst_274 : f32 to vector<2x8x1xf32>
    %815 = arith.divf %813, %814 : vector<2x8x1xf32>
    %816 = vector.broadcast %808 : vector<2x8x1xf32> to vector<2x8x32xf32>
    %817 = arith.subf %800, %816 : vector<2x8x32xf32>
    %cst_275 = arith.constant 9.99999974E-6 : f32
    %818 = vector.broadcast %cst_275 : f32 to vector<2x8x1xf32>
    %819 = arith.addf %815, %818 : vector<2x8x1xf32>
    %820 = math.rsqrt %819 : vector<2x8x1xf32>
    %821 = vector.broadcast %820 : vector<2x8x1xf32> to vector<2x8x32xf32>
    %822 = arith.mulf %817, %821 : vector<2x8x32xf32>
    %823 = vector.shape_cast %802 : vector<1x32xf32> to vector<1x1x32xf32>
    %824 = vector.broadcast %823 : vector<1x1x32xf32> to vector<2x8x32xf32>
    %825 = arith.mulf %822, %824 : vector<2x8x32xf32>
    %826 = vector.shape_cast %804 : vector<1x32xf32> to vector<1x1x32xf32>
    %827 = vector.broadcast %826 : vector<1x1x32xf32> to vector<2x8x32xf32>
    %828 = arith.addf %825, %827 : vector<2x8x32xf32>
    %c1_276 = arith.constant 1 : index
    %c0_277 = arith.constant 0 : index
    %c0_278 = arith.constant 0 : index
    %829 = vector.load %arg10[%c1_276, %c0_277, %c0_278] : memref<2x32x96xbf16, #tpu.memory_space<vmem>>, vector<1x32x96xbf16>
    %830 = vector.shape_cast %829 : vector<1x32x96xbf16> to vector<32x96xbf16>
    %c1_279 = arith.constant 1 : index
    %c0_280 = arith.constant 0 : index
    %c0_281 = arith.constant 0 : index
    %831 = vector.load %arg11[%c1_279, %c0_280, %c0_281] : memref<2x1x96xf32, #tpu.memory_space<vmem>>, vector<1x1x96xf32>
    %832 = vector.shape_cast %831 : vector<1x1x96xf32> to vector<1x96xf32>
    %c1_282 = arith.constant 1 : index
    %c0_283 = arith.constant 0 : index
    %c0_284 = arith.constant 0 : index
    %833 = vector.load %arg12[%c1_282, %c0_283, %c0_284] : memref<2x32x32xbf16, #tpu.memory_space<vmem>>, vector<1x32x32xbf16>
    %834 = vector.shape_cast %833 : vector<1x32x32xbf16> to vector<32x32xbf16>
    %c1_285 = arith.constant 1 : index
    %c0_286 = arith.constant 0 : index
    %c0_287 = arith.constant 0 : index
    %835 = vector.load %arg13[%c1_285, %c0_286, %c0_287] : memref<2x1x32xf32, #tpu.memory_space<vmem>>, vector<1x1x32xf32>
    %836 = vector.shape_cast %835 : vector<1x1x32xf32> to vector<1x32xf32>
    %cst_288 = arith.constant 8.000000e+00 : f32
    %837 = math.sqrt %cst_288 : f32
    %cst_289 = arith.constant 1.000000e+00 : f32
    %838 = arith.divf %cst_289, %837 : f32
    %839 = arith.truncf %828 : vector<2x8x32xf32> to vector<2x8x32xbf16>
    %840 = vector.extract_strided_slice %830 {offsets = [0, 0], sizes = [32, 32], strides = [1, 1]} : vector<32x96xbf16> to vector<32x32xbf16>
    "tpu.trace_start"() <{level = 10 : i32, message = "btd,de->bte"}> : () -> ()
    %cst_290 = arith.constant dense<0.000000e+00> : vector<2x8x32xf32>
    %841 = tpu.matmul %839, %840, %cst_290 {dimension_numbers = #tpu.dot_dimension_numbers<[2], [0], [0, 1], [1], [0, 0, 0, 1, 1, 1], [], []>} : vector<2x8x32xbf16>, vector<32x32xbf16>, vector<2x8x32xf32> -> vector<2x8x32xf32>
    "tpu.trace_stop"() : () -> ()
    %842 = vector.extract_strided_slice %832 {offsets = [0, 0], sizes = [1, 32], strides = [1, 1]} : vector<1x96xf32> to vector<1x32xf32>
    %843 = vector.shape_cast %842 : vector<1x32xf32> to vector<1x1x32xf32>
    %844 = vector.broadcast %843 : vector<1x1x32xf32> to vector<2x8x32xf32>
    %845 = arith.addf %841, %844 : vector<2x8x32xf32>
    %846 = arith.truncf %359 : vector<2x4x32xf32> to vector<2x4x32xbf16>
    %847 = vector.extract_strided_slice %830 {offsets = [0, 32], sizes = [32, 64], strides = [1, 1]} : vector<32x96xbf16> to vector<32x64xbf16>
    "tpu.trace_start"() <{level = 10 : i32, message = "bsd,de->bse"}> : () -> ()
    %cst_291 = arith.constant dense<0.000000e+00> : vector<2x4x64xf32>
    %848 = tpu.matmul %846, %847, %cst_291 {dimension_numbers = #tpu.dot_dimension_numbers<[2], [0], [0, 1], [1], [0, 0, 0, 1, 1, 1], [], []>} : vector<2x4x32xbf16>, vector<32x64xbf16>, vector<2x4x64xf32> -> vector<2x4x64xf32>
    "tpu.trace_stop"() : () -> ()
    %849 = vector.extract_strided_slice %832 {offsets = [0, 32], sizes = [1, 64], strides = [1, 1]} : vector<1x96xf32> to vector<1x64xf32>
    %850 = vector.shape_cast %849 : vector<1x64xf32> to vector<1x1x64xf32>
    %851 = vector.broadcast %850 : vector<1x1x64xf32> to vector<2x4x64xf32>
    %852 = arith.addf %848, %851 : vector<2x4x64xf32>
    %853 = vector.extract_strided_slice %852 {offsets = [0, 0, 0], sizes = [2, 4, 32], strides = [1, 1, 1]} : vector<2x4x64xf32> to vector<2x4x32xf32>
    %854 = vector.extract_strided_slice %852 {offsets = [0, 0, 32], sizes = [2, 4, 32], strides = [1, 1, 1]} : vector<2x4x64xf32> to vector<2x4x32xf32>
    %855 = vector.extract_strided_slice %845 {offsets = [0, 0, 0], sizes = [2, 8, 8], strides = [1, 1, 1]} : vector<2x8x32xf32> to vector<2x8x8xf32>
    %856 = arith.truncf %855 : vector<2x8x8xf32> to vector<2x8x8xbf16>
    %857 = vector.extract_strided_slice %853 {offsets = [0, 0, 0], sizes = [2, 4, 8], strides = [1, 1, 1]} : vector<2x4x32xf32> to vector<2x4x8xf32>
    %858 = arith.truncf %857 : vector<2x4x8xf32> to vector<2x4x8xbf16>
    "tpu.trace_start"() <{level = 10 : i32, message = "btk,bsk->bts"}> : () -> ()
    %cst_292 = arith.constant dense<0.000000e+00> : vector<2x8x4xf32>
    %859 = tpu.matmul %856, %858, %cst_292 {dimension_numbers = #tpu.dot_dimension_numbers<[2], [2], [1], [1], [0, 0, 0, 1, 1, 1], [0], [0]>} : vector<2x8x8xbf16>, vector<2x4x8xbf16>, vector<2x8x4xf32> -> vector<2x8x4xf32>
    "tpu.trace_stop"() : () -> ()
    %860 = vector.broadcast %838 : f32 to vector<2x8x4xf32>
    %861 = arith.mulf %859, %860 : vector<2x8x4xf32>
    %cst_293 = arith.constant dense<0xFF800000> : vector<2x8xf32>
    %862 = vector.multi_reduction <maximumf>, %861, %cst_293 [2] : vector<2x8x4xf32> to vector<2x8xf32>
    %863 = vector.shape_cast %862 : vector<2x8xf32> to vector<2x8x1xf32>
    %864 = vector.broadcast %863 : vector<2x8x1xf32> to vector<2x8x4xf32>
    %865 = arith.subf %861, %864 : vector<2x8x4xf32>
    %866 = math.exp %865 : vector<2x8x4xf32>
    %cst_294 = arith.constant dense<0.000000e+00> : vector<2x8xf32>
    %867 = vector.multi_reduction <add>, %866, %cst_294 [2] : vector<2x8x4xf32> to vector<2x8xf32>
    %868 = vector.shape_cast %867 : vector<2x8xf32> to vector<2x8x1xf32>
    %869 = tpu.reciprocal %868 {approx = true} : vector<2x8x1xf32> -> vector<2x8x1xf32>
    %870 = vector.broadcast %869 : vector<2x8x1xf32> to vector<2x8x4xf32>
    %871 = arith.mulf %866, %870 : vector<2x8x4xf32>
    %872 = arith.truncf %871 : vector<2x8x4xf32> to vector<2x8x4xbf16>
    %873 = vector.extract_strided_slice %854 {offsets = [0, 0, 0], sizes = [2, 4, 8], strides = [1, 1, 1]} : vector<2x4x32xf32> to vector<2x4x8xf32>
    %874 = arith.truncf %873 : vector<2x4x8xf32> to vector<2x4x8xbf16>
    "tpu.trace_start"() <{level = 10 : i32, message = "bts,bsk->btk"}> : () -> ()
    %cst_295 = arith.constant dense<0.000000e+00> : vector<2x8x8xf32>
    %875 = tpu.matmul %872, %874, %cst_295 {dimension_numbers = #tpu.dot_dimension_numbers<[2], [1], [1], [2], [0, 0, 0, 1, 1, 2], [0], [0]>} : vector<2x8x4xbf16>, vector<2x4x8xbf16>, vector<2x8x8xf32> -> vector<2x8x8xf32>
    "tpu.trace_stop"() : () -> ()
    %876 = vector.extract_strided_slice %845 {offsets = [0, 0, 8], sizes = [2, 8, 8], strides = [1, 1, 1]} : vector<2x8x32xf32> to vector<2x8x8xf32>
    %877 = arith.truncf %876 : vector<2x8x8xf32> to vector<2x8x8xbf16>
    %878 = vector.extract_strided_slice %853 {offsets = [0, 0, 8], sizes = [2, 4, 8], strides = [1, 1, 1]} : vector<2x4x32xf32> to vector<2x4x8xf32>
    %879 = arith.truncf %878 : vector<2x4x8xf32> to vector<2x4x8xbf16>
    "tpu.trace_start"() <{level = 10 : i32, message = "btk,bsk->bts"}> : () -> ()
    %cst_296 = arith.constant dense<0.000000e+00> : vector<2x8x4xf32>
    %880 = tpu.matmul %877, %879, %cst_296 {dimension_numbers = #tpu.dot_dimension_numbers<[2], [2], [1], [1], [0, 0, 0, 1, 1, 1], [0], [0]>} : vector<2x8x8xbf16>, vector<2x4x8xbf16>, vector<2x8x4xf32> -> vector<2x8x4xf32>
    "tpu.trace_stop"() : () -> ()
    %881 = vector.broadcast %838 : f32 to vector<2x8x4xf32>
    %882 = arith.mulf %880, %881 : vector<2x8x4xf32>
    %cst_297 = arith.constant dense<0xFF800000> : vector<2x8xf32>
    %883 = vector.multi_reduction <maximumf>, %882, %cst_297 [2] : vector<2x8x4xf32> to vector<2x8xf32>
    %884 = vector.shape_cast %883 : vector<2x8xf32> to vector<2x8x1xf32>
    %885 = vector.broadcast %884 : vector<2x8x1xf32> to vector<2x8x4xf32>
    %886 = arith.subf %882, %885 : vector<2x8x4xf32>
    %887 = math.exp %886 : vector<2x8x4xf32>
    %cst_298 = arith.constant dense<0.000000e+00> : vector<2x8xf32>
    %888 = vector.multi_reduction <add>, %887, %cst_298 [2] : vector<2x8x4xf32> to vector<2x8xf32>
    %889 = vector.shape_cast %888 : vector<2x8xf32> to vector<2x8x1xf32>
    %890 = tpu.reciprocal %889 {approx = true} : vector<2x8x1xf32> -> vector<2x8x1xf32>
    %891 = vector.broadcast %890 : vector<2x8x1xf32> to vector<2x8x4xf32>
    %892 = arith.mulf %887, %891 : vector<2x8x4xf32>
    %893 = arith.truncf %892 : vector<2x8x4xf32> to vector<2x8x4xbf16>
    %894 = vector.extract_strided_slice %854 {offsets = [0, 0, 8], sizes = [2, 4, 8], strides = [1, 1, 1]} : vector<2x4x32xf32> to vector<2x4x8xf32>
    %895 = arith.truncf %894 : vector<2x4x8xf32> to vector<2x4x8xbf16>
    "tpu.trace_start"() <{level = 10 : i32, message = "bts,bsk->btk"}> : () -> ()
    %cst_299 = arith.constant dense<0.000000e+00> : vector<2x8x8xf32>
    %896 = tpu.matmul %893, %895, %cst_299 {dimension_numbers = #tpu.dot_dimension_numbers<[2], [1], [1], [2], [0, 0, 0, 1, 1, 2], [0], [0]>} : vector<2x8x4xbf16>, vector<2x4x8xbf16>, vector<2x8x8xf32> -> vector<2x8x8xf32>
    "tpu.trace_stop"() : () -> ()
    %897 = vector.extract_strided_slice %845 {offsets = [0, 0, 16], sizes = [2, 8, 8], strides = [1, 1, 1]} : vector<2x8x32xf32> to vector<2x8x8xf32>
    %898 = arith.truncf %897 : vector<2x8x8xf32> to vector<2x8x8xbf16>
    %899 = vector.extract_strided_slice %853 {offsets = [0, 0, 16], sizes = [2, 4, 8], strides = [1, 1, 1]} : vector<2x4x32xf32> to vector<2x4x8xf32>
    %900 = arith.truncf %899 : vector<2x4x8xf32> to vector<2x4x8xbf16>
    "tpu.trace_start"() <{level = 10 : i32, message = "btk,bsk->bts"}> : () -> ()
    %cst_300 = arith.constant dense<0.000000e+00> : vector<2x8x4xf32>
    %901 = tpu.matmul %898, %900, %cst_300 {dimension_numbers = #tpu.dot_dimension_numbers<[2], [2], [1], [1], [0, 0, 0, 1, 1, 1], [0], [0]>} : vector<2x8x8xbf16>, vector<2x4x8xbf16>, vector<2x8x4xf32> -> vector<2x8x4xf32>
    "tpu.trace_stop"() : () -> ()
    %902 = vector.broadcast %838 : f32 to vector<2x8x4xf32>
    %903 = arith.mulf %901, %902 : vector<2x8x4xf32>
    %cst_301 = arith.constant dense<0xFF800000> : vector<2x8xf32>
    %904 = vector.multi_reduction <maximumf>, %903, %cst_301 [2] : vector<2x8x4xf32> to vector<2x8xf32>
    %905 = vector.shape_cast %904 : vector<2x8xf32> to vector<2x8x1xf32>
    %906 = vector.broadcast %905 : vector<2x8x1xf32> to vector<2x8x4xf32>
    %907 = arith.subf %903, %906 : vector<2x8x4xf32>
    %908 = math.exp %907 : vector<2x8x4xf32>
    %cst_302 = arith.constant dense<0.000000e+00> : vector<2x8xf32>
    %909 = vector.multi_reduction <add>, %908, %cst_302 [2] : vector<2x8x4xf32> to vector<2x8xf32>
    %910 = vector.shape_cast %909 : vector<2x8xf32> to vector<2x8x1xf32>
    %911 = tpu.reciprocal %910 {approx = true} : vector<2x8x1xf32> -> vector<2x8x1xf32>
    %912 = vector.broadcast %911 : vector<2x8x1xf32> to vector<2x8x4xf32>
    %913 = arith.mulf %908, %912 : vector<2x8x4xf32>
    %914 = arith.truncf %913 : vector<2x8x4xf32> to vector<2x8x4xbf16>
    %915 = vector.extract_strided_slice %854 {offsets = [0, 0, 16], sizes = [2, 4, 8], strides = [1, 1, 1]} : vector<2x4x32xf32> to vector<2x4x8xf32>
    %916 = arith.truncf %915 : vector<2x4x8xf32> to vector<2x4x8xbf16>
    "tpu.trace_start"() <{level = 10 : i32, message = "bts,bsk->btk"}> : () -> ()
    %cst_303 = arith.constant dense<0.000000e+00> : vector<2x8x8xf32>
    %917 = tpu.matmul %914, %916, %cst_303 {dimension_numbers = #tpu.dot_dimension_numbers<[2], [1], [1], [2], [0, 0, 0, 1, 1, 2], [0], [0]>} : vector<2x8x4xbf16>, vector<2x4x8xbf16>, vector<2x8x8xf32> -> vector<2x8x8xf32>
    "tpu.trace_stop"() : () -> ()
    %918 = vector.extract_strided_slice %845 {offsets = [0, 0, 24], sizes = [2, 8, 8], strides = [1, 1, 1]} : vector<2x8x32xf32> to vector<2x8x8xf32>
    %919 = arith.truncf %918 : vector<2x8x8xf32> to vector<2x8x8xbf16>
    %920 = vector.extract_strided_slice %853 {offsets = [0, 0, 24], sizes = [2, 4, 8], strides = [1, 1, 1]} : vector<2x4x32xf32> to vector<2x4x8xf32>
    %921 = arith.truncf %920 : vector<2x4x8xf32> to vector<2x4x8xbf16>
    "tpu.trace_start"() <{level = 10 : i32, message = "btk,bsk->bts"}> : () -> ()
    %cst_304 = arith.constant dense<0.000000e+00> : vector<2x8x4xf32>
    %922 = tpu.matmul %919, %921, %cst_304 {dimension_numbers = #tpu.dot_dimension_numbers<[2], [2], [1], [1], [0, 0, 0, 1, 1, 1], [0], [0]>} : vector<2x8x8xbf16>, vector<2x4x8xbf16>, vector<2x8x4xf32> -> vector<2x8x4xf32>
    "tpu.trace_stop"() : () -> ()
    %923 = vector.broadcast %838 : f32 to vector<2x8x4xf32>
    %924 = arith.mulf %922, %923 : vector<2x8x4xf32>
    %cst_305 = arith.constant dense<0xFF800000> : vector<2x8xf32>
    %925 = vector.multi_reduction <maximumf>, %924, %cst_305 [2] : vector<2x8x4xf32> to vector<2x8xf32>
    %926 = vector.shape_cast %925 : vector<2x8xf32> to vector<2x8x1xf32>
    %927 = vector.broadcast %926 : vector<2x8x1xf32> to vector<2x8x4xf32>
    %928 = arith.subf %924, %927 : vector<2x8x4xf32>
    %929 = math.exp %928 : vector<2x8x4xf32>
    %cst_306 = arith.constant dense<0.000000e+00> : vector<2x8xf32>
    %930 = vector.multi_reduction <add>, %929, %cst_306 [2] : vector<2x8x4xf32> to vector<2x8xf32>
    %931 = vector.shape_cast %930 : vector<2x8xf32> to vector<2x8x1xf32>
    %932 = tpu.reciprocal %931 {approx = true} : vector<2x8x1xf32> -> vector<2x8x1xf32>
    %933 = vector.broadcast %932 : vector<2x8x1xf32> to vector<2x8x4xf32>
    %934 = arith.mulf %929, %933 : vector<2x8x4xf32>
    %935 = arith.truncf %934 : vector<2x8x4xf32> to vector<2x8x4xbf16>
    %936 = vector.extract_strided_slice %854 {offsets = [0, 0, 24], sizes = [2, 4, 8], strides = [1, 1, 1]} : vector<2x4x32xf32> to vector<2x4x8xf32>
    %937 = arith.truncf %936 : vector<2x4x8xf32> to vector<2x4x8xbf16>
    "tpu.trace_start"() <{level = 10 : i32, message = "bts,bsk->btk"}> : () -> ()
    %cst_307 = arith.constant dense<0.000000e+00> : vector<2x8x8xf32>
    %938 = tpu.matmul %935, %937, %cst_307 {dimension_numbers = #tpu.dot_dimension_numbers<[2], [1], [1], [2], [0, 0, 0, 1, 1, 2], [0], [0]>} : vector<2x8x4xbf16>, vector<2x4x8xbf16>, vector<2x8x8xf32> -> vector<2x8x8xf32>
    "tpu.trace_stop"() : () -> ()
    %939 = tpu.concatenate %875, %896, %917, %938 in 2 : vector<2x8x8xf32>, vector<2x8x8xf32>, vector<2x8x8xf32>, vector<2x8x8xf32> -> vector<2x8x32xf32>
    %940 = arith.truncf %939 : vector<2x8x32xf32> to vector<2x8x32xbf16>
    "tpu.trace_start"() <{level = 10 : i32, message = "btd,de->bte"}> : () -> ()
    %cst_308 = arith.constant dense<0.000000e+00> : vector<2x8x32xf32>
    %941 = tpu.matmul %940, %834, %cst_308 {dimension_numbers = #tpu.dot_dimension_numbers<[2], [0], [0, 1], [1], [0, 0, 0, 1, 1, 1], [], []>} : vector<2x8x32xbf16>, vector<32x32xbf16>, vector<2x8x32xf32> -> vector<2x8x32xf32>
    "tpu.trace_stop"() : () -> ()
    %942 = vector.shape_cast %836 : vector<1x32xf32> to vector<1x1x32xf32>
    %943 = vector.broadcast %942 : vector<1x1x32xf32> to vector<2x8x32xf32>
    %944 = arith.addf %941, %943 : vector<2x8x32xf32>
    %945 = arith.addf %828, %944 : vector<2x8x32xf32>
    %c1_309 = arith.constant 1 : index
    %c0_310 = arith.constant 0 : index
    %c0_311 = arith.constant 0 : index
    %946 = vector.load %arg20[%c1_309, %c0_310, %c0_311] : memref<2x1x32xf32, #tpu.memory_space<vmem>>, vector<1x1x32xf32>
    %947 = vector.shape_cast %946 : vector<1x1x32xf32> to vector<1x32xf32>
    %c1_312 = arith.constant 1 : index
    %c0_313 = arith.constant 0 : index
    %c0_314 = arith.constant 0 : index
    %948 = vector.load %arg21[%c1_312, %c0_313, %c0_314] : memref<2x1x32xf32, #tpu.memory_space<vmem>>, vector<1x1x32xf32>
    %949 = vector.shape_cast %948 : vector<1x1x32xf32> to vector<1x32xf32>
    %cst_315 = arith.constant dense<0.000000e+00> : vector<2x8xf32>
    %950 = vector.multi_reduction <add>, %945, %cst_315 [2] : vector<2x8x32xf32> to vector<2x8xf32>
    %951 = vector.shape_cast %950 : vector<2x8xf32> to vector<2x8x1xf32>
    %cst_316 = arith.constant 3.200000e+01 : f32
    %952 = vector.broadcast %cst_316 : f32 to vector<2x8x1xf32>
    %953 = arith.divf %951, %952 : vector<2x8x1xf32>
    %954 = vector.broadcast %953 : vector<2x8x1xf32> to vector<2x8x32xf32>
    %955 = arith.subf %945, %954 : vector<2x8x32xf32>
    %956 = arith.mulf %955, %955 : vector<2x8x32xf32>
    %cst_317 = arith.constant dense<0.000000e+00> : vector<2x8xf32>
    %957 = vector.multi_reduction <add>, %956, %cst_317 [2] : vector<2x8x32xf32> to vector<2x8xf32>
    %958 = vector.shape_cast %957 : vector<2x8xf32> to vector<2x8x1xf32>
    %cst_318 = arith.constant 3.200000e+01 : f32
    %959 = vector.broadcast %cst_318 : f32 to vector<2x8x1xf32>
    %960 = arith.divf %958, %959 : vector<2x8x1xf32>
    %961 = vector.broadcast %953 : vector<2x8x1xf32> to vector<2x8x32xf32>
    %962 = arith.subf %945, %961 : vector<2x8x32xf32>
    %cst_319 = arith.constant 9.99999974E-6 : f32
    %963 = vector.broadcast %cst_319 : f32 to vector<2x8x1xf32>
    %964 = arith.addf %960, %963 : vector<2x8x1xf32>
    %965 = math.rsqrt %964 : vector<2x8x1xf32>
    %966 = vector.broadcast %965 : vector<2x8x1xf32> to vector<2x8x32xf32>
    %967 = arith.mulf %962, %966 : vector<2x8x32xf32>
    %968 = vector.shape_cast %947 : vector<1x32xf32> to vector<1x1x32xf32>
    %969 = vector.broadcast %968 : vector<1x1x32xf32> to vector<2x8x32xf32>
    %970 = arith.mulf %967, %969 : vector<2x8x32xf32>
    %971 = vector.shape_cast %949 : vector<1x32xf32> to vector<1x1x32xf32>
    %972 = vector.broadcast %971 : vector<1x1x32xf32> to vector<2x8x32xf32>
    %973 = arith.addf %970, %972 : vector<2x8x32xf32>
    %974 = arith.truncf %973 : vector<2x8x32xf32> to vector<2x8x32xbf16>
    %c1_320 = arith.constant 1 : index
    %c0_321 = arith.constant 0 : index
    %c0_322 = arith.constant 0 : index
    %975 = vector.load %arg14[%c1_320, %c0_321, %c0_322] : memref<2x32x2048xbf16, #tpu.memory_space<vmem>>, vector<1x32x2048xbf16>
    %976 = vector.shape_cast %975 : vector<1x32x2048xbf16> to vector<32x2048xbf16>
    "tpu.trace_start"() <{level = 10 : i32, message = "btd,df->btf"}> : () -> ()
    %cst_323 = arith.constant dense<0.000000e+00> : vector<2x8x2048xf32>
    %977 = tpu.matmul %974, %976, %cst_323 {dimension_numbers = #tpu.dot_dimension_numbers<[2], [0], [0, 1], [1], [0, 0, 0, 1, 1, 1], [], []>} : vector<2x8x32xbf16>, vector<32x2048xbf16>, vector<2x8x2048xf32> -> vector<2x8x2048xf32>
    "tpu.trace_stop"() : () -> ()
    %c1_324 = arith.constant 1 : index
    %c0_325 = arith.constant 0 : index
    %c0_326 = arith.constant 0 : index
    %978 = vector.load %arg15[%c1_324, %c0_325, %c0_326] : memref<2x1x2048xf32, #tpu.memory_space<vmem>>, vector<1x1x2048xf32>
    %979 = vector.shape_cast %978 : vector<1x1x2048xf32> to vector<1x2048xf32>
    %980 = vector.shape_cast %979 : vector<1x2048xf32> to vector<1x1x2048xf32>
    %981 = vector.broadcast %980 : vector<1x1x2048xf32> to vector<2x8x2048xf32>
    %982 = arith.addf %977, %981 : vector<2x8x2048xf32>
    %cst_327 = arith.constant 0.000000e+00 : f32
    %983 = vector.broadcast %cst_327 : f32 to vector<2x8x2048xf32>
    %984 = arith.maximumf %982, %983 : vector<2x8x2048xf32>
    %985 = arith.truncf %984 : vector<2x8x2048xf32> to vector<2x8x2048xbf16>
    %c1_328 = arith.constant 1 : index
    %c0_329 = arith.constant 0 : index
    %c0_330 = arith.constant 0 : index
    %986 = vector.load %arg16[%c1_328, %c0_329, %c0_330] : memref<2x2048x32xbf16, #tpu.memory_space<vmem>>, vector<1x2048x32xbf16>
    %987 = vector.shape_cast %986 : vector<1x2048x32xbf16> to vector<2048x32xbf16>
    "tpu.trace_start"() <{level = 10 : i32, message = "btf,fd->btd"}> : () -> ()
    %cst_331 = arith.constant dense<0.000000e+00> : vector<2x8x32xf32>
    %988 = tpu.matmul %985, %987, %cst_331 {dimension_numbers = #tpu.dot_dimension_numbers<[2], [0], [0, 1], [1], [0, 0, 0, 1, 1, 1], [], []>} : vector<2x8x2048xbf16>, vector<2048x32xbf16>, vector<2x8x32xf32> -> vector<2x8x32xf32>
    "tpu.trace_stop"() : () -> ()
    %c1_332 = arith.constant 1 : index
    %c0_333 = arith.constant 0 : index
    %c0_334 = arith.constant 0 : index
    %989 = vector.load %arg17[%c1_332, %c0_333, %c0_334] : memref<2x1x32xf32, #tpu.memory_space<vmem>>, vector<1x1x32xf32>
    %990 = vector.shape_cast %989 : vector<1x1x32xf32> to vector<1x32xf32>
    %991 = vector.shape_cast %990 : vector<1x32xf32> to vector<1x1x32xf32>
    %992 = vector.broadcast %991 : vector<1x1x32xf32> to vector<2x8x32xf32>
    %993 = arith.addf %988, %992 : vector<2x8x32xf32>
    %994 = arith.addf %973, %993 : vector<2x8x32xf32>
    %c1_335 = arith.constant 1 : index
    %c0_336 = arith.constant 0 : index
    %c0_337 = arith.constant 0 : index
    %995 = vector.load %arg22[%c1_335, %c0_336, %c0_337] : memref<2x1x32xf32, #tpu.memory_space<vmem>>, vector<1x1x32xf32>
    %996 = vector.shape_cast %995 : vector<1x1x32xf32> to vector<1x32xf32>
    %c1_338 = arith.constant 1 : index
    %c0_339 = arith.constant 0 : index
    %c0_340 = arith.constant 0 : index
    %997 = vector.load %arg23[%c1_338, %c0_339, %c0_340] : memref<2x1x32xf32, #tpu.memory_space<vmem>>, vector<1x1x32xf32>
    %998 = vector.shape_cast %997 : vector<1x1x32xf32> to vector<1x32xf32>
    %cst_341 = arith.constant dense<0.000000e+00> : vector<2x8xf32>
    %999 = vector.multi_reduction <add>, %994, %cst_341 [2] : vector<2x8x32xf32> to vector<2x8xf32>
    %1000 = vector.shape_cast %999 : vector<2x8xf32> to vector<2x8x1xf32>
    %cst_342 = arith.constant 3.200000e+01 : f32
    %1001 = vector.broadcast %cst_342 : f32 to vector<2x8x1xf32>
    %1002 = arith.divf %1000, %1001 : vector<2x8x1xf32>
    %1003 = vector.broadcast %1002 : vector<2x8x1xf32> to vector<2x8x32xf32>
    %1004 = arith.subf %994, %1003 : vector<2x8x32xf32>
    %1005 = arith.mulf %1004, %1004 : vector<2x8x32xf32>
    %cst_343 = arith.constant dense<0.000000e+00> : vector<2x8xf32>
    %1006 = vector.multi_reduction <add>, %1005, %cst_343 [2] : vector<2x8x32xf32> to vector<2x8xf32>
    %1007 = vector.shape_cast %1006 : vector<2x8xf32> to vector<2x8x1xf32>
    %cst_344 = arith.constant 3.200000e+01 : f32
    %1008 = vector.broadcast %cst_344 : f32 to vector<2x8x1xf32>
    %1009 = arith.divf %1007, %1008 : vector<2x8x1xf32>
    %1010 = vector.broadcast %1002 : vector<2x8x1xf32> to vector<2x8x32xf32>
    %1011 = arith.subf %994, %1010 : vector<2x8x32xf32>
    %cst_345 = arith.constant 9.99999974E-6 : f32
    %1012 = vector.broadcast %cst_345 : f32 to vector<2x8x1xf32>
    %1013 = arith.addf %1009, %1012 : vector<2x8x1xf32>
    %1014 = math.rsqrt %1013 : vector<2x8x1xf32>
    %1015 = vector.broadcast %1014 : vector<2x8x1xf32> to vector<2x8x32xf32>
    %1016 = arith.mulf %1011, %1015 : vector<2x8x32xf32>
    %1017 = vector.shape_cast %996 : vector<1x32xf32> to vector<1x1x32xf32>
    %1018 = vector.broadcast %1017 : vector<1x1x32xf32> to vector<2x8x32xf32>
    %1019 = arith.mulf %1016, %1018 : vector<2x8x32xf32>
    %1020 = vector.shape_cast %998 : vector<1x32xf32> to vector<1x1x32xf32>
    %1021 = vector.broadcast %1020 : vector<1x1x32xf32> to vector<2x8x32xf32>
    %1022 = arith.addf %1019, %1021 : vector<2x8x32xf32>
    %1023 = arith.truncf %1022 : vector<2x8x32xf32> to vector<2x8x32xbf16>
    %c0_346 = arith.constant 0 : index
    %c0_347 = arith.constant 0 : index
    %1024 = vector.load %arg24[%c0_346, %c0_347] : memref<32x128xbf16, #tpu.memory_space<vmem>>, vector<32x128xbf16>
    "tpu.trace_start"() <{level = 10 : i32, message = "btd,dv->btv"}> : () -> ()
    %cst_348 = arith.constant dense<0.000000e+00> : vector<2x8x128xf32>
    %1025 = tpu.matmul %1023, %1024, %cst_348 {dimension_numbers = #tpu.dot_dimension_numbers<[2], [0], [0, 1], [1], [0, 0, 0, 1, 1, 1], [], []>} : vector<2x8x32xbf16>, vector<32x128xbf16>, vector<2x8x128xf32> -> vector<2x8x128xf32>
    "tpu.trace_stop"() : () -> ()
    %c0_349 = arith.constant 0 : index
    %c0_350 = arith.constant 0 : index
    %1026 = vector.load %arg25[%c0_349, %c0_350] : memref<1x128xf32, #tpu.memory_space<vmem>>, vector<1x128xf32>
    %1027 = vector.shape_cast %1026 : vector<1x128xf32> to vector<1x1x128xf32>
    %1028 = vector.broadcast %1027 : vector<1x1x128xf32> to vector<2x8x128xf32>
    %1029 = arith.addf %1025, %1028 : vector<2x8x128xf32>
    %c0_351 = arith.constant 0 : index
    %c0_352 = arith.constant 0 : index
    %c0_353 = arith.constant 0 : index
    %1030 = vector.load %arg26[%c0_351, %c0_352, %c0_353] : memref<2x8x128xf32, #tpu.memory_space<vmem>>, vector<2x8x128xf32>
    tpu.vector_store %arg26[%c0_351, %c0_352, %c0_353], %1029 {strides = array<i32>} : memref<2x8x128xf32, #tpu.memory_space<vmem>>, vector<2x8x128xf32>,
    return
  }
}

</mosaic_0001>

<bundles_post_ra>
// kernel: forward.1
= control target key start
LH: loop header
LB: loop body
LE: loop exit
PB: predicated region body
PF: predicated region fallthrough
CT: control target
= control target key end

     0   :  { %s16623_s0 = inlined_call_operand.vmem [shape: f32[2,8,32], index: 0, kind: input, shape index: {}]   ;;  %s16624_s1 = inlined_call_operand.vmem [shape: f32[2,8,16], index: 1, kind: input, shape index: {}]   ;;  %s16625_s2 = inlined_call_operand.vmem [shape: bf16[3,16,32], index: 2, kind: input, shape index: {}]   ;;  %s16626_s3 = inlined_call_operand.vmem [shape: bf16[3,32,32], index: 3, kind: input, shape index: {}]   ;;  %s16627_s4 = inlined_call_operand.vmem [shape: f32[3,1,32], index: 4, kind: input, shape index: {}]   ;;  %s16628_s5 = inlined_call_operand.vmem [shape: f32[3,1,32], index: 5, kind: input, shape index: {}]   ;;  %s16629_s6 = inlined_call_operand.vmem [shape: bf16[2,32,96], index: 6, kind: input, shape index: {}]   ;;  %s16630_s7 = inlined_call_operand.vmem [shape: f32[2,1,96], index: 7, kind: input, shape index: {}]   ;;  %s16631_s8 = inlined_call_operand.vmem [shape: bf16[2,32,32], index: 8, kind: input, shape index: {}]   ;;  %s16632_s9 = inlined_call_operand.vmem [shape: f32[2,1,32], index: 9, kind: input, shape index: {}]   ;;  %s16633_s10 = inlined_call_operand.vmem [shape: bf16[2,32,96], index: 10, kind: input, shape index: {}]   ;;  %s16634_s11 = inlined_call_operand.vmem [shape: f32[2,1,96], index: 11, kind: input, shape index: {}]   ;;  %s16635_s12 = inlined_call_operand.vmem [shape: bf16[2,32,32], index: 12, kind: input, shape index: {}]   ;;  %s16636_s13 = inlined_call_operand.vmem [shape: f32[2,1,32], index: 13, kind: input, shape index: {}]   ;;  %s16637_s14 = inlined_call_operand.vmem [shape: bf16[2,32,2048], index: 14, kind: input, shape index: {}]   ;;  %s16638_s15 = inlined_call_operand.vmem [shape: f32[2,1,2048], index: 15, kind: input, shape index: {}]   ;;  %s16639_s16 = inlined_call_operand.vmem [shape: bf16[2,2048,32], index: 16, kind: input, shape index: {}]   ;;  %s16640_s17 = inlined_call_operand.vmem [shape: f32[2,1,32], index: 17, kind: input, shape index: {}]   ;;  %s16641_s18 = inlined_call_operand.vmem [shape: f32[2,1,32], index: 18, kind: input, shape index: {}]   ;;  %s16642_s19 = inlined_call_operand.vmem [shape: f32[2,1,32], index: 19, kind: input, shape index: {}]   ;;  %s16643_s20 = inlined_call_operand.vmem [shape: f32[2,1,32], index: 20, kind: input, shape index: {}]   ;;  %s16644_s21 = inlined_call_operand.vmem [shape: f32[2,1,32], index: 21, kind: input, shape index: {}]   ;;  %s16645_s22 = inlined_call_operand.vmem [shape: f32[2,1,32], index: 22, kind: input, shape index: {}]   ;;  %s16646_s23 = inlined_call_operand.vmem [shape: f32[2,1,32], index: 23, kind: input, shape index: {}]   ;;  %s16647_s24 = inlined_call_operand.vmem [shape: bf16[32,128], index: 24, kind: input, shape index: {}]   ;;  %s16648_s25 = inlined_call_operand.vmem [shape: f32[1,128], index: 25, kind: input, shape index: {}]   ;;  %s16649_s26 = inlined_call_operand.hbm [shape: f32[2,8,128], index: 26, kind: output, shape index: {}]  }
   0x1   :  { %16691 = sst [smem:[#allocation6_spill]] %s16623_s0 }
   0x2   :  { %16692 = sst [smem:[#allocation7_spill]] %s16624_s1 }
   0x3   :  { %16693 = sst [smem:[#allocation8_spill]] %s16625_s2 }
   0x4   :  { %16694 = sst [smem:[#allocation9_spill]] %s16626_s3 }
   0x5   :  { %16695 = sst [smem:[#allocation10_spill]] %s16627_s4 }
   0x6   :  { %16696 = sst [smem:[#allocation11_spill]] %s16628_s5 }
   0x7   :  { %16697 = sst [smem:[#allocation12_spill]] %s16629_s6 }
   0x8   :  { %16698 = sst [smem:[#allocation13_spill]] %s16630_s7 }
   0x9   :  { %16699 = sst [smem:[#allocation14_spill]] %s16631_s8 }
   0xa   :  { %16700 = sst [smem:[#allocation15_spill]] %s16632_s9 }
   0xb   :  { %16701 = sst [smem:[#allocation16_spill]] %s16633_s10 }
   0xc   :  { %16702 = sst [smem:[#allocation17_spill]] %s16636_s13 }
   0xd   :  { %16703 = sst [smem:[#allocation18_spill]] %s16647_s24 }
   0xe   :  { %16704 = sst [smem:[#allocation19_spill]] %s16648_s25 }
   0xf   :  { %16705 = sst [smem:[#allocation20_spill]] %s16649_s26 }
  0x10   :  { %s16706_s7 = sld [smem:[#allocation8_spill]]  ;;  %v13868_v1 = vmov 0.0   ;;  %vm13869_vm0 = vmmov 0   ;;  %vm109_vm1 = vcmask 130048   ;;  %v13870_v12 = vmov 0  }
  0x11   :  { %12478 = vmatprep.subr.bf16.mxu0 %v13868_v1  ;;  %12484 = vmatprep.subr.bf16.mxu1 %v13868_v1  ;;  %s16707_s0 = sld [smem:[#allocation7_spill]] }
  0x12   :  { %12480 = vmatprep.mubr.msk.bf16.mxu0 %vm13869_vm0, %v13868_v1  ;;  %12486 = vmatprep.mubr.msk.bf16.mxu1 %vm13869_vm0, %v13868_v1  ;;  %s16708_s10 = sld [smem:[#allocation9_spill]] }
  0x16   :  { %v13240_v0 = vld [vmem:[%s16706_s7] sm:$0xff]   ;;  %v13241_v2 = vld [vmem:[%s16706_s7 + $0x8] sm:$0xff]   ;;  %v13243_v7 = vld [vmem:[%s16706_s7 + $0x10] sm:$0xff]  }
  0x17   :  { %12479 = vmatpush3.bf16.msra.mxu0 %v13240_v0  ;;  %v85_v3 = vld [vmem:[%s16707_s0] sm:$0xff]  ;;  %v86_v4 = vld [vmem:[%s16707_s0 + $0x8] sm:$0xff]  ;;  %12485 = vmatpush3.bf16.msra.mxu1 %v13241_v2 }
  0x18   :  { %v11843_v5 = vpack.c.bf16 %v86_v4, %v85_v3  ;;  %v13242_v6 = vld [vmem:[%s16708_s10 + $0x8] sm:$0xff]   ;;  %12496 = vmatprep.subr.bf16.mxu1 %v13868_v1  ;;  %12490 = vmatprep.subr.bf16.mxu0 %v13868_v1  ;;  %v13244_v8 = vld [vmem:[%s16708_s10] sm:$0xff]   ;;  %v13245_v9 = vld [vmem:[%s16708_s10 + $0x18] sm:$0xff]  }
  0x19   :  { %v13247_v10 = vld [vmem:[%s16708_s10 + $0x28] sm:$0xff]   ;;  %v13246_v11 = vld [vmem:[%s16708_s10 + $0x10] sm:$0xff]   ;;  %v13248_v13 = vld [vmem:[%s16708_s10 + $0x20] sm:$0xff]  }
  0x1a   :  { %12481 = vmatmul.mubr.msk.bf16.vlgmr.msra.gmra.mxu0 %vm109_vm1, %v11843_v5  ;;  %12487 = vmatmul.mubr.msk.bf16.vlgmr.msra.gmra.mxu1 %vm109_vm1, %v11843_v5 }
  0x1b   :  { %12491 = vmatpush3.bf16.msra.mxu0 %v13243_v7  ;;  %12497 = vmatpush3.bf16.msra.mxu1 %v13242_v6 }
  0x1c   :  { %12492 = vmatprep.mubr.msk.bf16.mxu0 %vm13869_vm0, %v13868_v1  ;;  %12498 = vmatprep.subr.bf16.mxu1 %v13868_v1 }
  0x1d   :  { %12500 = vmatprep.mubr.msk.bf16.mxu1 %vm13869_vm0, %v13868_v1  ;;  %12504 = vmatprep.subr.bf16.mxu0 %v13868_v1 }
  0x1f   :  { %12499 = vmatpush3.bf16.msra.mxu1 %v13244_v8 }
  0x20   :  { %12512 = vmatprep.subr.bf16.mxu1 %v13868_v1 }
  0x22   :  { %12493 = vmatmul.mubr.msk.bf16.vlgmr.msra.gmra.mxu0 %vm109_vm1, %v11843_v5  ;;  %12501 = vmatmul.mubr.bf16.vlgmr.msra.gmra.mxu1 %v13870_v12 }
  0x23   :  { %12505 = vmatpush3.bf16.msra.mxu0 %v13245_v9  ;;  %12508 = vmatprep.mubr.msk.bf16.mxu0 %vm13869_vm0, %v13868_v1 }
  0x24   :  { %12506 = vmatprep.subr.bf16.mxu0 %v13868_v1  ;;  %12513 = vmatpush3.bf16.msra.mxu1 %v13247_v10 }
  0x25   :  { %12516 = vmatprep.mubr.msk.bf16.mxu1 %vm13869_vm0, %v13868_v1  ;;  %12514 = vmatprep.subr.bf16.mxu1 %v13868_v1 }
  0x27   :  { %12507 = vmatpush3.bf16.msra.mxu0 %v13246_v11 }
  0x28   :  { %12520 = vmatprep.subr.bf16.mxu0 %v13868_v1  ;;  %12515 = vmatpush3.bf16.msra.mxu1 %v13248_v13 }
  0x29   :  { %12528 = vmatprep.subr.bf16.mxu1 %v13868_v1 }
  0x2a   :  { %12509 = vmatmul.mubr.bf16.vlgmr.msra.gmra.mxu0 %v13870_v12 }
  0x2b   :  { %12521 = vmatpush3.bf16.msra.mxu0 %v13242_v6  ;;  %12524 = vmatprep.mubr.msk.bf16.mxu0 %vm13869_vm0, %v13868_v1 }
  0x2c   :  { %12517 = vmatmul.mubr.bf16.vlgmr.msra.gmra.mxu1 %v13870_v12  ;;  %12522 = vmatprep.subr.bf16.mxu0 %v13868_v1 }
  0x2d   :  { %12529 = vmatpush3.bf16.msra.mxu1 %v13245_v9  ;;  %12532 = vmatprep.mubr.msk.bf16.mxu1 %vm13869_vm0, %v13868_v1 }
  0x2e   :  { %12530 = vmatprep.subr.bf16.mxu1 %v13868_v1 }
  0x2f   :  { %12523 = vmatpush3.bf16.msra.mxu0 %v13244_v8 }
  0x30   :  { %12536 = vmatprep.subr.bf16.mxu0 %v13868_v1 }
  0x31   :  { %12531 = vmatpush3.bf16.msra.mxu1 %v13246_v11 }
  0x32   :  { %12544 = vmatprep.subr.bf16.mxu1 %v13868_v1 }
  0x33   :  { %31 = vsyncpa [#allocation4], 0  ;;  %s16709_s6 = sld [smem:[#allocation10_spill]]  ;;  %vm524_vm2 = vcmask 1041409   ;;  %vm307_vm3 = vcmask 261120   ;;  %vm714_vm4 = vcmask 253952  }
  0x34   :  { %s16710_s3 = sld [smem:[#allocation11_spill]]  ;;  %vm1106_vm5 = vcmask 256002   ;;  %vm1499_vm6 = vcmask 258052   ;;  %s16687_s8 = smov 96   ;;  %vm1892_vm7 = vcmask 260102   ;;  %vm1983_vm8 = vcmask 64512  }
  0x35   :  { %s16711_s28 = sld [smem:[#allocation12_spill]]  ;;  %s16667_s4 = smov 64   ;;  %vm2110_vm9 = vcmask 1043456   ;;  %vm2896_vm10 = vcmask 195584   ;;  %vm3260_vm11 = vcmask 31744   ;;  %vm3291_vm12 = vcmask 1041408  }
  0x36   :  { %s16712_s2 = sld [smem:[#allocation6_spill]]  ;;  %s16685_s29 = smov 88  }
  0x37   :  { %s16713_s7 = sld [smem:[#allocation13_spill]]  ;;  %s16683_s0 = smov 120  }
  0x38   :  { %s16665_s9 = smov 56   ;;  %s16681_s30 = smov 80  }
  0x39   :  { %v10974_v21 = vld [vmem:[%s16709_s6] ss:$0 sm:$0xff]  ;;  %v10981_v35 = vld [vmem:[%s16709_s6 + $0x1] ss:$0 sm:$0xff]  ;;  %v10987_v8 = vld [vmem:[%s16709_s6 + $0x2] ss:$0 sm:$0xff] }
  0x3a   :  { %v14099_v23 = vld [vmem:[%s16710_s3] ss:$0 sm:$0xff]  ;;  %v14114_v39 = vld [vmem:[%s16710_s3 + $0x1] ss:$0 sm:$0xff]  ;;  %v14126_v3 = vld [vmem:[%s16710_s3 + $0x2] ss:$0 sm:$0xff] }
  0x3b   :  { %s16663_s5 = smov 48   ;;  %s16675_s6 = smov 72  }
  0x3c   :  { %s16677_s1 = smov 104   ;;  %s16661_s27 = smov 40  }
  0x3d   :  { %s16721_s24 = smov 96   ;;  %s16725_s25 = smov 56  }
  0x3e   :  { %s16726_s26 = smov 80  }
  0xda   :  { %v147_v14 = vpop.f32.mrf.mxu0  ;;  %v205_v15 = vpop.f32.mrf.mxu1 }
  0xdb   :  { %v14101_v26 = vadd.f32 %v10974_v21, %v147_v14  ;;  %v14116_v44 = vadd.f32 %v10981_v35, %v205_v15 }
  0xdc   :  { %v12482_v16 = vpop.f32.mrf.mxu0  ;;  %v12488_v17 = vpop.f32.mrf.mxu1 }
  0xde   :  { %v150_v18 = vpop.f32.mrf.mxu0  ;;  %v208_v19 = vpop.f32.mrf.mxu1 }
  0xdf   :  { %v14104_v30 = vadd.f32 %v10974_v21, %v150_v18  ;;  %v14119_v49 = vadd.f32 %v10981_v35, %v208_v19 }
  0xe0   :  { %v12483_v20 = vpop.f32.mrf.mxu0  ;;  %v12489_v22 = vpop.f32.mrf.mxu1 }
  0xe2   :  { %v263_v24 = vpop.f32.mrf.mxu0  ;;  %v345_v25 = vpop.f32.mrf.mxu1 }
  0xe3   :  { %v346_v27 = vadd.f32 %v14099_v23, %v345_v25  ;;  %v14132_v13 = vadd.f32 %v10987_v8, %v263_v24 }
  0xe4   :  { %v12494_v28 = vpop.f32.mrf.mxu0  ;;  %v12502_v29 = vpop.f32.mrf.mxu1 }
  0xe5   :  { %v468_v31 = vrot.slane %v346_v27, 1  ;;  %v471_v32 = vadd.f32 %v346_v27, %v14101_v26 }
  0xe6   :  { %v266_v33 = vpop.f32.mrf.mxu0  ;;  %v348_v34 = vpop.f32.mrf.mxu1 }
  0xe7   :  { %v472_v36 = vadd.f32 %v468_v31, %v14104_v30  ;;  %v473_v37 = vsub.f32 0.0, %v471_v32  ;;  %v14134_v16 = vadd.f32 %v10987_v8, %v266_v33 }
  0xe8   :  { %v12495_v38 = vpop.f32.mrf.mxu0  ;;  %v12503_v40 = vpop.f32.mrf.mxu1 }
  0xe9   :  { %v474_v41 = vsub.f32 0.0, %v472_v36  ;;  %v475_v42 = vmul.f32 1.442695, %v473_v37 }
  0xea   :  { %v403_v43 = vpop.f32.mrf.mxu0 }
  0xeb   :  { %v404_v45 = vadd.f32 %v14114_v39, %v403_v43  ;;  %13523 = vpow2.f32 %v475_v42  ;;  %v477_v46 = vmul.f32 1.442695, %v474_v41  ;;  %v14152_v43 = vld [vmem:[%s16708_s10 + $0x28] sm:$0xff]  }
  0xec   :  { %v12510_v47 = vpop.f32.mrf.mxu0  ;;  %v461_v48 = vpop.f32.mrf.mxu1 }
  0xed   :  { %v484_v50 = vrot.slane %v404_v45, 1  ;;  %v487_v51 = vadd.f32 %v404_v45, %v14116_v44  ;;  %13525 = vpow2.f32 %v477_v46  ;;  %v462_v5 = vadd.f32 %v14126_v3, %v461_v48  ;;  %v14161_v45 = vld [vmem:[%s16708_s10 + $0x8] sm:$0xff]   ;;  %v14170_v46 = vld [vmem:[%s16708_s10 + $0x20] sm:$0xff]   ;;  %v14185_v48 = vld [vmem:[%s16708_s10 + $0x18] sm:$0xff]  }
  0xee   :  { %v406_v52 = vpop.f32.mrf.mxu0  ;;  %v12518_v53 = vpop.f32.mrf.mxu1  ;;  %v14177_v47 = vld [vmem:[%s16708_s10] sm:$0xff]  }
  0xef   :  { %v488_v54 = vadd.f32 %v484_v50, %v14119_v49  ;;  %v489_v55 = vsub.f32 0.0, %v487_v51  ;;  %v500_v10 = vrot.slane %v462_v5, 1  ;;  %v14194_v50 = vld [vmem:[%s16708_s10 + $0x10] sm:$0xff]  }
  0xf0   :  { %v12511_v56 = vpop.f32.mrf.mxu0  ;;  %v464_v57 = vpop.f32.mrf.mxu1 }
  0xf1   :  { %v490_v58 = vsub.f32 0.0, %v488_v54  ;;  %v491_v59 = vmul.f32 1.442695, %v489_v55 }
  0xf2   :  { %v12519_v60 = vpop.f32.mrf.mxu1 }
  0xf3   :  { %v493_v61 = vmul.f32 1.442695, %v490_v58  ;;  %13527 = vpow2.f32 %v491_v59 }
  0xf5   :  { %13529 = vpow2.f32 %v493_v61 }
  0xf8   :  { %v13524_v62 = vpop.eup %13523 }
  0xf9   :  { %v479_v63 = vadd.f32 1.0, %v13524_v62 }
  0xfa   :  { %v13526_v0 = vpop.eup %13525 }
  0xfb   :  { %v480_v2 = vadd.f32 1.0, %v13526_v0  ;;  %13531 = vrcp.f32 %v479_v63 }
  0xfd   :  { %13533 = vrcp.f32 %v480_v2 }
 0x100   :  { %v13528_v4 = vpop.eup %13527 }
 0x101   :  { %v495_v7 = vadd.f32 1.0, %v13528_v4 }
 0x102   :  { %v13530_v6 = vpop.eup %13529 }
 0x103   :  { %v496_v9 = vadd.f32 1.0, %v13530_v6  ;;  %13535 = vrcp.f32 %v495_v7 }
 0x105   :  { %13537 = vrcp.f32 %v496_v9 }
 0x108   :  { %v13532_v11 = vpop.eup %13531 }
 0x109   :  { %v503_v14 = vmul.f32 %v13532_v11, %v462_v5 }
 0x10a   :  { %v13534_v15 = vpop.eup %13533 }
 0x10b   :  { %v504_v17 = vmul.f32 %v13534_v15, %v500_v10  ;;  %v505_v18 = vadd.f32 %v503_v14, %v14132_v13 }
 0x10d   :  { %v506_v19 = vadd.f32 %v504_v17, %v14134_v16  ;;  %13539 = vtanh.f32 %v505_v18 }
 0x10f   :  { %13541 = vtanh.f32 %v506_v19 }
 0x110   :  { %v13536_v20 = vpop.eup %13535 }
 0x111   :  { %v509_v22 = vsub.f32 1.0, %v13536_v20  ;;  %v513_v27 = vmul.f32 0.0, %v13536_v20 }
 0x112   :  { %v13538_v21 = vpop.eup %13537 }
 0x113   :  { %v510_v24 = vsub.f32 1.0, %v13538_v21  ;;  %v514_v31 = vmul.f32 0.0, %v13538_v21 }
 0x11a   :  { %v13540_v25 = vpop.eup %13539 }
 0x11b   :  { %v511_v28 = vmul.f32 %v13540_v25, %v509_v22 }
 0x11c   :  { %v13542_v29 = vpop.eup %13541 }
 0x11d   :  { %v512_v32 = vmul.f32 %v13542_v29, %v510_v24  ;;  %v14138_v33 = vadd.f32 %v513_v27, %v511_v28 }
 0x11f   :  { %v14140_v34 = vadd.f32 %v514_v31, %v512_v32  ;;  %v517_v35 = vpack.c.bf16 %v14138_v33, %v14138_v33 }
 0x121   :  { %v518_v36 = vpack.c.bf16 %v14140_v34, %v14140_v34  ;;  %v521_v38 = vunpack.c.l.b16 %v517_v35 }
 0x123   :  { %v522_v37 = vunpack.c.l.b16 %v518_v36 }
 0x125   :  { %v523_v40 = vrot.slane %v522_v37, 7 }
 0x127   :  { %v525_v41 = vsel %vm524_vm2, %v523_v40, %v521_v38 }
 0x128   :  { %v526_v42 = vpack.c.b16 %v525_v41, %v525_v41 }
 0x12a   :  { %12525 = vmatmul.mubr.msk.bf16.vlgmr.msra.gmra.mxu0 %vm307_vm3, %v526_v42  ;;  %12533 = vmatmul.mubr.msk.bf16.vlgmr.msra.gmra.mxu1 %vm307_vm3, %v526_v42 }
 0x12b   :  { %12537 = vmatpush3.bf16.msra.mxu0 %v14152_v43  ;;  %12540 = vmatprep.mubr.msk.bf16.mxu0 %vm13869_vm0, %v13868_v1 }
 0x12c   :  { %12538 = vmatprep.subr.bf16.mxu0 %v13868_v1  ;;  %12545 = vmatpush3.bf16.msra.mxu1 %v14161_v45 }
 0x12d   :  { %12546 = vmatprep.subr.bf16.mxu1 %v13868_v1  ;;  %12548 = vmatprep.mubr.msk.bf16.mxu1 %vm13869_vm0, %v13868_v1 }
 0x12f   :  { %12539 = vmatpush3.bf16.msra.mxu0 %v14170_v46 }
 0x130   :  { %12552 = vmatprep.subr.bf16.mxu0 %v13868_v1  ;;  %12547 = vmatpush3.bf16.msra.mxu1 %v14177_v47 }
 0x131   :  { %12560 = vmatprep.subr.bf16.mxu1 %v13868_v1 }
 0x132   :  { %12541 = vmatmul.mubr.msk.bf16.vlgmr.msra.gmra.mxu0 %vm307_vm3, %v526_v42 }
 0x133   :  { %12553 = vmatpush3.bf16.msra.mxu0 %v14185_v48  ;;  %12556 = vmatprep.mubr.msk.bf16.mxu0 %vm13869_vm0, %v13868_v1 }
 0x134   :  { %12554 = vmatprep.subr.bf16.mxu0 %v13868_v1 }
 0x137   :  { %12555 = vmatpush3.bf16.msra.mxu0 %v14194_v50 }
 0x138   :  { %12568 = vmatprep.subr.bf16.mxu0 %v13868_v1 }
 0x1ea   :  { %v564_v51 = vpop.f32.mrf.mxu0  ;;  %v604_v52 = vpop.f32.mrf.mxu1 }
 0x1eb   :  { %v565_v53 = vadd.f32 %v14099_v23, %v564_v51  ;;  %v605_v54 = vadd.f32 %v14114_v39, %v604_v52  ;;  %v699_v52 = vrot.slane %v14140_v34, 7 }
 0x1ec   :  { %v12526_v55 = vpop.f32.mrf.mxu0  ;;  %v12534_v56 = vpop.f32.mrf.mxu1 }
 0x1ed   :  { %v651_v57 = vrot.slane %v565_v53, 7  ;;  %v655_v58 = vadd.f32 %v565_v53, %v14104_v30  ;;  %v667_v63 = vrot.slane %v605_v54, 7  ;;  %v671_v6 = vadd.f32 %v605_v54, %v14119_v49 }
 0x1ee   :  { %v567_v59 = vpop.f32.mrf.mxu0  ;;  %v607_v60 = vpop.f32.mrf.mxu1  ;;  %v698_v55 = vrot.slane %v14138_v33, 7 }
 0x1ef   :  { %v654_v61 = vadd.f32 %v651_v57, %v14101_v26  ;;  %v657_v62 = vsub.f32 0.0, %v655_v58  ;;  %v670_v9 = vadd.f32 %v667_v63, %v14116_v44  ;;  %v673_v11 = vsub.f32 0.0, %v671_v6 }
 0x1f0   :  { %v12527_v0 = vpop.f32.mrf.mxu0  ;;  %v12535_v2 = vpop.f32.mrf.mxu1 }
 0x1f1   :  { %v656_v4 = vsub.f32 0.0, %v654_v61  ;;  %v660_v5 = vmul.f32 1.442695, %v657_v62  ;;  %v672_v15 = vsub.f32 0.0, %v670_v9  ;;  %v676_v18 = vmul.f32 1.442695, %v673_v11 }
 0x1f2   :  { %v644_v7 = vpop.f32.mrf.mxu0 }
 0x1f3   :  { %v658_v8 = vmul.f32 1.442695, %v656_v4  ;;  %13543 = vpow2.f32 %v660_v5  ;;  %v674_v19 = vmul.f32 1.442695, %v672_v15  ;;  %v645_v29 = vadd.f32 %v14126_v3, %v644_v7 }
 0x1f4   :  { %v12542_v10 = vpop.f32.mrf.mxu0 }
 0x1f5   :  { %13545 = vpow2.f32 %v658_v8  ;;  %v683_v35 = vrot.slane %v645_v29, 7 }
 0x1f6   :  { %v647_v14 = vpop.f32.mrf.mxu0  ;;  %13547 = vpow2.f32 %v676_v18 }
 0x1f7   :  { %13549 = vpow2.f32 %v674_v19 }
 0x1f8   :  { %v12543_v17 = vpop.f32.mrf.mxu0 }
 0x200   :  { %v13544_v20 = vpop.eup %13543 }
 0x201   :  { %v663_v21 = vadd.f32 1.0, %v13544_v20 }
 0x202   :  { %v13546_v22 = vpop.eup %13545 }
 0x203   :  { %v662_v25 = vadd.f32 1.0, %v13546_v22  ;;  %13551 = vrcp.f32 %v663_v21  ;;  %v13548_v27 = vpop.eup %13547 }
 0x204   :  { %v13550_v24 = vpop.eup %13549  ;;  %v679_v28 = vadd.f32 1.0, %v13548_v27 }
 0x205   :  { %13553 = vrcp.f32 %v662_v25  ;;  %v678_v31 = vadd.f32 1.0, %v13550_v24 }
 0x206   :  { %13555 = vrcp.f32 %v679_v28 }
 0x207   :  { %13557 = vrcp.f32 %v678_v31 }
 0x210   :  { %v13552_v32 = vpop.eup %13551 }
 0x211   :  { %v687_v36 = vmul.f32 %v13552_v32, %v645_v29 }
 0x212   :  { %v13554_v37 = vpop.eup %13553 }
 0x213   :  { %v686_v38 = vmul.f32 %v13554_v37, %v683_v35  ;;  %v689_v40 = vadd.f32 %v687_v36, %v14134_v16  ;;  %v13556_v42 = vpop.eup %13555 }
 0x214   :  { %v13558_v51 = vpop.eup %13557  ;;  %v693_v53 = vsub.f32 1.0, %v13556_v42  ;;  %v703_v56 = vmul.f32 %v13556_v42, %v699_v52 }
 0x215   :  { %v688_v41 = vadd.f32 %v686_v38, %v14132_v13  ;;  %13559 = vtanh.f32 %v689_v40  ;;  %v692_v57 = vsub.f32 1.0, %v13558_v51  ;;  %v702_v60 = vmul.f32 %v13558_v51, %v698_v55 }
 0x217   :  { %13561 = vtanh.f32 %v688_v41 }
 0x222   :  { %v13560_v54 = vpop.eup %13559 }
 0x223   :  { %v695_v58 = vmul.f32 %v13560_v54, %v693_v53 }
 0x224   :  { %v13562_v59 = vpop.eup %13561 }
 0x225   :  { %v694_v61 = vmul.f32 %v13562_v59, %v692_v57  ;;  %v14209_v62 = vadd.f32 %v703_v56, %v695_v58 }
 0x227   :  { %v709_v63 = vrot.slane %v14209_v62, 1  ;;  %v14212_v0 = vadd.f32 %v702_v60, %v694_v61  ;;  %v718_v6 = vpack.c.bf16 %v14209_v62, %v14209_v62 }
 0x229   :  { %v713_v2 = vmax.f32 %v14140_v34, %v709_v63  ;;  %v708_v4 = vrot.slane %v14212_v0, 1  ;;  %v717_v5 = vpack.c.bf16 %v14212_v0, %v14212_v0  ;;  %v722_v9 = vunpack.c.l.b16 %v718_v6 }
 0x22b   :  { %716 = vst.msk [vmem:[#allocation2 + $0x4] sm:$0x1] %vm714_vm4, %v713_v2  ;;  %v712_v7 = vmax.f32 %v14138_v33, %v708_v4  ;;  %v721_v8 = vunpack.c.l.b16 %v717_v5 }
 0x22d   :  { %715 = vst.msk [vmem:[#allocation2] sm:$0x1] %vm714_vm4, %v712_v7  ;;  %v723_v10 = vrot.slane %v721_v8, 1 }
 0x22f   :  { %v724_v11 = vsel %vm524_vm2, %v722_v9, %v723_v10 }
 0x230   :  { %v725_v14 = vpack.c.b16 %v724_v11, %v724_v11 }
 0x232   :  { %12549 = vmatmul.mubr.msk.bf16.vlgmr.msra.gmra.mxu1 %vm307_vm3, %v725_v14  ;;  %12557 = vmatmul.mubr.msk.bf16.vlgmr.msra.gmra.mxu0 %vm307_vm3, %v725_v14 }
 0x233   :  { %12561 = vmatpush3.bf16.msra.mxu1 %v14152_v43  ;;  %12564 = vmatprep.mubr.msk.bf16.mxu1 %vm13869_vm0, %v13868_v1 }
 0x234   :  { %12562 = vmatprep.subr.bf16.mxu1 %v13868_v1  ;;  %12569 = vmatpush3.bf16.msra.mxu0 %v14161_v45 }
 0x235   :  { %12570 = vmatprep.subr.bf16.mxu0 %v13868_v1  ;;  %12572 = vmatprep.mubr.msk.bf16.mxu0 %vm13869_vm0, %v13868_v1 }
 0x237   :  { %12563 = vmatpush3.bf16.msra.mxu1 %v14170_v46 }
 0x238   :  { %12576 = vmatprep.subr.bf16.mxu1 %v13868_v1  ;;  %12571 = vmatpush3.bf16.msra.mxu0 %v14177_v47 }
 0x239   :  { %12584 = vmatprep.subr.bf16.mxu0 %v13868_v1 }
 0x23a   :  { %12565 = vmatmul.mubr.msk.bf16.vlgmr.msra.gmra.mxu1 %vm307_vm3, %v725_v14 }
 0x23b   :  { %12577 = vmatpush3.bf16.msra.mxu1 %v14185_v48  ;;  %12580 = vmatprep.mubr.msk.bf16.mxu1 %vm13869_vm0, %v13868_v1 }
 0x23c   :  { %12578 = vmatprep.subr.bf16.mxu1 %v13868_v1 }
 0x23f   :  { %12579 = vmatpush3.bf16.msra.mxu1 %v14194_v50 }
 0x240   :  { %12592 = vmatprep.subr.bf16.mxu1 %v13868_v1 }
 0x2f2   :  { %v763_v33 = vpop.f32.mrf.mxu1  ;;  %v803_v34 = vpop.f32.mrf.mxu0 }
 0x2f3   :  { %v764_v15 = vadd.f32 %v14099_v23, %v763_v33  ;;  %v804_v17 = vadd.f32 %v14114_v39, %v803_v34 }
 0x2f4   :  { %v12550_v18 = vpop.f32.mrf.mxu1  ;;  %v12558_v19 = vpop.f32.mrf.mxu0 }
 0x2f5   :  { %v850_v20 = vrot.slane %v764_v15, 6  ;;  %v851_v21 = vrot.slane %v764_v15, 7  ;;  %v867_v28 = vrot.slane %v804_v17, 6  ;;  %v868_v29 = vrot.slane %v804_v17, 7 }
 0x2f6   :  { %v766_v22 = vpop.f32.mrf.mxu1  ;;  %v806_v25 = vpop.f32.mrf.mxu0  ;;  %v898_v18 = vrot.slane %v14212_v0, 7 }
 0x2f7   :  { %v854_v27 = vadd.f32 %v850_v20, %v14101_v26  ;;  %v855_v24 = vadd.f32 %v851_v21, %v14104_v30  ;;  %v871_v41 = vadd.f32 %v867_v28, %v14116_v44  ;;  %v872_v42 = vadd.f32 %v868_v29, %v14119_v49 }
 0x2f8   :  { %v12551_v31 = vpop.f32.mrf.mxu1  ;;  %v12559_v32 = vpop.f32.mrf.mxu0  ;;  %v899_v21 = vrot.slane %v14209_v62, 7 }
 0x2f9   :  { %v856_v35 = vsub.f32 0.0, %v854_v27  ;;  %v857_v36 = vsub.f32 0.0, %v855_v24  ;;  %v873_v53 = vsub.f32 0.0, %v871_v41  ;;  %v874_v54 = vsub.f32 0.0, %v872_v42 }
 0x2fa   :  { %v843_v37 = vpop.f32.mrf.mxu1 }
 0x2fb   :  { %v858_v38 = vmul.f32 1.442695, %v856_v35  ;;  %v860_v40 = vmul.f32 1.442695, %v857_v36  ;;  %v875_v56 = vmul.f32 1.442695, %v873_v53  ;;  %v844_v4 = vadd.f32 %v14126_v3, %v843_v37 }
 0x2fc   :  { %v12566_v51 = vpop.f32.mrf.mxu1  ;;  %v877_v57 = vmul.f32 1.442695, %v874_v54 }
 0x2fd   :  { %13563 = vpow2.f32 %v858_v38  ;;  %v884_v7 = vrot.slane %v844_v4, 6  ;;  %v885_v9 = vrot.slane %v844_v4, 7 }
 0x2fe   :  { %13565 = vpow2.f32 %v860_v40  ;;  %v846_v52 = vpop.f32.mrf.mxu1 }
 0x2ff   :  { %13567 = vpow2.f32 %v875_v56 }
 0x300   :  { %v12567_v55 = vpop.f32.mrf.mxu1  ;;  %13569 = vpow2.f32 %v877_v57 }
 0x30a   :  { %v13564_v58 = vpop.eup %13563 }
 0x30b   :  { %v13566_v59 = vpop.eup %13565  ;;  %v862_v60 = vadd.f32 1.0, %v13564_v58 }
 0x30c   :  { %v863_v61 = vadd.f32 1.0, %v13566_v59  ;;  %v13568_v63 = vpop.eup %13567 }
 0x30d   :  { %13571 = vrcp.f32 %v862_v60  ;;  %v13570_v2 = vpop.eup %13569  ;;  %v879_v5 = vadd.f32 1.0, %v13568_v63 }
 0x30e   :  { %13573 = vrcp.f32 %v863_v61  ;;  %v880_v6 = vadd.f32 1.0, %v13570_v2 }
 0x30f   :  { %13575 = vrcp.f32 %v879_v5 }
 0x310   :  { %13577 = vrcp.f32 %v880_v6 }
 0x31a   :  { %v13572_v8 = vpop.eup %13571 }
 0x31b   :  { %v13574_v10 = vpop.eup %13573  ;;  %v888_v11 = vmul.f32 %v13572_v8, %v884_v7 }
 0x31c   :  { %v889_v14 = vmul.f32 %v13574_v10, %v885_v9  ;;  %v13576_v15 = vpop.eup %13575 }
 0x31d   :  { %v890_v33 = vadd.f32 %v888_v11, %v14132_v13  ;;  %v13578_v17 = vpop.eup %13577  ;;  %v894_v19 = vsub.f32 1.0, %v13576_v15  ;;  %v902_v27 = vmul.f32 %v13576_v15, %v898_v18 }
 0x31e   :  { %v891_v34 = vadd.f32 %v889_v14, %v14134_v16  ;;  %v895_v22 = vsub.f32 1.0, %v13578_v17  ;;  %v903_v28 = vmul.f32 %v13578_v17, %v899_v21 }
 0x31f   :  { %13579 = vtanh.f32 %v890_v33 }
 0x320   :  { %13581 = vtanh.f32 %v891_v34 }
 0x32c   :  { %v13580_v20 = vpop.eup %13579 }
 0x32d   :  { %v13582_v25 = vpop.eup %13581  ;;  %v896_v24 = vmul.f32 %v13580_v20, %v894_v19 }
 0x32e   :  { %v897_v29 = vmul.f32 %v13582_v25, %v895_v22 }
 0x32f   :  { %v14254_v31 = vadd.f32 %v902_v27, %v896_v24 }
 0x330   :  { %v14256_v32 = vadd.f32 %v903_v28, %v897_v29 }
 0x331   :  { %v906_v35 = vpack.c.bf16 %v14254_v31, %v14254_v31 }
 0x332   :  { %v907_v0 = vpack.c.bf16 %v14256_v32, %v14256_v32 }
 0x333   :  { %v910_v36 = vunpack.c.l.b16 %v906_v35 }
 0x334   :  { %v911_v37 = vunpack.c.l.b16 %v907_v0 }
 0x335   :  { %v912_v38 = vrot.slane %v910_v36, 2 }
 0x336   :  { %v913_v62 = vrot.slane %v911_v37, 1 }
 0x338   :  { %v914_v40 = vsel %vm524_vm2, %v913_v62, %v912_v38 }
 0x339   :  { %v915_v41 = vpack.c.b16 %v914_v40, %v914_v40 }
 0x33b   :  { %12573 = vmatmul.mubr.msk.bf16.vlgmr.msra.gmra.mxu0 %vm307_vm3, %v915_v41  ;;  %12581 = vmatmul.mubr.msk.bf16.vlgmr.msra.gmra.mxu1 %vm307_vm3, %v915_v41 }
 0x33c   :  { %12585 = vmatpush3.bf16.msra.mxu0 %v14152_v43  ;;  %12588 = vmatprep.mubr.msk.bf16.mxu0 %vm13869_vm0, %v13868_v1 }
 0x33d   :  { %12586 = vmatprep.subr.bf16.mxu0 %v13868_v1  ;;  %12593 = vmatpush3.bf16.msra.mxu1 %v14161_v45 }
 0x33e   :  { %12594 = vmatprep.subr.bf16.mxu1 %v13868_v1  ;;  %12596 = vmatprep.mubr.msk.bf16.mxu1 %vm13869_vm0, %v13868_v1 }
 0x340   :  { %12587 = vmatpush3.bf16.msra.mxu0 %v14170_v46 }
 0x341   :  { %12600 = vmatprep.subr.bf16.mxu0 %v13868_v1  ;;  %12595 = vmatpush3.bf16.msra.mxu1 %v14177_v47 }
 0x342   :  { %12608 = vmatprep.subr.bf16.mxu1 %v13868_v1 }
 0x343   :  { %12589 = vmatmul.mubr.msk.bf16.vlgmr.msra.gmra.mxu0 %vm307_vm3, %v915_v41 }
 0x344   :  { %12601 = vmatpush3.bf16.msra.mxu0 %v14185_v48  ;;  %12604 = vmatprep.mubr.msk.bf16.mxu0 %vm13869_vm0, %v13868_v1 }
 0x345   :  { %12602 = vmatprep.subr.bf16.mxu0 %v13868_v1 }
 0x348   :  { %12603 = vmatpush3.bf16.msra.mxu0 %v14194_v50 }
 0x349   :  { %12616 = vmatprep.subr.bf16.mxu0 %v13868_v1 }
 0x3fb   :  { %v953_v42 = vpop.f32.mrf.mxu0  ;;  %v993_v51 = vpop.f32.mrf.mxu1 }
 0x3fc   :  { %v954_v52 = vadd.f32 %v14099_v23, %v953_v42  ;;  %v994_v53 = vadd.f32 %v14114_v39, %v993_v51 }
 0x3fd   :  { %v12574_v54 = vpop.f32.mrf.mxu0  ;;  %v12582_v55 = vpop.f32.mrf.mxu1 }
 0x3fe   :  { %v1040_v56 = vrot.slane %v954_v52, 5  ;;  %v1041_v57 = vrot.slane %v954_v52, 6  ;;  %v1057_v63 = vrot.slane %v994_v53, 5  ;;  %v1058_v2 = vrot.slane %v994_v53, 6 }
 0x3ff   :  { %v956_v58 = vpop.f32.mrf.mxu0  ;;  %v996_v59 = vpop.f32.mrf.mxu1  ;;  %v1090_v54 = vrot.slane %v14254_v31, 7 }
 0x400   :  { %v1044_v60 = vadd.f32 %v1040_v56, %v14101_v26  ;;  %v1045_v61 = vadd.f32 %v1041_v57, %v14104_v30  ;;  %v1061_v11 = vadd.f32 %v1057_v63, %v14116_v44  ;;  %v1062_v14 = vadd.f32 %v1058_v2, %v14119_v49 }
 0x401   :  { %v12575_v4 = vpop.f32.mrf.mxu0  ;;  %v12583_v5 = vpop.f32.mrf.mxu1  ;;  %v1091_v57 = vrot.slane %v14256_v32, 7 }
 0x402   :  { %v1046_v6 = vsub.f32 0.0, %v1044_v60  ;;  %v1047_v7 = vsub.f32 0.0, %v1045_v61  ;;  %v1063_v15 = vsub.f32 0.0, %v1061_v11  ;;  %v1064_v17 = vsub.f32 0.0, %v1062_v14 }
 0x403   :  { %v1033_v8 = vpop.f32.mrf.mxu0 }
 0x404   :  { %v1048_v9 = vmul.f32 1.442695, %v1046_v6  ;;  %v1050_v10 = vmul.f32 1.442695, %v1047_v7  ;;  %v1065_v19 = vmul.f32 1.442695, %v1063_v15  ;;  %v1034_v29 = vadd.f32 %v14126_v3, %v1033_v8 }
 0x405   :  { %v12590_v33 = vpop.f32.mrf.mxu0  ;;  %v1067_v20 = vmul.f32 1.442695, %v1064_v17 }
 0x406   :  { %13583 = vpow2.f32 %v1048_v9  ;;  %v1074_v36 = vrot.slane %v1034_v29, 5  ;;  %v1075_v38 = vrot.slane %v1034_v29, 6 }
 0x407   :  { %13585 = vpow2.f32 %v1050_v10  ;;  %v1036_v34 = vpop.f32.mrf.mxu0 }
 0x408   :  { %13587 = vpow2.f32 %v1065_v19 }
 0x409   :  { %v12591_v18 = vpop.f32.mrf.mxu0  ;;  %13589 = vpow2.f32 %v1067_v20 }
 0x413   :  { %v13584_v21 = vpop.eup %13583 }
 0x414   :  { %v13586_v22 = vpop.eup %13585  ;;  %v1052_v25 = vadd.f32 1.0, %v13584_v21 }
 0x415   :  { %v1053_v27 = vadd.f32 1.0, %v13586_v22  ;;  %v13588_v24 = vpop.eup %13587 }
 0x416   :  { %13591 = vrcp.f32 %v1052_v25  ;;  %v13590_v28 = vpop.eup %13589  ;;  %v1069_v35 = vadd.f32 1.0, %v13588_v24 }
 0x417   :  { %13593 = vrcp.f32 %v1053_v27  ;;  %v1070_v0 = vadd.f32 1.0, %v13590_v28 }
 0x418   :  { %13595 = vrcp.f32 %v1069_v35 }
 0x419   :  { %13597 = vrcp.f32 %v1070_v0 }
 0x423   :  { %v13592_v37 = vpop.eup %13591 }
 0x424   :  { %v13594_v62 = vpop.eup %13593  ;;  %v1078_v40 = vmul.f32 %v13592_v37, %v1074_v36 }
 0x425   :  { %v1079_v41 = vmul.f32 %v13594_v62, %v1075_v38  ;;  %v13596_v52 = vpop.eup %13595 }
 0x426   :  { %v1080_v42 = vadd.f32 %v1078_v40, %v14132_v13  ;;  %v13598_v53 = vpop.eup %13597  ;;  %v1084_v55 = vsub.f32 1.0, %v13596_v52  ;;  %v1094_v60 = vmul.f32 %v13596_v52, %v1090_v54 }
 0x427   :  { %v1081_v51 = vadd.f32 %v1079_v41, %v14134_v16  ;;  %v1085_v58 = vsub.f32 1.0, %v13598_v53  ;;  %v1095_v63 = vmul.f32 %v13598_v53, %v1091_v57 }
 0x428   :  { %13599 = vtanh.f32 %v1080_v42 }
 0x429   :  { %13601 = vtanh.f32 %v1081_v51 }
 0x435   :  { %v13600_v56 = vpop.eup %13599 }
 0x436   :  { %v13602_v59 = vpop.eup %13601  ;;  %v1086_v61 = vmul.f32 %v13600_v56, %v1084_v55 }
 0x437   :  { %v1087_v2 = vmul.f32 %v13602_v59, %v1085_v58 }
 0x438   :  { %v14295_v4 = vadd.f32 %v1094_v60, %v1086_v61 }
 0x439   :  { %v14297_v5 = vadd.f32 %v1095_v63, %v1087_v2 }
 0x43a   :  { %v1100_v6 = vrot.slane %v14295_v4, 1  ;;  %v1109_v7 = vpack.c.bf16 %v14295_v4, %v14295_v4 }
 0x43b   :  { %v1101_v8 = vrot.slane %v14297_v5, 1  ;;  %v1110_v9 = vpack.c.bf16 %v14297_v5, %v14297_v5 }
 0x43c   :  { %v1104_v10 = vmax.f32 %v14254_v31, %v1100_v6  ;;  %v1113_v11 = vunpack.c.l.b16 %v1109_v7 }
 0x43d   :  { %v1105_v14 = vmax.f32 %v14256_v32, %v1101_v8  ;;  %v1114_v33 = vunpack.c.l.b16 %v1110_v9 }
 0x43e   :  { %1107 = vst.msk [vmem:[#allocation2 - $0x1] sm:$0x4] %vm1106_vm5, %v1104_v10  ;;  %v1115_v34 = vrot.slane %v1113_v11, 3 }
 0x43f   :  { %1108 = vst.msk [vmem:[#allocation2 + $0x3] sm:$0x4] %vm1106_vm5, %v1105_v14  ;;  %v1116_v15 = vrot.slane %v1114_v33, 2 }
 0x441   :  { %v1117_v17 = vsel %vm524_vm2, %v1116_v15, %v1115_v34 }
 0x442   :  { %v1118_v18 = vpack.c.b16 %v1117_v17, %v1117_v17 }
 0x444   :  { %12597 = vmatmul.mubr.msk.bf16.vlgmr.msra.gmra.mxu1 %vm307_vm3, %v1118_v18  ;;  %12605 = vmatmul.mubr.msk.bf16.vlgmr.msra.gmra.mxu0 %vm307_vm3, %v1118_v18 }
 0x445   :  { %12609 = vmatpush3.bf16.msra.mxu1 %v14152_v43  ;;  %12612 = vmatprep.mubr.msk.bf16.mxu1 %vm13869_vm0, %v13868_v1 }
 0x446   :  { %12610 = vmatprep.subr.bf16.mxu1 %v13868_v1  ;;  %12617 = vmatpush3.bf16.msra.mxu0 %v14161_v45 }
 0x447   :  { %12618 = vmatprep.subr.bf16.mxu0 %v13868_v1  ;;  %12620 = vmatprep.mubr.msk.bf16.mxu0 %vm13869_vm0, %v13868_v1 }
 0x449   :  { %12611 = vmatpush3.bf16.msra.mxu1 %v14170_v46 }
 0x44a   :  { %12624 = vmatprep.subr.bf16.mxu1 %v13868_v1  ;;  %12619 = vmatpush3.bf16.msra.mxu0 %v14177_v47 }
 0x44b   :  { %12632 = vmatprep.subr.bf16.mxu0 %v13868_v1 }
 0x44c   :  { %12613 = vmatmul.mubr.msk.bf16.vlgmr.msra.gmra.mxu1 %vm307_vm3, %v1118_v18 }
 0x44d   :  { %12625 = vmatpush3.bf16.msra.mxu1 %v14185_v48  ;;  %12628 = vmatprep.mubr.msk.bf16.mxu1 %vm13869_vm0, %v13868_v1 }
 0x44e   :  { %12626 = vmatprep.subr.bf16.mxu1 %v13868_v1 }
 0x451   :  { %12627 = vmatpush3.bf16.msra.mxu1 %v14194_v50 }
 0x452   :  { %12640 = vmatprep.subr.bf16.mxu1 %v13868_v1 }
 0x504   :  { %v1156_v31 = vpop.f32.mrf.mxu1  ;;  %v1196_v32 = vpop.f32.mrf.mxu0 }
 0x505   :  { %v1157_v19 = vadd.f32 %v14099_v23, %v1156_v31  ;;  %v1197_v20 = vadd.f32 %v14114_v39, %v1196_v32 }
 0x506   :  { %v12598_v21 = vpop.f32.mrf.mxu1  ;;  %v12606_v22 = vpop.f32.mrf.mxu0 }
 0x507   :  { %v1243_v25 = vrot.slane %v1157_v19, 4  ;;  %v1244_v27 = vrot.slane %v1157_v19, 5  ;;  %v1260_v0 = vrot.slane %v1197_v20, 4  ;;  %v1261_v36 = vrot.slane %v1197_v20, 5 }
 0x508   :  { %v1159_v24 = vpop.f32.mrf.mxu1  ;;  %v1199_v28 = vpop.f32.mrf.mxu0  ;;  %v1291_v21 = vrot.slane %v14295_v4, 7 }
 0x509   :  { %v1247_v29 = vadd.f32 %v1243_v25, %v14101_v26  ;;  %v1248_v35 = vadd.f32 %v1244_v27, %v14104_v30  ;;  %v1264_v52 = vadd.f32 %v1260_v0, %v14116_v44  ;;  %v1265_v53 = vadd.f32 %v1261_v36, %v14119_v49 }
 0x50a   :  { %v12599_v37 = vpop.f32.mrf.mxu1  ;;  %v12607_v38 = vpop.f32.mrf.mxu0  ;;  %v1292_v27 = vrot.slane %v14297_v5, 7 }
 0x50b   :  { %v1249_v62 = vsub.f32 0.0, %v1247_v29  ;;  %v1250_v40 = vsub.f32 0.0, %v1248_v35  ;;  %v1266_v56 = vsub.f32 0.0, %v1264_v52  ;;  %v1267_v57 = vsub.f32 0.0, %v1265_v53 }
 0x50c   :  { %v1236_v41 = vpop.f32.mrf.mxu1 }
 0x50d   :  { %v1251_v42 = vmul.f32 1.442695, %v1249_v62  ;;  %v1253_v51 = vmul.f32 1.442695, %v1250_v40  ;;  %v1268_v59 = vmul.f32 1.442695, %v1266_v56  ;;  %v1237_v9 = vadd.f32 %v14126_v3, %v1236_v41 }
 0x50e   :  { %v12614_v54 = vpop.f32.mrf.mxu1  ;;  %v1270_v60 = vmul.f32 1.442695, %v1267_v57 }
 0x50f   :  { %13603 = vpow2.f32 %v1251_v42  ;;  %v1277_v14 = vrot.slane %v1237_v9, 4  ;;  %v1278_v34 = vrot.slane %v1237_v9, 5 }
 0x510   :  { %13605 = vpow2.f32 %v1253_v51  ;;  %v1239_v55 = vpop.f32.mrf.mxu1 }
 0x511   :  { %13607 = vpow2.f32 %v1268_v59 }
 0x512   :  { %v12615_v58 = vpop.f32.mrf.mxu1  ;;  %13609 = vpow2.f32 %v1270_v60 }
 0x51c   :  { %v13604_v61 = vpop.eup %13603 }
 0x51d   :  { %v13606_v63 = vpop.eup %13605  ;;  %v1255_v2 = vadd.f32 1.0, %v13604_v61 }
 0x51e   :  { %v1256_v6 = vadd.f32 1.0, %v13606_v63  ;;  %v13608_v7 = vpop.eup %13607 }
 0x51f   :  { %13611 = vrcp.f32 %v1255_v2  ;;  %v13610_v8 = vpop.eup %13609  ;;  %v1272_v10 = vadd.f32 1.0, %v13608_v7 }
 0x520   :  { %13613 = vrcp.f32 %v1256_v6  ;;  %v1273_v11 = vadd.f32 1.0, %v13610_v8 }
 0x521   :  { %13615 = vrcp.f32 %v1272_v10 }
 0x522   :  { %13617 = vrcp.f32 %v1273_v11 }
 0x52c   :  { %v13612_v33 = vpop.eup %13611 }
 0x52d   :  { %v13614_v15 = vpop.eup %13613  ;;  %v1281_v17 = vmul.f32 %v13612_v33, %v1277_v14 }
 0x52e   :  { %v1282_v18 = vmul.f32 %v13614_v15, %v1278_v34  ;;  %v13616_v19 = vpop.eup %13615 }
 0x52f   :  { %v1283_v31 = vadd.f32 %v1281_v17, %v14132_v13  ;;  %v13618_v20 = vpop.eup %13617  ;;  %v1287_v22 = vsub.f32 1.0, %v13616_v19  ;;  %v1295_v29 = vmul.f32 %v13616_v19, %v1291_v21 }
 0x530   :  { %v1284_v32 = vadd.f32 %v1282_v18, %v14134_v16  ;;  %v1288_v24 = vsub.f32 1.0, %v13618_v20  ;;  %v1296_v0 = vmul.f32 %v13618_v20, %v1292_v27 }
 0x531   :  { %13619 = vtanh.f32 %v1283_v31 }
 0x532   :  { %13621 = vtanh.f32 %v1284_v32 }
 0x53e   :  { %v13620_v25 = vpop.eup %13619 }
 0x53f   :  { %v13622_v28 = vpop.eup %13621  ;;  %v1289_v35 = vmul.f32 %v13620_v25, %v1287_v22 }
 0x540   :  { %v1290_v36 = vmul.f32 %v13622_v28, %v1288_v24 }
 0x541   :  { %v14340_v37 = vadd.f32 %v1295_v29, %v1289_v35 }
 0x542   :  { %v14342_v38 = vadd.f32 %v1296_v0, %v1290_v36 }
 0x543   :  { %v1299_v62 = vpack.c.bf16 %v14340_v37, %v14340_v37 }
 0x544   :  { %v1300_v4 = vpack.c.bf16 %v14342_v38, %v14342_v38 }
 0x545   :  { %v1303_v40 = vunpack.c.l.b16 %v1299_v62 }
 0x546   :  { %v1304_v41 = vunpack.c.l.b16 %v1300_v4 }
 0x547   :  { %v1305_v42 = vrot.slane %v1303_v40, 4 }
 0x548   :  { %v1306_v5 = vrot.slane %v1304_v41, 3 }
 0x54a   :  { %v1307_v51 = vsel %vm524_vm2, %v1306_v5, %v1305_v42 }
 0x54b   :  { %v1308_v52 = vpack.c.b16 %v1307_v51, %v1307_v51 }
 0x54d   :  { %12621 = vmatmul.mubr.msk.bf16.vlgmr.msra.gmra.mxu0 %vm307_vm3, %v1308_v52  ;;  %12629 = vmatmul.mubr.msk.bf16.vlgmr.msra.gmra.mxu1 %vm307_vm3, %v1308_v52 }
 0x54e   :  { %12633 = vmatpush3.bf16.msra.mxu0 %v14152_v43  ;;  %12636 = vmatprep.mubr.msk.bf16.mxu0 %vm13869_vm0, %v13868_v1 }
 0x54f   :  { %12634 = vmatprep.subr.bf16.mxu0 %v13868_v1  ;;  %12641 = vmatpush3.bf16.msra.mxu1 %v14161_v45 }
 0x550   :  { %12642 = vmatprep.subr.bf16.mxu1 %v13868_v1  ;;  %12644 = vmatprep.mubr.msk.bf16.mxu1 %vm13869_vm0, %v13868_v1 }
 0x552   :  { %12635 = vmatpush3.bf16.msra.mxu0 %v14170_v46 }
 0x553   :  { %12648 = vmatprep.subr.bf16.mxu0 %v13868_v1  ;;  %12643 = vmatpush3.bf16.msra.mxu1 %v14177_v47 }
 0x554   :  { %12656 = vmatprep.subr.bf16.mxu1 %v13868_v1 }
 0x555   :  { %12637 = vmatmul.mubr.msk.bf16.vlgmr.msra.gmra.mxu0 %vm307_vm3, %v1308_v52 }
 0x556   :  { %12649 = vmatpush3.bf16.msra.mxu0 %v14185_v48  ;;  %12652 = vmatprep.mubr.msk.bf16.mxu0 %vm13869_vm0, %v13868_v1 }
 0x557   :  { %12650 = vmatprep.subr.bf16.mxu0 %v13868_v1 }
 0x55a   :  { %12651 = vmatpush3.bf16.msra.mxu0 %v14194_v50 }
 0x55b   :  { %12664 = vmatprep.subr.bf16.mxu0 %v13868_v1 }
 0x60d   :  { %v1346_v53 = vpop.f32.mrf.mxu0  ;;  %v1386_v54 = vpop.f32.mrf.mxu1 }
 0x60e   :  { %v1347_v55 = vadd.f32 %v14099_v23, %v1346_v53  ;;  %v1387_v56 = vadd.f32 %v14114_v39, %v1386_v54 }
 0x60f   :  { %v12622_v57 = vpop.f32.mrf.mxu0  ;;  %v12630_v58 = vpop.f32.mrf.mxu1 }
 0x610   :  { %v1433_v59 = vrot.slane %v1347_v55, 3  ;;  %v1434_v60 = vrot.slane %v1347_v55, 4  ;;  %v1450_v7 = vrot.slane %v1387_v56, 3  ;;  %v1451_v8 = vrot.slane %v1387_v56, 4 }
 0x611   :  { %v1349_v61 = vpop.f32.mrf.mxu0  ;;  %v1389_v63 = vpop.f32.mrf.mxu1  ;;  %v1484_v57 = vrot.slane %v14342_v38, 7 }
 0x612   :  { %v1437_v2 = vadd.f32 %v1433_v59, %v14101_v26  ;;  %v1438_v6 = vadd.f32 %v1434_v60, %v14104_v30  ;;  %v1454_v39 = vadd.f32 %v1450_v7, %v14116_v44  ;;  %v1455_v15 = vadd.f32 %v1451_v8, %v14119_v49 }
 0x613   :  { %v12623_v9 = vpop.f32.mrf.mxu0  ;;  %v12631_v10 = vpop.f32.mrf.mxu1 }
 0x614   :  { %v1439_v11 = vsub.f32 0.0, %v1437_v2  ;;  %v1440_v14 = vsub.f32 0.0, %v1438_v6  ;;  %v1456_v31 = vsub.f32 0.0, %v1454_v39  ;;  %v1457_v32 = vsub.f32 0.0, %v1455_v15 }
 0x615   :  { %v1426_v33 = vpop.f32.mrf.mxu0 }
 0x616   :  { %v1441_v23 = vmul.f32 1.442695, %v1439_v11  ;;  %v1443_v34 = vmul.f32 1.442695, %v1440_v14  ;;  %v1458_v20 = vmul.f32 1.442695, %v1456_v31  ;;  %v1427_v35 = vadd.f32 %v14126_v3, %v1426_v33 }
 0x617   :  { %v12638_v17 = vpop.f32.mrf.mxu0  ;;  %v1460_v21 = vmul.f32 1.442695, %v1457_v32  ;;  %v1483_v3 = vrot.slane %v14340_v37, 7 }
 0x618   :  { %13623 = vpow2.f32 %v1441_v23  ;;  %v1467_v62 = vrot.slane %v1427_v35, 3  ;;  %v1468_v40 = vrot.slane %v1427_v35, 4 }
 0x619   :  { %13625 = vpow2.f32 %v1443_v34  ;;  %v1429_v18 = vpop.f32.mrf.mxu0 }
 0x61a   :  { %13627 = vpow2.f32 %v1458_v20 }
 0x61b   :  { %v12639_v19 = vpop.f32.mrf.mxu0  ;;  %13629 = vpow2.f32 %v1460_v21 }
 0x625   :  { %v13624_v22 = vpop.eup %13623 }
 0x626   :  { %v13626_v25 = vpop.eup %13625  ;;  %v1445_v27 = vadd.f32 1.0, %v13624_v22 }
 0x627   :  { %v1446_v24 = vadd.f32 1.0, %v13626_v25  ;;  %v13628_v28 = vpop.eup %13627 }
 0x628   :  { %13631 = vrcp.f32 %v1445_v27  ;;  %v13630_v29 = vpop.eup %13629  ;;  %v1462_v0 = vadd.f32 1.0, %v13628_v28 }
 0x629   :  { %13633 = vrcp.f32 %v1446_v24  ;;  %v1463_v36 = vadd.f32 1.0, %v13630_v29 }
 0x62a   :  { %13635 = vrcp.f32 %v1462_v0 }
 0x62b   :  { %13637 = vrcp.f32 %v1463_v36 }
 0x635   :  { %v13632_v4 = vpop.eup %13631 }
 0x636   :  { %v13634_v41 = vpop.eup %13633  ;;  %v1471_v42 = vmul.f32 %v13632_v4, %v1467_v62 }
 0x637   :  { %v1472_v5 = vmul.f32 %v13634_v41, %v1468_v40  ;;  %v13636_v53 = vpop.eup %13635 }
 0x638   :  { %v1473_v51 = vadd.f32 %v1471_v42, %v14132_v13  ;;  %v13638_v54 = vpop.eup %13637  ;;  %v1477_v55 = vsub.f32 1.0, %v13636_v53  ;;  %v1487_v60 = vmul.f32 %v13636_v53, %v1483_v3 }
 0x639   :  { %v1474_v52 = vadd.f32 %v1472_v5, %v14134_v16  ;;  %v1478_v58 = vsub.f32 1.0, %v13638_v54  ;;  %v1488_v63 = vmul.f32 %v13638_v54, %v1484_v57 }
 0x63a   :  { %13639 = vtanh.f32 %v1473_v51 }
 0x63b   :  { %13641 = vtanh.f32 %v1474_v52 }
 0x647   :  { %v13640_v56 = vpop.eup %13639 }
 0x648   :  { %v13642_v59 = vpop.eup %13641  ;;  %v1479_v61 = vmul.f32 %v13640_v56, %v1477_v55 }
 0x649   :  { %v1480_v2 = vmul.f32 %v13642_v59, %v1478_v58 }
 0x64a   :  { %v14381_v6 = vadd.f32 %v1487_v60, %v1479_v61  ;;  %v14434_v60 = vld [vmem:[%s16710_s3 + $0x2] ss:$0 sm:$0xff] }
 0x64b   :  { %v14383_v7 = vadd.f32 %v1488_v63, %v1480_v2 }
 0x64c   :  { %v1493_v8 = vrot.slane %v14381_v6, 1  ;;  %v1502_v9 = vpack.c.bf16 %v14381_v6, %v14381_v6 }
 0x64d   :  { %v1494_v10 = vrot.slane %v14383_v7, 1  ;;  %v1503_v11 = vpack.c.bf16 %v14383_v7, %v14383_v7 }
 0x64e   :  { %v1497_v14 = vmax.f32 %v14340_v37, %v1493_v8  ;;  %v1506_v33 = vunpack.c.l.b16 %v1502_v9 }
 0x64f   :  { %v1498_v23 = vmax.f32 %v14342_v38, %v1494_v10  ;;  %v1507_v34 = vunpack.c.l.b16 %v1503_v11 }
 0x650   :  { %1500 = vst.msk [vmem:[#allocation2 - $0x2] sm:$0x10] %vm1499_vm6, %v1497_v14  ;;  %v1508_v39 = vrot.slane %v1506_v33, 5 }
 0x651   :  { %1501 = vst.msk [vmem:[#allocation2 + $0x2] sm:$0x10] %vm1499_vm6, %v1498_v23  ;;  %v1509_v15 = vrot.slane %v1507_v34, 4 }
 0x653   :  { %v1510_v17 = vsel %vm524_vm2, %v1509_v15, %v1508_v39 }
 0x654   :  { %v1511_v18 = vpack.c.b16 %v1510_v17, %v1510_v17  ;;  %v1684_v17 = vrot.slane %v14381_v6, 7 }
 0x656   :  { %12645 = vmatmul.mubr.msk.bf16.vlgmr.msra.gmra.mxu1 %vm307_vm3, %v1511_v18  ;;  %12653 = vmatmul.mubr.msk.bf16.vlgmr.msra.gmra.mxu0 %vm307_vm3, %v1511_v18 }
 0x657   :  { %12657 = vmatpush3.bf16.msra.mxu1 %v14152_v43  ;;  %12660 = vmatprep.mubr.msk.bf16.mxu1 %vm13869_vm0, %v13868_v1 }
 0x658   :  { %12658 = vmatprep.subr.bf16.mxu1 %v13868_v1  ;;  %12665 = vmatpush3.bf16.msra.mxu0 %v14161_v45 }
 0x659   :  { %12666 = vmatprep.subr.bf16.mxu0 %v13868_v1  ;;  %12668 = vmatprep.mubr.msk.bf16.mxu0 %vm13869_vm0, %v13868_v1 }
 0x65b   :  { %12659 = vmatpush3.bf16.msra.mxu1 %v14170_v46  ;;  %v14418_v46 = vld [vmem:[%s16710_s3] ss:$0 sm:$0xff] }
 0x65c   :  { %12672 = vmatprep.subr.bf16.mxu1 %v13868_v1  ;;  %12667 = vmatpush3.bf16.msra.mxu0 %v14177_v47 }
 0x65d   :  { %12680 = vmatprep.subr.bf16.mxu0 %v13868_v1 }
 0x65e   :  { %12661 = vmatmul.mubr.msk.bf16.vlgmr.msra.gmra.mxu1 %vm307_vm3, %v1511_v18 }
 0x65f   :  { %12673 = vmatpush3.bf16.msra.mxu1 %v14185_v48  ;;  %12676 = vmatprep.mubr.msk.bf16.mxu1 %vm13869_vm0, %v13868_v1  ;;  %v14424_v48 = vld [vmem:[%s16710_s3 + $0x1] ss:$0 sm:$0xff]  ;;  %s16669_s3 = smov 16  }
 0x660   :  { %12674 = vmatprep.subr.bf16.mxu1 %v13868_v1 }
 0x663   :  { %12675 = vmatpush3.bf16.msra.mxu1 %v14194_v50 }
 0x664   :  { %12688 = vmatprep.subr.bf16.mxu1 %v13868_v1 }
 0x716   :  { %v1549_v43 = vpop.f32.mrf.mxu1  ;;  %v1589_v45 = vpop.f32.mrf.mxu0 }
 0x717   :  { %v1550_v47 = vadd.f32 %v14418_v46, %v1549_v43  ;;  %v1590_v37 = vadd.f32 %v14424_v48, %v1589_v45  ;;  %v1685_v45 = vrot.slane %v14383_v7, 7 }
 0x718   :  { %v12646_v38 = vpop.f32.mrf.mxu1  ;;  %v12654_v50 = vpop.f32.mrf.mxu0 }
 0x719   :  { %v1636_v31 = vrot.slane %v1550_v47, 2  ;;  %v1637_v32 = vrot.slane %v1550_v47, 3  ;;  %v1653_v25 = vrot.slane %v1590_v37, 2  ;;  %v1654_v27 = vrot.slane %v1590_v37, 3 }
 0x71a   :  { %v1552_v19 = vpop.f32.mrf.mxu1  ;;  %v1592_v20 = vpop.f32.mrf.mxu0 }
 0x71b   :  { %v1640_v21 = vadd.f32 %v1636_v31, %v14101_v26  ;;  %v1641_v22 = vadd.f32 %v1637_v32, %v14104_v30  ;;  %v1657_v4 = vadd.f32 %v1653_v25, %v14116_v44  ;;  %v1658_v40 = vadd.f32 %v1654_v27, %v14119_v49 }
 0x71c   :  { %v12647_v24 = vpop.f32.mrf.mxu1  ;;  %v12655_v28 = vpop.f32.mrf.mxu0 }
 0x71d   :  { %v1642_v29 = vsub.f32 0.0, %v1640_v21  ;;  %v1643_v35 = vsub.f32 0.0, %v1641_v22  ;;  %v1659_v5 = vsub.f32 0.0, %v1657_v4  ;;  %v1660_v51 = vsub.f32 0.0, %v1658_v40  ;;  %v13249_v28 = vld [vmem:[%s16711_s28 + $0x8] sm:$0xff]   ;;  %v13845_v40 = vld [vmem:[%s16708_s10 + $0x20] sm:$0xff]  }
 0x71e   :  { %v1629_v0 = vpop.f32.mrf.mxu1 }
 0x71f   :  { %v1644_v36 = vmul.f32 1.442695, %v1642_v29  ;;  %v1646_v62 = vmul.f32 1.442695, %v1643_v35  ;;  %v1661_v53 = vmul.f32 1.442695, %v1659_v5  ;;  %v1630_v61 = vadd.f32 %v14434_v60, %v1629_v0 }
 0x720   :  { %v12662_v41 = vpop.f32.mrf.mxu1  ;;  %v1663_v54 = vmul.f32 1.442695, %v1660_v51  ;;  %v13844_v35 = vld [vmem:[%s16708_s10 + $0x28] sm:$0xff]   ;;  %v13250_v0 = vld [vmem:[%s16711_s28] sm:$0xff]   ;;  %s16671_s10 = smov 8  }
 0x721   :  { %13643 = vpow2.f32 %v1644_v36  ;;  %v1670_v8 = vrot.slane %v1630_v61, 2  ;;  %v1671_v10 = vrot.slane %v1630_v61, 3  ;;  %v14464_v36 = vld [vmem:[%s16712_s2] sm:$0xff] }
 0x722   :  { %13645 = vpow2.f32 %v1646_v62  ;;  %v1632_v42 = vpop.f32.mrf.mxu1  ;;  %v14469_v62 = vld [vmem:[%s16712_s2 + $0x8] sm:$0xff]  ;;  %s16679_s2 = smov 112  }
 0x723   :  { %13647 = vpow2.f32 %v1661_v53  ;;  %v11844_v4 = vpack.c.bf16 %v14469_v62, %v14464_v36 }
 0x724   :  { %v12663_v52 = vpop.f32.mrf.mxu1  ;;  %13649 = vpow2.f32 %v1663_v54 }
 0x72e   :  { %v13644_v3 = vpop.eup %13643 }
 0x72f   :  { %v13646_v55 = vpop.eup %13645  ;;  %v1648_v56 = vadd.f32 1.0, %v13644_v3 }
 0x730   :  { %v1649_v57 = vadd.f32 1.0, %v13646_v55  ;;  %v13648_v58 = vpop.eup %13647 }
 0x731   :  { %13651 = vrcp.f32 %v1648_v56  ;;  %v13650_v59 = vpop.eup %13649  ;;  %v1665_v63 = vadd.f32 1.0, %v13648_v58 }
 0x732   :  { %13653 = vrcp.f32 %v1649_v57  ;;  %v1666_v2 = vadd.f32 1.0, %v13650_v59 }
 0x733   :  { %13655 = vrcp.f32 %v1665_v63 }
 0x734   :  { %13657 = vrcp.f32 %v1666_v2 }
 0x73e   :  { %v13652_v9 = vpop.eup %13651 }
 0x73f   :  { %v13654_v11 = vpop.eup %13653  ;;  %v1674_v14 = vmul.f32 %v13652_v9, %v1670_v8 }
 0x740   :  { %v1675_v33 = vmul.f32 %v13654_v11, %v1671_v10  ;;  %v13656_v39 = vpop.eup %13655 }
 0x741   :  { %v1676_v23 = vadd.f32 %v1674_v14, %v14132_v13  ;;  %v13658_v15 = vpop.eup %13657  ;;  %v1680_v18 = vsub.f32 1.0, %v13656_v39  ;;  %v1688_v38 = vmul.f32 %v13656_v39, %v1684_v17 }
 0x742   :  { %v1677_v34 = vadd.f32 %v1675_v33, %v14134_v16  ;;  %v1681_v47 = vsub.f32 1.0, %v13658_v15  ;;  %v1689_v31 = vmul.f32 %v13658_v15, %v1685_v45 }
 0x743   :  { %13659 = vtanh.f32 %v1676_v23 }
 0x744   :  { %13661 = vtanh.f32 %v1677_v34 }
 0x750   :  { %v13660_v43 = vpop.eup %13659 }
 0x751   :  { %v13662_v37 = vpop.eup %13661  ;;  %v1682_v50 = vmul.f32 %v13660_v43, %v1680_v18 }
 0x752   :  { %v1683_v32 = vmul.f32 %v13662_v37, %v1681_v47 }
 0x753   :  { %v14441_v19 = vadd.f32 %v1688_v38, %v1682_v50 }
 0x754   :  { %v14443_v20 = vadd.f32 %v1689_v31, %v1683_v32 }
 0x755   :  { %v1692_v21 = vpack.c.bf16 %v14441_v19, %v14441_v19 }
 0x756   :  { %v1693_v6 = vpack.c.bf16 %v14443_v20, %v14443_v20 }
 0x757   :  { %v1696_v22 = vunpack.c.l.b16 %v1692_v21 }
 0x758   :  { %v1697_v25 = vunpack.c.l.b16 %v1693_v6 }
 0x759   :  { %v1698_v27 = vrot.slane %v1696_v22, 6 }
 0x75a   :  { %v1699_v7 = vrot.slane %v1697_v25, 5 }
 0x75c   :  { %v1700_v24 = vsel %vm524_vm2, %v1699_v7, %v1698_v27 }
 0x75d   :  { %v1701_v29 = vpack.c.b16 %v1700_v24, %v1700_v24 }
 0x75f   :  { %12669 = vmatmul.mubr.msk.bf16.vlgmr.msra.gmra.mxu0 %vm307_vm3, %v1701_v29  ;;  %12677 = vmatmul.mubr.msk.bf16.vlgmr.msra.gmra.mxu1 %vm307_vm3, %v1701_v29 }
 0x760   :  { %12681 = vmatpush3.bf16.msra.mxu0 %v13844_v35  ;;  %12689 = vmatpush3.bf16.msra.mxu1 %v13249_v28 }
 0x761   :  { %12682 = vmatprep.subr.bf16.mxu0 %v13868_v1  ;;  %12690 = vmatprep.subr.bf16.mxu1 %v13868_v1 }
 0x762   :  { %12684 = vmatprep.mubr.msk.bf16.mxu0 %vm13869_vm0, %v13868_v1  ;;  %12692 = vmatprep.mubr.msk.bf16.mxu1 %vm13869_vm0, %v13868_v1 }
 0x764   :  { %12683 = vmatpush3.bf16.msra.mxu0 %v13845_v40  ;;  %12691 = vmatpush3.bf16.msra.mxu1 %v13250_v0 }
 0x765   :  { %12696 = vmatprep.subr.bf16.mxu0 %v13868_v1  ;;  %12702 = vmatprep.subr.bf16.mxu1 %v13868_v1 }
 0x767   :  { %12685 = vmatmul.mubr.msk.bf16.vlgmr.msra.gmra.mxu0 %vm307_vm3, %v1701_v29  ;;  %12693 = vmatmul.mubr.msk.bf16.vlgmr.msra.gmra.mxu1 %vm307_vm3, %v11844_v4 }
 0x768   :  { %12698 = vmatprep.mubr.msk.bf16.mxu0 %vm13869_vm0, %v13868_v1  ;;  %12704 = vmatprep.mubr.msk.bf16.mxu1 %vm13869_vm0, %v13868_v1 }
 0x81f   :  { %v1739_v41 = vpop.f32.mrf.mxu0  ;;  %v1779_v42 = vpop.f32.mrf.mxu1 }
 0x820   :  { %v1740_v5 = vadd.f32 %v14418_v46, %v1739_v41  ;;  %v1780_v51 = vadd.f32 %v14424_v48, %v1779_v42  ;;  %v11030_v46 = vld [vmem:[%s16713_s7] ss:$0 sm:$0xff] }
 0x821   :  { %v12670_v52 = vpop.f32.mrf.mxu0  ;;  %v12678_v53 = vpop.f32.mrf.mxu1 }
 0x822   :  { %v1826_v54 = vrot.slane %v1740_v5, 1  ;;  %v1827_v3 = vrot.slane %v1740_v5, 2  ;;  %v1843_v59 = vrot.slane %v1780_v51, 1  ;;  %v1844_v61 = vrot.slane %v1780_v51, 2 }
 0x823   :  { %v1742_v55 = vpop.f32.mrf.mxu0  ;;  %v1782_v56 = vpop.f32.mrf.mxu1  ;;  %v1877_v53 = vrot.slane %v14443_v20, 7 }
 0x824   :  { %v1830_v57 = vadd.f32 %v1826_v54, %v14101_v26  ;;  %v1831_v58 = vadd.f32 %v1827_v3, %v14104_v30  ;;  %v1847_v33 = vadd.f32 %v1843_v59, %v14116_v44  ;;  %v1848_v26 = vadd.f32 %v1844_v61, %v14119_v49 }
 0x825   :  { %v12671_v63 = vpop.f32.mrf.mxu0  ;;  %v12679_v2 = vpop.f32.mrf.mxu1 }
 0x826   :  { %v1832_v8 = vsub.f32 0.0, %v1830_v57  ;;  %v1833_v9 = vsub.f32 0.0, %v1831_v58  ;;  %v1849_v18 = vsub.f32 0.0, %v1847_v33  ;;  %v1850_v45 = vsub.f32 0.0, %v1848_v26 }
 0x827   :  { %v1819_v48 = vpop.f32.mrf.mxu0  ;;  %v1971_v10 = vpop.f32.mrf.mxu1 }
 0x828   :  { %v1834_v11 = vmul.f32 1.442695, %v1832_v8  ;;  %v1836_v14 = vmul.f32 1.442695, %v1833_v9  ;;  %v1972_v23 = vadd.f32 %v11030_v46, %v1971_v10  ;;  %v1851_v49 = vmul.f32 1.442695, %v1849_v18 }
 0x829   :  { %v12686_v30 = vpop.f32.mrf.mxu0  ;;  %v12694_v34 = vpop.f32.mrf.mxu1  ;;  %v1853_v38 = vmul.f32 1.442695, %v1850_v45  ;;  %v1820_v25 = vadd.f32 %v14434_v60, %v1819_v48  ;;  %v1876_v60 = vrot.slane %v14441_v19, 7 }
 0x82a   :  { %13663 = vpow2.f32 %v1834_v11  ;;  %v14499_v39 = vpack.c.bf16 %v1972_v23, %v1972_v23 }
 0x82b   :  { %13665 = vpow2.f32 %v1836_v14  ;;  %v1822_v15 = vpop.f32.mrf.mxu0  ;;  %v1974_v17 = vpop.f32.mrf.mxu1  ;;  %v1860_v24 = vrot.slane %v1820_v25, 1  ;;  %v1861_v29 = vrot.slane %v1820_v25, 2 }
 0x82c   :  { %v1975_v43 = vadd.f32 %v11030_v46, %v1974_v17  ;;  %1981 = vrot.lane.b32.xlu0 %v14499_v39, %s16687_s8  ;;  %13667 = vpow2.f32 %v1851_v49 }
 0x82d   :  { %v12687_v47 = vpop.f32.mrf.mxu0  ;;  %v12695_v44 = vpop.f32.mrf.mxu1  ;;  %13669 = vpow2.f32 %v1853_v38 }
 0x82e   :  { %v14503_v37 = vpack.c.bf16 %v1975_v43, %v1975_v43 }
 0x830   :  { %2031 = vrot.lane.b32.xlu0 %v14503_v37, %s16687_s8 }
 0x837   :  { %v13664_v50 = vpop.eup %13663 }
 0x838   :  { %v13666_v31 = vpop.eup %13665  ;;  %v1838_v32 = vadd.f32 1.0, %v13664_v50 }
 0x839   :  { %v1839_v21 = vadd.f32 1.0, %v13666_v31  ;;  %v13668_v6 = vpop.eup %13667 }
 0x83a   :  { %13671 = vrcp.f32 %v1838_v32  ;;  %v13670_v22 = vpop.eup %13669  ;;  %v1855_v27 = vadd.f32 1.0, %v13668_v6 }
 0x83b   :  { %13673 = vrcp.f32 %v1839_v21  ;;  %v1856_v7 = vadd.f32 1.0, %v13670_v22 }
 0x83c   :  { %13675 = vrcp.f32 %v1855_v27 }
 0x83d   :  { %13677 = vrcp.f32 %v1856_v7 }
 0x847   :  { %v13672_v28 = vpop.eup %13671 }
 0x848   :  { %v13674_v35 = vpop.eup %13673  ;;  %v1864_v0 = vmul.f32 %v13672_v28, %v1860_v24 }
 0x849   :  { %v1865_v4 = vmul.f32 %v13674_v35, %v1861_v29  ;;  %v13676_v42 = vpop.eup %13675 }
 0x84a   :  { %v1866_v40 = vadd.f32 %v1864_v0, %v14132_v13  ;;  %v13678_v5 = vpop.eup %13677  ;;  %v1870_v51 = vsub.f32 1.0, %v13676_v42  ;;  %v1880_v55 = vmul.f32 %v13676_v42, %v1876_v60 }
 0x84b   :  { %v1867_v41 = vadd.f32 %v1865_v4, %v14134_v16  ;;  %v1871_v54 = vsub.f32 1.0, %v13678_v5  ;;  %v1881_v57 = vmul.f32 %v13678_v5, %v1877_v53 }
 0x84c   :  { %13679 = vtanh.f32 %v1866_v40 }
 0x84d   :  { %13681 = vtanh.f32 %v1867_v41 }
 0x859   :  { %v13680_v52 = vpop.eup %13679 }
 0x85a   :  { %v13682_v3 = vpop.eup %13681  ;;  %v1872_v56 = vmul.f32 %v13680_v52, %v1870_v51 }
 0x85b   :  { %v1873_v58 = vmul.f32 %v13682_v3, %v1871_v54 }
 0x85c   :  { %v1882_v59 = vadd.f32 %v1880_v55, %v1872_v56 }
 0x85d   :  { %v1883_v13 = vadd.f32 %v1881_v57, %v1873_v58 }
 0x85e   :  { %v1886_v61 = vrot.slane %v1882_v59, 1 }
 0x85f   :  { %v1887_v16 = vrot.slane %v1883_v13, 1 }
 0x860   :  { %v1890_v63 = vmax.f32 %v14441_v19, %v1886_v61 }
 0x861   :  { %v1891_v2 = vmax.f32 %v14443_v20, %v1887_v16 }
 0x862   :  { %1893 = vst.msk [vmem:[#allocation2 - $0x3] sm:$0x40] %vm1892_vm7, %v1890_v63 }
 0x863   :  { %1894 = vst.msk [vmem:[#allocation2 + $0x1] sm:$0x40] %vm1892_vm7, %v1891_v2 }
 0x89e   :  { %v1982_v8 = vpop.permute.xlu0 %1981 }
 0x89f   :  { %v1988_v9 = vsel %vm1983_vm8, %v1982_v8, 0 }
 0x8a0   :  { %12697 = vmatpush3.bf16.xpose.msra.mxu0 %v1988_v9 }
 0x8a1   :  { %12708 = vmatprep.subr.bf16.mxu0 %v13868_v1 }
 0x8a2   :  { %v2032_v46 = vpop.permute.xlu0 %2031 }
 0x8a3   :  { %v2037_v48 = vsel %vm1983_vm8, %v2032_v46, 0 }
 0x8a4   :  { %12703 = vmatpush3.bf16.xpose.msra.mxu1 %v2037_v48 }
 0x8a5   :  { %12714 = vmatprep.subr.bf16.mxu1 %v13868_v1 }
 0x8a7   :  { %12699 = vmatmul.mubr.msk.bf16.vlgmr.msra.gmra.mxu0 %vm1983_vm8, %v14499_v39 }
 0x8a8   :  { %12710 = vmatprep.mubr.msk.bf16.mxu0 %vm13869_vm0, %v13868_v1 }
 0x8ab   :  { %12705 = vmatmul.mubr.msk.bf16.vlgmr.msra.gmra.mxu1 %vm1983_vm8, %v14503_v37 }
 0x8ac   :  { %12716 = vmatprep.mubr.msk.bf16.mxu1 %vm13869_vm0, %v13868_v1 }
 0x967   :  { %v2024_v19 = vpop.f32.mrf.mxu0 }
 0x968   :  { %v2079_v20 = vmul.f32 0.35355338, %v2024_v19 }
 0x969   :  { %v12700_v10 = vpop.f32.mrf.mxu0 }
 0x96a   :  { %v2081_v11 = vsel %vm1983_vm8, %v2079_v20, -inf }
 0x96b   :  { %v2073_v14 = vpop.f32.mrf.mxu1  ;;  %2082 = vmax.xlane.f32.xlu1 %v2081_v11  ;;  %v2027_v33 = vpop.f32.mrf.mxu0 }
 0x96c   :  { %v2080_v26 = vmul.f32 0.35355338, %v2073_v14 }
 0x96d   :  { %v12701_v23 = vpop.f32.mrf.mxu0  ;;  %v12706_v30 = vpop.f32.mrf.mxu1 }
 0x96e   :  { %v2084_v34 = vsel %vm1983_vm8, %v2080_v26, -inf }
 0x96f   :  { %v2076_v15 = vpop.f32.mrf.mxu1  ;;  %2085 = vmax.xlane.f32.xlu1 %v2084_v34 }
 0x971   :  { %v12707_v17 = vpop.f32.mrf.mxu1 }
 0x980   :  { %2105 = vrot.lane.b32.xlu1 %v14499_v39, %s16667_s4 }
 0x984   :  { %2154 = vrot.lane.b32.xlu1 %v14503_v37, %s16667_s4  ;;  %s16716_s4 = sld [smem:[#allocation16_spill]] }
 0x988   :  { %2204 = vrot.lane.b32.xlu1 %v14499_v39, %s16685_s29 }
 0x9f4   :  { %v2083_v18 = vpop.xlane.xlu1 %2082 }
 0x9f5   :  { %v2087_v43 = vsub.f32 %v2079_v20, %v2083_v18 }
 0x9f7   :  { %v2089_v45 = vmul.f32 1.442695, %v2087_v43 }
 0x9f8   :  { %v2086_v47 = vpop.xlane.xlu1 %2085 }
 0x9f9   :  { %13683 = vpow2.f32 %v2089_v45  ;;  %v2088_v44 = vsub.f32 %v2080_v26, %v2086_v47 }
 0x9fb   :  { %v2091_v49 = vmul.f32 1.442695, %v2088_v44 }
 0x9fc   :  { %v2106_v38 = vpop.permute.xlu1 %2105 }
 0x9fd   :  { %13685 = vpow2.f32 %v2091_v49  ;;  %v2112_v50 = vsel %vm2110_vm9, %v2106_v38, 0 }
 0x9fe   :  { %12709 = vmatpush3.bf16.msra.mxu0 %v2112_v50 }
 0x9ff   :  { %12720 = vmatprep.subr.bf16.mxu0 %v13868_v1 }
 0xa00   :  { %v2155_v31 = vpop.permute.xlu1 %2154 }
 0xa01   :  { %v2160_v32 = vsel %vm2110_vm9, %v2155_v31, 0 }
 0xa02   :  { %12715 = vmatpush3.bf16.msra.mxu1 %v2160_v32 }
 0xa03   :  { %12726 = vmatprep.subr.bf16.mxu1 %v13868_v1 }
 0xa04   :  { %v2205_v27 = vpop.permute.xlu1 %2204 }
 0xa05   :  { %v2210_v4 = vsel %vm1983_vm8, %v2205_v27, 0 }
 0xa06   :  { %v13684_v21 = vpop.eup %13683 }
 0xa07   :  { %v2093_v6 = vsel %vm1983_vm8, %v13684_v21, 0.0 }
 0xa08   :  { %2094 = vadd.xlane.f32.xlu0 %v2093_v6 }
 0xa0a   :  { %v13686_v22 = vpop.eup %13685 }
 0xa0b   :  { %v2096_v25 = vsel %vm1983_vm8, %v13686_v22, 0.0 }
 0xa0c   :  { %2097 = vadd.xlane.f32.xlu1 %v2096_v25 }
 0xa1d   :  { %2254 = vrot.lane.b32.xlu1 %v14503_v37, %s16685_s29 }
 0xa1e   :  { %2202 = vrot.lane.b32.xlu0 %v14499_v39, %s16683_s0 }
 0xa21   :  { %2252 = vrot.lane.b32.xlu1 %v14503_v37, %s16683_s0 }
 0xa91   :  { %v2095_v7 = vpop.xlane.xlu0 %2094 }
 0xa92   :  { %13687 = vrcp.f32 %v2095_v7 }
 0xa95   :  { %v2098_v24 = vpop.xlane.xlu1 %2097  ;;  %v2203_v60 = vpop.permute.xlu0 %2202 }
 0xa96   :  { %13689 = vrcp.f32 %v2098_v24 }
 0xa99   :  { %v2255_v41 = vpop.permute.xlu1 %2254 }
 0xa9a   :  { %v2260_v5 = vsel %vm1983_vm8, %v2255_v41, 0 }
 0xa9d   :  { %v2253_v51 = vpop.permute.xlu1 %2252 }
 0xa9f   :  { %v13688_v28 = vpop.eup %13687 }
 0xaa0   :  { %v2101_v29 = vmul.f32 %v13688_v28, %v13684_v21 }
 0xaa2   :  { %v2103_v35 = vpack.c.bf16 %v2101_v29, %v2101_v29 }
 0xaa3   :  { %v13690_v0 = vpop.eup %13689 }
 0xaa4   :  { %12711 = vmatmul.mubr.msk.bf16.vlgmr.msra.gmra.mxu0 %vm1983_vm8, %v2103_v35  ;;  %v2102_v40 = vmul.f32 %v13690_v0, %v13686_v22 }
 0xaa5   :  { %12721 = vmatpush3.bf16.xpose.msra.mxu0 %v2210_v4  ;;  %12722 = vmatprep.mubr.msk.bf16.mxu0 %vm13869_vm0, %v13868_v1 }
 0xaa6   :  { %v2104_v42 = vpack.c.bf16 %v2102_v40, %v2102_v40  ;;  %12732 = vmatprep.subr.bf16.mxu0 %v13868_v1 }
 0xaa8   :  { %12717 = vmatmul.mubr.msk.bf16.vlgmr.msra.gmra.mxu1 %vm1983_vm8, %v2104_v42 }
 0xaa9   :  { %12727 = vmatpush3.bf16.xpose.msra.mxu1 %v2260_v5  ;;  %12728 = vmatprep.mubr.msk.bf16.mxu1 %vm13869_vm0, %v13868_v1 }
 0xaaa   :  { %12738 = vmatprep.subr.bf16.mxu1 %v13868_v1 }
 0xaac   :  { %12723 = vmatmul.mubr.msk.bf16.vlgmr.msra.gmra.mxu0 %vm1983_vm8, %v2203_v60 }
 0xaad   :  { %12734 = vmatprep.mubr.msk.bf16.mxu0 %vm13869_vm0, %v13868_v1 }
 0xab0   :  { %12729 = vmatmul.mubr.msk.bf16.vlgmr.msra.gmra.mxu1 %vm1983_vm8, %v2253_v51 }
 0xab1   :  { %12740 = vmatprep.mubr.msk.bf16.mxu1 %vm13869_vm0, %v13868_v1 }
 0xb64   :  { %v14562_v52 = vpop.f32.mrf.mxu0 }
 0xb66   :  { %v12712_v53 = vpop.f32.mrf.mxu0 }
 0xb68   :  { %v2151_v54 = vpop.f32.mrf.mxu0  ;;  %v14564_v3 = vpop.f32.mrf.mxu1 }
 0xb6a   :  { %v12713_v55 = vpop.f32.mrf.mxu0  ;;  %v12718_v56 = vpop.f32.mrf.mxu1 }
 0xb6c   :  { %v2199_v57 = vpop.f32.mrf.mxu1  ;;  %v2246_v58 = vpop.f32.mrf.mxu0 }
 0xb6d   :  { %v2302_v59 = vmul.f32 0.35355338, %v2246_v58 }
 0xb6e   :  { %v12719_v13 = vpop.f32.mrf.mxu1  ;;  %v12724_v61 = vpop.f32.mrf.mxu0 }
 0xb6f   :  { %v2304_v16 = vsel %vm1983_vm8, %v2302_v59, -inf }
 0xb70   :  { %v2296_v63 = vpop.f32.mrf.mxu1  ;;  %2305 = vmax.xlane.f32.xlu1 %v2304_v16  ;;  %v2249_v2 = vpop.f32.mrf.mxu0 }
 0xb71   :  { %v2303_v8 = vmul.f32 0.35355338, %v2296_v63 }
 0xb72   :  { %v12725_v9 = vpop.f32.mrf.mxu0  ;;  %v12730_v46 = vpop.f32.mrf.mxu1 }
 0xb73   :  { %v2307_v48 = vsel %vm1983_vm8, %v2303_v8, -inf }
 0xb74   :  { %2308 = vmax.xlane.f32.xlu0 %v2307_v48  ;;  %v2299_v19 = vpop.f32.mrf.mxu1 }
 0xb76   :  { %v12731_v20 = vpop.f32.mrf.mxu1 }
 0xb81   :  { %2328 = vrot.lane.b32.xlu1 %v14499_v39, %s16665_s9 }
 0xb85   :  { %2426 = vrot.lane.b32.xlu1 %v14499_v39, %s16681_s30 }
 0xb8a   :  { %2376 = vrot.lane.b32.xlu0 %v14503_v37, %s16665_s9  ;;  %s16714_s9 = sld [smem:[#allocation14_spill]] }
 0xb8e   :  { %2424 = vrot.lane.b32.xlu0 %v14499_v39, %s16679_s2 }
 0xbf9   :  { %v2306_v10 = vpop.xlane.xlu1 %2305 }
 0xbfa   :  { %v2310_v11 = vsub.f32 %v2302_v59, %v2306_v10 }
 0xbfc   :  { %v2312_v14 = vmul.f32 1.442695, %v2310_v11 }
 0xbfd   :  { %v2309_v33 = vpop.xlane.xlu0 %2308  ;;  %v2329_v26 = vpop.permute.xlu1 %2328 }
 0xbfe   :  { %13691 = vpow2.f32 %v2312_v14  ;;  %v2311_v23 = vsub.f32 %v2303_v8, %v2309_v33  ;;  %v2334_v30 = vsel %vm2110_vm9, %v2329_v26, 0 }
 0xbff   :  { %12733 = vmatpush3.bf16.msra.mxu0 %v2334_v30 }
 0xc00   :  { %v2314_v34 = vmul.f32 1.442695, %v2311_v23  ;;  %12744 = vmatprep.subr.bf16.mxu0 %v13868_v1 }
 0xc01   :  { %v2377_v15 = vpop.permute.xlu0 %2376  ;;  %v2427_v44 = vpop.permute.xlu1 %2426 }
 0xc02   :  { %13693 = vpow2.f32 %v2314_v34  ;;  %v2382_v17 = vsel %vm2110_vm9, %v2377_v15, 0  ;;  %v2432_v6 = vsel %vm1983_vm8, %v2427_v44, 0 }
 0xc03   :  { %12739 = vmatpush3.bf16.msra.mxu1 %v2382_v17 }
 0xc04   :  { %12750 = vmatprep.subr.bf16.mxu1 %v13868_v1 }
 0xc05   :  { %v2425_v24 = vpop.permute.xlu0 %2424 }
 0xc0b   :  { %v13692_v18 = vpop.eup %13691 }
 0xc0c   :  { %v2316_v43 = vsel %vm1983_vm8, %v13692_v18, 0.0 }
 0xc0d   :  { %2317 = vadd.xlane.f32.xlu1 %v2316_v43 }
 0xc0f   :  { %v13694_v45 = vpop.eup %13693 }
 0xc10   :  { %v2319_v47 = vsel %vm1983_vm8, %v13694_v45, 0.0 }
 0xc11   :  { %2320 = vadd.xlane.f32.xlu1 %v2319_v47 }
 0xc22   :  { %2476 = vrot.lane.b32.xlu1 %v14503_v37, %s16681_s30 }
 0xc26   :  { %2474 = vrot.lane.b32.xlu1 %v14503_v37, %s16679_s2 }
 0xc96   :  { %v2318_v49 = vpop.xlane.xlu1 %2317 }
 0xc97   :  { %13695 = vrcp.f32 %v2318_v49 }
 0xc9a   :  { %v2321_v38 = vpop.xlane.xlu1 %2320 }
 0xc9b   :  { %13697 = vrcp.f32 %v2321_v38 }
 0xc9e   :  { %v2477_v25 = vpop.permute.xlu1 %2476 }
 0xc9f   :  { %v2482_v7 = vsel %vm1983_vm8, %v2477_v25, 0 }
 0xca2   :  { %v2475_v28 = vpop.permute.xlu1 %2474 }
 0xca4   :  { %v13696_v50 = vpop.eup %13695 }
 0xca5   :  { %v2324_v31 = vmul.f32 %v13696_v50, %v13692_v18 }
 0xca7   :  { %v2326_v32 = vpack.c.bf16 %v2324_v31, %v2324_v31 }
 0xca8   :  { %v13698_v21 = vpop.eup %13697 }
 0xca9   :  { %12735 = vmatmul.mubr.msk.bf16.vlgmr.msra.gmra.mxu0 %vm1983_vm8, %v2326_v32  ;;  %v2325_v22 = vmul.f32 %v13698_v21, %v13694_v45 }
 0xcaa   :  { %12745 = vmatpush3.bf16.xpose.msra.mxu0 %v2432_v6  ;;  %12746 = vmatprep.mubr.msk.bf16.mxu0 %vm13869_vm0, %v13868_v1 }
 0xcab   :  { %v2327_v27 = vpack.c.bf16 %v2325_v22, %v2325_v22  ;;  %12756 = vmatprep.subr.bf16.mxu0 %v13868_v1 }
 0xcad   :  { %12741 = vmatmul.mubr.msk.bf16.vlgmr.msra.gmra.mxu1 %vm1983_vm8, %v2327_v27 }
 0xcae   :  { %12751 = vmatpush3.bf16.xpose.msra.mxu1 %v2482_v7  ;;  %12752 = vmatprep.mubr.msk.bf16.mxu1 %vm13869_vm0, %v13868_v1 }
 0xcaf   :  { %12762 = vmatprep.subr.bf16.mxu1 %v13868_v1 }
 0xcb1   :  { %12747 = vmatmul.mubr.msk.bf16.vlgmr.msra.gmra.mxu0 %vm1983_vm8, %v2425_v24 }
 0xcb2   :  { %12758 = vmatprep.mubr.msk.bf16.mxu0 %vm13869_vm0, %v13868_v1 }
 0xcb5   :  { %12753 = vmatmul.mubr.msk.bf16.vlgmr.msra.gmra.mxu1 %vm1983_vm8, %v2475_v28 }
 0xcb6   :  { %12764 = vmatprep.mubr.msk.bf16.mxu1 %vm13869_vm0, %v13868_v1 }
 0xd69   :  { %v14602_v29 = vpop.f32.mrf.mxu0 }
 0xd6b   :  { %v12736_v35 = vpop.f32.mrf.mxu0 }
 0xd6d   :  { %v2373_v0 = vpop.f32.mrf.mxu0  ;;  %v14604_v4 = vpop.f32.mrf.mxu1 }
 0xd6e   :  { %v13180_v40 = vpack.i.bf16 %v14604_v4, %v14602_v29 }
 0xd6f   :  { %v12737_v41 = vpop.f32.mrf.mxu0  ;;  %v12742_v42 = vpop.f32.mrf.mxu1 }
 0xd71   :  { %v2421_v5 = vpop.f32.mrf.mxu1  ;;  %v2468_v60 = vpop.f32.mrf.mxu0 }
 0xd72   :  { %v2524_v51 = vmul.f32 0.35355338, %v2468_v60 }
 0xd73   :  { %v12743_v53 = vpop.f32.mrf.mxu1  ;;  %v12748_v54 = vpop.f32.mrf.mxu0 }
 0xd74   :  { %v2526_v55 = vsel %vm1983_vm8, %v2524_v51, -inf }
 0xd75   :  { %v2518_v56 = vpop.f32.mrf.mxu1  ;;  %2527 = vmax.xlane.f32.xlu0 %v2526_v55  ;;  %v2471_v57 = vpop.f32.mrf.mxu0 }
 0xd76   :  { %v2525_v58 = vmul.f32 0.35355338, %v2518_v56 }
 0xd77   :  { %v12749_v59 = vpop.f32.mrf.mxu0  ;;  %v12754_v13 = vpop.f32.mrf.mxu1 }
 0xd78   :  { %v2529_v61 = vsel %vm1983_vm8, %v2525_v58, -inf }
 0xd79   :  { %2530 = vmax.xlane.f32.xlu1 %v2529_v61  ;;  %v2521_v16 = vpop.f32.mrf.mxu1 }
 0xd7b   :  { %v12755_v63 = vpop.f32.mrf.mxu1 }
 0xd8a   :  { %2550 = vrot.lane.b32.xlu1 %v14499_v39, %s16663_s5 }
 0xd8e   :  { %2648 = vrot.lane.b32.xlu1 %v14499_v39, %s16675_s6 }
 0xd92   :  { %2698 = vrot.lane.b32.xlu1 %v14503_v37, %s16675_s6  ;;  %s16719_s6 = smov 16  }
 0xd96   :  { %2696 = vrot.lane.b32.xlu1 %v14503_v37, %s16677_s1 }
 0xdfe   :  { %v2528_v2 = vpop.xlane.xlu0 %2527 }
 0xdff   :  { %v2532_v8 = vsub.f32 %v2524_v51, %v2528_v2 }
 0xe01   :  { %v2534_v9 = vmul.f32 1.442695, %v2532_v8 }
 0xe02   :  { %v2531_v46 = vpop.xlane.xlu1 %2530 }
 0xe03   :  { %13699 = vpow2.f32 %v2534_v9  ;;  %v2533_v48 = vsub.f32 %v2525_v58, %v2531_v46 }
 0xe05   :  { %v2536_v19 = vmul.f32 1.442695, %v2533_v48 }
 0xe06   :  { %v2551_v20 = vpop.permute.xlu1 %2550 }
 0xe07   :  { %13701 = vpow2.f32 %v2536_v19  ;;  %v2556_v10 = vsel %vm2110_vm9, %v2551_v20, 0 }
 0xe08   :  { %12757 = vmatpush3.bf16.msra.mxu0 %v2556_v10 }
 0xe09   :  { %12768 = vmatprep.subr.bf16.mxu0 %v13868_v1 }
 0xe0a   :  { %v2649_v18 = vpop.permute.xlu1 %2648 }
 0xe0b   :  { %v2654_v44 = vsel %vm1983_vm8, %v2649_v18, 0 }
 0xe0e   :  { %v2699_v38 = vpop.permute.xlu1 %2698 }
 0xe0f   :  { %v2704_v31 = vsel %vm1983_vm8, %v2699_v38, 0 }
 0xe10   :  { %v13700_v11 = vpop.eup %13699 }
 0xe11   :  { %v2538_v14 = vsel %vm1983_vm8, %v13700_v11, 0.0 }
 0xe12   :  { %2539 = vadd.xlane.f32.xlu0 %v2538_v14  ;;  %v2697_v21 = vpop.permute.xlu1 %2696 }
 0xe14   :  { %v13702_v33 = vpop.eup %13701 }
 0xe15   :  { %v2541_v26 = vsel %vm1983_vm8, %v13702_v33, 0.0 }
 0xe16   :  { %2542 = vadd.xlane.f32.xlu0 %v2541_v26 }
 0xe2c   :  { %2598 = vrot.lane.b32.xlu0 %v14503_v37, %s16663_s5  ;;  %s16718_s5 = smov 8  }
 0xe30   :  { %2646 = vrot.lane.b32.xlu0 %v14499_v39, %s16677_s1 }
 0xe9b   :  { %v2540_v23 = vpop.xlane.xlu0 %2539 }
 0xe9c   :  { %13703 = vrcp.f32 %v2540_v23 }
 0xe9f   :  { %v2543_v30 = vpop.xlane.xlu0 %2542 }
 0xea0   :  { %13705 = vrcp.f32 %v2543_v30  ;;  %v13251_v30 = vld [vmem:[%s16714_s9 + $0x8] sm:$0xff]  }
 0xea3   :  { %v2599_v34 = vpop.permute.xlu0 %2598 }
 0xea4   :  { %v2604_v15 = vsel %vm2110_vm9, %v2599_v34, 0  ;;  %v13252_v34 = vld [vmem:[%s16714_s9] sm:$0xff]  }
 0xea5   :  { %12763 = vmatpush3.bf16.msra.mxu1 %v2604_v15 }
 0xea6   :  { %12774 = vmatprep.subr.bf16.mxu1 %v13868_v1 }
 0xea7   :  { %v2647_v32 = vpop.permute.xlu0 %2646 }
 0xea9   :  { %v13704_v17 = vpop.eup %13703 }
 0xeaa   :  { %v2546_v43 = vmul.f32 %v13704_v17, %v13700_v11 }
 0xeac   :  { %v2548_v45 = vpack.c.bf16 %v2546_v43, %v2546_v43 }
 0xead   :  { %v13706_v47 = vpop.eup %13705 }
 0xeae   :  { %12759 = vmatmul.mubr.msk.bf16.vlgmr.msra.gmra.mxu0 %vm1983_vm8, %v2548_v45  ;;  %v2547_v49 = vmul.f32 %v13706_v47, %v13702_v33 }
 0xeaf   :  { %12769 = vmatpush3.bf16.xpose.msra.mxu0 %v2654_v44  ;;  %12770 = vmatprep.mubr.msk.bf16.mxu0 %vm13869_vm0, %v13868_v1 }
 0xeb0   :  { %v2549_v50 = vpack.c.bf16 %v2547_v49, %v2547_v49  ;;  %12780 = vmatprep.subr.bf16.mxu0 %v13868_v1 }
 0xeb2   :  { %12765 = vmatmul.mubr.msk.bf16.vlgmr.msra.gmra.mxu1 %vm1983_vm8, %v2549_v50 }
 0xeb3   :  { %12775 = vmatpush3.bf16.xpose.msra.mxu1 %v2704_v31  ;;  %12776 = vmatprep.mubr.msk.bf16.mxu1 %vm13869_vm0, %v13868_v1 }
 0xeb4   :  { %12786 = vmatprep.subr.bf16.mxu1 %v13868_v1 }
 0xeb6   :  { %12771 = vmatmul.mubr.msk.bf16.vlgmr.msra.gmra.mxu0 %vm1983_vm8, %v2647_v32 }
 0xeb7   :  { %12782 = vmatprep.mubr.msk.bf16.mxu0 %vm13869_vm0, %v13868_v1 }
 0xeba   :  { %12777 = vmatmul.mubr.msk.bf16.vlgmr.msra.gmra.mxu1 %vm1983_vm8, %v2697_v21 }
 0xebb   :  { %12788 = vmatprep.mubr.msk.bf16.mxu1 %vm13869_vm0, %v13868_v1 }
 0xf6e   :  { %v2592_v6 = vpop.f32.mrf.mxu0 }
 0xf70   :  { %v12760_v22 = vpop.f32.mrf.mxu0 }
 0xf72   :  { %v2595_v25 = vpop.f32.mrf.mxu0  ;;  %v2640_v27 = vpop.f32.mrf.mxu1 }
 0xf73   :  { %v13185_v59 = vpack.i.bf16 %v2640_v27, %v2592_v6 }
 0xf74   :  { %v12761_v7 = vpop.f32.mrf.mxu0  ;;  %v12766_v24 = vpop.f32.mrf.mxu1 }
 0xf76   :  { %v2643_v28 = vpop.f32.mrf.mxu1  ;;  %v2690_v35 = vpop.f32.mrf.mxu0 }
 0xf77   :  { %v2746_v0 = vmul.f32 0.35355338, %v2690_v35 }
 0xf78   :  { %v12767_v41 = vpop.f32.mrf.mxu1  ;;  %v12772_v42 = vpop.f32.mrf.mxu0 }
 0xf79   :  { %v2748_v5 = vsel %vm1983_vm8, %v2746_v0, -inf }
 0xf7a   :  { %v2740_v60 = vpop.f32.mrf.mxu1  ;;  %2749 = vmax.xlane.f32.xlu0 %v2748_v5  ;;  %v2693_v51 = vpop.f32.mrf.mxu0 }
 0xf7b   :  { %v2747_v53 = vmul.f32 0.35355338, %v2740_v60 }
 0xf7c   :  { %v12773_v54 = vpop.f32.mrf.mxu0  ;;  %v12778_v55 = vpop.f32.mrf.mxu1 }
 0xf7d   :  { %v2751_v56 = vsel %vm1983_vm8, %v2747_v53, -inf }
 0xf7e   :  { %2752 = vmax.xlane.f32.xlu1 %v2751_v56  ;;  %v2743_v57 = vpop.f32.mrf.mxu1 }
 0xf80   :  { %v12779_v58 = vpop.f32.mrf.mxu1 }
 0xf8f   :  { %2772 = vrot.lane.b32.xlu1 %v14499_v39, %s16661_s27 }
 0xf93   :  { %13181 = vrot.lane.b32.xlu1 %v13180_v40, %s16671_s10  ;;  %s16673_s10 = smov 24  }
 0xf97   :  { %13186 = vrot.lane.b32.xlu1 %v13185_v59, %s16669_s3  ;;  %s16717_s3 = smov 72  }
0x1003   :  { %v2750_v13 = vpop.xlane.xlu0 %2749 }
0x1004   :  { %v2754_v61 = vsub.f32 %v2746_v0, %v2750_v13  ;;  %v13253_v13 = vld [vmem:[%s16716_s4 + $0x8] sm:$0xff]  }
0x1006   :  { %v2756_v16 = vmul.f32 1.442695, %v2754_v61 }
0x1007   :  { %v2753_v63 = vpop.xlane.xlu1 %2752 }
0x1008   :  { %13707 = vpow2.f32 %v2756_v16  ;;  %v2755_v2 = vsub.f32 %v2747_v53, %v2753_v63 }
0x100a   :  { %v2758_v8 = vmul.f32 1.442695, %v2755_v2 }
0x100b   :  { %v2773_v9 = vpop.permute.xlu1 %2772 }
0x100c   :  { %13709 = vpow2.f32 %v2758_v8  ;;  %v2778_v39 = vsel %vm2110_vm9, %v2773_v9, 0 }
0x100d   :  { %12781 = vmatpush3.bf16.msra.mxu0 %v2778_v39 }
0x100e   :  { %12792 = vmatprep.subr.bf16.mxu0 %v13868_v1 }
0x100f   :  { %v13182_v50 = vpop.permute.xlu1 %13181 }
0x1010   :  { %v13184_v32 = vunpack.i.h.bf16 %v13182_v50  ;;  %v13183_v21 = vunpack.i.l.bf16 %v13182_v50 }
0x1012   :  { %v2893_v27 = vsel %vm1983_vm8, %v14564_v3, %v13184_v32  ;;  %v2892_v7 = vsel %vm1983_vm8, %v14562_v52, %v13183_v21  ;;  %v11057_v21 = vld [vmem:[%s16642_s19] ss:$0 sm:$0xff] }
0x1013   :  { %v13187_v31 = vpop.permute.xlu1 %13186 }
0x1014   :  { %v13189_v6 = vunpack.i.h.bf16 %v13187_v31  ;;  %v13188_v22 = vunpack.i.l.bf16 %v13187_v31 }
0x1015   :  { %v13708_v29 = vpop.eup %13707 }
0x1016   :  { %v2760_v4 = vsel %vm1983_vm8, %v13708_v29, 0.0  ;;  %v2895_v35 = vsel %vm109_vm1, %v2893_v27, %v13189_v6  ;;  %v2894_v0 = vsel %vm109_vm1, %v2892_v7, %v13188_v22 }
0x1017   :  { %2761 = vadd.xlane.f32.xlu0 %v2760_v4 }
0x1019   :  { %v13710_v40 = vpop.eup %13709 }
0x101a   :  { %v2763_v46 = vsel %vm1983_vm8, %v13710_v40, 0.0 }
0x101b   :  { %2764 = vadd.xlane.f32.xlu0 %v2763_v46 }
0x1031   :  { %2820 = vrot.lane.b32.xlu0 %v14503_v37, %s16661_s27  ;;  %s16715_s27 = sld [smem:[#allocation15_spill]] }
0x1037   :  { %v11051_v52 = vld [vmem:[%s16715_s27] ss:$0 sm:$0xff] }
0x10a0   :  { %v2762_v48 = vpop.xlane.xlu0 %2761 }
0x10a1   :  { %13711 = vrcp.f32 %v2762_v48  ;;  %v13885_v48 = vmov 1983009808  }
0x10a4   :  { %v2765_v19 = vpop.xlane.xlu0 %2764 }
0x10a5   :  { %13713 = vrcp.f32 %v2765_v19  ;;  %v3100_v19 = vunpack.c.l.s4 %v13885_v48 }
0x10a8   :  { %v2821_v20 = vpop.permute.xlu0 %2820 }
0x10a9   :  { %v2826_v10 = vsel %vm2110_vm9, %v2821_v20, 0  ;;  %v3102_v20 = vlaneseq }
0x10aa   :  { %12787 = vmatpush3.bf16.msra.mxu1 %v2826_v10 }
0x10ab   :  { %12800 = vmatprep.subr.bf16.mxu1 %v13868_v1 }
0x10ae   :  { %v13712_v11 = vpop.eup %13711 }
0x10af   :  { %v2768_v14 = vmul.f32 %v13712_v11, %v13708_v29 }
0x10b1   :  { %v2770_v33 = vpack.c.bf16 %v2768_v14, %v2768_v14  ;;  %v3101_v14 = vunpack.c.0.s8 %v3100_v19 }
0x10b2   :  { %v13714_v26 = vpop.eup %13713 }
0x10b3   :  { %12783 = vmatmul.mubr.msk.bf16.vlgmr.msra.gmra.mxu0 %vm1983_vm8, %v2770_v33  ;;  %v2769_v23 = vmul.f32 %v13714_v26, %v13710_v40  ;;  %v11058_v40 = vld [vmem:[%s16634_s11] ss:$0 sm:$0xff]  ;;  %v14710_v33 = vshrl.u32 %v3102_v20, 7 }
0x10b4   :  { %12796 = vmatprep.mubr.msk.bf16.mxu0 %vm13869_vm0, %v13868_v1  ;;  %12793 = vmatpush3.bf16.msra.mxu0 %v13251_v30  ;;  %v3112_v46 = vcombine.low %v11058_v40, %v11058_v40 }
0x10b5   :  { %v2771_v37 = vpack.c.bf16 %v2769_v23, %v2769_v23  ;;  %12794 = vmatprep.subr.bf16.mxu0 %v13868_v1  ;;  %v1895_v23 = vld [vmem:[#allocation2] sm:$0xf] }
0x10b7   :  { %12789 = vmatmul.mubr.msk.bf16.vlgmr.msra.gmra.mxu1 %vm1983_vm8, %v2771_v37  ;;  %v1896_v37 = vld [vmem:[#allocation2 + $0x4] sm:$0xf] }
0x10b8   :  { %12804 = vmatprep.mubr.msk.bf16.mxu1 %vm13869_vm0, %v13868_v1  ;;  %12795 = vmatpush3.bf16.msra.mxu0 %v13252_v34 }
0x10b9   :  { %12808 = vmatprep.subr.bf16.mxu0 %v13868_v1  ;;  %12801 = vmatpush3.bf16.msra.mxu1 %v13253_v13 }
0x10ba   :  { %12802 = vmatprep.subr.bf16.mxu1 %v13868_v1 }
0x1173   :  { %v2814_v15 = vpop.f32.mrf.mxu0 }
0x1175   :  { %v12784_v17 = vpop.f32.mrf.mxu0 }
0x1176   :  { %v11063_v17 = vpack.c.bf16 %v1896_v37, %v1895_v23 }
0x1177   :  { %v2817_v18 = vpop.f32.mrf.mxu0  ;;  %v2862_v43 = vpop.f32.mrf.mxu1 }
0x1178   :  { %v13190_v45 = vpack.i.bf16 %v2862_v43, %v2814_v15  ;;  %v3104_v18 = vsub.s32 %v3101_v14, %v14710_v33 }
0x1179   :  { %v12785_v47 = vpop.f32.mrf.mxu0  ;;  %v12790_v44 = vpop.f32.mrf.mxu1 }
0x117a   :  { %13191 = vrot.lane.b32.xlu0 %v13190_v45, %s16673_s10  ;;  %v14714_v47 = vrot.slane %v11063_v17, %v3104_v18  ;;  %s16728_s10 = smov 48  }
0x117b   :  { %v2865_v49 = vpop.f32.mrf.mxu1 }
0x117d   :  { %v12791_v38 = vpop.f32.mrf.mxu1 }
0x117e   :  { %v11056_v38 = vld [vmem:[%s16641_s18] ss:$0 sm:$0xff] }
0x11ec   :  { %v13192_v25 = vpop.permute.xlu0 %13191 }
0x11ed   :  { %v13194_v24 = vunpack.i.h.bf16 %v13192_v25  ;;  %v13193_v28 = vunpack.i.l.bf16 %v13192_v25 }
0x11ef   :  { %v2898_v41 = vsel %vm2896_vm10, %v2895_v35, %v13194_v24  ;;  %v2897_v42 = vsel %vm2896_vm10, %v2894_v0, %v13193_v28 }
0x11f0   :  { %v11845_v5 = vpack.c.bf16 %v2898_v41, %v2897_v42 }
0x11f2   :  { %12797 = vmatmul.mubr.msk.bf16.vlgmr.msra.gmra.mxu0 %vm307_vm3, %v11845_v5 }
0x11f3   :  { %12812 = vmatprep.mubr.msk.bf16.mxu0 %vm13869_vm0, %v13868_v1 }
0x12b2   :  { %v2961_v3 = vpop.f32.mrf.mxu0 }
0x12b3   :  { %v2962_v60 = vadd.f32 %v11051_v52, %v2961_v3 }
0x12b4   :  { %v12798_v51 = vpop.f32.mrf.mxu0 }
0x12b5   :  { %v2968_v53 = vadd.f32 %v2962_v60, %v14464_v36  ;;  %v13254_v36 = vld [vmem:[%s16716_s4] sm:$0xff]  }
0x12b6   :  { %v2964_v54 = vpop.f32.mrf.mxu0  ;;  %12803 = vmatpush3.bf16.msra.mxu1 %v13254_v36 }
0x12b7   :  { %v2965_v55 = vadd.f32 %v11051_v52, %v2964_v54  ;;  %v2972_v56 = vsel %vm307_vm3, %v2968_v53, 0.0  ;;  %12816 = vmatprep.subr.bf16.mxu1 %v13868_v1 }
0x12b8   :  { %2973 = vadd.xlane.f32.xlu1 %v2972_v56  ;;  %v12799_v57 = vpop.f32.mrf.mxu0 }
0x12b9   :  { %v2969_v58 = vadd.f32 %v2965_v55, %v14469_v62 }
0x12bb   :  { %v2975_v59 = vsel %vm307_vm3, %v2969_v58, 0.0 }
0x12bc   :  { %2976 = vadd.xlane.f32.xlu0 %v2975_v59 }
0x1341   :  { %v2974_v61 = vpop.xlane.xlu1 %2973 }
0x1342   :  { %v2979_v16 = vmul.f32 0.03125, %v2974_v61 }
0x1344   :  { %v2981_v62 = vsub.f32 %v2968_v53, %v2979_v16 }
0x1345   :  { %v2977_v63 = vpop.xlane.xlu0 %2976 }
0x1346   :  { %v2980_v2 = vmul.f32 0.03125, %v2977_v63  ;;  %v2983_v8 = vmul.f32 %v2981_v62, %v2981_v62 }
0x1348   :  { %v2982_v9 = vsub.f32 %v2969_v58, %v2980_v2  ;;  %v2985_v39 = vsel %vm307_vm3, %v2983_v8, 0.0 }
0x1349   :  { %2986 = vadd.xlane.f32.xlu0 %v2985_v39 }
0x134a   :  { %v2984_v29 = vmul.f32 %v2982_v9, %v2982_v9 }
0x134c   :  { %v2988_v4 = vsel %vm307_vm3, %v2984_v29, 0.0 }
0x134d   :  { %2989 = vadd.xlane.f32.xlu1 %v2988_v4 }
0x135e   :  { %3106 = vrot.lane.b32.xlu1 %v13254_v36, %s16687_s8 }
0x135f   :  { %3108 = vrot.lane.b32.xlu0 %v13253_v13, %s16687_s8 }
0x1362   :  { %3113 = vrot.lane.b32.xlu1 %v3112_v46, %s16687_s8 }
0x13d2   :  { %v2987_v10 = vpop.xlane.xlu0 %2986 }
0x13d3   :  { %v2991_v11 = vmul.f32 0.03125, %v2987_v10 }
0x13d5   :  { %v2993_v26 = vadd.f32 1e-05, %v2991_v11 }
0x13d6   :  { %v2990_v30 = vpop.xlane.xlu1 %2989  ;;  %v3109_v34 = vpop.permute.xlu0 %3108 }
0x13d7   :  { %13715 = vrsqrt.f32 %v2993_v26  ;;  %v2992_v15 = vmul.f32 0.03125, %v2990_v30  ;;  %12809 = vmatpush3.bf16.msra.mxu0 %v3109_v34 }
0x13d8   :  { %12810 = vmatprep.subr.bf16.mxu0 %v13868_v1 }
0x13d9   :  { %v2994_v43 = vadd.f32 1e-05, %v2992_v15 }
0x13da   :  { %v3107_v45 = vpop.permute.xlu1 %3106 }
0x13db   :  { %13717 = vrsqrt.f32 %v2994_v43  ;;  %12811 = vmatpush3.bf16.msra.mxu0 %v3107_v45 }
0x13dc   :  { %12822 = vmatprep.subr.bf16.mxu0 %v13868_v1 }
0x13de   :  { %12813 = vmatmul.mubr.msk.bf16.vlgmr.msra.gmra.mxu0 %vm307_vm3, %v14714_v47  ;;  %v3114_v7 = vpop.permute.xlu1 %3113 }
0x13df   :  { %12824 = vmatprep.mubr.msk.bf16.mxu0 %vm13869_vm0, %v13868_v1 }
0x13e4   :  { %v13716_v44 = vpop.eup %13715 }
0x13e5   :  { %v2997_v49 = vmul.f32 %v13716_v44, %v2981_v62 }
0x13e7   :  { %v3005_v32 = vmul.f32 %v11056_v38, %v2997_v49 }
0x13e8   :  { %v13718_v50 = vpop.eup %13717 }
0x13e9   :  { %v2998_v31 = vmul.f32 %v13718_v50, %v2982_v9  ;;  %v14727_v22 = vadd.f32 %v11057_v21, %v3005_v32 }
0x13eb   :  { %v3006_v6 = vmul.f32 %v11056_v38, %v2998_v31 }
0x13ed   :  { %v14729_v25 = vadd.f32 %v11057_v21, %v3006_v6 }
0x13ef   :  { %v11846_v27 = vpack.c.bf16 %v14729_v25, %v14727_v22 }
0x13f1   :  { %12805 = vmatmul.mubr.msk.bf16.vlgmr.msra.gmra.mxu1 %vm307_vm3, %v11846_v27 }
0x13f2   :  { %12818 = vmatprep.mubr.msk.bf16.mxu1 %vm13869_vm0, %v13868_v1 }
0x149e   :  { %v3153_v24 = vpop.f32.mrf.mxu0 }
0x149f   :  { %v3154_v28 = vadd.f32 %v3153_v24, %v3114_v7 }
0x14a0   :  { %v12814_v35 = vpop.f32.mrf.mxu0 }
0x14a1   :  { %v3160_v0 = vcombine.high %v3154_v28, %v3154_v28  ;;  %v14736_v41 = vpack.c.bf16 %v3154_v28, %v3154_v28 }
0x14a2   :  { %v3156_v42 = vpop.f32.mrf.mxu0 }
0x14a3   :  { %v14738_v5 = vpack.c.bf16 %v3160_v0, %v3160_v0  ;;  %v3170_v52 = vsel %vm1983_vm8, %v14736_v41, 0 }
0x14a4   :  { %v12815_v3 = vpop.f32.mrf.mxu0  ;;  %12817 = vmatpush3.bf16.xpose.msra.mxu1 %v3170_v52 }
0x14a5   :  { %v3216_v60 = vsel %vm1983_vm8, %v14738_v5, 0  ;;  %12828 = vmatprep.subr.bf16.mxu1 %v13868_v1 }
0x14a6   :  { %12823 = vmatpush3.bf16.xpose.msra.mxu0 %v3216_v60 }
0x14a7   :  { %12834 = vmatprep.subr.bf16.mxu0 %v13868_v1 }
0x14b1   :  { %v3087_v51 = vpop.f32.mrf.mxu1 }
0x14b2   :  { %v3088_v53 = vadd.f32 %v11058_v40, %v3087_v51 }
0x14b3   :  { %v12806_v54 = vpop.f32.mrf.mxu1 }
0x14b4   :  { %v14746_v55 = vpack.c.bf16 %v3088_v53, %v3088_v53 }
0x14b5   :  { %v3090_v56 = vpop.f32.mrf.mxu1 }
0x14b6   :  { %v3091_v57 = vadd.f32 %v11058_v40, %v3090_v56  ;;  %12819 = vmatmul.mubr.msk.bf16.vlgmr.msra.gmra.mxu1 %vm1983_vm8, %v14746_v55 }
0x14b7   :  { %v12807_v58 = vpop.f32.mrf.mxu1  ;;  %12830 = vmatprep.mubr.msk.bf16.mxu1 %vm13869_vm0, %v13868_v1 }
0x14b8   :  { %v14752_v59 = vpack.c.bf16 %v3091_v57, %v3091_v57 }
0x14ba   :  { %12825 = vmatmul.mubr.msk.bf16.vlgmr.msra.gmra.mxu0 %vm1983_vm8, %v14752_v59 }
0x14bb   :  { %12836 = vmatprep.mubr.msk.bf16.mxu0 %vm13869_vm0, %v13868_v1 }
0x1576   :  { %v3206_v13 = vpop.f32.mrf.mxu1 }
0x1577   :  { %v3258_v36 = vmul.f32 0.35355338, %v3206_v13 }
0x1578   :  { %v12820_v61 = vpop.f32.mrf.mxu1 }
0x1579   :  { %v3261_v16 = vsel %vm3260_vm11, %v3258_v36, -inf }
0x157a   :  { %3262 = vmax.xlane.f32.xlu0 %v3261_v16  ;;  %v3209_v62 = vpop.f32.mrf.mxu1  ;;  %v3252_v63 = vpop.f32.mrf.mxu0 }
0x157b   :  { %v3259_v2 = vmul.f32 0.35355338, %v3252_v63 }
0x157c   :  { %v12821_v8 = vpop.f32.mrf.mxu1  ;;  %v12826_v9 = vpop.f32.mrf.mxu0 }
0x157d   :  { %v3264_v39 = vsel %vm3260_vm11, %v3259_v2, -inf }
0x157e   :  { %3265 = vmax.xlane.f32.xlu1 %v3264_v39  ;;  %v3255_v29 = vpop.f32.mrf.mxu0 }
0x1580   :  { %v12827_v4 = vpop.f32.mrf.mxu0 }
0x158f   :  { %3286 = vrot.lane.b32.xlu1 %v14736_v41, %s16687_s8 }
0x1593   :  { %3387 = vrot.lane.b32.xlu1 %v14736_v41, %s16683_s0 }
0x1597   :  { %3438 = vrot.lane.b32.xlu1 %v14738_v5, %s16683_s0 }
0x159b   :  { %3436 = vrot.lane.b32.xlu1 %v14752_v59, %s16683_s0 }
0x1603   :  { %v3263_v40 = vpop.xlane.xlu0 %3262 }
0x1604   :  { %v3267_v46 = vsub.f32 %v3258_v36, %v3263_v40 }
0x1606   :  { %v3269_v48 = vmul.f32 1.442695, %v3267_v46 }
0x1607   :  { %v3266_v19 = vpop.xlane.xlu1 %3265 }
0x1608   :  { %13719 = vpow2.f32 %v3269_v48  ;;  %v3268_v20 = vsub.f32 %v3259_v2, %v3266_v19 }
0x160a   :  { %v3271_v10 = vmul.f32 1.442695, %v3268_v20 }
0x160b   :  { %v3287_v11 = vpop.permute.xlu1 %3286 }
0x160c   :  { %13721 = vpow2.f32 %v3271_v10  ;;  %v3293_v14 = vsel %vm3291_vm12, %v3287_v11, 0 }
0x160d   :  { %12829 = vmatpush3.bf16.msra.mxu1 %v3293_v14 }
0x160e   :  { %12840 = vmatprep.subr.bf16.mxu1 %v13868_v1 }
0x160f   :  { %v3388_v45 = vpop.permute.xlu1 %3387 }
0x1610   :  { %v3393_v50 = vsel %vm1983_vm8, %v3388_v45, 0 }
0x1613   :  { %v3439_v32 = vpop.permute.xlu1 %3438 }
0x1614   :  { %v3444_v6 = vsel %vm1983_vm8, %v3439_v32, 0 }
0x1615   :  { %v13720_v26 = vpop.eup %13719 }
0x1616   :  { %v3273_v23 = vsel %vm3260_vm11, %v13720_v26, 0.0 }
0x1617   :  { %3274 = vadd.xlane.f32.xlu0 %v3273_v23  ;;  %v3437_v7 = vpop.permute.xlu1 %3436 }
0x1619   :  { %v13722_v37 = vpop.eup %13721 }
0x161a   :  { %v3276_v30 = vsel %vm3260_vm11, %v13722_v37, 0.0 }
0x161b   :  { %3277 = vadd.xlane.f32.xlu0 %v3276_v30 }
0x1631   :  { %3336 = vrot.lane.b32.xlu0 %v14738_v5, %s16687_s8  ;;  %s16723_s8 = smov 88  }
0x1635   :  { %3385 = vrot.lane.b32.xlu0 %v14746_v55, %s16683_s0  ;;  %s16720_s0 = smov 24  }
0x16a0   :  { %v3275_v34 = vpop.xlane.xlu0 %3274 }
0x16a1   :  { %13723 = vrcp.f32 %v3275_v34 }
0x16a4   :  { %v3278_v15 = vpop.xlane.xlu0 %3277 }
0x16a5   :  { %13725 = vrcp.f32 %v3278_v15 }
0x16a8   :  { %v3337_v17 = vpop.permute.xlu0 %3336 }
0x16a9   :  { %v3342_v18 = vsel %vm3291_vm12, %v3337_v17, 0 }
0x16aa   :  { %12835 = vmatpush3.bf16.msra.mxu0 %v3342_v18 }
0x16ab   :  { %12846 = vmatprep.subr.bf16.mxu0 %v13868_v1 }
0x16ac   :  { %v3386_v27 = vpop.permute.xlu0 %3385 }
0x16ae   :  { %v13724_v43 = vpop.eup %13723 }
0x16af   :  { %v3281_v44 = vmul.f32 %v13724_v43, %v13720_v26 }
0x16b1   :  { %v3283_v49 = vpack.c.bf16 %v3281_v44, %v3281_v44 }
0x16b2   :  { %v13726_v38 = vpop.eup %13725 }
0x16b3   :  { %12831 = vmatmul.mubr.msk.bf16.vlgmr.msra.gmra.mxu1 %vm3260_vm11, %v3283_v49  ;;  %v3282_v31 = vmul.f32 %v13726_v38, %v13722_v37 }
0x16b4   :  { %12841 = vmatpush3.bf16.xpose.msra.mxu1 %v3393_v50  ;;  %12842 = vmatprep.mubr.msk.bf16.mxu1 %vm13869_vm0, %v13868_v1 }
0x16b5   :  { %v3284_v21 = vpack.c.bf16 %v3282_v31, %v3282_v31  ;;  %12852 = vmatprep.subr.bf16.mxu1 %v13868_v1 }
0x16b7   :  { %12837 = vmatmul.mubr.msk.bf16.vlgmr.msra.gmra.mxu0 %vm3260_vm11, %v3284_v21 }
0x16b8   :  { %12847 = vmatpush3.bf16.xpose.msra.mxu0 %v3444_v6  ;;  %12848 = vmatprep.mubr.msk.bf16.mxu0 %vm13869_vm0, %v13868_v1 }
0x16b9   :  { %12858 = vmatprep.subr.bf16.mxu0 %v13868_v1 }
0x16bb   :  { %12843 = vmatmul.mubr.msk.bf16.vlgmr.msra.gmra.mxu1 %vm1983_vm8, %v3386_v27 }
0x16bc   :  { %12854 = vmatprep.mubr.msk.bf16.mxu1 %vm13869_vm0, %v13868_v1 }
0x16bf   :  { %12849 = vmatmul.mubr.msk.bf16.vlgmr.msra.gmra.mxu0 %vm1983_vm8, %v3437_v7 }
0x16c0   :  { %12860 = vmatprep.mubr.msk.bf16.mxu0 %vm13869_vm0, %v13868_v1 }
0x1773   :  { %v14794_v24 = vpop.f32.mrf.mxu1 }
0x1775   :  { %v12832_v28 = vpop.f32.mrf.mxu1 }
0x1777   :  { %v3332_v35 = vpop.f32.mrf.mxu1  ;;  %v14796_v0 = vpop.f32.mrf.mxu0 }
0x1779   :  { %v12833_v42 = vpop.f32.mrf.mxu1  ;;  %v12838_v52 = vpop.f32.mrf.mxu0 }
0x177b   :  { %v3381_v3 = vpop.f32.mrf.mxu0  ;;  %v3429_v60 = vpop.f32.mrf.mxu1 }
0x177c   :  { %v3486_v51 = vmul.f32 0.35355338, %v3429_v60 }
0x177d   :  { %v12839_v53 = vpop.f32.mrf.mxu0  ;;  %v12844_v54 = vpop.f32.mrf.mxu1 }
0x177e   :  { %v3488_v56 = vsel %vm3260_vm11, %v3486_v51, -inf }
0x177f   :  { %3489 = vmax.xlane.f32.xlu0 %v3488_v56  ;;  %v3432_v57 = vpop.f32.mrf.mxu1  ;;  %v3480_v58 = vpop.f32.mrf.mxu0 }
0x1780   :  { %v3487_v13 = vmul.f32 0.35355338, %v3480_v58 }
0x1781   :  { %v12845_v36 = vpop.f32.mrf.mxu1  ;;  %v12850_v61 = vpop.f32.mrf.mxu0 }
0x1782   :  { %v3491_v16 = vsel %vm3260_vm11, %v3487_v13, -inf }
0x1783   :  { %3492 = vmax.xlane.f32.xlu1 %v3491_v16  ;;  %v3483_v62 = vpop.f32.mrf.mxu0 }
0x1785   :  { %v12851_v63 = vpop.f32.mrf.mxu0 }
0x1794   :  { %3512 = vrot.lane.b32.xlu1 %v14736_v41, %s16685_s29 }
0x1798   :  { %3610 = vrot.lane.b32.xlu1 %v14736_v41, %s16679_s2 }
0x179c   :  { %3660 = vrot.lane.b32.xlu1 %v14738_v5, %s16679_s2 }
0x17a0   :  { %3658 = vrot.lane.b32.xlu1 %v14752_v59, %s16679_s2 }
0x1808   :  { %v3490_v2 = vpop.xlane.xlu0 %3489 }
0x1809   :  { %v3494_v8 = vsub.f32 %v3486_v51, %v3490_v2 }
0x180b   :  { %v3496_v9 = vmul.f32 1.442695, %v3494_v8 }
0x180c   :  { %v3493_v39 = vpop.xlane.xlu1 %3492 }
0x180d   :  { %13727 = vpow2.f32 %v3496_v9  ;;  %v3495_v29 = vsub.f32 %v3487_v13, %v3493_v39 }
0x180f   :  { %v3498_v4 = vmul.f32 1.442695, %v3495_v29 }
0x1810   :  { %v3513_v40 = vpop.permute.xlu1 %3512 }
0x1811   :  { %13729 = vpow2.f32 %v3498_v4  ;;  %v3518_v46 = vsel %vm3291_vm12, %v3513_v40, 0 }
0x1812   :  { %12853 = vmatpush3.bf16.msra.mxu1 %v3518_v46 }
0x1813   :  { %12864 = vmatprep.subr.bf16.mxu1 %v13868_v1 }
0x1814   :  { %v3611_v30 = vpop.permute.xlu1 %3610 }
0x1815   :  { %v3616_v18 = vsel %vm1983_vm8, %v3611_v30, 0 }
0x1818   :  { %v3661_v45 = vpop.permute.xlu1 %3660 }
0x1819   :  { %v3666_v49 = vsel %vm1983_vm8, %v3661_v45, 0 }
0x181a   :  { %v13728_v48 = vpop.eup %13727 }
0x181b   :  { %v3500_v19 = vsel %vm3260_vm11, %v13728_v48, 0.0 }
0x181c   :  { %3501 = vadd.xlane.f32.xlu0 %v3500_v19  ;;  %v3659_v50 = vpop.permute.xlu1 %3658 }
0x181e   :  { %v13730_v20 = vpop.eup %13729 }
0x181f   :  { %v3503_v10 = vsel %vm3260_vm11, %v13730_v20, 0.0 }
0x1820   :  { %3504 = vadd.xlane.f32.xlu0 %v3503_v10 }
0x1836   :  { %3560 = vrot.lane.b32.xlu0 %v14738_v5, %s16685_s29  ;;  %s16724_s29 = smov 120  }
0x183a   :  { %3608 = vrot.lane.b32.xlu0 %v14746_v55, %s16679_s2 }
0x18a5   :  { %v3502_v11 = vpop.xlane.xlu0 %3501 }
0x18a6   :  { %13731 = vrcp.f32 %v3502_v11 }
0x18a9   :  { %v3505_v14 = vpop.xlane.xlu0 %3504 }
0x18aa   :  { %13733 = vrcp.f32 %v3505_v14 }
0x18ad   :  { %v3561_v26 = vpop.permute.xlu0 %3560 }
0x18ae   :  { %v3566_v23 = vsel %vm3291_vm12, %v3561_v26, 0 }
0x18af   :  { %12859 = vmatpush3.bf16.msra.mxu0 %v3566_v23 }
0x18b0   :  { %12870 = vmatprep.subr.bf16.mxu0 %v13868_v1 }
0x18b1   :  { %v3609_v38 = vpop.permute.xlu0 %3608 }
0x18b3   :  { %v13732_v37 = vpop.eup %13731 }
0x18b4   :  { %v3508_v34 = vmul.f32 %v13732_v37, %v13728_v48 }
0x18b6   :  { %v3510_v15 = vpack.c.bf16 %v3508_v34, %v3508_v34 }
0x18b7   :  { %v13734_v17 = vpop.eup %13733 }
0x18b8   :  { %12855 = vmatmul.mubr.msk.bf16.vlgmr.msra.gmra.mxu1 %vm3260_vm11, %v3510_v15  ;;  %v3509_v43 = vmul.f32 %v13734_v17, %v13730_v20 }
0x18b9   :  { %12865 = vmatpush3.bf16.xpose.msra.mxu1 %v3616_v18  ;;  %12866 = vmatprep.mubr.msk.bf16.mxu1 %vm13869_vm0, %v13868_v1 }
0x18ba   :  { %v3511_v44 = vpack.c.bf16 %v3509_v43, %v3509_v43  ;;  %12876 = vmatprep.subr.bf16.mxu1 %v13868_v1 }
0x18bc   :  { %12861 = vmatmul.mubr.msk.bf16.vlgmr.msra.gmra.mxu0 %vm3260_vm11, %v3511_v44 }
0x18bd   :  { %12871 = vmatpush3.bf16.xpose.msra.mxu0 %v3666_v49  ;;  %12872 = vmatprep.mubr.msk.bf16.mxu0 %vm13869_vm0, %v13868_v1 }
0x18be   :  { %12882 = vmatprep.subr.bf16.mxu0 %v13868_v1 }
0x18c0   :  { %12867 = vmatmul.mubr.msk.bf16.vlgmr.msra.gmra.mxu1 %vm1983_vm8, %v3609_v38 }
0x18c1   :  { %12878 = vmatprep.mubr.msk.bf16.mxu1 %vm13869_vm0, %v13868_v1 }
0x18c4   :  { %12873 = vmatmul.mubr.msk.bf16.vlgmr.msra.gmra.mxu0 %vm1983_vm8, %v3659_v50 }
0x18c5   :  { %12884 = vmatprep.mubr.msk.bf16.mxu0 %vm13869_vm0, %v13868_v1 }
0x1978   :  { %v14834_v31 = vpop.f32.mrf.mxu1 }
0x197a   :  { %v12856_v32 = vpop.f32.mrf.mxu1 }
0x197c   :  { %v3557_v21 = vpop.f32.mrf.mxu1  ;;  %v14836_v6 = vpop.f32.mrf.mxu0 }
0x197d   :  { %v13195_v27 = vpack.i.bf16 %v14836_v6, %v14834_v31 }
0x197e   :  { %v12857_v7 = vpop.f32.mrf.mxu1  ;;  %v12862_v28 = vpop.f32.mrf.mxu0 }
0x1980   :  { %v3605_v35 = vpop.f32.mrf.mxu0  ;;  %v3652_v42 = vpop.f32.mrf.mxu1 }
0x1981   :  { %v3708_v52 = vmul.f32 0.35355338, %v3652_v42 }
0x1982   :  { %v12863_v3 = vpop.f32.mrf.mxu0  ;;  %v12868_v60 = vpop.f32.mrf.mxu1 }
0x1983   :  { %v3710_v51 = vsel %vm3260_vm11, %v3708_v52, -inf }
0x1984   :  { %3711 = vmax.xlane.f32.xlu0 %v3710_v51  ;;  %v3655_v53 = vpop.f32.mrf.mxu1  ;;  %v3702_v54 = vpop.f32.mrf.mxu0 }
0x1985   :  { %v3709_v56 = vmul.f32 0.35355338, %v3702_v54 }
0x1986   :  { %v12869_v57 = vpop.f32.mrf.mxu1  ;;  %v12874_v58 = vpop.f32.mrf.mxu0 }
0x1987   :  { %v3713_v13 = vsel %vm3260_vm11, %v3709_v56, -inf }
0x1988   :  { %3714 = vmax.xlane.f32.xlu1 %v3713_v13  ;;  %v3705_v36 = vpop.f32.mrf.mxu0 }
0x198a   :  { %v12875_v61 = vpop.f32.mrf.mxu0 }
0x1999   :  { %3734 = vrot.lane.b32.xlu1 %v14736_v41, %s16681_s30 }
0x199d   :  { %3832 = vrot.lane.b32.xlu1 %v14736_v41, %s16677_s1 }
0x19a1   :  { %3882 = vrot.lane.b32.xlu1 %v14738_v5, %s16677_s1 }
0x19a5   :  { %3880 = vrot.lane.b32.xlu1 %v14752_v59, %s16677_s1 }
0x1a0d   :  { %v3712_v16 = vpop.xlane.xlu0 %3711 }
0x1a0e   :  { %v3716_v62 = vsub.f32 %v3708_v52, %v3712_v16 }
0x1a10   :  { %v3718_v63 = vmul.f32 1.442695, %v3716_v62 }
0x1a11   :  { %v3715_v2 = vpop.xlane.xlu1 %3714 }
0x1a12   :  { %13735 = vpow2.f32 %v3718_v63  ;;  %v3717_v8 = vsub.f32 %v3709_v56, %v3715_v2 }
0x1a14   :  { %v3720_v9 = vmul.f32 1.442695, %v3717_v8 }
0x1a15   :  { %v3735_v39 = vpop.permute.xlu1 %3734 }
0x1a16   :  { %13737 = vpow2.f32 %v3720_v9  ;;  %v3740_v29 = vsel %vm3291_vm12, %v3735_v39, 0 }
0x1a17   :  { %12877 = vmatpush3.bf16.msra.mxu1 %v3740_v29 }
0x1a18   :  { %12888 = vmatprep.subr.bf16.mxu1 %v13868_v1 }
0x1a19   :  { %v3833_v14 = vpop.permute.xlu1 %3832 }
0x1a1a   :  { %v3838_v30 = vsel %vm1983_vm8, %v3833_v14, 0 }
0x1a1f   :  { %v13736_v4 = vpop.eup %13735 }
0x1a20   :  { %v3722_v40 = vsel %vm3260_vm11, %v13736_v4, 0.0 }
0x1a21   :  { %3723 = vadd.xlane.f32.xlu0 %v3722_v40 }
0x1a23   :  { %v13738_v46 = vpop.eup %13737 }
0x1a24   :  { %v3725_v59 = vsel %vm3260_vm11, %v13738_v46, 0.0 }
0x1a25   :  { %3726 = vadd.xlane.f32.xlu0 %v3725_v59 }
0x1a3b   :  { %3782 = vrot.lane.b32.xlu0 %v14738_v5, %s16681_s30  ;;  %s16730_s30 = smov 40  }
0x1a3f   :  { %3830 = vrot.lane.b32.xlu0 %v14746_v55, %s16677_s1  ;;  %v3883_v55 = vpop.permute.xlu1 %3882  ;;  %s16727_s1 = smov 112  }
0x1a40   :  { %v3888_v17 = vsel %vm1983_vm8, %v3883_v55, 0 }
0x1a43   :  { %v3881_v43 = vpop.permute.xlu1 %3880 }
0x1aaa   :  { %v3724_v48 = vpop.xlane.xlu0 %3723 }
0x1aab   :  { %13739 = vrcp.f32 %v3724_v48 }
0x1aae   :  { %v3727_v19 = vpop.xlane.xlu0 %3726 }
0x1aaf   :  { %13741 = vrcp.f32 %v3727_v19 }
0x1ab2   :  { %v3783_v20 = vpop.permute.xlu0 %3782 }
0x1ab3   :  { %v3788_v10 = vsel %vm3291_vm12, %v3783_v20, 0 }
0x1ab4   :  { %12883 = vmatpush3.bf16.msra.mxu0 %v3788_v10 }
0x1ab5   :  { %12894 = vmatprep.subr.bf16.mxu0 %v13868_v1 }
0x1ab6   :  { %v3831_v18 = vpop.permute.xlu0 %3830 }
0x1ab8   :  { %v13740_v11 = vpop.eup %13739 }
0x1ab9   :  { %v3730_v26 = vmul.f32 %v13740_v11, %v13736_v4  ;;  %v13256_v11 = vld [vmem:[%s16635_s12] sm:$0xff]  }
0x1abb   :  { %v3732_v23 = vpack.c.bf16 %v3730_v26, %v3730_v26 }
0x1abc   :  { %v13742_v37 = vpop.eup %13741 }
0x1abd   :  { %v3731_v34 = vmul.f32 %v13742_v37, %v13738_v46  ;;  %12879 = vmatmul.mubr.msk.bf16.vlgmr.msra.gmra.mxu1 %vm3260_vm11, %v3732_v23 }
0x1abe   :  { %12889 = vmatpush3.bf16.xpose.msra.mxu1 %v3838_v30  ;;  %12890 = vmatprep.mubr.msk.bf16.mxu1 %vm13869_vm0, %v13868_v1 }
0x1abf   :  { %v3733_v15 = vpack.c.bf16 %v3731_v34, %v3731_v34  ;;  %12900 = vmatprep.subr.bf16.mxu1 %v13868_v1 }
0x1ac1   :  { %12885 = vmatmul.mubr.msk.bf16.vlgmr.msra.gmra.mxu0 %vm3260_vm11, %v3733_v15 }
0x1ac2   :  { %12895 = vmatpush3.bf16.xpose.msra.mxu0 %v3888_v17  ;;  %12896 = vmatprep.mubr.msk.bf16.mxu0 %vm13869_vm0, %v13868_v1 }
0x1ac3   :  { %12906 = vmatprep.subr.bf16.mxu0 %v13868_v1 }
0x1ac5   :  { %12891 = vmatmul.mubr.msk.bf16.vlgmr.msra.gmra.mxu1 %vm1983_vm8, %v3831_v18 }
0x1ac6   :  { %12902 = vmatprep.mubr.msk.bf16.mxu1 %vm13869_vm0, %v13868_v1 }
0x1ac9   :  { %12897 = vmatmul.mubr.msk.bf16.vlgmr.msra.gmra.mxu0 %vm1983_vm8, %v3881_v43 }
0x1aca   :  { %12908 = vmatprep.mubr.msk.bf16.mxu0 %vm13869_vm0, %v13868_v1 }
0x1b7d   :  { %v3776_v45 = vpop.f32.mrf.mxu1 }
0x1b7f   :  { %v12880_v44 = vpop.f32.mrf.mxu1 }
0x1b81   :  { %v3779_v49 = vpop.f32.mrf.mxu1  ;;  %v3824_v38 = vpop.f32.mrf.mxu0 }
0x1b82   :  { %v13200_v13 = vpack.i.bf16 %v3824_v38, %v3776_v45 }
0x1b83   :  { %v12881_v50 = vpop.f32.mrf.mxu1  ;;  %v12886_v32 = vpop.f32.mrf.mxu0 }
0x1b85   :  { %v3827_v21 = vpop.f32.mrf.mxu0  ;;  %v3874_v7 = vpop.f32.mrf.mxu1 }
0x1b86   :  { %v3930_v28 = vmul.f32 0.35355338, %v3874_v7 }
0x1b87   :  { %v12887_v35 = vpop.f32.mrf.mxu0  ;;  %v12892_v42 = vpop.f32.mrf.mxu1 }
0x1b88   :  { %v3932_v52 = vsel %vm3260_vm11, %v3930_v28, -inf }
0x1b89   :  { %3933 = vmax.xlane.f32.xlu0 %v3932_v52  ;;  %v3877_v3 = vpop.f32.mrf.mxu1  ;;  %v3924_v60 = vpop.f32.mrf.mxu0 }
0x1b8a   :  { %v3931_v51 = vmul.f32 0.35355338, %v3924_v60 }
0x1b8b   :  { %v12893_v53 = vpop.f32.mrf.mxu1  ;;  %v12898_v54 = vpop.f32.mrf.mxu0 }
0x1b8c   :  { %v3935_v56 = vsel %vm3260_vm11, %v3931_v51, -inf }
0x1b8d   :  { %3936 = vmax.xlane.f32.xlu1 %v3935_v56  ;;  %v3927_v57 = vpop.f32.mrf.mxu0 }
0x1b8f   :  { %v12899_v58 = vpop.f32.mrf.mxu0 }
0x1b9e   :  { %3956 = vrot.lane.b32.xlu1 %v14736_v41, %s16717_s3 }
0x1ba2   :  { %13196 = vrot.lane.b32.xlu1 %v13195_v27, %s16718_s5 }
0x1ba6   :  { %13201 = vrot.lane.b32.xlu1 %v13200_v13, %s16719_s6 }
0x1c12   :  { %v3934_v36 = vpop.xlane.xlu0 %3933 }
0x1c13   :  { %v3938_v61 = vsub.f32 %v3930_v28, %v3934_v36 }
0x1c15   :  { %v3940_v16 = vmul.f32 1.442695, %v3938_v61 }
0x1c16   :  { %v3937_v62 = vpop.xlane.xlu1 %3936 }
0x1c17   :  { %13743 = vpow2.f32 %v3940_v16  ;;  %v3939_v63 = vsub.f32 %v3931_v51, %v3937_v62 }
0x1c19   :  { %v3942_v2 = vmul.f32 1.442695, %v3939_v63 }
0x1c1a   :  { %v3957_v8 = vpop.permute.xlu1 %3956 }
0x1c1b   :  { %13745 = vpow2.f32 %v3942_v2  ;;  %v3962_v9 = vsel %vm3291_vm12, %v3957_v8, 0 }
0x1c1c   :  { %12901 = vmatpush3.bf16.msra.mxu1 %v3962_v9 }
0x1c1d   :  { %12912 = vmatprep.subr.bf16.mxu1 %v13868_v1 }
0x1c1e   :  { %v13197_v18 = vpop.permute.xlu1 %13196 }
0x1c1f   :  { %v13199_v45 = vunpack.i.h.bf16 %v13197_v18  ;;  %v13198_v44 = vunpack.i.l.bf16 %v13197_v18 }
0x1c21   :  { %v4077_v32 = vsel %vm1983_vm8, %v14796_v0, %v13199_v45  ;;  %v4076_v21 = vsel %vm1983_vm8, %v14794_v24, %v13198_v44  ;;  %v11081_v0 = vld [vmem:[%s16636_s13] ss:$0 sm:$0xff] }
0x1c22   :  { %v13202_v43 = vpop.permute.xlu1 %13201 }
0x1c23   :  { %v13204_v49 = vunpack.i.h.bf16 %v13202_v43  ;;  %v13203_v38 = vunpack.i.l.bf16 %v13202_v43 }
0x1c24   :  { %v13744_v41 = vpop.eup %13743 }
0x1c25   :  { %v3944_v31 = vsel %vm3260_vm11, %v13744_v41, 0.0  ;;  %v4078_v35 = vsel %vm109_vm1, %v4076_v21, %v13203_v38  ;;  %v4079_v42 = vsel %vm109_vm1, %v4077_v32, %v13204_v49 }
0x1c26   :  { %3945 = vadd.xlane.f32.xlu0 %v3944_v31 }
0x1c28   :  { %v13746_v6 = vpop.eup %13745 }
0x1c29   :  { %v3947_v27 = vsel %vm3260_vm11, %v13746_v6, 0.0 }
0x1c2a   :  { %3948 = vadd.xlane.f32.xlu0 %v3947_v27  ;;  %v4223_v27 = vld [vmem:[%s16637_s14 + $0xc0] sm:$0xff] }
0x1c40   :  { %4004 = vrot.lane.b32.xlu0 %v14738_v5, %s16717_s3  ;;  %v13255_v5 = vld [vmem:[%s16635_s12 + $0x8] sm:$0xff]  }
0x1caf   :  { %v3946_v39 = vpop.xlane.xlu0 %3945 }
0x1cb0   :  { %13747 = vrcp.f32 %v3946_v39  ;;  %v4216_v39 = vld [vmem:[%s16637_s14 + $0x88] sm:$0xff] }
0x1cb3   :  { %v3949_v29 = vpop.xlane.xlu0 %3948 }
0x1cb4   :  { %13749 = vrcp.f32 %v3949_v29 }
0x1cb7   :  { %v4005_v4 = vpop.permute.xlu0 %4004 }
0x1cb8   :  { %v4010_v40 = vsel %vm3291_vm12, %v4005_v4, 0  ;;  %v4224_v4 = vld [vmem:[%s16637_s14 + $0xc8] sm:$0xff] }
0x1cb9   :  { %12907 = vmatpush3.bf16.msra.mxu0 %v4010_v40 }
0x1cbd   :  { %v13748_v46 = vpop.eup %13747 }
0x1cbe   :  { %v3952_v59 = vmul.f32 %v13748_v46, %v13744_v41  ;;  %v11107_v46 = vcombine.low %v4216_v39, %v4224_v4 }
0x1cc0   :  { %v3954_v48 = vpack.c.bf16 %v3952_v59, %v3952_v59  ;;  %v11108_v59 = vcombine.high %v4216_v39, %v4224_v4  ;;  %v4229_v4 = vld [vmem:[%s16637_s14 + $0xf0] sm:$0xff] }
0x1cc1   :  { %v13750_v19 = vpop.eup %13749 }
0x1cc2   :  { %v3953_v20 = vmul.f32 %v13750_v19, %v13746_v6  ;;  %12903 = vmatmul.mubr.msk.bf16.vlgmr.msra.gmra.mxu1 %vm3260_vm11, %v3954_v48  ;;  %v4199_v48 = vld [vmem:[%s16637_s14] sm:$0xff] }
0x1cc3   :  { %12916 = vmatprep.mubr.msk.bf16.mxu1 %vm13869_vm0, %v13868_v1  ;;  %12913 = vmatpush3.bf16.msra.mxu1 %v13255_v5  ;;  %v4207_v19 = vld [vmem:[%s16637_s14 + $0x40] sm:$0xff]  ;;  %v4208_v5 = vld [vmem:[%s16637_s14 + $0x48] sm:$0xff] }
0x1cc4   :  { %v3955_v10 = vpack.c.bf16 %v3953_v20, %v3953_v20  ;;  %12914 = vmatprep.subr.bf16.mxu1 %v13868_v1  ;;  %v4200_v20 = vld [vmem:[%s16637_s14 + $0x8] sm:$0xff] }
0x1cc6   :  { %12909 = vmatmul.mubr.msk.bf16.vlgmr.msra.gmra.mxu0 %vm3260_vm11, %v3955_v10  ;;  %v11090_v10 = vcombine.high %v4199_v48, %v4207_v19 }
0x1cc7   :  { %4515 = vmatprep.mubr.bf16.mxu0 %v13870_v12  ;;  %12915 = vmatpush3.bf16.msra.mxu1 %v13256_v11  ;;  %v11089_v11 = vcombine.low %v4199_v48, %v4207_v19 }
0x1cc8   :  { %4538 = vmatprep.subr.bf16.mxu1 %v11108_v59 }
0x1d82   :  { %v3998_v14 = vpop.f32.mrf.mxu1 }
0x1d84   :  { %v12904_v26 = vpop.f32.mrf.mxu1 }
0x1d85   :  { %v11092_v26 = vcombine.high %v4200_v20, %v4208_v5 }
0x1d86   :  { %v4001_v23 = vpop.f32.mrf.mxu1  ;;  %v4046_v37 = vpop.f32.mrf.mxu0 }
0x1d87   :  { %v13205_v30 = vpack.i.bf16 %v4046_v37, %v3998_v14  ;;  %v11091_v14 = vcombine.low %v4200_v20, %v4208_v5  ;;  %v4217_v23 = vld [vmem:[%s16637_s14 + $0x90] sm:$0xff] }
0x1d88   :  { %v12905_v34 = vpop.f32.mrf.mxu1  ;;  %v12910_v55 = vpop.f32.mrf.mxu0  ;;  %v4225_v37 = vld [vmem:[%s16637_s14 + $0xd0] sm:$0xff] }
0x1d89   :  { %13206 = vrot.lane.b32.xlu0 %v13205_v30, %s16720_s0  ;;  %v4218_v30 = vld [vmem:[%s16637_s14 + $0x98] sm:$0xff]  ;;  %v11109_v34 = vcombine.low %v4217_v23, %v4225_v37  ;;  %v11110_v55 = vcombine.high %v4217_v23, %v4225_v37  ;;  %v4213_v5 = vld [vmem:[%s16637_s14 + $0x70] sm:$0xff] }
0x1d8a   :  { %v4049_v15 = vpop.f32.mrf.mxu0 }
0x1d8b   :  { %v4226_v15 = vld [vmem:[%s16637_s14 + $0xd8] sm:$0xff] }
0x1d8c   :  { %v12911_v17 = vpop.f32.mrf.mxu0  ;;  %v11112_v18 = vcombine.high %v4218_v30, %v4226_v15 }
0x1d8d   :  { %v11111_v17 = vcombine.low %v4218_v30, %v4226_v15  ;;  %v13257_v15 = vld [vmem:[%s16639_s16 + $0x78] sm:$0xff]  }
0x1dfb   :  { %v13207_v50 = vpop.permute.xlu0 %13206 }
0x1dfc   :  { %v13209_v7 = vunpack.i.h.bf16 %v13207_v50  ;;  %v13208_v28 = vunpack.i.l.bf16 %v13207_v50 }
0x1dfe   :  { %v4081_v52 = vsel %vm2896_vm10, %v4079_v42, %v13209_v7  ;;  %v4080_v3 = vsel %vm2896_vm10, %v4078_v35, %v13208_v28  ;;  %v11086_v7 = vld [vmem:[%s16643_s20] ss:$0 sm:$0xff] }
0x1dff   :  { %v11847_v60 = vpack.c.bf16 %v4081_v52, %v4080_v3  ;;  %v11087_v52 = vld [vmem:[%s16644_s21] ss:$0 sm:$0xff] }
0x1e01   :  { %12917 = vmatmul.mubr.msk.bf16.vlgmr.msra.gmra.mxu1 %vm307_vm3, %v11847_v60  ;;  %v4201_v60 = vld [vmem:[%s16637_s14 + $0x10] sm:$0xff] }
0x1e02   :  { %4558 = vmatprep.mubr.bf16.mxu1 %v13870_v12  ;;  %4539 = vmatpush1.bf16.msra.mxu1 %v11107_v46  ;;  %v4230_v46 = vld [vmem:[%s16637_s14 + $0xf8] sm:$0xff] }
0x1e03   :  { %4540 = vmatprep.subr.bf16.mxu1 %v11092_v26 }
0x1e06   :  { %4541 = vmatpush1.bf16.msra.mxu1 %v11091_v14  ;;  %v4214_v14 = vld [vmem:[%s16637_s14 + $0x78] sm:$0xff] }
0x1e07   :  { %4624 = vmatprep.subr.bf16.mxu1 %v11112_v18  ;;  %v13259_v18 = vld [vmem:[%s16639_s16 + $0x38] sm:$0xff]  }
0x1ec1   :  { %v4144_v24 = vpop.f32.mrf.mxu1 }
0x1ec2   :  { %v4145_v51 = vadd.f32 %v11081_v0, %v4144_v24  ;;  %v4202_v24 = vld [vmem:[%s16637_s14 + $0x18] sm:$0xff] }
0x1ec3   :  { %v12918_v53 = vpop.f32.mrf.mxu1 }
0x1ec4   :  { %v4151_v54 = vadd.f32 %v4145_v51, %v14727_v22  ;;  %v4210_v51 = vld [vmem:[%s16637_s14 + $0x58] sm:$0xff] }
0x1ec5   :  { %v4147_v56 = vpop.f32.mrf.mxu1 }
0x1ec6   :  { %v4148_v57 = vadd.f32 %v11081_v0, %v4147_v56  ;;  %v4155_v58 = vsel %vm307_vm3, %v4151_v54, 0.0  ;;  %v4209_v0 = vld [vmem:[%s16637_s14 + $0x50] sm:$0xff] }
0x1ec7   :  { %4156 = vadd.xlane.f32.xlu1 %v4155_v58  ;;  %v12919_v13 = vpop.f32.mrf.mxu1  ;;  %v11096_v58 = vcombine.high %v4202_v24, %v4210_v51 }
0x1ec8   :  { %v4152_v36 = vadd.f32 %v4148_v57, %v14729_v25  ;;  %v4215_v25 = vld [vmem:[%s16637_s14 + $0x80] sm:$0xff]  ;;  %v11094_v57 = vcombine.high %v4201_v60, %v4209_v0 }
0x1ec9   :  { %v11106_v29 = vcombine.high %v4215_v25, %v4223_v27  ;;  %v11105_v40 = vcombine.low %v4215_v25, %v4223_v27  ;;  %v4219_v13 = vld [vmem:[%s16637_s14 + $0xa0] sm:$0xff] }
0x1eca   :  { %v4158_v61 = vsel %vm307_vm3, %v4152_v36, 0.0 }
0x1ecb   :  { %4159 = vadd.xlane.f32.xlu0 %v4158_v61  ;;  %4495 = vmatprep.subr.bf16.mxu0 %v11106_v29  ;;  %v4220_v61 = vld [vmem:[%s16637_s14 + $0xa8] sm:$0xff]  ;;  %v4221_v29 = vld [vmem:[%s16637_s14 + $0xb0] sm:$0xff] }
0x1ecc   :  { %4496 = vmatpush1.bf16.msra.mxu0 %v11105_v40  ;;  %v4222_v40 = vld [vmem:[%s16637_s14 + $0xb8] sm:$0xff]  ;;  %v11118_v19 = vcombine.high %v4221_v29, %v4229_v4  ;;  %v11117_v26 = vcombine.low %v4221_v29, %v4229_v4 }
0x1ecd   :  { %4497 = vmatprep.subr.bf16.mxu0 %v11090_v10  ;;  %v11120_v20 = vcombine.high %v4222_v40, %v4230_v46  ;;  %v4205_v10 = vld [vmem:[%s16637_s14 + $0x30] sm:$0xff]  ;;  %v11119_v23 = vcombine.low %v4222_v40, %v4230_v46 }
0x1ece   :  { %v11102_v37 = vcombine.high %v4205_v10, %v4213_v5 }
0x1ed0   :  { %4498 = vmatpush1.bf16.msra.mxu0 %v11089_v11  ;;  %v4206_v11 = vld [vmem:[%s16637_s14 + $0x38] sm:$0xff] }
0x1ed1   :  { %4581 = vmatprep.subr.bf16.mxu0 %v11110_v55  ;;  %v11104_v30 = vcombine.high %v4206_v11, %v4214_v14  ;;  %v11103_v55 = vcombine.low %v4206_v11, %v4214_v14 }
0x1f50   :  { %v4157_v16 = vpop.xlane.xlu1 %4156 }
0x1f51   :  { %v4161_v62 = vmul.f32 0.03125, %v4157_v16  ;;  %v4228_v16 = vld [vmem:[%s16637_s14 + $0xe8] sm:$0xff] }
0x1f52   :  { %v11115_v25 = vcombine.low %v4220_v61, %v4228_v16 }
0x1f53   :  { %v4163_v63 = vsub.f32 %v4151_v54, %v4161_v62  ;;  %v11093_v62 = vcombine.low %v4201_v60, %v4209_v0  ;;  %v13274_v60 = vld [vmem:[%s16639_s16 + $0xd8] sm:$0xff]  }
0x1f54   :  { %v4160_v2 = vpop.xlane.xlu0 %4159  ;;  %v13275_v0 = vld [vmem:[%s16639_s16 + $0x18] sm:$0xff]  }
0x1f55   :  { %v4162_v8 = vmul.f32 0.03125, %v4160_v2  ;;  %v4165_v9 = vmul.f32 %v4163_v63, %v4163_v63 }
0x1f57   :  { %v4164_v41 = vsub.f32 %v4152_v36, %v4162_v8  ;;  %v4167_v22 = vsel %vm307_vm3, %v4165_v9, 0.0  ;;  %v4227_v36 = vld [vmem:[%s16637_s14 + $0xe0] sm:$0xff]  ;;  %v11116_v8 = vcombine.high %v4220_v61, %v4228_v16  ;;  %v13283_v61 = vld [vmem:[%s16639_s16 + $0x8] sm:$0xff]  }
0x1f58   :  { %4168 = vadd.xlane.f32.xlu0 %v4167_v22  ;;  %v11114_v2 = vcombine.high %v4219_v13, %v4227_v36  ;;  %v4203_v9 = vld [vmem:[%s16637_s14 + $0x20] sm:$0xff]  ;;  %v4204_v22 = vld [vmem:[%s16637_s14 + $0x28] sm:$0xff] }
0x1f59   :  { %v4166_v31 = vmul.f32 %v4164_v41, %v4164_v41  ;;  %v13284_v16 = vld [vmem:[%s16639_s16 + $0x88] sm:$0xff]  }
0x1f5b   :  { %v4170_v6 = vsel %vm307_vm3, %v4166_v31, 0.0  ;;  %v4212_v31 = vld [vmem:[%s16637_s14 + $0x68] sm:$0xff] }
0x1f5c   :  { %4171 = vadd.xlane.f32.xlu1 %v4170_v6  ;;  %v11113_v6 = vcombine.low %v4219_v13, %v4227_v36  ;;  %v11100_v39 = vcombine.high %v4204_v22, %v4212_v31  ;;  %v11099_v48 = vcombine.low %v4204_v22, %v4212_v31  ;;  %v13281_v13 = vld [vmem:[%s16639_s16 + $0x48] sm:$0xff]   ;;  %v15159_v22 = vsub.s32 1, %v14710_v33 }
0x1f5d   :  { %v13282_v36 = vld [vmem:[%s16639_s16 + $0xc8] sm:$0xff]   ;;  %v15162_v31 = vsub.s32 3, %v14710_v33 }
0x1fe1   :  { %v4169_v43 = vpop.xlane.xlu0 %4168 }
0x1fe2   :  { %v4173_v45 = vmul.f32 0.03125, %v4169_v43  ;;  %v13260_v43 = vld [vmem:[%s16639_s16 + $0xb8] sm:$0xff]  }
0x1fe4   :  { %v4175_v44 = vadd.f32 1e-05, %v4173_v45  ;;  %v13261_v45 = vld [vmem:[%s16639_s16 + $0x70] sm:$0xff]  }
0x1fe5   :  { %v4172_v49 = vpop.xlane.xlu1 %4171 }
0x1fe6   :  { %13751 = vrsqrt.f32 %v4175_v44  ;;  %v4174_v38 = vmul.f32 0.03125, %v4172_v49  ;;  %v13262_v44 = vld [vmem:[%s16639_s16 + $0xf0] sm:$0xff]  }
0x1fe7   :  { %v13263_v49 = vld [vmem:[%s16639_s16 + $0x30] sm:$0xff]  }
0x1fe8   :  { %v4176_v50 = vadd.f32 1e-05, %v4174_v38  ;;  %v13264_v38 = vld [vmem:[%s16639_s16 + $0xb0] sm:$0xff]  }
0x1fea   :  { %13753 = vrsqrt.f32 %v4176_v50  ;;  %v13265_v50 = vld [vmem:[%s16639_s16 + $0x68] sm:$0xff]  }
0x1ff3   :  { %v13752_v32 = vpop.eup %13751 }
0x1ff4   :  { %v4179_v21 = vmul.f32 %v13752_v32, %v4163_v63  ;;  %v11095_v63 = vcombine.low %v4202_v24, %v4210_v51  ;;  %v13266_v32 = vld [vmem:[%s16639_s16 + $0xe8] sm:$0xff]   ;;  %v13276_v24 = vld [vmem:[%s16639_s16 + $0x98] sm:$0xff]   ;;  %v13277_v51 = vld [vmem:[%s16639_s16 + $0x50] sm:$0xff]  }
0x1ff6   :  { %v4187_v35 = vmul.f32 %v11086_v7, %v4179_v21  ;;  %v13267_v21 = vld [vmem:[%s16639_s16 + $0x28] sm:$0xff]  }
0x1ff7   :  { %v13754_v28 = vpop.eup %13753 }
0x1ff8   :  { %v4180_v42 = vmul.f32 %v13754_v28, %v4164_v41  ;;  %v14978_v53 = vadd.f32 %v11087_v52, %v4187_v35  ;;  %v4211_v41 = vld [vmem:[%s16637_s14 + $0x60] sm:$0xff] }
0x1ff9   :  { %v11098_v27 = vcombine.high %v4203_v9, %v4211_v41  ;;  %v11097_v59 = vcombine.low %v4203_v9, %v4211_v41  ;;  %v13269_v28 = vld [vmem:[%s16639_s16 + $0x60] sm:$0xff]   ;;  %v13289_v9 = vld [vmem:[%s16639_s16 + $0x178] sm:$0xff]  }
0x1ffa   :  { %v4188_v3 = vmul.f32 %v11086_v7, %v4180_v42  ;;  %v13268_v7 = vld [vmem:[%s16639_s16 + $0xa8] sm:$0xff]   ;;  %v13270_v35 = vld [vmem:[%s16639_s16 + $0xe0] sm:$0xff]   ;;  %v13290_v41 = vld [vmem:[%s16639_s16 + $0x1f8] sm:$0xff]  }
0x1ffb   :  { %v13271_v42 = vld [vmem:[%s16639_s16 + $0x20] sm:$0xff]  }
0x1ffc   :  { %v14980_v54 = vadd.f32 %v11087_v52, %v4188_v3  ;;  %v13272_v52 = vld [vmem:[%s16639_s16 + $0xa0] sm:$0xff]   ;;  %v13273_v3 = vld [vmem:[%s16639_s16 + $0x58] sm:$0xff]  }
0x1ffe   :  { %v14984_v56 = vpack.c.bf16 %v14980_v54, %v14978_v53 }
0x2000   :  { %11121 = vmatmul.mubr.msk.bf16.vlgmr.msra.gmra.mxu0 %vm307_vm3, %v14984_v56  ;;  %11122 = vmatmul.mubr.msk.bf16.vlgmr.msra.gmra.mxu1 %vm307_vm3, %v14984_v56 }
0x2001   :  { %4582 = vmatpush1.bf16.msra.mxu0 %v11109_v34  ;;  %4625 = vmatpush1.bf16.msra.mxu1 %v11111_v17  ;;  %v11101_v34 = vcombine.low %v4205_v10, %v4213_v5  ;;  %v13258_v17 = vld [vmem:[%s16639_s16 + $0xf8] sm:$0xff]   ;;  %v15184_v5 = vsub.s32 5, %v14710_v33 }
0x2002   :  { %4583 = vmatprep.subr.bf16.mxu0 %v11094_v57  ;;  %4626 = vmatprep.subr.bf16.mxu1 %v11096_v58  ;;  %v13279_v57 = vld [vmem:[%s16639_s16 + $0x10] sm:$0xff]  }
0x2003   :  { %4601 = vmatprep.mubr.bf16.mxu0 %v13870_v12  ;;  %4644 = vmatprep.mubr.bf16.mxu1 %v13870_v12  ;;  %v13280_v58 = vld [vmem:[%s16639_s16 + $0x90] sm:$0xff]  }
0x2005   :  { %4584 = vmatpush1.bf16.msra.mxu0 %v11093_v62  ;;  %4627 = vmatpush1.bf16.msra.mxu1 %v11095_v63  ;;  %v13285_v62 = vld [vmem:[%s16639_s16 + $0x40] sm:$0xff]  }
0x2006   :  { %4667 = vmatprep.subr.bf16.mxu0 %v11114_v2  ;;  %4710 = vmatprep.subr.bf16.mxu1 %v11116_v8  ;;  %v13286_v63 = vld [vmem:[%s16639_s16 + $0xc0] sm:$0xff]  }
0x2007   :  { %v13287_v2 = vld [vmem:[%s16639_s16] sm:$0xff]  }
0x2008   :  { %11123 = vmatmul.mubr.msk.bf16.vlgmr.msra.gmra.mxu0 %vm307_vm3, %v14984_v56  ;;  %11124 = vmatmul.mubr.msk.bf16.vlgmr.msra.gmra.mxu1 %vm307_vm3, %v14984_v56  ;;  %v13288_v8 = vld [vmem:[%s16639_s16 + $0x80] sm:$0xff]  }
0x2009   :  { %4668 = vmatpush1.bf16.msra.mxu0 %v11113_v6  ;;  %4711 = vmatpush1.bf16.msra.mxu1 %v11115_v25  ;;  %v15165_v6 = vsub.s32 0, %v14710_v33  ;;  %v15168_v25 = vsub.s32 2, %v14710_v33 }
0x200a   :  { %4669 = vmatprep.subr.bf16.mxu0 %v11098_v27  ;;  %4712 = vmatprep.subr.bf16.mxu1 %v11100_v39  ;;  %v15173_v27 = vld [vmem:[%s16638_s15] sm:$0xff] }
0x200b   :  { %4687 = vmatprep.mubr.bf16.mxu0 %v13870_v12  ;;  %4730 = vmatprep.mubr.bf16.mxu1 %v13870_v12  ;;  %v4242_v4 = vrot.slane %v15173_v27, %v15159_v22  ;;  %v4250_v40 = vrot.slane %v15173_v27, %v15162_v31  ;;  %v4238_v46 = vrot.slane %v15173_v27, %v15165_v6 }
0x200d   :  { %4670 = vmatpush1.bf16.msra.mxu0 %v11097_v59  ;;  %4713 = vmatpush1.bf16.msra.mxu1 %v11099_v48  ;;  %v4246_v59 = vrot.slane %v15173_v27, %v15168_v25 }
0x200e   :  { %4753 = vmatprep.subr.bf16.mxu0 %v11118_v19  ;;  %4796 = vmatprep.subr.bf16.mxu1 %v11120_v20 }
0x2010   :  { %11125 = vmatmul.mubr.msk.bf16.vlgmr.msra.gmra.mxu0 %vm307_vm3, %v14984_v56  ;;  %11126 = vmatmul.mubr.msk.bf16.vlgmr.msra.gmra.mxu1 %vm307_vm3, %v14984_v56 }
0x2011   :  { %4754 = vmatpush1.bf16.msra.mxu0 %v11117_v26  ;;  %4797 = vmatpush1.bf16.msra.mxu1 %v11119_v23 }
0x2012   :  { %4755 = vmatprep.subr.bf16.mxu0 %v11102_v37  ;;  %4798 = vmatprep.subr.bf16.mxu1 %v11104_v30 }
0x2013   :  { %4773 = vmatprep.mubr.bf16.mxu0 %v13870_v12  ;;  %4816 = vmatprep.mubr.bf16.mxu1 %v13870_v12 }
0x2015   :  { %4756 = vmatpush1.bf16.msra.mxu0 %v11101_v34  ;;  %4799 = vmatpush1.bf16.msra.mxu1 %v11103_v55 }
0x2016   :  { %12044 = vmatprep.subr.bf16.mxu0 %v13257_v15  ;;  %12066 = vmatprep.subr.bf16.mxu1 %v13258_v17  ;;  %v15187_v15 = vsub.s32 7, %v14710_v33 }
0x2018   :  { %11127 = vmatmul.mubr.msk.bf16.vlgmr.msra.gmra.mxu0 %vm307_vm3, %v14984_v56  ;;  %11128 = vmatmul.mubr.msk.bf16.vlgmr.msra.gmra.mxu1 %vm307_vm3, %v14984_v56  ;;  %v13278_v56 = vld [vmem:[%s16639_s16 + $0xd0] sm:$0xff]  }
0x2019   :  { %12045 = vmatpush3.bf16.msra.mxu0 %v13259_v18  ;;  %12067 = vmatpush3.bf16.msra.mxu1 %v13260_v43 }
0x201a   :  { %12046 = vmatprep.subr.bf16.mxu0 %v13261_v45  ;;  %12068 = vmatprep.subr.bf16.mxu1 %v13262_v44 }
0x201d   :  { %12047 = vmatpush3.bf16.msra.mxu0 %v13263_v49  ;;  %12069 = vmatpush3.bf16.msra.mxu1 %v13264_v38  ;;  %v4258_v38 = vrot.slane %v15173_v27, %v15184_v5 }
0x201e   :  { %12048 = vmatprep.subr.bf16.mxu0 %v13265_v50  ;;  %12070 = vmatprep.subr.bf16.mxu1 %v13266_v32 }
0x2021   :  { %12049 = vmatpush3.bf16.msra.mxu0 %v13267_v21  ;;  %12071 = vmatpush3.bf16.msra.mxu1 %v13268_v7 }
0x2022   :  { %12050 = vmatprep.subr.bf16.mxu0 %v13269_v28  ;;  %12072 = vmatprep.subr.bf16.mxu1 %v13270_v35 }
0x2025   :  { %12051 = vmatpush3.bf16.msra.mxu0 %v13271_v42  ;;  %12073 = vmatpush3.bf16.msra.mxu1 %v13272_v52  ;;  %v4266_v52 = vrot.slane %v15173_v27, %v15187_v15 }
0x2026   :  { %12052 = vmatprep.subr.bf16.mxu0 %v13273_v3  ;;  %12074 = vmatprep.subr.bf16.mxu1 %v13274_v60 }
0x2029   :  { %12053 = vmatpush3.bf16.msra.mxu0 %v13275_v0  ;;  %12075 = vmatpush3.bf16.msra.mxu1 %v13276_v24  ;;  %v13291_v24 = vld [vmem:[%s16639_s16 + $0x138] sm:$0xff]  }
0x202a   :  { %12054 = vmatprep.subr.bf16.mxu0 %v13277_v51  ;;  %12076 = vmatprep.subr.bf16.mxu1 %v13278_v56  ;;  %v13292_v51 = vld [vmem:[%s16639_s16 + $0x1b8] sm:$0xff]  }
0x202d   :  { %12055 = vmatpush3.bf16.msra.mxu0 %v13279_v57  ;;  %12077 = vmatpush3.bf16.msra.mxu1 %v13280_v58 }
0x202e   :  { %12056 = vmatprep.subr.bf16.mxu0 %v13281_v13  ;;  %12078 = vmatprep.subr.bf16.mxu1 %v13282_v36  ;;  %v13293_v36 = vld [vmem:[%s16639_s16 + $0x170] sm:$0xff]  }
0x2031   :  { %12057 = vmatpush3.bf16.msra.mxu0 %v13283_v61  ;;  %12079 = vmatpush3.bf16.msra.mxu1 %v13284_v16  ;;  %v13294_v61 = vld [vmem:[%s16639_s16 + $0x1f0] sm:$0xff]  }
0x2032   :  { %12058 = vmatprep.subr.bf16.mxu0 %v13285_v62  ;;  %12080 = vmatprep.subr.bf16.mxu1 %v13286_v63 }
0x2035   :  { %12059 = vmatpush3.bf16.msra.mxu0 %v13287_v2  ;;  %12081 = vmatpush3.bf16.msra.mxu1 %v13288_v8 }
0x2036   :  { %12088 = vmatprep.subr.bf16.mxu0 %v13289_v9  ;;  %12110 = vmatprep.subr.bf16.mxu1 %v13290_v41  ;;  %v13295_v41 = vld [vmem:[%s16639_s16 + $0x130] sm:$0xff]  }
0x20c0   :  { %v4517_v39 = vpop.f32.mrf.mxu0  ;;  %v4560_v29 = vpop.f32.mrf.mxu1 }
0x20c1   :  { %v4518_v37 = vadd.f32 %v4517_v39, %v4238_v46  ;;  %v4561_v30 = vadd.f32 %v4560_v29, %v4246_v59  ;;  %v13296_v39 = vld [vmem:[%s16639_s16 + $0x1b0] sm:$0xff]   ;;  %v13297_v29 = vld [vmem:[%s16639_s16 + $0x168] sm:$0xff]  }
0x20c2   :  { %v4519_v48 = vpop.f32.mrf.mxu0  ;;  %v4562_v19 = vpop.f32.mrf.mxu1 }
0x20c3   :  { %v4520_v11 = vadd.f32 %v4519_v48, %v4242_v4  ;;  %v4563_v14 = vadd.f32 %v4562_v19, %v4250_v40  ;;  %v4827_v28 = vmax.f32 %v4518_v37, 0.0  ;;  %v4829_v35 = vmax.f32 %v4561_v30, 0.0  ;;  %v13303_v30 = vld [vmem:[%s16639_s16 + $0x120] sm:$0xff]  }
0x20c4   :  { %v4521_v20 = vpop.f32.mrf.mxu0  ;;  %v4564_v10 = vpop.f32.mrf.mxu1 }
0x20c5   :  { %v4522_v26 = vadd.f32 %v4521_v20, %v4238_v46  ;;  %v4565_v23 = vadd.f32 %v4564_v10, %v4246_v59  ;;  %v4828_v50 = vmax.f32 %v4520_v11, 0.0  ;;  %v4830_v32 = vmax.f32 %v4563_v14, 0.0  ;;  %v13299_v20 = vld [vmem:[%s16639_s16 + $0x128] sm:$0xff]   ;;  %v13301_v14 = vld [vmem:[%s16639_s16 + $0x160] sm:$0xff]  }
0x20c6   :  { %v4523_v34 = vpop.f32.mrf.mxu0  ;;  %v4566_v55 = vpop.f32.mrf.mxu1  ;;  %v13300_v10 = vld [vmem:[%s16639_s16 + $0x1a8] sm:$0xff]  }
0x20c7   :  { %v4524_v17 = vadd.f32 %v4523_v34, %v4242_v4  ;;  %v4567_v18 = vadd.f32 %v4566_v55, %v4250_v40  ;;  %v4843_v43 = vmax.f32 %v4522_v26, 0.0  ;;  %v4845_v45 = vmax.f32 %v4565_v23, 0.0  ;;  %v13298_v4 = vld [vmem:[%s16639_s16 + $0x1e8] sm:$0xff]   ;;  %v13302_v26 = vld [vmem:[%s16639_s16 + $0x1e0] sm:$0xff]   ;;  %v13305_v55 = vld [vmem:[%s16639_s16 + $0x158] sm:$0xff]  }
0x20c8   :  { %v15189_v44 = vpop.f32.mrf.mxu0  ;;  %v15191_v49 = vpop.f32.mrf.mxu1  ;;  %v13304_v34 = vld [vmem:[%s16639_s16 + $0x1a0] sm:$0xff]  }
0x20c9   :  { %v4844_v21 = vmax.f32 %v4524_v17, 0.0  ;;  %v4846_v7 = vmax.f32 %v4567_v18, 0.0  ;;  %v11849_v56 = vpack.c.bf16 %v4843_v43, %v4827_v28  ;;  %v11851_v57 = vpack.c.bf16 %v4845_v45, %v4829_v35  ;;  %v13306_v17 = vld [vmem:[%s16639_s16 + $0x1d8] sm:$0xff]  }
0x20ca   :  { %v4605_v42 = vpop.f32.mrf.mxu0  ;;  %v4648_v3 = vpop.f32.mrf.mxu1  ;;  %v13307_v45 = vld [vmem:[%s16639_s16 + $0x118] sm:$0xff]  }
0x20cb   :  { %v11850_v60 = vpack.c.bf16 %v4844_v21, %v4828_v50  ;;  %v11852_v0 = vpack.c.bf16 %v4846_v7, %v4830_v32  ;;  %v4606_v16 = vadd.f32 %v4605_v42, %v4258_v38  ;;  %v4649_v62 = vadd.f32 %v4648_v3, %v4266_v52  ;;  %v13309_v50 = vld [vmem:[%s16639_s16 + $0x150] sm:$0xff]   ;;  %v13314_v3 = vld [vmem:[%s16639_s16 + $0x1c8] sm:$0xff]  }
0x20cc   :  { %v15203_v58 = vpop.f32.mrf.mxu0  ;;  %v15205_v13 = vpop.f32.mrf.mxu1  ;;  %v13310_v32 = vld [vmem:[%s16639_s16 + $0x1d0] sm:$0xff]   ;;  %v15266_v21 = vsub.s32 4, %v14710_v33  ;;  %v15269_v7 = vsub.s32 6, %v14710_v33  ;;  %v13313_v33 = vld [vmem:[%s16639_s16 + $0x148] sm:$0xff]  }
0x20cd   :  { %6050 = vmatprep.mubr.bf16.mxu0 %v11850_v60  ;;  %6091 = vmatprep.mubr.bf16.mxu1 %v11852_v0  ;;  %v4832_v40 = vmax.f32 %v4606_v16, 0.0  ;;  %v4834_v48 = vmax.f32 %v4649_v62, 0.0  ;;  %v13311_v42 = vld [vmem:[%s16639_s16 + $0x110] sm:$0xff]  }
0x20ce   :  { %v4609_v63 = vpop.f32.mrf.mxu0  ;;  %v4652_v2 = vpop.f32.mrf.mxu1  ;;  %6051 = vmatmul.mubr.bf16.vlgmr.msra.gmra.mxu0 %v11849_v56  ;;  %6092 = vmatmul.mubr.bf16.vlgmr.msra.gmra.mxu1 %v11851_v57  ;;  %v4254_v60 = vrot.slane %v15173_v27, %v15266_v21  ;;  %v4262_v0 = vrot.slane %v15173_v27, %v15269_v7  ;;  %v13316_v27 = vld [vmem:[%s16639_s16 + $0x188] sm:$0xff]  }
0x20cf   :  { %v4610_v8 = vadd.f32 %v4609_v63, %v4258_v38  ;;  %v4653_v9 = vadd.f32 %v4652_v2, %v4266_v52  ;;  %12089 = vmatpush3.bf16.msra.mxu0 %v13291_v24  ;;  %12111 = vmatpush3.bf16.msra.mxu1 %v13292_v51  ;;  %v13308_v38 = vld [vmem:[%s16639_s16 + $0x198] sm:$0xff]   ;;  %v13312_v52 = vld [vmem:[%s16639_s16 + $0x190] sm:$0xff]   ;;  %v15294_v24 = vld [vmem:[%s16638_s15 + $0x8] sm:$0xff] }
0x20d0   :  { %12090 = vmatprep.subr.bf16.mxu0 %v13293_v36  ;;  %12112 = vmatprep.subr.bf16.mxu1 %v13294_v61  ;;  %v15237_v23 = vpop.f32.mrf.mxu0  ;;  %v15239_v37 = vpop.f32.mrf.mxu1  ;;  %v4274_v56 = vrot.slane %v15294_v24, %v15159_v22  ;;  %v13315_v36 = vld [vmem:[%s16639_s16 + $0x108] sm:$0xff]   ;;  %v4608_v61 = vadd.f32 %v15203_v58, %v4254_v60  ;;  %v4651_v16 = vadd.f32 %v15205_v13, %v4262_v0  ;;  %v13317_v63 = vld [vmem:[%s16639_s16 + $0x140] sm:$0xff]  }
0x20d1   :  { %v4848_v46 = vmax.f32 %v4610_v8, 0.0  ;;  %v4850_v59 = vmax.f32 %v4653_v9, 0.0  ;;  %v4282_v62 = vrot.slane %v15294_v24, %v15162_v31  ;;  %v13318_v2 = vld [vmem:[%s16639_s16 + $0x1c0] sm:$0xff]   ;;  %v4604_v9 = vadd.f32 %v15189_v44, %v4254_v60  ;;  %v13321_v44 = vld [vmem:[%s16639_s16 + $0x278] sm:$0xff]  }
0x20d2   :  { %v4691_v18 = vpop.f32.mrf.mxu0  ;;  %v4734_v43 = vpop.f32.mrf.mxu1  ;;  %v4647_v58 = vadd.f32 %v15191_v49, %v4262_v0  ;;  %v13322_v49 = vld [vmem:[%s16639_s16 + $0x2f8] sm:$0xff]   ;;  %v13335_v0 = vld [vmem:[%s16639_s16 + $0x220] sm:$0xff]  }
0x20d3   :  { %12091 = vmatpush3.bf16.msra.mxu0 %v13295_v41  ;;  %12113 = vmatpush3.bf16.msra.mxu1 %v13296_v39  ;;  %v11854_v19 = vpack.c.bf16 %v4848_v46, %v4832_v40  ;;  %v11856_v11 = vpack.c.bf16 %v4850_v59, %v4834_v48  ;;  %v4692_v13 = vadd.f32 %v4691_v18, %v4274_v56  ;;  %v13319_v39 = vld [vmem:[%s16639_s16 + $0x100] sm:$0xff]   ;;  %v4849_v40 = vmax.f32 %v4651_v16, 0.0  ;;  %v13326_v18 = vld [vmem:[%s16639_s16 + $0x2f0] sm:$0xff]  }
0x20d4   :  { %12092 = vmatprep.subr.bf16.mxu0 %v13297_v29  ;;  %12114 = vmatprep.subr.bf16.mxu1 %v13298_v4  ;;  %v15271_v28 = vpop.f32.mrf.mxu0  ;;  %v15273_v35 = vpop.f32.mrf.mxu1  ;;  %v13320_v29 = vld [vmem:[%s16639_s16 + $0x180] sm:$0xff]   ;;  %v4847_v4 = vmax.f32 %v4608_v61, 0.0  ;;  %v4735_v46 = vadd.f32 %v4734_v43, %v4282_v62  ;;  %v4831_v48 = vmax.f32 %v4604_v9, 0.0  ;;  %v13339_v61 = vld [vmem:[%s16639_s16 + $0x218] sm:$0xff]   ;;  %v13343_v9 = vld [vmem:[%s16639_s16 + $0x210] sm:$0xff]  }
0x20d5   :  { %6132 = vmatprep.mubr.bf16.mxu0 %v11854_v19  ;;  %6173 = vmatprep.mubr.bf16.mxu1 %v11856_v11  ;;  %v4833_v19 = vmax.f32 %v4647_v58, 0.0  ;;  %v13323_v11 = vld [vmem:[%s16639_s16 + $0x238] sm:$0xff]  }
0x20d6   :  { %v4695_v51 = vpop.f32.mrf.mxu0  ;;  %v4738_v57 = vpop.f32.mrf.mxu1 }
0x20d7   :  { %12093 = vmatpush3.bf16.msra.mxu0 %v13299_v20  ;;  %12115 = vmatpush3.bf16.msra.mxu1 %v13300_v10  ;;  %v4696_v8 = vadd.f32 %v4695_v51, %v4274_v56  ;;  %v4739_v41 = vadd.f32 %v4738_v57, %v4282_v62  ;;  %v4836_v10 = vmax.f32 %v4692_v13, 0.0  ;;  %v13336_v56 = vld [vmem:[%s16639_s16 + $0x2a0] sm:$0xff]   ;;  %v13337_v57 = vld [vmem:[%s16639_s16 + $0x258] sm:$0xff]   ;;  %v13345_v13 = vld [vmem:[%s16639_s16 + $0x248] sm:$0xff]  }
0x20d8   :  { %12094 = vmatprep.subr.bf16.mxu0 %v13301_v14  ;;  %12116 = vmatprep.subr.bf16.mxu1 %v13302_v26  ;;  %v11853_v14 = vpack.c.bf16 %v4847_v4, %v4831_v48  ;;  %v11855_v26 = vpack.c.bf16 %v4849_v40, %v4833_v19  ;;  %v15364_v60 = vpop.f32.mrf.mxu0  ;;  %v15369_v51 = vpop.f32.mrf.mxu1  ;;  %v13340_v62 = vld [vmem:[%s16639_s16 + $0x298] sm:$0xff]   ;;  %v4278_v4 = vrot.slane %v15294_v24, %v15168_v25  ;;  %v13348_v48 = vld [vmem:[%s16639_s16 + $0x288] sm:$0xff]   ;;  %v13349_v19 = vld [vmem:[%s16639_s16 + $0x240] sm:$0xff]  }
0x20d9   :  { %v4852_v59 = vmax.f32 %v4696_v8, 0.0  ;;  %v4854_v20 = vmax.f32 %v4739_v41, 0.0  ;;  %v13344_v41 = vld [vmem:[%s16639_s16 + $0x290] sm:$0xff]  }
0x20da   :  { %v4820_v16 = vpop.f32.mrf.mxu1 }
0x20db   :  { %12095 = vmatpush3.bf16.msra.mxu0 %v13303_v30  ;;  %12117 = vmatpush3.bf16.msra.mxu1 %v13304_v34  ;;  %v4838_v30 = vmax.f32 %v4735_v46, 0.0  ;;  %v13324_v34 = vld [vmem:[%s16639_s16 + $0x2b8] sm:$0xff]   ;;  %v13347_v46 = vld [vmem:[%s16639_s16 + $0x208] sm:$0xff]  }
0x20dc   :  { %12096 = vmatprep.subr.bf16.mxu0 %v13305_v55  ;;  %12118 = vmatprep.subr.bf16.mxu1 %v13306_v17  ;;  %v11858_v55 = vpack.c.bf16 %v4852_v59, %v4836_v10  ;;  %v13325_v17 = vld [vmem:[%s16639_s16 + $0x270] sm:$0xff]   ;;  %v15397_v58 = vpop.f32.mrf.mxu1  ;;  %v4298_v10 = vrot.slane %v15294_v24, %v15187_v15 }
0x20dd   :  { %v11860_v43 = vpack.c.bf16 %v4854_v20, %v4838_v30  ;;  %v4737_v20 = vadd.f32 %v15273_v35, %v4278_v4 }
0x20de   :  { %v4824_v59 = vpop.f32.mrf.mxu1 }
0x20df   :  { %12097 = vmatpush3.bf16.msra.mxu0 %v13307_v45  ;;  %12119 = vmatpush3.bf16.msra.mxu1 %v13308_v38  ;;  %v13327_v45 = vld [vmem:[%s16639_s16 + $0x230] sm:$0xff]   ;;  %v4825_v30 = vadd.f32 %v4824_v59, %v4298_v10 }
0x20e0   :  { %12098 = vmatprep.subr.bf16.mxu0 %v13309_v50  ;;  %12120 = vmatprep.subr.bf16.mxu1 %v13310_v32  ;;  %v13328_v38 = vld [vmem:[%s16639_s16 + $0x2b0] sm:$0xff]   ;;  %v13329_v50 = vld [vmem:[%s16639_s16 + $0x268] sm:$0xff]  }
0x20e1   :  { %v13330_v32 = vld [vmem:[%s16639_s16 + $0x2e8] sm:$0xff]   ;;  %v13373_v59 = vld [vmem:[%s16639_s16 + $0x350] sm:$0xff]  }
0x20e3   :  { %12099 = vmatpush3.bf16.msra.mxu0 %v13311_v42  ;;  %12121 = vmatpush3.bf16.msra.mxu1 %v13312_v52  ;;  %v13331_v42 = vld [vmem:[%s16639_s16 + $0x228] sm:$0xff]  }
0x20e4   :  { %12100 = vmatprep.subr.bf16.mxu0 %v13313_v33  ;;  %12122 = vmatprep.subr.bf16.mxu1 %v13314_v3  ;;  %v13332_v52 = vld [vmem:[%s16639_s16 + $0x2a8] sm:$0xff]   ;;  %v13333_v33 = vld [vmem:[%s16639_s16 + $0x260] sm:$0xff]  }
0x20e5   :  { %v13334_v3 = vld [vmem:[%s16639_s16 + $0x2e0] sm:$0xff]  }
0x20e7   :  { %12101 = vmatpush3.bf16.msra.mxu0 %v13315_v36  ;;  %12123 = vmatpush3.bf16.msra.mxu1 %v13316_v27  ;;  %v13338_v36 = vld [vmem:[%s16639_s16 + $0x2d8] sm:$0xff]   ;;  %v4777_v27 = vpop.f32.mrf.mxu0 }
0x20e8   :  { %12102 = vmatprep.subr.bf16.mxu0 %v13317_v63  ;;  %12124 = vmatprep.subr.bf16.mxu1 %v13318_v2  ;;  %v13341_v63 = vld [vmem:[%s16639_s16 + $0x250] sm:$0xff]  }
0x20e9   :  { %v13342_v2 = vld [vmem:[%s16639_s16 + $0x2d0] sm:$0xff]   ;;  %v15392_v8 = vpop.f32.mrf.mxu0 }
0x20eb   :  { %12103 = vmatpush3.bf16.msra.mxu0 %v13319_v39  ;;  %12125 = vmatpush3.bf16.msra.mxu1 %v13320_v29  ;;  %v13346_v39 = vld [vmem:[%s16639_s16 + $0x2c8] sm:$0xff]   ;;  %v4270_v29 = vrot.slane %v15294_v24, %v15165_v6  ;;  %v4781_v40 = vpop.f32.mrf.mxu0 }
0x20ec   :  { %12132 = vmatprep.subr.bf16.mxu0 %v13321_v44  ;;  %12154 = vmatprep.subr.bf16.mxu1 %v13322_v49  ;;  %v4290_v49 = vrot.slane %v15294_v24, %v15184_v5 }
0x20ed   :  { %v4694_v44 = vadd.f32 %v15271_v28, %v4270_v29  ;;  %v13350_v28 = vld [vmem:[%s16639_s16 + $0x2c0] sm:$0xff]  }
0x20ee   :  { %6133 = vmatmul.mubr.bf16.vlgmr.msra.gmra.mxu0 %v11853_v14  ;;  %6174 = vmatmul.mubr.bf16.vlgmr.msra.gmra.mxu1 %v11855_v26  ;;  %v4782_v14 = vadd.f32 %v4781_v40, %v4290_v49  ;;  %v4733_v26 = vadd.f32 %v15239_v37, %v4278_v4  ;;  %v4821_v37 = vadd.f32 %v4820_v16, %v4298_v10  ;;  %v13359_v16 = vld [vmem:[%s16639_s16 + $0x330] sm:$0xff]   ;;  %v13368_v4 = vld [vmem:[%s16639_s16 + $0x3a0] sm:$0xff]   ;;  %v13369_v40 = vld [vmem:[%s16639_s16 + $0x358] sm:$0xff]  }
0x20ef   :  { %12133 = vmatpush3.bf16.msra.mxu0 %v13323_v11  ;;  %6214 = vmatprep.mubr.bf16.mxu0 %v11858_v55  ;;  %v4690_v11 = vadd.f32 %v15237_v23, %v4270_v29  ;;  %v4851_v35 = vmax.f32 %v4694_v44, 0.0  ;;  %v4778_v55 = vadd.f32 %v4777_v27, %v4290_v49  ;;  %v13353_v23 = vld [vmem:[%s16639_s16 + $0x378] sm:$0xff]   ;;  %v13358_v27 = vld [vmem:[%s16639_s16 + $0x3f0] sm:$0xff]   ;;  %v13367_v29 = vld [vmem:[%s16639_s16 + $0x320] sm:$0xff]  }
0x20f0   :  { %12155 = vmatpush3.bf16.msra.mxu1 %v13324_v34  ;;  %6255 = vmatprep.mubr.bf16.mxu1 %v11860_v43  ;;  %v13351_v34 = vld [vmem:[%s16639_s16 + $0x200] sm:$0xff]   ;;  %v13354_v43 = vld [vmem:[%s16639_s16 + $0x3f8] sm:$0xff]   ;;  %v13377_v10 = vld [vmem:[%s16639_s16 + $0x348] sm:$0xff]  }
0x20f1   :  { %12134 = vmatprep.subr.bf16.mxu0 %v13325_v17  ;;  %12156 = vmatprep.subr.bf16.mxu1 %v13326_v18  ;;  %v13352_v17 = vld [vmem:[%s16639_s16 + $0x280] sm:$0xff]   ;;  %v4853_v18 = vmax.f32 %v4737_v20, 0.0  ;;  %v13371_v44 = vld [vmem:[%s16639_s16 + $0x318] sm:$0xff]   ;;  %v13376_v20 = vld [vmem:[%s16639_s16 + $0x390] sm:$0xff]  }
0x20f2   :  { %v13372_v49 = vld [vmem:[%s16639_s16 + $0x398] sm:$0xff]  }
0x20f3   :  { %12135 = vmatpush3.bf16.msra.mxu0 %v13327_v45  ;;  %v4835_v45 = vmax.f32 %v4690_v11, 0.0  ;;  %v4286_v11 = vrot.slane %v15294_v24, %v15266_v21 }
0x20f4   :  { %12157 = vmatpush3.bf16.msra.mxu1 %v13328_v38  ;;  %12136 = vmatprep.subr.bf16.mxu0 %v13329_v50  ;;  %v4856_v38 = vmax.f32 %v4782_v14, 0.0  ;;  %v4837_v50 = vmax.f32 %v4733_v26, 0.0  ;;  %v4294_v14 = vrot.slane %v15294_v24, %v15269_v7  ;;  %v13379_v26 = vld [vmem:[%s16639_s16 + $0x308] sm:$0xff]   ;;  %v13382_v24 = vld [vmem:[%s16639_s16 + $0x3c0] sm:$0xff]  }
0x20f5   :  { %12158 = vmatprep.subr.bf16.mxu1 %v13330_v32  ;;  %v4858_v32 = vmax.f32 %v4825_v30, 0.0  ;;  %v4780_v30 = vadd.f32 %v15392_v8, %v4286_v11 }
0x20f6   :  { %v4819_v8 = vadd.f32 %v15369_v51, %v4294_v14 }
0x20f7   :  { %12137 = vmatpush3.bf16.msra.mxu0 %v13331_v42  ;;  %v13355_v42 = vld [vmem:[%s16639_s16 + $0x338] sm:$0xff]  }
0x20f8   :  { %12159 = vmatpush3.bf16.msra.mxu1 %v13332_v52  ;;  %12138 = vmatprep.subr.bf16.mxu0 %v13333_v33  ;;  %v11857_v52 = vpack.c.bf16 %v4851_v35, %v4835_v45  ;;  %v4840_v33 = vmax.f32 %v4778_v55, 0.0  ;;  %v13381_v35 = vld [vmem:[%s16639_s16 + $0x340] sm:$0xff]   ;;  %v4823_v55 = vadd.f32 %v15397_v58, %v4294_v14  ;;  %v4841_v45 = vmax.f32 %v4819_v8, 0.0 }
0x20f9   :  { %12160 = vmatprep.subr.bf16.mxu1 %v13334_v3  ;;  %v13356_v3 = vld [vmem:[%s16639_s16 + $0x3b8] sm:$0xff]   ;;  %v13384_v58 = vld [vmem:[%s16639_s16 + $0x380] sm:$0xff]  }
0x20fb   :  { %12139 = vmatpush3.bf16.msra.mxu0 %v13335_v0  ;;  %v11859_v0 = vpack.c.bf16 %v4853_v18, %v4837_v50  ;;  %v4855_v18 = vmax.f32 %v4780_v30, 0.0 }
0x20fc   :  { %12161 = vmatpush3.bf16.msra.mxu1 %v13336_v56  ;;  %12140 = vmatprep.subr.bf16.mxu0 %v13337_v57  ;;  %v4842_v56 = vmax.f32 %v4821_v37, 0.0  ;;  %v13357_v57 = vld [vmem:[%s16639_s16 + $0x370] sm:$0xff]   ;;  %v4857_v37 = vmax.f32 %v4823_v55, 0.0 }
0x20fd   :  { %12162 = vmatprep.subr.bf16.mxu1 %v13338_v36  ;;  %v11862_v36 = vpack.c.bf16 %v4856_v38, %v4840_v33 }
0x20fe   :  { %v11863_v51 = vpack.c.bf16 %v4857_v37, %v4841_v45 }
0x20ff   :  { %12141 = vmatpush3.bf16.msra.mxu0 %v13339_v61  ;;  %v11864_v61 = vpack.c.bf16 %v4858_v32, %v4842_v56 }
0x2100   :  { %12163 = vmatpush3.bf16.msra.mxu1 %v13340_v62  ;;  %12142 = vmatprep.subr.bf16.mxu0 %v13341_v63  ;;  %v13360_v62 = vld [vmem:[%s16639_s16 + $0x3b0] sm:$0xff]   ;;  %v13361_v63 = vld [vmem:[%s16639_s16 + $0x368] sm:$0xff]  }
0x2101   :  { %12164 = vmatprep.subr.bf16.mxu1 %v13342_v2  ;;  %v13362_v2 = vld [vmem:[%s16639_s16 + $0x3e8] sm:$0xff]  }
0x2103   :  { %12143 = vmatpush3.bf16.msra.mxu0 %v13343_v9  ;;  %v13363_v9 = vld [vmem:[%s16639_s16 + $0x328] sm:$0xff]  }
0x2104   :  { %12165 = vmatpush3.bf16.msra.mxu1 %v13344_v41  ;;  %12144 = vmatprep.subr.bf16.mxu0 %v13345_v13  ;;  %v13364_v41 = vld [vmem:[%s16639_s16 + $0x3a8] sm:$0xff]   ;;  %v13365_v13 = vld [vmem:[%s16639_s16 + $0x360] sm:$0xff]  }
0x2105   :  { %12166 = vmatprep.subr.bf16.mxu1 %v13346_v39  ;;  %v13366_v39 = vld [vmem:[%s16639_s16 + $0x3e0] sm:$0xff]  }
0x2107   :  { %12145 = vmatpush3.bf16.msra.mxu0 %v13347_v46  ;;  %v13370_v46 = vld [vmem:[%s16639_s16 + $0x3d8] sm:$0xff]  }
0x2108   :  { %12167 = vmatpush3.bf16.msra.mxu1 %v13348_v48  ;;  %12146 = vmatprep.subr.bf16.mxu0 %v13349_v19  ;;  %v13374_v48 = vld [vmem:[%s16639_s16 + $0x3d0] sm:$0xff]  }
0x2109   :  { %12168 = vmatprep.subr.bf16.mxu1 %v13350_v28  ;;  %v13375_v19 = vld [vmem:[%s16639_s16 + $0x310] sm:$0xff]   ;;  %v13378_v28 = vld [vmem:[%s16639_s16 + $0x3c8] sm:$0xff]  }
0x210b   :  { %12147 = vmatpush3.bf16.msra.mxu0 %v13351_v34  ;;  %v13380_v34 = vld [vmem:[%s16639_s16 + $0x388] sm:$0xff]  }
0x210c   :  { %12169 = vmatpush3.bf16.msra.mxu1 %v13352_v17  ;;  %12176 = vmatprep.subr.bf16.mxu0 %v13353_v23  ;;  %v4776_v17 = vadd.f32 %v15364_v60, %v4286_v11  ;;  %v13383_v23 = vld [vmem:[%s16639_s16 + $0x300] sm:$0xff]  }
0x210d   :  { %12198 = vmatprep.subr.bf16.mxu1 %v13354_v43 }
0x210e   :  { %6215 = vmatmul.mubr.bf16.vlgmr.msra.gmra.mxu0 %v11857_v52  ;;  %v4839_v43 = vmax.f32 %v4776_v17, 0.0 }
0x210f   :  { %6256 = vmatmul.mubr.bf16.vlgmr.msra.gmra.mxu1 %v11859_v0  ;;  %12177 = vmatpush3.bf16.msra.mxu0 %v13355_v42 }
0x2110   :  { %6296 = vmatprep.mubr.bf16.mxu0 %v11862_v36  ;;  %12199 = vmatpush3.bf16.msra.mxu1 %v13356_v3  ;;  %v11861_v60 = vpack.c.bf16 %v4855_v18, %v4839_v43 }
0x2111   :  { %6337 = vmatprep.mubr.bf16.mxu1 %v11864_v61  ;;  %12178 = vmatprep.subr.bf16.mxu0 %v13357_v57 }
0x2112   :  { %12200 = vmatprep.subr.bf16.mxu1 %v13358_v27 }
0x2113   :  { %12179 = vmatpush3.bf16.msra.mxu0 %v13359_v16 }
0x2114   :  { %12201 = vmatpush3.bf16.msra.mxu1 %v13360_v62  ;;  %12180 = vmatprep.subr.bf16.mxu0 %v13361_v63 }
0x2115   :  { %12202 = vmatprep.subr.bf16.mxu1 %v13362_v2  ;;  %v11129_v2 = vld [vmem:[%s16640_s17] ss:$0 sm:$0xff] }
0x2117   :  { %12181 = vmatpush3.bf16.msra.mxu0 %v13363_v9 }
0x2118   :  { %12203 = vmatpush3.bf16.msra.mxu1 %v13364_v41  ;;  %12182 = vmatprep.subr.bf16.mxu0 %v13365_v13 }
0x2119   :  { %12204 = vmatprep.subr.bf16.mxu1 %v13366_v39 }
0x211b   :  { %12183 = vmatpush3.bf16.msra.mxu0 %v13367_v29 }
0x211c   :  { %12205 = vmatpush3.bf16.msra.mxu1 %v13368_v4  ;;  %12184 = vmatprep.subr.bf16.mxu0 %v13369_v40 }
0x211d   :  { %12206 = vmatprep.subr.bf16.mxu1 %v13370_v46 }
0x211f   :  { %12185 = vmatpush3.bf16.msra.mxu0 %v13371_v44 }
0x2120   :  { %12207 = vmatpush3.bf16.msra.mxu1 %v13372_v49  ;;  %12186 = vmatprep.subr.bf16.mxu0 %v13373_v59 }
0x2121   :  { %12208 = vmatprep.subr.bf16.mxu1 %v13374_v48 }
0x2123   :  { %12187 = vmatpush3.bf16.msra.mxu0 %v13375_v19 }
0x2124   :  { %12209 = vmatpush3.bf16.msra.mxu1 %v13376_v20  ;;  %12188 = vmatprep.subr.bf16.mxu0 %v13377_v10 }
0x2125   :  { %12210 = vmatprep.subr.bf16.mxu1 %v13378_v28 }
0x2127   :  { %12189 = vmatpush3.bf16.msra.mxu0 %v13379_v26 }
0x2128   :  { %12211 = vmatpush3.bf16.msra.mxu1 %v13380_v34  ;;  %12190 = vmatprep.subr.bf16.mxu0 %v13381_v35 }
0x2129   :  { %12212 = vmatprep.subr.bf16.mxu1 %v13382_v24 }
0x212b   :  { %12191 = vmatpush3.bf16.msra.mxu0 %v13383_v23 }
0x212c   :  { %12213 = vmatpush3.bf16.msra.mxu1 %v13384_v58  ;;  %12920 = vmatprep.subr.bf16.mxu0 %v13868_v1 }
0x212d   :  { %12928 = vmatprep.subr.bf16.mxu1 %v13868_v1 }
0x212e   :  { %6297 = vmatmul.mubr.bf16.vlgmr.msra.gmra.mxu0 %v11861_v60 }
0x212f   :  { %6338 = vmatmul.mubr.bf16.vlgmr.msra.gmra.mxu1 %v11863_v51  ;;  %12924 = vmatprep.mubr.msk.bf16.mxu0 %vm13869_vm0, %v13868_v1 }
0x2130   :  { %12930 = vmatprep.mubr.msk.bf16.mxu1 %vm13869_vm0, %v13868_v1 }
0x218e   :  { %v12060_v38 = vpop.f32.mrf.mxu0  ;;  %v12082_v50 = vpop.f32.mrf.mxu1 }
0x2190   :  { %v12061_v32 = vpop.f32.mrf.mxu0  ;;  %v12083_v42 = vpop.f32.mrf.mxu1 }
0x2191   :  { %v12062_v63 = vadd.f32 %v12061_v32, %v12060_v38  ;;  %v12084_v40 = vadd.f32 %v12083_v42, %v12082_v50 }
0x2192   :  { %v12063_v52 = vpop.f32.mrf.mxu0  ;;  %v12085_v33 = vpop.f32.mrf.mxu1 }
0x2193   :  { %v6053_v13 = vadd.f32 %v12062_v63, %v11129_v2 }
0x2194   :  { %v12064_v3 = vpop.f32.mrf.mxu0  ;;  %v12086_v56 = vpop.f32.mrf.mxu1 }
0x2195   :  { %v12065_v39 = vadd.f32 %v12064_v3, %v12063_v52  ;;  %v6094_v44 = vadd.f32 %v12084_v40, %v6053_v13  ;;  %v12087_v19 = vadd.f32 %v12086_v56, %v12085_v33 }
0x2197   :  { %v6056_v49 = vadd.f32 %v12065_v39, %v11129_v2 }
0x2199   :  { %v6097_v28 = vadd.f32 %v12087_v19, %v6056_v49 }
0x21ae   :  { %v12104_v0 = vpop.f32.mrf.mxu0  ;;  %v12126_v57 = vpop.f32.mrf.mxu1 }
0x21b0   :  { %v12105_v36 = vpop.f32.mrf.mxu0  ;;  %v12127_v27 = vpop.f32.mrf.mxu1 }
0x21b1   :  { %v12106_v46 = vadd.f32 %v12105_v36, %v12104_v0  ;;  %v12128_v11 = vadd.f32 %v12127_v27, %v12126_v57 }
0x21b2   :  { %v12107_v61 = vpop.f32.mrf.mxu0  ;;  %v12129_v16 = vpop.f32.mrf.mxu1 }
0x21b3   :  { %v6135_v20 = vadd.f32 %v12106_v46, %v6094_v44 }
0x21b4   :  { %v12108_v62 = vpop.f32.mrf.mxu0  ;;  %v12130_v41 = vpop.f32.mrf.mxu1 }
0x21b5   :  { %v12109_v10 = vadd.f32 %v12108_v62, %v12107_v61  ;;  %v6176_v34 = vadd.f32 %v12128_v11, %v6135_v20  ;;  %v12131_v55 = vadd.f32 %v12130_v41, %v12129_v16 }
0x21b7   :  { %v6138_v35 = vadd.f32 %v12109_v10, %v6097_v28 }
0x21b9   :  { %v6179_v18 = vadd.f32 %v12131_v55, %v6138_v35 }
0x21ce   :  { %v12148_v9 = vpop.f32.mrf.mxu0 }
0x21cf   :  { %v12170_v29 = vpop.f32.mrf.mxu1 }
0x21d0   :  { %v12149_v4 = vpop.f32.mrf.mxu0 }
0x21d1   :  { %v12171_v59 = vpop.f32.mrf.mxu1  ;;  %v12150_v14 = vadd.f32 %v12149_v4, %v12148_v9 }
0x21d2   :  { %v12151_v48 = vpop.f32.mrf.mxu0  ;;  %v12172_v58 = vadd.f32 %v12171_v59, %v12170_v29  ;;  %v13386_v59 = vld [vmem:[%s16711_s28 + $0x10] sm:$0xff]  }
0x21d3   :  { %v12173_v26 = vpop.f32.mrf.mxu1  ;;  %v6217_v24 = vadd.f32 %v12150_v14, %v6176_v34 }
0x21d4   :  { %v12152_v30 = vpop.f32.mrf.mxu0 }
0x21d5   :  { %v12153_v17 = vadd.f32 %v12152_v30, %v12151_v48  ;;  %v12174_v8 = vpop.f32.mrf.mxu1  ;;  %v6258_v45 = vadd.f32 %v12172_v58, %v6217_v24  ;;  %v11274_v30 = vld [vmem:[%s16645_s22] ss:$0 sm:$0xff]  ;;  %v11286_v58 = vld [vmem:[%s16713_s7 + $0x1] ss:$0 sm:$0xff]  ;;  %s16722_s7 = smov 64  }
0x21d6   :  { %v12175_v32 = vadd.f32 %v12174_v8, %v12173_v26  ;;  %v11275_v24 = vld [vmem:[%s16646_s23] ss:$0 sm:$0xff] }
0x21d7   :  { %v6220_v60 = vadd.f32 %v12153_v17, %v6179_v18 }
0x21d9   :  { %v6261_v0 = vadd.f32 %v12175_v32, %v6220_v60 }
0x21ee   :  { %v12192_v23 = vpop.f32.mrf.mxu0 }
0x21ef   :  { %v12214_v37 = vpop.f32.mrf.mxu1 }
0x21f0   :  { %v12193_v43 = vpop.f32.mrf.mxu0 }
0x21f1   :  { %v12194_v51 = vadd.f32 %v12193_v43, %v12192_v23  ;;  %v12215_v38 = vpop.f32.mrf.mxu1 }
0x21f2   :  { %v12195_v50 = vpop.f32.mrf.mxu0  ;;  %v12216_v52 = vadd.f32 %v12215_v38, %v12214_v37 }
0x21f3   :  { %v6299_v42 = vadd.f32 %v12194_v51, %v6258_v45  ;;  %v12217_v33 = vpop.f32.mrf.mxu1 }
0x21f4   :  { %v12196_v3 = vpop.f32.mrf.mxu0 }
0x21f5   :  { %v6340_v56 = vadd.f32 %v12216_v52, %v6299_v42  ;;  %v12197_v57 = vadd.f32 %v12196_v3, %v12195_v50  ;;  %v12218_v36 = vpop.f32.mrf.mxu1 }
0x21f6   :  { %v12219_v61 = vadd.f32 %v12218_v36, %v12217_v33 }
0x21f7   :  { %v6302_v27 = vadd.f32 %v12197_v57, %v6261_v0  ;;  %v6346_v16 = vadd.f32 %v6340_v56, %v14978_v53 }
0x21f9   :  { %v6343_v62 = vadd.f32 %v12219_v61, %v6302_v27  ;;  %v6350_v63 = vsel %vm307_vm3, %v6346_v16, 0.0 }
0x21fa   :  { %6351 = vadd.xlane.f32.xlu0 %v6350_v63 }
0x21fb   :  { %v6347_v2 = vadd.f32 %v6343_v62, %v14980_v54  ;;  %v13385_v54 = vld [vmem:[%s16711_s28 + $0x18] sm:$0xff]   ;;  %s16729_s28 = smov 104  }
0x21fc   :  { %12921 = vmatpush3.bf16.msra.mxu0 %v13385_v54 }
0x21fd   :  { %v6353_v9 = vsel %vm307_vm3, %v6347_v2, 0.0  ;;  %12922 = vmatprep.subr.bf16.mxu0 %v13868_v1 }
0x21fe   :  { %6354 = vadd.xlane.f32.xlu1 %v6353_v9 }
0x2200   :  { %12923 = vmatpush3.bf16.msra.mxu0 %v13386_v59 }
0x2201   :  { %12934 = vmatprep.subr.bf16.mxu0 %v13868_v1 }
0x2283   :  { %v6352_v41 = vpop.xlane.xlu0 %6351 }
0x2284   :  { %v6356_v13 = vmul.f32 0.03125, %v6352_v41 }
0x2286   :  { %v6358_v39 = vsub.f32 %v6346_v16, %v6356_v13 }
0x2287   :  { %v6355_v29 = vpop.xlane.xlu1 %6354 }
0x2288   :  { %v6357_v4 = vmul.f32 0.03125, %v6355_v29  ;;  %v6360_v40 = vmul.f32 %v6358_v39, %v6358_v39 }
0x228a   :  { %v6359_v46 = vsub.f32 %v6347_v2, %v6357_v4  ;;  %v6362_v44 = vsel %vm307_vm3, %v6360_v40, 0.0 }
0x228b   :  { %6363 = vadd.xlane.f32.xlu0 %v6362_v44 }
0x228c   :  { %v6361_v53 = vmul.f32 %v6359_v46, %v6359_v46 }
0x228e   :  { %v6365_v49 = vsel %vm307_vm3, %v6361_v53, 0.0 }
0x228f   :  { %6366 = vadd.xlane.f32.xlu1 %v6365_v49 }
0x2314   :  { %v6364_v48 = vpop.xlane.xlu0 %6363 }
0x2315   :  { %v6368_v19 = vmul.f32 0.03125, %v6364_v48 }
0x2317   :  { %v6370_v20 = vadd.f32 1e-05, %v6368_v19 }
0x2318   :  { %v6367_v10 = vpop.xlane.xlu1 %6366 }
0x2319   :  { %13755 = vrsqrt.f32 %v6370_v20  ;;  %v6369_v28 = vmul.f32 0.03125, %v6367_v10 }
0x231b   :  { %v6371_v11 = vadd.f32 1e-05, %v6369_v28 }
0x231d   :  { %13757 = vrsqrt.f32 %v6371_v11 }
0x2326   :  { %v13756_v14 = vpop.eup %13755 }
0x2327   :  { %v6374_v26 = vmul.f32 %v13756_v14, %v6358_v39 }
0x2329   :  { %v6382_v35 = vmul.f32 %v11274_v30, %v6374_v26 }
0x232a   :  { %v13758_v34 = vpop.eup %13757 }
0x232b   :  { %v6375_v55 = vmul.f32 %v13758_v34, %v6359_v46  ;;  %v15571_v8 = vadd.f32 %v11275_v24, %v6382_v35 }
0x232d   :  { %v6383_v17 = vmul.f32 %v11274_v30, %v6375_v55 }
0x232f   :  { %v15573_v23 = vadd.f32 %v11275_v24, %v6383_v17 }
0x2331   :  { %v11865_v18 = vpack.c.bf16 %v15573_v23, %v15571_v8 }
0x2333   :  { %12925 = vmatmul.mubr.msk.bf16.vlgmr.msra.gmra.mxu0 %vm307_vm3, %v11865_v18 }
0x2334   :  { %12936 = vmatprep.mubr.msk.bf16.mxu0 %vm13869_vm0, %v13868_v1 }
0x23f3   :  { %v6468_v37 = vpop.f32.mrf.mxu0 }
0x23f4   :  { %v6469_v43 = vadd.f32 %v11286_v58, %v6468_v37 }
0x23f5   :  { %v12926_v45 = vpop.f32.mrf.mxu0 }
0x23f6   :  { %v15583_v60 = vpack.c.bf16 %v6469_v43, %v6469_v43 }
0x23f7   :  { %v6471_v51 = vpop.f32.mrf.mxu0 }
0x23f8   :  { %v6472_v38 = vadd.f32 %v11286_v58, %v6471_v51  ;;  %6478 = vrot.lane.b32.xlu0 %v15583_v60, %s16721_s24 }
0x23f9   :  { %v12927_v50 = vpop.f32.mrf.mxu0 }
0x23fa   :  { %v15587_v32 = vpack.c.bf16 %v6472_v38, %v6472_v38 }
0x23fc   :  { %6527 = vrot.lane.b32.xlu1 %v15587_v32, %s16721_s24 }
0x246a   :  { %v6479_v42 = vpop.permute.xlu0 %6478 }
0x246b   :  { %v6484_v52 = vsel %vm1983_vm8, %v6479_v42, 0 }
0x246c   :  { %12929 = vmatpush3.bf16.xpose.msra.mxu1 %v6484_v52 }
0x246d   :  { %12940 = vmatprep.subr.bf16.mxu1 %v13868_v1 }
0x246e   :  { %v6528_v33 = vpop.permute.xlu1 %6527 }
0x246f   :  { %v6533_v3 = vsel %vm1983_vm8, %v6528_v33, 0 }
0x2470   :  { %12935 = vmatpush3.bf16.xpose.msra.mxu0 %v6533_v3 }
0x2471   :  { %12946 = vmatprep.subr.bf16.mxu0 %v13868_v1 }
0x2473   :  { %12931 = vmatmul.mubr.msk.bf16.vlgmr.msra.gmra.mxu1 %vm1983_vm8, %v15583_v60 }
0x2474   :  { %12942 = vmatprep.mubr.msk.bf16.mxu1 %vm13869_vm0, %v13868_v1 }
0x2477   :  { %12937 = vmatmul.mubr.msk.bf16.vlgmr.msra.gmra.mxu0 %vm1983_vm8, %v15587_v32 }
0x2478   :  { %12948 = vmatprep.mubr.msk.bf16.mxu0 %vm13869_vm0, %v13868_v1 }
0x2533   :  { %v6520_v0 = vpop.f32.mrf.mxu1 }
0x2534   :  { %v6575_v56 = vmul.f32 0.35355338, %v6520_v0 }
0x2535   :  { %v12932_v57 = vpop.f32.mrf.mxu1 }
0x2536   :  { %v6577_v36 = vsel %vm1983_vm8, %v6575_v56, -inf }
0x2537   :  { %v6523_v27 = vpop.f32.mrf.mxu1  ;;  %6578 = vmax.xlane.f32.xlu1 %v6577_v36  ;;  %v6569_v61 = vpop.f32.mrf.mxu0 }
0x2538   :  { %v6576_v16 = vmul.f32 0.35355338, %v6569_v61 }
0x2539   :  { %v12933_v62 = vpop.f32.mrf.mxu1  ;;  %v12938_v63 = vpop.f32.mrf.mxu0 }
0x253a   :  { %v6580_v2 = vsel %vm1983_vm8, %v6576_v16, -inf }
0x253b   :  { %6581 = vmax.xlane.f32.xlu0 %v6580_v2  ;;  %v6572_v9 = vpop.f32.mrf.mxu0 }
0x253d   :  { %v12939_v41 = vpop.f32.mrf.mxu0 }
0x2548   :  { %6649 = vrot.lane.b32.xlu1 %v15587_v32, %s16722_s7 }
0x2551   :  { %6601 = vrot.lane.b32.xlu0 %v15583_v60, %s16722_s7 }
0x25c0   :  { %v6579_v13 = vpop.xlane.xlu1 %6578 }
0x25c1   :  { %v6583_v39 = vsub.f32 %v6575_v56, %v6579_v13 }
0x25c3   :  { %v6585_v29 = vmul.f32 1.442695, %v6583_v39 }
0x25c4   :  { %v6650_v4 = vpop.permute.xlu1 %6649  ;;  %v6582_v40 = vpop.xlane.xlu0 %6581 }
0x25c5   :  { %13759 = vpow2.f32 %v6585_v29  ;;  %v6655_v46 = vsel %vm2110_vm9, %v6650_v4, 0  ;;  %v6584_v44 = vsub.f32 %v6576_v16, %v6582_v40 }
0x25c6   :  { %12947 = vmatpush3.bf16.msra.mxu0 %v6655_v46 }
0x25c7   :  { %v6587_v53 = vmul.f32 1.442695, %v6584_v44  ;;  %12958 = vmatprep.subr.bf16.mxu0 %v13868_v1 }
0x25c8   :  { %v6602_v49 = vpop.permute.xlu0 %6601 }
0x25c9   :  { %13761 = vpow2.f32 %v6587_v53  ;;  %v6607_v54 = vsel %vm2110_vm9, %v6602_v49, 0 }
0x25ca   :  { %12941 = vmatpush3.bf16.msra.mxu1 %v6607_v54 }
0x25cb   :  { %12952 = vmatprep.subr.bf16.mxu1 %v13868_v1 }
0x25d2   :  { %v13760_v59 = vpop.eup %13759 }
0x25d3   :  { %v6589_v48 = vsel %vm1983_vm8, %v13760_v59, 0.0 }
0x25d4   :  { %6590 = vadd.xlane.f32.xlu0 %v6589_v48 }
0x25d6   :  { %v13762_v19 = vpop.eup %13761 }
0x25d7   :  { %v6592_v20 = vsel %vm1983_vm8, %v13762_v19, 0.0 }
0x25d8   :  { %6593 = vadd.xlane.f32.xlu1 %v6592_v20 }
0x25e9   :  { %6699 = vrot.lane.b32.xlu1 %v15583_v60, %s16723_s8 }
0x25ea   :  { %6749 = vrot.lane.b32.xlu0 %v15587_v32, %s16723_s8 }
0x25ed   :  { %6697 = vrot.lane.b32.xlu1 %v15583_v60, %s16724_s29 }
0x25ee   :  { %6747 = vrot.lane.b32.xlu0 %v15587_v32, %s16724_s29 }
0x265d   :  { %v6591_v10 = vpop.xlane.xlu0 %6590 }
0x265e   :  { %13763 = vrcp.f32 %v6591_v10 }
0x2661   :  { %v6594_v28 = vpop.xlane.xlu1 %6593  ;;  %v6750_v24 = vpop.permute.xlu0 %6749 }
0x2662   :  { %13765 = vrcp.f32 %v6594_v28  ;;  %v6755_v18 = vsel %vm1983_vm8, %v6750_v24, 0 }
0x2665   :  { %v6700_v26 = vpop.permute.xlu1 %6699  ;;  %v6748_v37 = vpop.permute.xlu0 %6747 }
0x2666   :  { %v6705_v55 = vsel %vm1983_vm8, %v6700_v26, 0 }
0x2669   :  { %v6698_v58 = vpop.permute.xlu1 %6697 }
0x266b   :  { %v13764_v11 = vpop.eup %13763 }
0x266c   :  { %v6597_v14 = vmul.f32 %v13764_v11, %v13760_v59 }
0x266e   :  { %v6599_v30 = vpack.c.bf16 %v6597_v14, %v6597_v14 }
0x266f   :  { %v13766_v34 = vpop.eup %13765 }
0x2670   :  { %v6598_v35 = vmul.f32 %v13766_v34, %v13762_v19  ;;  %12943 = vmatmul.mubr.msk.bf16.vlgmr.msra.gmra.mxu1 %vm1983_vm8, %v6599_v30 }
0x2671   :  { %12953 = vmatpush3.bf16.xpose.msra.mxu1 %v6705_v55  ;;  %12954 = vmatprep.mubr.msk.bf16.mxu1 %vm13869_vm0, %v13868_v1 }
0x2672   :  { %v6600_v17 = vpack.c.bf16 %v6598_v35, %v6598_v35  ;;  %12964 = vmatprep.subr.bf16.mxu1 %v13868_v1 }
0x2674   :  { %12949 = vmatmul.mubr.msk.bf16.vlgmr.msra.gmra.mxu0 %vm1983_vm8, %v6600_v17 }
0x2675   :  { %12959 = vmatpush3.bf16.xpose.msra.mxu0 %v6755_v18  ;;  %12960 = vmatprep.mubr.msk.bf16.mxu0 %vm13869_vm0, %v13868_v1 }
0x2676   :  { %12970 = vmatprep.subr.bf16.mxu0 %v13868_v1 }
0x2678   :  { %12955 = vmatmul.mubr.msk.bf16.vlgmr.msra.gmra.mxu1 %vm1983_vm8, %v6698_v58 }
0x2679   :  { %12966 = vmatprep.mubr.msk.bf16.mxu1 %vm13869_vm0, %v13868_v1 }
0x267c   :  { %12961 = vmatmul.mubr.msk.bf16.vlgmr.msra.gmra.mxu0 %vm1983_vm8, %v6748_v37 }
0x267d   :  { %12972 = vmatprep.mubr.msk.bf16.mxu0 %vm13869_vm0, %v13868_v1 }
0x2730   :  { %v15639_v43 = vpop.f32.mrf.mxu1 }
0x2732   :  { %v12944_v45 = vpop.f32.mrf.mxu1 }
0x2734   :  { %v6646_v51 = vpop.f32.mrf.mxu1  ;;  %v15641_v38 = vpop.f32.mrf.mxu0 }
0x2736   :  { %v12945_v50 = vpop.f32.mrf.mxu1  ;;  %v12950_v42 = vpop.f32.mrf.mxu0 }
0x2738   :  { %v6694_v52 = vpop.f32.mrf.mxu0  ;;  %v6741_v33 = vpop.f32.mrf.mxu1 }
0x2739   :  { %v6797_v3 = vmul.f32 0.35355338, %v6741_v33 }
0x273a   :  { %v12951_v0 = vpop.f32.mrf.mxu0  ;;  %v12956_v56 = vpop.f32.mrf.mxu1 }
0x273b   :  { %v6799_v57 = vsel %vm1983_vm8, %v6797_v3, -inf }
0x273c   :  { %6800 = vmax.xlane.f32.xlu1 %v6799_v57  ;;  %v6744_v36 = vpop.f32.mrf.mxu1  ;;  %v6791_v27 = vpop.f32.mrf.mxu0 }
0x273d   :  { %v6798_v61 = vmul.f32 0.35355338, %v6791_v27 }
0x273e   :  { %v12957_v16 = vpop.f32.mrf.mxu1  ;;  %v12962_v62 = vpop.f32.mrf.mxu0 }
0x273f   :  { %v6802_v63 = vsel %vm1983_vm8, %v6798_v61, -inf }
0x2740   :  { %6803 = vmax.xlane.f32.xlu0 %v6802_v63  ;;  %v6794_v2 = vpop.f32.mrf.mxu0 }
0x2742   :  { %v12963_v9 = vpop.f32.mrf.mxu0 }
0x274d   :  { %6871 = vrot.lane.b32.xlu1 %v15587_v32, %s16725_s25 }
0x2756   :  { %6823 = vrot.lane.b32.xlu0 %v15583_v60, %s16725_s25 }
0x27c5   :  { %v6801_v41 = vpop.xlane.xlu1 %6800 }
0x27c6   :  { %v6805_v13 = vsub.f32 %v6797_v3, %v6801_v41 }
0x27c8   :  { %v6807_v39 = vmul.f32 1.442695, %v6805_v13 }
0x27c9   :  { %v6872_v29 = vpop.permute.xlu1 %6871  ;;  %v6804_v4 = vpop.xlane.xlu0 %6803 }
0x27ca   :  { %13767 = vpow2.f32 %v6807_v39  ;;  %v6877_v40 = vsel %vm2110_vm9, %v6872_v29, 0  ;;  %v6806_v46 = vsub.f32 %v6798_v61, %v6804_v4 }
0x27cb   :  { %12971 = vmatpush3.bf16.msra.mxu0 %v6877_v40 }
0x27cc   :  { %v6809_v44 = vmul.f32 1.442695, %v6806_v46  ;;  %12982 = vmatprep.subr.bf16.mxu0 %v13868_v1 }
0x27cd   :  { %v6824_v53 = vpop.permute.xlu0 %6823 }
0x27ce   :  { %13769 = vpow2.f32 %v6809_v44  ;;  %v6829_v49 = vsel %vm2110_vm9, %v6824_v53, 0 }
0x27cf   :  { %12965 = vmatpush3.bf16.msra.mxu1 %v6829_v49 }
0x27d0   :  { %12976 = vmatprep.subr.bf16.mxu1 %v13868_v1 }
0x27d7   :  { %v13768_v54 = vpop.eup %13767 }
0x27d8   :  { %v6811_v59 = vsel %vm1983_vm8, %v13768_v54, 0.0 }
0x27d9   :  { %6812 = vadd.xlane.f32.xlu0 %v6811_v59 }
0x27db   :  { %v13770_v48 = vpop.eup %13769 }
0x27dc   :  { %v6814_v19 = vsel %vm1983_vm8, %v13770_v48, 0.0 }
0x27dd   :  { %6815 = vadd.xlane.f32.xlu1 %v6814_v19 }
0x27ee   :  { %6921 = vrot.lane.b32.xlu1 %v15583_v60, %s16726_s26 }
0x27ef   :  { %6971 = vrot.lane.b32.xlu0 %v15587_v32, %s16726_s26 }
0x27f2   :  { %6919 = vrot.lane.b32.xlu1 %v15583_v60, %s16727_s1 }
0x27f3   :  { %6969 = vrot.lane.b32.xlu0 %v15587_v32, %s16727_s1 }
0x2862   :  { %v6813_v20 = vpop.xlane.xlu0 %6812 }
0x2863   :  { %13771 = vrcp.f32 %v6813_v20 }
0x2866   :  { %v6816_v10 = vpop.xlane.xlu1 %6815  ;;  %v6972_v55 = vpop.permute.xlu0 %6971 }
0x2867   :  { %13773 = vrcp.f32 %v6816_v10  ;;  %v6977_v17 = vsel %vm1983_vm8, %v6972_v55, 0 }
0x286a   :  { %v6922_v14 = vpop.permute.xlu1 %6921  ;;  %v6970_v58 = vpop.permute.xlu0 %6969 }
0x286b   :  { %v6927_v35 = vsel %vm1983_vm8, %v6922_v14, 0 }
0x286e   :  { %v6920_v18 = vpop.permute.xlu1 %6919 }
0x2870   :  { %v13772_v28 = vpop.eup %13771 }
0x2871   :  { %v6819_v11 = vmul.f32 %v13772_v28, %v13768_v54 }
0x2873   :  { %v6821_v26 = vpack.c.bf16 %v6819_v11, %v6819_v11 }
0x2874   :  { %v13774_v30 = vpop.eup %13773 }
0x2875   :  { %v6820_v34 = vmul.f32 %v13774_v30, %v13770_v48  ;;  %12967 = vmatmul.mubr.msk.bf16.vlgmr.msra.gmra.mxu1 %vm1983_vm8, %v6821_v26 }
0x2876   :  { %12977 = vmatpush3.bf16.xpose.msra.mxu1 %v6927_v35  ;;  %12978 = vmatprep.mubr.msk.bf16.mxu1 %vm13869_vm0, %v13868_v1 }
0x2877   :  { %v6822_v24 = vpack.c.bf16 %v6820_v34, %v6820_v34  ;;  %12988 = vmatprep.subr.bf16.mxu1 %v13868_v1 }
0x2879   :  { %12973 = vmatmul.mubr.msk.bf16.vlgmr.msra.gmra.mxu0 %vm1983_vm8, %v6822_v24 }
0x287a   :  { %12983 = vmatpush3.bf16.xpose.msra.mxu0 %v6977_v17  ;;  %12984 = vmatprep.mubr.msk.bf16.mxu0 %vm13869_vm0, %v13868_v1 }
0x287b   :  { %12994 = vmatprep.subr.bf16.mxu0 %v13868_v1 }
0x287d   :  { %12979 = vmatmul.mubr.msk.bf16.vlgmr.msra.gmra.mxu1 %vm1983_vm8, %v6920_v18 }
0x287e   :  { %12990 = vmatprep.mubr.msk.bf16.mxu1 %vm13869_vm0, %v13868_v1 }
0x2881   :  { %12985 = vmatmul.mubr.msk.bf16.vlgmr.msra.gmra.mxu0 %vm1983_vm8, %v6970_v58 }
0x2882   :  { %12996 = vmatprep.mubr.msk.bf16.mxu0 %vm13869_vm0, %v13868_v1 }
0x2935   :  { %v15679_v37 = vpop.f32.mrf.mxu1 }
0x2937   :  { %v12968_v45 = vpop.f32.mrf.mxu1 }
0x2939   :  { %v6868_v51 = vpop.f32.mrf.mxu1  ;;  %v15681_v50 = vpop.f32.mrf.mxu0 }
0x293a   :  { %v13210_v42 = vpack.i.bf16 %v15681_v50, %v15679_v37 }
0x293b   :  { %v12969_v52 = vpop.f32.mrf.mxu1  ;;  %v12974_v33 = vpop.f32.mrf.mxu0 }
0x293d   :  { %v6916_v3 = vpop.f32.mrf.mxu0  ;;  %v6963_v0 = vpop.f32.mrf.mxu1 }
0x293e   :  { %v7019_v56 = vmul.f32 0.35355338, %v6963_v0 }
0x293f   :  { %v12975_v57 = vpop.f32.mrf.mxu0  ;;  %v12980_v36 = vpop.f32.mrf.mxu1 }
0x2940   :  { %v7021_v27 = vsel %vm1983_vm8, %v7019_v56, -inf }
0x2941   :  { %7022 = vmax.xlane.f32.xlu1 %v7021_v27  ;;  %v6966_v61 = vpop.f32.mrf.mxu1  ;;  %v7013_v16 = vpop.f32.mrf.mxu0 }
0x2942   :  { %v7020_v62 = vmul.f32 0.35355338, %v7013_v16 }
0x2943   :  { %v12981_v63 = vpop.f32.mrf.mxu1  ;;  %v12986_v2 = vpop.f32.mrf.mxu0 }
0x2944   :  { %v7024_v9 = vsel %vm1983_vm8, %v7020_v62, -inf }
0x2945   :  { %7025 = vmax.xlane.f32.xlu0 %v7024_v9  ;;  %v7016_v41 = vpop.f32.mrf.mxu0 }
0x2947   :  { %v12987_v13 = vpop.f32.mrf.mxu0 }
0x2952   :  { %7093 = vrot.lane.b32.xlu1 %v15587_v32, %s16728_s10 }
0x295b   :  { %7045 = vrot.lane.b32.xlu0 %v15583_v60, %s16728_s10 }
0x29ca   :  { %v7023_v39 = vpop.xlane.xlu1 %7022 }
0x29cb   :  { %v7027_v29 = vsub.f32 %v7019_v56, %v7023_v39 }
0x29cd   :  { %v7029_v4 = vmul.f32 1.442695, %v7027_v29 }
0x29ce   :  { %v7094_v40 = vpop.permute.xlu1 %7093  ;;  %v7026_v46 = vpop.xlane.xlu0 %7025 }
0x29cf   :  { %13775 = vpow2.f32 %v7029_v4  ;;  %v7099_v44 = vsel %vm2110_vm9, %v7094_v40, 0  ;;  %v7028_v53 = vsub.f32 %v7020_v62, %v7026_v46 }
0x29d0   :  { %12995 = vmatpush3.bf16.msra.mxu0 %v7099_v44 }
0x29d1   :  { %v7031_v49 = vmul.f32 1.442695, %v7028_v53  ;;  %13006 = vmatprep.subr.bf16.mxu0 %v13868_v1 }
0x29d2   :  { %v7046_v54 = vpop.permute.xlu0 %7045 }
0x29d3   :  { %13777 = vpow2.f32 %v7031_v49  ;;  %v7051_v59 = vsel %vm2110_vm9, %v7046_v54, 0 }
0x29d4   :  { %12989 = vmatpush3.bf16.msra.mxu1 %v7051_v59 }
0x29d5   :  { %13000 = vmatprep.subr.bf16.mxu1 %v13868_v1 }
0x29dc   :  { %v13776_v48 = vpop.eup %13775 }
0x29dd   :  { %v7033_v19 = vsel %vm1983_vm8, %v13776_v48, 0.0 }
0x29de   :  { %7034 = vadd.xlane.f32.xlu0 %v7033_v19 }
0x29e0   :  { %v13778_v20 = vpop.eup %13777 }
0x29e1   :  { %v7036_v10 = vsel %vm1983_vm8, %v13778_v20, 0.0 }
0x29e2   :  { %7037 = vadd.xlane.f32.xlu1 %v7036_v10 }
0x29f3   :  { %7143 = vrot.lane.b32.xlu1 %v15583_v60, %s16717_s3 }
0x29f4   :  { %7193 = vrot.lane.b32.xlu0 %v15587_v32, %s16717_s3 }
0x29f7   :  { %7141 = vrot.lane.b32.xlu1 %v15583_v60, %s16729_s28 }
0x29f8   :  { %7191 = vrot.lane.b32.xlu0 %v15587_v32, %s16729_s28 }
0x2a67   :  { %v7035_v28 = vpop.xlane.xlu0 %7034 }
0x2a68   :  { %13779 = vrcp.f32 %v7035_v28 }
0x2a6b   :  { %v7038_v11 = vpop.xlane.xlu1 %7037  ;;  %v7194_v17 = vpop.permute.xlu0 %7193 }
0x2a6c   :  { %13781 = vrcp.f32 %v7038_v11  ;;  %v7199_v58 = vsel %vm1983_vm8, %v7194_v17, 0  ;;  %v13388_v17 = vld [vmem:[%s16714_s9 + $0x10] sm:$0xff]  }
0x2a6f   :  { %v7144_v30 = vpop.permute.xlu1 %7143  ;;  %v7192_v51 = vpop.permute.xlu0 %7191 }
0x2a70   :  { %v7149_v24 = vsel %vm1983_vm8, %v7144_v30, 0 }
0x2a73   :  { %v7142_v45 = vpop.permute.xlu1 %7141 }
0x2a75   :  { %v13780_v14 = vpop.eup %13779 }
0x2a76   :  { %v7041_v26 = vmul.f32 %v13780_v14, %v13776_v48 }
0x2a78   :  { %v7043_v34 = vpack.c.bf16 %v7041_v26, %v7041_v26 }
0x2a79   :  { %v13782_v35 = vpop.eup %13781 }
0x2a7a   :  { %v7042_v55 = vmul.f32 %v13782_v35, %v13778_v20  ;;  %12991 = vmatmul.mubr.msk.bf16.vlgmr.msra.gmra.mxu1 %vm1983_vm8, %v7043_v34 }
0x2a7b   :  { %13001 = vmatpush3.bf16.xpose.msra.mxu1 %v7149_v24  ;;  %13002 = vmatprep.mubr.msk.bf16.mxu1 %vm13869_vm0, %v13868_v1  ;;  %v13387_v24 = vld [vmem:[%s16714_s9 + $0x18] sm:$0xff]  }
0x2a7c   :  { %v7044_v18 = vpack.c.bf16 %v7042_v55, %v7042_v55  ;;  %13012 = vmatprep.subr.bf16.mxu1 %v13868_v1 }
0x2a7e   :  { %12997 = vmatmul.mubr.msk.bf16.vlgmr.msra.gmra.mxu0 %vm1983_vm8, %v7044_v18 }
0x2a7f   :  { %13007 = vmatpush3.bf16.xpose.msra.mxu0 %v7199_v58  ;;  %13008 = vmatprep.mubr.msk.bf16.mxu0 %vm13869_vm0, %v13868_v1 }
0x2a80   :  { %13018 = vmatprep.subr.bf16.mxu0 %v13868_v1 }
0x2a82   :  { %13003 = vmatmul.mubr.msk.bf16.vlgmr.msra.gmra.mxu1 %vm1983_vm8, %v7142_v45 }
0x2a83   :  { %13014 = vmatprep.mubr.msk.bf16.mxu1 %vm13869_vm0, %v13868_v1 }
0x2a86   :  { %13009 = vmatmul.mubr.msk.bf16.vlgmr.msra.gmra.mxu0 %vm1983_vm8, %v7192_v51 }
0x2a87   :  { %13020 = vmatprep.mubr.msk.bf16.mxu0 %vm13869_vm0, %v13868_v1 }
0x2b3a   :  { %v7087_v52 = vpop.f32.mrf.mxu1 }
0x2b3c   :  { %v12992_v33 = vpop.f32.mrf.mxu1 }
0x2b3e   :  { %v7090_v3 = vpop.f32.mrf.mxu1  ;;  %v7135_v0 = vpop.f32.mrf.mxu0 }
0x2b3f   :  { %v13215_v56 = vpack.i.bf16 %v7135_v0, %v7087_v52 }
0x2b40   :  { %v12993_v57 = vpop.f32.mrf.mxu1  ;;  %v12998_v36 = vpop.f32.mrf.mxu0 }
0x2b42   :  { %v7138_v27 = vpop.f32.mrf.mxu0  ;;  %v7185_v61 = vpop.f32.mrf.mxu1 }
0x2b43   :  { %v7241_v16 = vmul.f32 0.35355338, %v7185_v61 }
0x2b44   :  { %v12999_v62 = vpop.f32.mrf.mxu0  ;;  %v13004_v63 = vpop.f32.mrf.mxu1 }
0x2b45   :  { %v7243_v2 = vsel %vm1983_vm8, %v7241_v16, -inf }
0x2b46   :  { %7244 = vmax.xlane.f32.xlu1 %v7243_v2  ;;  %v7188_v9 = vpop.f32.mrf.mxu1  ;;  %v7235_v41 = vpop.f32.mrf.mxu0 }
0x2b47   :  { %v7242_v13 = vmul.f32 0.35355338, %v7235_v41 }
0x2b48   :  { %v13005_v39 = vpop.f32.mrf.mxu1  ;;  %v13010_v29 = vpop.f32.mrf.mxu0 }
0x2b49   :  { %v7246_v4 = vsel %vm1983_vm8, %v7242_v13, -inf }
0x2b4a   :  { %7247 = vmax.xlane.f32.xlu0 %v7246_v4  ;;  %v7238_v40 = vpop.f32.mrf.mxu0 }
0x2b4c   :  { %v13011_v46 = vpop.f32.mrf.mxu0 }
0x2bcf   :  { %v7245_v44 = vpop.xlane.xlu1 %7244 }
0x2bd0   :  { %v7249_v53 = vsub.f32 %v7241_v16, %v7245_v44 }
0x2bd2   :  { %v7251_v49 = vmul.f32 1.442695, %v7249_v53 }
0x2bd3   :  { %v7248_v54 = vpop.xlane.xlu0 %7247 }
0x2bd4   :  { %13783 = vpow2.f32 %v7251_v49  ;;  %v7250_v59 = vsub.f32 %v7242_v13, %v7248_v54 }
0x2bd6   :  { %v7253_v48 = vmul.f32 1.442695, %v7250_v59 }
0x2bd8   :  { %13785 = vpow2.f32 %v7253_v48 }
0x2be1   :  { %v13784_v19 = vpop.eup %13783 }
0x2be2   :  { %v7255_v20 = vsel %vm1983_vm8, %v13784_v19, 0.0 }
0x2be3   :  { %7256 = vadd.xlane.f32.xlu0 %v7255_v20 }
0x2be5   :  { %v13786_v10 = vpop.eup %13785 }
0x2be6   :  { %v7258_v28 = vsel %vm1983_vm8, %v13786_v10, 0.0 }
0x2be7   :  { %7259 = vadd.xlane.f32.xlu1 %v7258_v28  ;;  %v13389_v28 = vld [vmem:[%s16716_s4 + $0x18] sm:$0xff]  }
0x2bf8   :  { %7315 = vrot.lane.b32.xlu1 %v15587_v32, %s16730_s30 }
0x2bf9   :  { %7267 = vrot.lane.b32.xlu0 %v15583_v60, %s16730_s30 }
0x2bfc   :  { %13211 = vrot.lane.b32.xlu1 %v13210_v42, %s16718_s5 }
0x2bfd   :  { %13216 = vrot.lane.b32.xlu0 %v13215_v56, %s16719_s6 }
0x2c6c   :  { %v7257_v11 = vpop.xlane.xlu0 %7256 }
0x2c6d   :  { %13787 = vrcp.f32 %v7257_v11 }
0x2c70   :  { %v7260_v14 = vpop.xlane.xlu1 %7259  ;;  %v7268_v26 = vpop.permute.xlu0 %7267 }
0x2c71   :  { %13789 = vrcp.f32 %v7260_v14  ;;  %v7273_v30 = vsel %vm2110_vm9, %v7268_v26, 0 }
0x2c72   :  { %13013 = vmatpush3.bf16.msra.mxu1 %v7273_v30 }
0x2c73   :  { %13024 = vmatprep.subr.bf16.mxu1 %v13868_v1 }
0x2c74   :  { %v7316_v32 = vpop.permute.xlu1 %7315  ;;  %v13217_v61 = vpop.permute.xlu0 %13216 }
0x2c75   :  { %v7321_v60 = vsel %vm2110_vm9, %v7316_v32, 0  ;;  %v13219_v63 = vunpack.i.h.bf16 %v13217_v61  ;;  %v13218_v2 = vunpack.i.l.bf16 %v13217_v61 }
0x2c76   :  { %13019 = vmatpush3.bf16.msra.mxu0 %v7321_v60 }
0x2c77   :  { %13032 = vmatprep.subr.bf16.mxu0 %v13868_v1 }
0x2c78   :  { %v13212_v57 = vpop.permute.xlu1 %13211 }
0x2c79   :  { %v13214_v36 = vunpack.i.h.bf16 %v13212_v57  ;;  %v13213_v27 = vunpack.i.l.bf16 %v13212_v57 }
0x2c7a   :  { %v13788_v37 = vpop.eup %13787 }
0x2c7b   :  { %v7263_v50 = vmul.f32 %v13788_v37, %v13784_v19  ;;  %v7388_v16 = vsel %vm1983_vm8, %v15641_v38, %v13214_v36  ;;  %v7387_v62 = vsel %vm1983_vm8, %v15639_v43, %v13213_v27  ;;  %v11307_v43 = vld [vmem:[%s16715_s27 + $0x1] ss:$0 sm:$0xff] }
0x2c7c   :  { %v7389_v39 = vsel %vm109_vm1, %v7387_v62, %v13218_v2  ;;  %v7390_v29 = vsel %vm109_vm1, %v7388_v16, %v13219_v63  ;;  %v11315_v27 = vld [vmem:[%s16642_s19 + $0x1] ss:$0 sm:$0xff] }
0x2c7d   :  { %v7265_v42 = vpack.c.bf16 %v7263_v50, %v7263_v50 }
0x2c7e   :  { %v13790_v34 = vpop.eup %13789 }
0x2c7f   :  { %v7264_v35 = vmul.f32 %v13790_v34, %v13786_v10  ;;  %13015 = vmatmul.mubr.msk.bf16.vlgmr.msra.gmra.mxu1 %vm1983_vm8, %v7265_v42 }
0x2c80   :  { %13028 = vmatprep.mubr.msk.bf16.mxu1 %vm13869_vm0, %v13868_v1  ;;  %13025 = vmatpush3.bf16.msra.mxu1 %v13387_v24 }
0x2c81   :  { %v7266_v55 = vpack.c.bf16 %v7264_v35, %v7264_v35  ;;  %13026 = vmatprep.subr.bf16.mxu1 %v13868_v1  ;;  %v11326_v35 = vld [vmem:[%s16634_s11 + $0x1] ss:$0 sm:$0xff] }
0x2c83   :  { %13021 = vmatmul.mubr.msk.bf16.vlgmr.msra.gmra.mxu0 %vm1983_vm8, %v7266_v55  ;;  %v7599_v55 = vcombine.low %v11326_v35, %v11326_v35 }
0x2c84   :  { %13036 = vmatprep.mubr.msk.bf16.mxu0 %vm13869_vm0, %v13868_v1  ;;  %13027 = vmatpush3.bf16.msra.mxu1 %v13388_v17 }
0x2c85   :  { %13040 = vmatprep.subr.bf16.mxu1 %v13868_v1  ;;  %13033 = vmatpush3.bf16.msra.mxu0 %v13389_v28 }
0x2c86   :  { %13034 = vmatprep.subr.bf16.mxu0 %v13868_v1 }
0x2d3f   :  { %v7309_v18 = vpop.f32.mrf.mxu1 }
0x2d41   :  { %v13016_v58 = vpop.f32.mrf.mxu1 }
0x2d43   :  { %v7312_v45 = vpop.f32.mrf.mxu1  ;;  %v7357_v51 = vpop.f32.mrf.mxu0 }
0x2d44   :  { %v13220_v52 = vpack.i.bf16 %v7357_v51, %v7309_v18 }
0x2d45   :  { %v13017_v33 = vpop.f32.mrf.mxu1  ;;  %v13022_v3 = vpop.f32.mrf.mxu0 }
0x2d46   :  { %13221 = vrot.lane.b32.xlu1 %v13220_v52, %s16720_s0 }
0x2d47   :  { %v7360_v0 = vpop.f32.mrf.mxu0 }
0x2d48   :  { %v11314_v0 = vld [vmem:[%s16641_s18 + $0x1] ss:$0 sm:$0xff] }
0x2d49   :  { %v13023_v56 = vpop.f32.mrf.mxu0 }
0x2db8   :  { %v13222_v9 = vpop.permute.xlu1 %13221 }
0x2db9   :  { %v13224_v41 = vunpack.i.h.bf16 %v13222_v9  ;;  %v13223_v13 = vunpack.i.l.bf16 %v13222_v9 }
0x2dbb   :  { %v7392_v4 = vsel %vm2896_vm10, %v7390_v29, %v13224_v41  ;;  %v7391_v40 = vsel %vm2896_vm10, %v7389_v39, %v13223_v13 }
0x2dbc   :  { %v11866_v46 = vpack.c.bf16 %v7392_v4, %v7391_v40 }
0x2dbe   :  { %13029 = vmatmul.mubr.msk.bf16.vlgmr.msra.gmra.mxu1 %vm307_vm3, %v11866_v46 }
0x2dbf   :  { %13044 = vmatprep.mubr.msk.bf16.mxu1 %vm13869_vm0, %v13868_v1 }
0x2e7e   :  { %v7455_v38 = vpop.f32.mrf.mxu1 }
0x2e7f   :  { %v7456_v44 = vadd.f32 %v11307_v43, %v7455_v38 }
0x2e80   :  { %v13030_v53 = vpop.f32.mrf.mxu1 }
0x2e81   :  { %v7462_v49 = vadd.f32 %v7456_v44, %v15571_v8  ;;  %v13390_v8 = vld [vmem:[%s16716_s4 + $0x10] sm:$0xff]  }
0x2e82   :  { %v7458_v54 = vpop.f32.mrf.mxu1  ;;  %13035 = vmatpush3.bf16.msra.mxu0 %v13390_v8 }
0x2e83   :  { %v7459_v59 = vadd.f32 %v11307_v43, %v7458_v54  ;;  %v7468_v48 = vsel %vm307_vm3, %v7462_v49, 0.0  ;;  %13048 = vmatprep.subr.bf16.mxu0 %v13868_v1 }
0x2e84   :  { %7469 = vadd.xlane.f32.xlu0 %v7468_v48  ;;  %v13031_v19 = vpop.f32.mrf.mxu1 }
0x2e85   :  { %v7463_v20 = vadd.f32 %v7459_v59, %v15573_v23 }
0x2e87   :  { %v7471_v10 = vsel %vm307_vm3, %v7463_v20, 0.0 }
0x2e88   :  { %7472 = vadd.xlane.f32.xlu1 %v7471_v10 }
0x2e99   :  { %7595 = vrot.lane.b32.xlu1 %v13389_v28, %s16721_s24 }
0x2e9d   :  { %7600 = vrot.lane.b32.xlu1 %v7599_v55, %s16721_s24 }
0x2f0d   :  { %v7470_v23 = vpop.xlane.xlu0 %7469 }
0x2f0e   :  { %v7474_v11 = vmul.f32 0.03125, %v7470_v23 }
0x2f10   :  { %v7476_v14 = vsub.f32 %v7462_v49, %v7474_v11 }
0x2f11   :  { %v7473_v26 = vpop.xlane.xlu1 %7472 }
0x2f12   :  { %v7475_v30 = vmul.f32 0.03125, %v7473_v26  ;;  %v7478_v32 = vmul.f32 %v7476_v14, %v7476_v14 }
0x2f14   :  { %v7477_v60 = vsub.f32 %v7463_v20, %v7475_v30  ;;  %v7480_v37 = vsel %vm307_vm3, %v7478_v32, 0.0 }
0x2f15   :  { %7481 = vadd.xlane.f32.xlu0 %v7480_v37  ;;  %v7596_v34 = vpop.permute.xlu1 %7595 }
0x2f16   :  { %v7479_v50 = vmul.f32 %v7477_v60, %v7477_v60  ;;  %13041 = vmatpush3.bf16.msra.mxu1 %v7596_v34 }
0x2f17   :  { %13042 = vmatprep.subr.bf16.mxu1 %v13868_v1 }
0x2f18   :  { %v7483_v42 = vsel %vm307_vm3, %v7479_v50, 0.0 }
0x2f19   :  { %7484 = vadd.xlane.f32.xlu0 %v7483_v42  ;;  %v7601_v63 = vpop.permute.xlu1 %7600 }
0x2f2f   :  { %7593 = vrot.lane.b32.xlu0 %v13390_v8, %s16721_s24 }
0x2f9e   :  { %v7482_v24 = vpop.xlane.xlu0 %7481 }
0x2f9f   :  { %v7486_v17 = vmul.f32 0.03125, %v7482_v24 }
0x2fa1   :  { %v7488_v18 = vadd.f32 1e-05, %v7486_v17 }
0x2fa2   :  { %v7485_v58 = vpop.xlane.xlu0 %7484 }
0x2fa3   :  { %13791 = vrsqrt.f32 %v7488_v18  ;;  %v7487_v45 = vmul.f32 0.03125, %v7485_v58 }
0x2fa5   :  { %v7489_v51 = vadd.f32 1e-05, %v7487_v45 }
0x2fa6   :  { %v7594_v52 = vpop.permute.xlu0 %7593 }
0x2fa7   :  { %13793 = vrsqrt.f32 %v7489_v51  ;;  %13043 = vmatpush3.bf16.msra.mxu1 %v7594_v52 }
0x2fa8   :  { %13054 = vmatprep.subr.bf16.mxu1 %v13868_v1 }
0x2faa   :  { %13045 = vmatmul.mubr.msk.bf16.vlgmr.msra.gmra.mxu1 %vm307_vm3, %v14714_v47 }
0x2fab   :  { %13056 = vmatprep.mubr.msk.bf16.mxu1 %vm13869_vm0, %v13868_v1 }
0x2fb0   :  { %v13792_v33 = vpop.eup %13791 }
0x2fb1   :  { %v7492_v3 = vmul.f32 %v13792_v33, %v7476_v14 }
0x2fb3   :  { %v7500_v57 = vmul.f32 %v11314_v0, %v7492_v3 }
0x2fb4   :  { %v13794_v56 = vpop.eup %13793 }
0x2fb5   :  { %v7493_v36 = vmul.f32 %v13794_v56, %v7477_v60  ;;  %v15799_v16 = vadd.f32 %v11315_v27, %v7500_v57 }
0x2fb7   :  { %v7501_v61 = vmul.f32 %v11314_v0, %v7493_v36 }
0x2fb9   :  { %v15801_v47 = vadd.f32 %v11315_v27, %v7501_v61 }
0x2fbb   :  { %v11867_v62 = vpack.c.bf16 %v15801_v47, %v15799_v16 }
0x2fbd   :  { %13037 = vmatmul.mubr.msk.bf16.vlgmr.msra.gmra.mxu0 %vm307_vm3, %v11867_v62 }
0x2fbe   :  { %13050 = vmatprep.mubr.msk.bf16.mxu0 %vm13869_vm0, %v13868_v1 }
0x306a   :  { %v7637_v2 = vpop.f32.mrf.mxu1 }
0x306b   :  { %v7638_v9 = vadd.f32 %v7637_v2, %v7601_v63 }
0x306c   :  { %v13046_v41 = vpop.f32.mrf.mxu1 }
0x306d   :  { %v7644_v13 = vcombine.high %v7638_v9, %v7638_v9  ;;  %v15808_v39 = vpack.c.bf16 %v7638_v9, %v7638_v9 }
0x306e   :  { %v7640_v29 = vpop.f32.mrf.mxu1 }
0x306f   :  { %v15810_v4 = vpack.c.bf16 %v7644_v13, %v7644_v13  ;;  %v7654_v40 = vsel %vm1983_vm8, %v15808_v39, 0 }
0x3070   :  { %v13047_v46 = vpop.f32.mrf.mxu1  ;;  %13049 = vmatpush3.bf16.xpose.msra.mxu0 %v7654_v40 }
0x3071   :  { %v7700_v43 = vsel %vm1983_vm8, %v15810_v4, 0  ;;  %13060 = vmatprep.subr.bf16.mxu0 %v13868_v1 }
0x3072   :  { %13055 = vmatpush3.bf16.xpose.msra.mxu1 %v7700_v43 }
0x3073   :  { %13066 = vmatprep.subr.bf16.mxu1 %v13868_v1 }
0x307d   :  { %v7586_v38 = vpop.f32.mrf.mxu0 }
0x307e   :  { %v7587_v44 = vadd.f32 %v11326_v35, %v7586_v38 }
0x307f   :  { %v13038_v53 = vpop.f32.mrf.mxu0 }
0x3080   :  { %v15818_v49 = vpack.c.bf16 %v7587_v44, %v7587_v44 }
0x3081   :  { %v7589_v54 = vpop.f32.mrf.mxu0 }
0x3082   :  { %v7590_v59 = vadd.f32 %v11326_v35, %v7589_v54  ;;  %13051 = vmatmul.mubr.msk.bf16.vlgmr.msra.gmra.mxu0 %vm1983_vm8, %v15818_v49 }
0x3083   :  { %v13039_v48 = vpop.f32.mrf.mxu0  ;;  %13062 = vmatprep.mubr.msk.bf16.mxu0 %vm13869_vm0, %v13868_v1 }
0x3084   :  { %v15824_v19 = vpack.c.bf16 %v7590_v59, %v7590_v59 }
0x3086   :  { %13057 = vmatmul.mubr.msk.bf16.vlgmr.msra.gmra.mxu1 %vm1983_vm8, %v15824_v19 }
0x3087   :  { %13068 = vmatprep.mubr.msk.bf16.mxu1 %vm13869_vm0, %v13868_v1 }
0x3142   :  { %v7690_v20 = vpop.f32.mrf.mxu0 }
0x3143   :  { %v7742_v10 = vmul.f32 0.35355338, %v7690_v20 }
0x3144   :  { %v13052_v28 = vpop.f32.mrf.mxu0 }
0x3145   :  { %v7744_v8 = vsel %vm3260_vm11, %v7742_v10, -inf }
0x3146   :  { %v7736_v23 = vpop.f32.mrf.mxu1  ;;  %7745 = vmax.xlane.f32.xlu1 %v7744_v8  ;;  %v7693_v11 = vpop.f32.mrf.mxu0 }
0x3147   :  { %v7743_v14 = vmul.f32 0.35355338, %v7736_v23 }
0x3148   :  { %v13053_v26 = vpop.f32.mrf.mxu0  ;;  %v13058_v30 = vpop.f32.mrf.mxu1 }
0x3149   :  { %v7747_v32 = vsel %vm3260_vm11, %v7743_v14, -inf }
0x314a   :  { %7748 = vmax.xlane.f32.xlu0 %v7747_v32  ;;  %v7739_v60 = vpop.f32.mrf.mxu1 }
0x314c   :  { %v13059_v37 = vpop.f32.mrf.mxu1 }
0x3157   :  { %7818 = vrot.lane.b32.xlu1 %v15810_v4, %s16721_s24 }
0x3160   :  { %7769 = vrot.lane.b32.xlu0 %v15808_v39, %s16721_s24  ;;  %s16731_s24 = sld [smem:[#allocation17_spill]] }
0x31cf   :  { %v7746_v50 = vpop.xlane.xlu1 %7745 }
0x31d0   :  { %v7750_v42 = vsub.f32 %v7742_v10, %v7746_v50 }
0x31d2   :  { %v7752_v34 = vmul.f32 1.442695, %v7750_v42 }
0x31d3   :  { %v7749_v35 = vpop.xlane.xlu0 %7748  ;;  %v7819_v55 = vpop.permute.xlu1 %7818 }
0x31d4   :  { %13795 = vpow2.f32 %v7752_v34  ;;  %v7751_v24 = vsub.f32 %v7743_v14, %v7749_v35  ;;  %v7824_v17 = vsel %vm3291_vm12, %v7819_v55, 0 }
0x31d5   :  { %13067 = vmatpush3.bf16.msra.mxu1 %v7824_v17 }
0x31d6   :  { %v7754_v18 = vmul.f32 1.442695, %v7751_v24  ;;  %13078 = vmatprep.subr.bf16.mxu1 %v13868_v1 }
0x31d7   :  { %v7770_v58 = vpop.permute.xlu0 %7769 }
0x31d8   :  { %13797 = vpow2.f32 %v7754_v18  ;;  %v7775_v45 = vsel %vm3291_vm12, %v7770_v58, 0 }
0x31d9   :  { %13061 = vmatpush3.bf16.msra.mxu0 %v7775_v45 }
0x31da   :  { %13072 = vmatprep.subr.bf16.mxu0 %v13868_v1 }
0x31e1   :  { %v13796_v51 = vpop.eup %13795 }
0x31e2   :  { %v7756_v52 = vsel %vm3260_vm11, %v13796_v51, 0.0 }
0x31e3   :  { %7757 = vadd.xlane.f32.xlu0 %v7756_v52 }
0x31e5   :  { %v13798_v33 = vpop.eup %13797 }
0x31e6   :  { %v7759_v3 = vsel %vm3260_vm11, %v13798_v33, 0.0 }
0x31e7   :  { %7760 = vadd.xlane.f32.xlu1 %v7759_v3 }
0x31f8   :  { %7869 = vrot.lane.b32.xlu1 %v15808_v39, %s16724_s29 }
0x31f9   :  { %7920 = vrot.lane.b32.xlu0 %v15810_v4, %s16724_s29 }
0x31fc   :  { %7867 = vrot.lane.b32.xlu1 %v15818_v49, %s16724_s29 }
0x31fd   :  { %7918 = vrot.lane.b32.xlu0 %v15824_v19, %s16724_s29 }
0x326c   :  { %v7758_v0 = vpop.xlane.xlu0 %7757 }
0x326d   :  { %13799 = vrcp.f32 %v7758_v0 }
0x3270   :  { %v7761_v56 = vpop.xlane.xlu1 %7760  ;;  %v7921_v9 = vpop.permute.xlu0 %7920 }
0x3271   :  { %13801 = vrcp.f32 %v7761_v56  ;;  %v7926_v13 = vsel %vm1983_vm8, %v7921_v9, 0 }
0x3274   :  { %v7870_v27 = vpop.permute.xlu1 %7869  ;;  %v7919_v40 = vpop.permute.xlu0 %7918 }
0x3275   :  { %v7875_v2 = vsel %vm1983_vm8, %v7870_v27, 0 }
0x3278   :  { %v7868_v29 = vpop.permute.xlu1 %7867 }
0x327a   :  { %v13800_v57 = vpop.eup %13799 }
0x327b   :  { %v7764_v36 = vmul.f32 %v13800_v57, %v13796_v51 }
0x327d   :  { %v7766_v61 = vpack.c.bf16 %v7764_v36, %v7764_v36 }
0x327e   :  { %v13802_v62 = vpop.eup %13801 }
0x327f   :  { %v7765_v63 = vmul.f32 %v13802_v62, %v13798_v33  ;;  %13063 = vmatmul.mubr.msk.bf16.vlgmr.msra.gmra.mxu0 %vm3260_vm11, %v7766_v61 }
0x3280   :  { %13073 = vmatpush3.bf16.xpose.msra.mxu0 %v7875_v2  ;;  %13074 = vmatprep.mubr.msk.bf16.mxu0 %vm13869_vm0, %v13868_v1 }
0x3281   :  { %v7767_v41 = vpack.c.bf16 %v7765_v63, %v7765_v63  ;;  %13084 = vmatprep.subr.bf16.mxu0 %v13868_v1 }
0x3283   :  { %13069 = vmatmul.mubr.msk.bf16.vlgmr.msra.gmra.mxu1 %vm3260_vm11, %v7767_v41 }
0x3284   :  { %13079 = vmatpush3.bf16.xpose.msra.mxu1 %v7926_v13  ;;  %13080 = vmatprep.mubr.msk.bf16.mxu1 %vm13869_vm0, %v13868_v1 }
0x3285   :  { %13090 = vmatprep.subr.bf16.mxu1 %v13868_v1 }
0x3287   :  { %13075 = vmatmul.mubr.msk.bf16.vlgmr.msra.gmra.mxu0 %vm1983_vm8, %v7868_v29 }
0x3288   :  { %13086 = vmatprep.mubr.msk.bf16.mxu0 %vm13869_vm0, %v13868_v1 }
0x328b   :  { %13081 = vmatmul.mubr.msk.bf16.vlgmr.msra.gmra.mxu1 %vm1983_vm8, %v7919_v40 }
0x328c   :  { %13092 = vmatprep.mubr.msk.bf16.mxu1 %vm13869_vm0, %v13868_v1 }
0x333f   :  { %v15866_v46 = vpop.f32.mrf.mxu0 }
0x3341   :  { %v13064_v43 = vpop.f32.mrf.mxu0 }
0x3343   :  { %v7814_v38 = vpop.f32.mrf.mxu0  ;;  %v15868_v44 = vpop.f32.mrf.mxu1 }
0x3345   :  { %v13065_v53 = vpop.f32.mrf.mxu0  ;;  %v13070_v54 = vpop.f32.mrf.mxu1 }
0x3347   :  { %v7863_v59 = vpop.f32.mrf.mxu1  ;;  %v7911_v48 = vpop.f32.mrf.mxu0 }
0x3348   :  { %v7968_v20 = vmul.f32 0.35355338, %v7911_v48 }
0x3349   :  { %v13071_v10 = vpop.f32.mrf.mxu1  ;;  %v13076_v28 = vpop.f32.mrf.mxu0 }
0x334a   :  { %v7970_v8 = vsel %vm3260_vm11, %v7968_v20, -inf }
0x334b   :  { %v7962_v23 = vpop.f32.mrf.mxu1  ;;  %7971 = vmax.xlane.f32.xlu1 %v7970_v8  ;;  %v7914_v11 = vpop.f32.mrf.mxu0 }
0x334c   :  { %v7969_v14 = vmul.f32 0.35355338, %v7962_v23 }
0x334d   :  { %v13077_v26 = vpop.f32.mrf.mxu0  ;;  %v13082_v30 = vpop.f32.mrf.mxu1 }
0x334e   :  { %v7973_v32 = vsel %vm3260_vm11, %v7969_v14, -inf }
0x334f   :  { %7974 = vmax.xlane.f32.xlu0 %v7973_v32  ;;  %v7965_v60 = vpop.f32.mrf.mxu1 }
0x3351   :  { %v13083_v37 = vpop.f32.mrf.mxu1 }
0x335c   :  { %8042 = vrot.lane.b32.xlu1 %v15810_v4, %s16723_s8 }
0x3365   :  { %7994 = vrot.lane.b32.xlu0 %v15808_v39, %s16723_s8 }
0x33d4   :  { %v7972_v50 = vpop.xlane.xlu1 %7971 }
0x33d5   :  { %v7976_v42 = vsub.f32 %v7968_v20, %v7972_v50 }
0x33d7   :  { %v7978_v34 = vmul.f32 1.442695, %v7976_v42 }
0x33d8   :  { %v7975_v35 = vpop.xlane.xlu0 %7974  ;;  %v8043_v55 = vpop.permute.xlu1 %8042 }
0x33d9   :  { %13803 = vpow2.f32 %v7978_v34  ;;  %v7977_v24 = vsub.f32 %v7969_v14, %v7975_v35  ;;  %v8048_v17 = vsel %vm3291_vm12, %v8043_v55, 0 }
0x33da   :  { %13091 = vmatpush3.bf16.msra.mxu1 %v8048_v17 }
0x33db   :  { %v7980_v18 = vmul.f32 1.442695, %v7977_v24  ;;  %13102 = vmatprep.subr.bf16.mxu1 %v13868_v1 }
0x33dc   :  { %v7995_v58 = vpop.permute.xlu0 %7994 }
0x33dd   :  { %13805 = vpow2.f32 %v7980_v18  ;;  %v8000_v45 = vsel %vm3291_vm12, %v7995_v58, 0 }
0x33de   :  { %13085 = vmatpush3.bf16.msra.mxu0 %v8000_v45 }
0x33df   :  { %13096 = vmatprep.subr.bf16.mxu0 %v13868_v1 }
0x33e6   :  { %v13804_v51 = vpop.eup %13803 }
0x33e7   :  { %v7982_v52 = vsel %vm3260_vm11, %v13804_v51, 0.0 }
0x33e8   :  { %7983 = vadd.xlane.f32.xlu0 %v7982_v52 }
0x33ea   :  { %v13806_v33 = vpop.eup %13805 }
0x33eb   :  { %v7985_v3 = vsel %vm3260_vm11, %v13806_v33, 0.0 }
0x33ec   :  { %7986 = vadd.xlane.f32.xlu1 %v7985_v3 }
0x33fd   :  { %8092 = vrot.lane.b32.xlu1 %v15808_v39, %s16727_s1 }
0x33fe   :  { %8142 = vrot.lane.b32.xlu0 %v15810_v4, %s16727_s1 }
0x3401   :  { %8090 = vrot.lane.b32.xlu1 %v15818_v49, %s16727_s1 }
0x3402   :  { %8140 = vrot.lane.b32.xlu0 %v15824_v19, %s16727_s1  ;;  %s16732_s1 = sld [smem:[#allocation18_spill]] }
0x3471   :  { %v7984_v0 = vpop.xlane.xlu0 %7983 }
0x3472   :  { %13807 = vrcp.f32 %v7984_v0 }
0x3475   :  { %v7987_v56 = vpop.xlane.xlu1 %7986  ;;  %v8143_v9 = vpop.permute.xlu0 %8142 }
0x3476   :  { %13809 = vrcp.f32 %v7987_v56  ;;  %v8148_v13 = vsel %vm1983_vm8, %v8143_v9, 0 }
0x3479   :  { %v8093_v27 = vpop.permute.xlu1 %8092  ;;  %v8141_v40 = vpop.permute.xlu0 %8140 }
0x347a   :  { %v8098_v2 = vsel %vm1983_vm8, %v8093_v27, 0 }
0x347d   :  { %v8091_v29 = vpop.permute.xlu1 %8090 }
0x347f   :  { %v13808_v57 = vpop.eup %13807 }
0x3480   :  { %v7990_v36 = vmul.f32 %v13808_v57, %v13804_v51 }
0x3482   :  { %v7992_v61 = vpack.c.bf16 %v7990_v36, %v7990_v36 }
0x3483   :  { %v13810_v62 = vpop.eup %13809 }
0x3484   :  { %v7991_v63 = vmul.f32 %v13810_v62, %v13806_v33  ;;  %13087 = vmatmul.mubr.msk.bf16.vlgmr.msra.gmra.mxu0 %vm3260_vm11, %v7992_v61 }
0x3485   :  { %13097 = vmatpush3.bf16.xpose.msra.mxu0 %v8098_v2  ;;  %13098 = vmatprep.mubr.msk.bf16.mxu0 %vm13869_vm0, %v13868_v1 }
0x3486   :  { %v7993_v41 = vpack.c.bf16 %v7991_v63, %v7991_v63  ;;  %13108 = vmatprep.subr.bf16.mxu0 %v13868_v1 }
0x3488   :  { %13093 = vmatmul.mubr.msk.bf16.vlgmr.msra.gmra.mxu1 %vm3260_vm11, %v7993_v41 }
0x3489   :  { %13103 = vmatpush3.bf16.xpose.msra.mxu1 %v8148_v13  ;;  %13104 = vmatprep.mubr.msk.bf16.mxu1 %vm13869_vm0, %v13868_v1 }
0x348a   :  { %13114 = vmatprep.subr.bf16.mxu1 %v13868_v1 }
0x348c   :  { %13099 = vmatmul.mubr.msk.bf16.vlgmr.msra.gmra.mxu0 %vm1983_vm8, %v8091_v29 }
0x348d   :  { %13110 = vmatprep.mubr.msk.bf16.mxu0 %vm13869_vm0, %v13868_v1 }
0x3490   :  { %13105 = vmatmul.mubr.msk.bf16.vlgmr.msra.gmra.mxu1 %vm1983_vm8, %v8141_v40 }
0x3491   :  { %13116 = vmatprep.mubr.msk.bf16.mxu1 %vm13869_vm0, %v13868_v1 }
0x3544   :  { %v15906_v43 = vpop.f32.mrf.mxu0 }
0x3546   :  { %v13088_v38 = vpop.f32.mrf.mxu0 }
0x3548   :  { %v8039_v53 = vpop.f32.mrf.mxu0  ;;  %v15908_v54 = vpop.f32.mrf.mxu1 }
0x3549   :  { %v13225_v59 = vpack.i.bf16 %v15908_v54, %v15906_v43 }
0x354a   :  { %v13089_v48 = vpop.f32.mrf.mxu0  ;;  %v13094_v20 = vpop.f32.mrf.mxu1 }
0x354c   :  { %v8087_v10 = vpop.f32.mrf.mxu1  ;;  %v8134_v28 = vpop.f32.mrf.mxu0 }
0x354d   :  { %v8190_v8 = vmul.f32 0.35355338, %v8134_v28 }
0x354e   :  { %v13095_v23 = vpop.f32.mrf.mxu1  ;;  %v13100_v11 = vpop.f32.mrf.mxu0 }
0x354f   :  { %v8192_v14 = vsel %vm3260_vm11, %v8190_v8, -inf }
0x3550   :  { %v8184_v26 = vpop.f32.mrf.mxu1  ;;  %8193 = vmax.xlane.f32.xlu1 %v8192_v14  ;;  %v8137_v30 = vpop.f32.mrf.mxu0 }
0x3551   :  { %v8191_v32 = vmul.f32 0.35355338, %v8184_v26 }
0x3552   :  { %v13101_v60 = vpop.f32.mrf.mxu0  ;;  %v13106_v37 = vpop.f32.mrf.mxu1 }
0x3553   :  { %v8195_v50 = vsel %vm3260_vm11, %v8191_v32, -inf }
0x3554   :  { %8196 = vmax.xlane.f32.xlu0 %v8195_v50  ;;  %v8187_v42 = vpop.f32.mrf.mxu1 }
0x3556   :  { %v13107_v34 = vpop.f32.mrf.mxu1 }
0x3561   :  { %8264 = vrot.lane.b32.xlu1 %v15810_v4, %s16726_s26 }
0x356a   :  { %8216 = vrot.lane.b32.xlu0 %v15808_v39, %s16726_s26 }
0x35d9   :  { %v8194_v35 = vpop.xlane.xlu1 %8193 }
0x35da   :  { %v8198_v55 = vsub.f32 %v8190_v8, %v8194_v35 }
0x35dc   :  { %v8200_v24 = vmul.f32 1.442695, %v8198_v55 }
0x35dd   :  { %v8197_v17 = vpop.xlane.xlu0 %8196  ;;  %v8265_v18 = vpop.permute.xlu1 %8264 }
0x35de   :  { %13811 = vpow2.f32 %v8200_v24  ;;  %v8199_v58 = vsub.f32 %v8191_v32, %v8197_v17  ;;  %v8270_v45 = vsel %vm3291_vm12, %v8265_v18, 0 }
0x35df   :  { %13115 = vmatpush3.bf16.msra.mxu1 %v8270_v45 }
0x35e0   :  { %v8202_v51 = vmul.f32 1.442695, %v8199_v58  ;;  %13126 = vmatprep.subr.bf16.mxu1 %v13868_v1 }
0x35e1   :  { %v8217_v52 = vpop.permute.xlu0 %8216 }
0x35e2   :  { %13813 = vpow2.f32 %v8202_v51  ;;  %v8222_v33 = vsel %vm3291_vm12, %v8217_v52, 0 }
0x35e3   :  { %13109 = vmatpush3.bf16.msra.mxu0 %v8222_v33 }
0x35e4   :  { %13120 = vmatprep.subr.bf16.mxu0 %v13868_v1 }
0x35eb   :  { %v13812_v3 = vpop.eup %13811 }
0x35ec   :  { %v8204_v0 = vsel %vm3260_vm11, %v13812_v3, 0.0 }
0x35ed   :  { %8205 = vadd.xlane.f32.xlu0 %v8204_v0 }
0x35ef   :  { %v13814_v56 = vpop.eup %13813 }
0x35f0   :  { %v8207_v57 = vsel %vm3260_vm11, %v13814_v56, 0.0 }
0x35f1   :  { %8208 = vadd.xlane.f32.xlu1 %v8207_v57 }
0x3602   :  { %8314 = vrot.lane.b32.xlu1 %v15808_v39, %s16729_s28 }
0x3603   :  { %8364 = vrot.lane.b32.xlu0 %v15810_v4, %s16729_s28 }
0x3606   :  { %8312 = vrot.lane.b32.xlu1 %v15818_v49, %s16729_s28 }
0x3607   :  { %8362 = vrot.lane.b32.xlu0 %v15824_v19, %s16729_s28 }
0x3676   :  { %v8206_v36 = vpop.xlane.xlu0 %8205 }
0x3677   :  { %13815 = vrcp.f32 %v8206_v36 }
0x367a   :  { %v8209_v27 = vpop.xlane.xlu1 %8208  ;;  %v8365_v29 = vpop.permute.xlu0 %8364 }
0x367b   :  { %13817 = vrcp.f32 %v8209_v27  ;;  %v8370_v19 = vsel %vm1983_vm8, %v8365_v29, 0 }
0x367e   :  { %v8315_v63 = vpop.permute.xlu1 %8314  ;;  %v8363_v38 = vpop.permute.xlu0 %8362 }
0x367f   :  { %v8320_v13 = vsel %vm1983_vm8, %v8315_v63, 0 }
0x3682   :  { %v8313_v40 = vpop.permute.xlu1 %8312 }
0x3684   :  { %v13816_v61 = vpop.eup %13815 }
0x3685   :  { %v8212_v62 = vmul.f32 %v13816_v61, %v13812_v3 }
0x3687   :  { %v8214_v2 = vpack.c.bf16 %v8212_v62, %v8212_v62 }
0x3688   :  { %v13818_v9 = vpop.eup %13817 }
0x3689   :  { %v8213_v41 = vmul.f32 %v13818_v9, %v13814_v56  ;;  %13111 = vmatmul.mubr.msk.bf16.vlgmr.msra.gmra.mxu0 %vm3260_vm11, %v8214_v2 }
0x368a   :  { %13121 = vmatpush3.bf16.xpose.msra.mxu0 %v8320_v13  ;;  %13122 = vmatprep.mubr.msk.bf16.mxu0 %vm13869_vm0, %v13868_v1  ;;  %v13392_v13 = vld [vmem:[%s16635_s12 + $0x10] sm:$0xff]  }
0x368b   :  { %v8215_v49 = vpack.c.bf16 %v8213_v41, %v8213_v41  ;;  %13132 = vmatprep.subr.bf16.mxu0 %v13868_v1  ;;  %v13391_v41 = vld [vmem:[%s16635_s12 + $0x18] sm:$0xff]  }
0x368d   :  { %13117 = vmatmul.mubr.msk.bf16.vlgmr.msra.gmra.mxu1 %vm3260_vm11, %v8215_v49 }
0x368e   :  { %13127 = vmatpush3.bf16.xpose.msra.mxu1 %v8370_v19  ;;  %13128 = vmatprep.mubr.msk.bf16.mxu1 %vm13869_vm0, %v13868_v1 }
0x368f   :  { %13138 = vmatprep.subr.bf16.mxu1 %v13868_v1 }
0x3691   :  { %13123 = vmatmul.mubr.msk.bf16.vlgmr.msra.gmra.mxu0 %vm1983_vm8, %v8313_v40 }
0x3692   :  { %13134 = vmatprep.mubr.msk.bf16.mxu0 %vm13869_vm0, %v13868_v1 }
0x3695   :  { %13129 = vmatmul.mubr.msk.bf16.vlgmr.msra.gmra.mxu1 %vm1983_vm8, %v8363_v38 }
0x3696   :  { %13140 = vmatprep.mubr.msk.bf16.mxu1 %vm13869_vm0, %v13868_v1 }
0x3749   :  { %v8258_v53 = vpop.f32.mrf.mxu0 }
0x374b   :  { %v13112_v48 = vpop.f32.mrf.mxu0 }
0x374d   :  { %v8261_v20 = vpop.f32.mrf.mxu0  ;;  %v8306_v10 = vpop.f32.mrf.mxu1 }
0x374e   :  { %v13230_v28 = vpack.i.bf16 %v8306_v10, %v8258_v53 }
0x374f   :  { %v13113_v8 = vpop.f32.mrf.mxu0  ;;  %v13118_v23 = vpop.f32.mrf.mxu1 }
0x3751   :  { %v8309_v11 = vpop.f32.mrf.mxu1  ;;  %v8356_v14 = vpop.f32.mrf.mxu0 }
0x3752   :  { %v8412_v26 = vmul.f32 0.35355338, %v8356_v14 }
0x3753   :  { %v13119_v30 = vpop.f32.mrf.mxu1  ;;  %v13124_v32 = vpop.f32.mrf.mxu0 }
0x3754   :  { %v8414_v60 = vsel %vm3260_vm11, %v8412_v26, -inf }
0x3755   :  { %v8406_v37 = vpop.f32.mrf.mxu1  ;;  %8415 = vmax.xlane.f32.xlu1 %v8414_v60  ;;  %v8359_v50 = vpop.f32.mrf.mxu0 }
0x3756   :  { %v8413_v42 = vmul.f32 0.35355338, %v8406_v37 }
0x3757   :  { %v13125_v34 = vpop.f32.mrf.mxu0  ;;  %v13130_v35 = vpop.f32.mrf.mxu1 }
0x3758   :  { %v8417_v55 = vsel %vm3260_vm11, %v8413_v42, -inf }
0x3759   :  { %8418 = vmax.xlane.f32.xlu0 %v8417_v55  ;;  %v8409_v24 = vpop.f32.mrf.mxu1 }
0x375b   :  { %v13131_v17 = vpop.f32.mrf.mxu1 }
0x37de   :  { %v8416_v18 = vpop.xlane.xlu1 %8415 }
0x37df   :  { %v8420_v58 = vsub.f32 %v8412_v26, %v8416_v18 }
0x37e1   :  { %v8422_v45 = vmul.f32 1.442695, %v8420_v58 }
0x37e2   :  { %v8419_v51 = vpop.xlane.xlu0 %8418 }
0x37e3   :  { %13819 = vpow2.f32 %v8422_v45  ;;  %v8421_v52 = vsub.f32 %v8413_v42, %v8419_v51 }
0x37e5   :  { %v8424_v33 = vmul.f32 1.442695, %v8421_v52 }
0x37e7   :  { %13821 = vpow2.f32 %v8424_v33 }
0x37f0   :  { %v13820_v3 = vpop.eup %13819 }
0x37f1   :  { %v8426_v0 = vsel %vm3260_vm11, %v13820_v3, 0.0 }
0x37f2   :  { %8427 = vadd.xlane.f32.xlu0 %v8426_v0 }
0x37f4   :  { %v13822_v56 = vpop.eup %13821 }
0x37f5   :  { %v8429_v57 = vsel %vm3260_vm11, %v13822_v56, 0.0 }
0x37f6   :  { %8430 = vadd.xlane.f32.xlu1 %v8429_v57 }
0x3807   :  { %8486 = vrot.lane.b32.xlu1 %v15810_v4, %s16717_s3 }
0x3808   :  { %8438 = vrot.lane.b32.xlu0 %v15808_v39, %s16717_s3 }
0x380b   :  { %13226 = vrot.lane.b32.xlu1 %v13225_v59, %s16718_s5 }
0x380c   :  { %13231 = vrot.lane.b32.xlu0 %v13230_v28, %s16719_s6 }
0x387b   :  { %v8428_v36 = vpop.xlane.xlu0 %8427 }
0x387c   :  { %13823 = vrcp.f32 %v8428_v36 }
0x387f   :  { %v8439_v27 = vpop.permute.xlu0 %8438  ;;  %v8431_v61 = vpop.xlane.xlu1 %8430 }
0x3880   :  { %v8444_v62 = vsel %vm3291_vm12, %v8439_v27, 0  ;;  %13825 = vrcp.f32 %v8431_v61 }
0x3881   :  { %13133 = vmatpush3.bf16.msra.mxu0 %v8444_v62 }
0x3882   :  { %13144 = vmatprep.subr.bf16.mxu0 %v13868_v1 }
0x3883   :  { %v8487_v4 = vpop.permute.xlu1 %8486  ;;  %v13232_v11 = vpop.permute.xlu0 %13231 }
0x3884   :  { %v8492_v39 = vsel %vm3291_vm12, %v8487_v4, 0  ;;  %v13234_v30 = vunpack.i.h.bf16 %v13232_v11  ;;  %v13233_v32 = vunpack.i.l.bf16 %v13232_v11 }
0x3885   :  { %13139 = vmatpush3.bf16.msra.mxu1 %v8492_v39 }
0x3887   :  { %v13227_v28 = vpop.permute.xlu1 %13226 }
0x3888   :  { %v13229_v8 = vunpack.i.h.bf16 %v13227_v28  ;;  %v13228_v23 = vunpack.i.l.bf16 %v13227_v28  ;;  %v11383_v28 = vld [vmem:[%s16637_s14 + $0x1d0] sm:$0xff] }
0x3889   :  { %v13824_v63 = vpop.eup %13823 }
0x388a   :  { %v8434_v2 = vmul.f32 %v13824_v63, %v13820_v3  ;;  %v8559_v14 = vsel %vm1983_vm8, %v15868_v44, %v13229_v8  ;;  %v8558_v26 = vsel %vm1983_vm8, %v15866_v46, %v13228_v23  ;;  %v11348_v46 = vld [vmem:[%s16731_s24 + $0x1] ss:$0 sm:$0xff]  ;;  %v11376_v8 = vld [vmem:[%s16637_s14 + $0x198] sm:$0xff] }
0x388b   :  { %v8560_v42 = vsel %vm109_vm1, %v8558_v26, %v13233_v32  ;;  %v8561_v34 = vsel %vm109_vm1, %v8559_v14, %v13234_v30  ;;  %v11384_v14 = vld [vmem:[%s16637_s14 + $0x1d8] sm:$0xff] }
0x388c   :  { %v8436_v43 = vpack.c.bf16 %v8434_v2, %v8434_v2  ;;  %v11381_v2 = vld [vmem:[%s16637_s14 + $0x1c0] sm:$0xff]  ;;  %v11414_v26 = vcombine.low %v11376_v8, %v11384_v14  ;;  %v11415_v30 = vcombine.high %v11376_v8, %v11384_v14  ;;  %v11371_v8 = vld [vmem:[%s16637_s14 + $0x170] sm:$0xff] }
0x388d   :  { %v13826_v54 = vpop.eup %13825 }
0x388e   :  { %v8435_v59 = vmul.f32 %v13826_v54, %v13822_v56  ;;  %13135 = vmatmul.mubr.msk.bf16.vlgmr.msra.gmra.mxu0 %vm3260_vm11, %v8436_v43  ;;  %v11374_v43 = vld [vmem:[%s16637_s14 + $0x188] sm:$0xff] }
0x388f   :  { %13148 = vmatprep.mubr.msk.bf16.mxu0 %vm13869_vm0, %v13868_v1  ;;  %13145 = vmatpush3.bf16.msra.mxu0 %v13391_v41 }
0x3890   :  { %v8437_v9 = vpack.c.bf16 %v8435_v59, %v8435_v59  ;;  %13146 = vmatprep.subr.bf16.mxu0 %v13868_v1  ;;  %v11382_v59 = vld [vmem:[%s16637_s14 + $0x1c8] sm:$0xff] }
0x3891   :  { %v11410_v41 = vcombine.low %v11374_v43, %v11382_v59 }
0x3892   :  { %13141 = vmatmul.mubr.msk.bf16.vlgmr.msra.gmra.mxu1 %vm3260_vm11, %v8437_v9 }
0x3893   :  { %9001 = vmatprep.mubr.bf16.mxu1 %v13870_v12  ;;  %13147 = vmatpush3.bf16.msra.mxu0 %v13392_v13  ;;  %v11411_v13 = vcombine.high %v11374_v43, %v11382_v59  ;;  %v11369_v43 = vld [vmem:[%s16637_s14 + $0x160] sm:$0xff]  ;;  %v11370_v59 = vld [vmem:[%s16637_s14 + $0x168] sm:$0xff] }
0x3895   :  { %9024 = vmatprep.subr.bf16.mxu0 %v11411_v13 }
0x394e   :  { %v8480_v29 = vpop.f32.mrf.mxu0 }
0x3950   :  { %v13136_v49 = vpop.f32.mrf.mxu0 }
0x3951   :  { %v11365_v49 = vld [vmem:[%s16637_s14 + $0x140] sm:$0xff] }
0x3952   :  { %v8483_v19 = vpop.f32.mrf.mxu0  ;;  %v8528_v40 = vpop.f32.mrf.mxu1 }
0x3953   :  { %v13235_v38 = vpack.i.bf16 %v8528_v40, %v8480_v29  ;;  %v11357_v29 = vld [vmem:[%s16637_s14 + $0x100] sm:$0xff]  ;;  %v11358_v19 = vld [vmem:[%s16637_s14 + $0x108] sm:$0xff] }
0x3954   :  { %v13137_v53 = vpop.f32.mrf.mxu0  ;;  %v13142_v48 = vpop.f32.mrf.mxu1  ;;  %v11393_v40 = vcombine.high %v11357_v29, %v11365_v49 }
0x3955   :  { %13236 = vrot.lane.b32.xlu1 %v13235_v38, %s16720_s0  ;;  %v11366_v38 = vld [vmem:[%s16637_s14 + $0x148] sm:$0xff]  ;;  %v11392_v53 = vcombine.low %v11357_v29, %v11365_v49  ;;  %v11379_v49 = vld [vmem:[%s16637_s14 + $0x1b0] sm:$0xff] }
0x3956   :  { %v8531_v20 = vpop.f32.mrf.mxu1  ;;  %v11394_v48 = vcombine.low %v11358_v19, %v11366_v38 }
0x3957   :  { %v11395_v20 = vcombine.high %v11358_v19, %v11366_v38  ;;  %v11387_v19 = vld [vmem:[%s16637_s14 + $0x1f0] sm:$0xff]  ;;  %v11388_v38 = vld [vmem:[%s16637_s14 + $0x1f8] sm:$0xff] }
0x3958   :  { %v13143_v10 = vpop.f32.mrf.mxu1  ;;  %v11420_v14 = vcombine.low %v11379_v49, %v11387_v19 }
0x3959   :  { %v11375_v10 = vld [vmem:[%s16637_s14 + $0x190] sm:$0xff] }
0x395a   :  { %v11412_v23 = vcombine.low %v11375_v10, %v11383_v28  ;;  %v11413_v11 = vcombine.high %v11375_v10, %v11383_v28  ;;  %v11363_v28 = vld [vmem:[%s16637_s14 + $0x130] sm:$0xff] }
0x39c7   :  { %v13237_v60 = vpop.permute.xlu1 %13236 }
0x39c8   :  { %v13239_v37 = vunpack.i.h.bf16 %v13237_v60  ;;  %v13238_v50 = vunpack.i.l.bf16 %v13237_v60 }
0x39ca   :  { %v8563_v35 = vsel %vm2896_vm10, %v8561_v34, %v13239_v37  ;;  %v8562_v55 = vsel %vm2896_vm10, %v8560_v42, %v13238_v50 }
0x39cb   :  { %v11868_v24 = vpack.c.bf16 %v8563_v35, %v8562_v55 }
0x39cd   :  { %13149 = vmatmul.mubr.msk.bf16.vlgmr.msra.gmra.mxu0 %vm307_vm3, %v11868_v24  ;;  %v11355_v24 = vld [vmem:[%s16643_s20 + $0x1] ss:$0 sm:$0xff]  ;;  %s16733_s20 = sld [smem:[#allocation19_spill]] }
0x39ce   :  { %9044 = vmatprep.mubr.bf16.mxu0 %v13870_v12  ;;  %9025 = vmatpush1.bf16.msra.mxu0 %v11410_v41 }
0x39cf   :  { %9026 = vmatprep.subr.bf16.mxu0 %v11395_v20  ;;  %v11421_v20 = vcombine.high %v11379_v49, %v11387_v19 }
0x39d2   :  { %9027 = vmatpush1.bf16.msra.mxu0 %v11394_v48 }
0x39d3   :  { %9110 = vmatprep.subr.bf16.mxu0 %v11415_v30  ;;  %v11405_v30 = vcombine.high %v11363_v28, %v11371_v8 }
0x3a8d   :  { %v8626_v44 = vpop.f32.mrf.mxu0 }
0x3a8e   :  { %v8627_v17 = vadd.f32 %v11348_v46, %v8626_v44 }
0x3a8f   :  { %v13150_v18 = vpop.f32.mrf.mxu0 }
0x3a90   :  { %v8633_v58 = vadd.f32 %v8627_v17, %v15799_v16  ;;  %v11356_v18 = vld [vmem:[%s16644_s21 + $0x1] ss:$0 sm:$0xff] }
0x3a91   :  { %v8629_v45 = vpop.f32.mrf.mxu0 }
0x3a92   :  { %v8630_v51 = vadd.f32 %v11348_v46, %v8629_v45  ;;  %v8639_v52 = vsel %vm307_vm3, %v8633_v58, 0.0  ;;  %v11359_v45 = vld [vmem:[%s16637_s14 + $0x110] sm:$0xff] }
0x3a93   :  { %8640 = vadd.xlane.f32.xlu0 %v8639_v52  ;;  %v13151_v33 = vpop.f32.mrf.mxu0  ;;  %v11360_v52 = vld [vmem:[%s16637_s14 + $0x118] sm:$0xff] }
0x3a94   :  { %v8634_v3 = vadd.f32 %v8630_v51, %v15801_v47  ;;  %v11373_v47 = vld [vmem:[%s16637_s14 + $0x180] sm:$0xff]  ;;  %v11367_v51 = vld [vmem:[%s16637_s14 + $0x150] sm:$0xff]  ;;  %v11368_v33 = vld [vmem:[%s16637_s14 + $0x158] sm:$0xff] }
0x3a95   :  { %v11409_v54 = vcombine.high %v11373_v47, %v11381_v2  ;;  %v11408_v9 = vcombine.low %v11373_v47, %v11381_v2  ;;  %v11361_v2 = vld [vmem:[%s16637_s14 + $0x120] sm:$0xff] }
0x3a96   :  { %v8642_v0 = vsel %vm307_vm3, %v8634_v3, 0.0  ;;  %v11401_v13 = vcombine.high %v11361_v2, %v11369_v43 }
0x3a97   :  { %8643 = vadd.xlane.f32.xlu1 %v8642_v0  ;;  %8981 = vmatprep.subr.bf16.mxu1 %v11409_v54  ;;  %v11362_v54 = vld [vmem:[%s16637_s14 + $0x128] sm:$0xff] }
0x3a98   :  { %8982 = vmatpush1.bf16.msra.mxu1 %v11408_v9  ;;  %v11403_v29 = vcombine.high %v11362_v54, %v11370_v59  ;;  %v11402_v48 = vcombine.low %v11362_v54, %v11370_v59  ;;  %v13422_v54 = vld [vmem:[%s16639_s16 + $0x4c0] sm:$0xff]  }
0x3a99   :  { %8983 = vmatprep.subr.bf16.mxu1 %v11393_v40  ;;  %v11380_v40 = vld [vmem:[%s16637_s14 + $0x1b8] sm:$0xff]  ;;  %v13423_v59 = vld [vmem:[%s16639_s16 + $0x400] sm:$0xff]  }
0x3a9a   :  { %v11423_v10 = vcombine.high %v11380_v40, %v11388_v38 }
0x3a9c   :  { %8984 = vmatpush1.bf16.msra.mxu1 %v11392_v53  ;;  %v11400_v53 = vcombine.low %v11361_v2, %v11369_v43  ;;  %v13420_v2 = vld [vmem:[%s16639_s16 + $0x488] sm:$0xff]   ;;  %v13421_v43 = vld [vmem:[%s16639_s16 + $0x440] sm:$0xff]  }
0x3a9d   :  { %9067 = vmatprep.subr.bf16.mxu1 %v11413_v11  ;;  %v11372_v11 = vld [vmem:[%s16637_s14 + $0x178] sm:$0xff] }
0x3b1c   :  { %v8641_v56 = vpop.xlane.xlu0 %8640 }
0x3b1d   :  { %v8645_v57 = vmul.f32 0.03125, %v8641_v56 }
0x3b1f   :  { %v8647_v36 = vsub.f32 %v8633_v58, %v8645_v57  ;;  %v11397_v57 = vcombine.high %v11359_v45, %v11367_v51 }
0x3b20   :  { %v8644_v27 = vpop.xlane.xlu1 %8643 }
0x3b21   :  { %v8646_v61 = vmul.f32 0.03125, %v8644_v27  ;;  %v8649_v62 = vmul.f32 %v8647_v36, %v8647_v36  ;;  %v11377_v27 = vld [vmem:[%s16637_s14 + $0x1a0] sm:$0xff] }
0x3b23   :  { %v8648_v4 = vsub.f32 %v8634_v3, %v8646_v61  ;;  %v8651_v16 = vsel %vm307_vm3, %v8649_v62, 0.0  ;;  %v11385_v61 = vld [vmem:[%s16637_s14 + $0x1e0] sm:$0xff]  ;;  %v11378_v62 = vld [vmem:[%s16637_s14 + $0x1a8] sm:$0xff] }
0x3b24   :  { %8652 = vadd.xlane.f32.xlu0 %v8651_v16  ;;  %v11396_v16 = vcombine.low %v11359_v45, %v11367_v51  ;;  %v11416_v9 = vcombine.low %v11377_v27, %v11385_v61  ;;  %v13405_v45 = vld [vmem:[%s16639_s16 + $0x460] sm:$0xff]  }
0x3b25   :  { %v8650_v39 = vmul.f32 %v8648_v4, %v8648_v4  ;;  %v13406_v51 = vld [vmem:[%s16639_s16 + $0x4e0] sm:$0xff]  }
0x3b27   :  { %v8654_v63 = vsel %vm307_vm3, %v8650_v39, 0.0  ;;  %v11398_v39 = vcombine.low %v11360_v52, %v11368_v33 }
0x3b28   :  { %8655 = vadd.xlane.f32.xlu0 %v8654_v63  ;;  %v11417_v63 = vcombine.high %v11377_v27, %v11385_v61  ;;  %v13412_v27 = vld [vmem:[%s16639_s16 + $0x498] sm:$0xff]   ;;  %v13413_v61 = vld [vmem:[%s16639_s16 + $0x450] sm:$0xff]  }
0x3bad   :  { %v8653_v32 = vpop.xlane.xlu0 %8652 }
0x3bae   :  { %v8657_v60 = vmul.f32 0.03125, %v8653_v32 }
0x3bb0   :  { %v8659_v37 = vadd.f32 1e-05, %v8657_v60  ;;  %v11404_v60 = vcombine.low %v11363_v28, %v11371_v8 }
0x3bb1   :  { %v8656_v50 = vpop.xlane.xlu0 %8655 }
0x3bb2   :  { %13827 = vrsqrt.f32 %v8659_v37  ;;  %v8658_v42 = vmul.f32 0.03125, %v8656_v50  ;;  %v13393_v50 = vld [vmem:[%s16639_s16 + $0x478] sm:$0xff]  }
0x3bb4   :  { %v8660_v34 = vadd.f32 1e-05, %v8658_v42  ;;  %v13394_v42 = vld [vmem:[%s16639_s16 + $0x4f8] sm:$0xff]  }
0x3bb6   :  { %13829 = vrsqrt.f32 %v8660_v34  ;;  %v13395_v34 = vld [vmem:[%s16639_s16 + $0x438] sm:$0xff]  }
0x3bbf   :  { %v13828_v35 = vpop.eup %13827 }
0x3bc0   :  { %v8663_v55 = vmul.f32 %v13828_v35, %v8647_v36  ;;  %v11399_v36 = vcombine.high %v11360_v52, %v11368_v33  ;;  %v13396_v35 = vld [vmem:[%s16639_s16 + $0x4b8] sm:$0xff]   ;;  %v13407_v52 = vld [vmem:[%s16639_s16 + $0x420] sm:$0xff]  }
0x3bc1   :  { %v13408_v33 = vld [vmem:[%s16639_s16 + $0x4a0] sm:$0xff]  }
0x3bc2   :  { %v8671_v44 = vmul.f32 %v11355_v24, %v8663_v55  ;;  %v13397_v55 = vld [vmem:[%s16639_s16 + $0x470] sm:$0xff]  }
0x3bc3   :  { %v13830_v46 = vpop.eup %13829 }
0x3bc4   :  { %v8664_v17 = vmul.f32 %v13830_v46, %v8648_v4  ;;  %v16050_v3 = vadd.f32 %v11356_v18, %v8671_v44  ;;  %v11386_v4 = vld [vmem:[%s16637_s14 + $0x1e8] sm:$0xff]  ;;  %v13400_v46 = vld [vmem:[%s16639_s16 + $0x4b0] sm:$0xff]  }
0x3bc5   :  { %v11419_v47 = vcombine.high %v11378_v62, %v11386_v4  ;;  %v11418_v41 = vcombine.low %v11378_v62, %v11386_v4  ;;  %v13401_v44 = vld [vmem:[%s16639_s16 + $0x468] sm:$0xff]   ;;  %v13414_v62 = vld [vmem:[%s16639_s16 + $0x4d0] sm:$0xff]  }
0x3bc6   :  { %v8672_v58 = vmul.f32 %v11355_v24, %v8664_v17  ;;  %v13399_v24 = vld [vmem:[%s16639_s16 + $0x430] sm:$0xff]   ;;  %v13402_v17 = vld [vmem:[%s16639_s16 + $0x4e8] sm:$0xff]  }
0x3bc7   :  { %v13415_v4 = vld [vmem:[%s16639_s16 + $0x410] sm:$0xff]  }
0x3bc8   :  { %v16052_v0 = vadd.f32 %v11356_v18, %v8672_v58  ;;  %v13403_v18 = vld [vmem:[%s16639_s16 + $0x428] sm:$0xff]  }
0x3bc9   :  { %v13404_v58 = vld [vmem:[%s16639_s16 + $0x4a8] sm:$0xff]  }
0x3bca   :  { %v16056_v56 = vpack.c.bf16 %v16052_v0, %v16050_v3 }
0x3bcc   :  { %11424 = vmatmul.mubr.msk.bf16.vlgmr.msra.gmra.mxu1 %vm307_vm3, %v16056_v56  ;;  %11425 = vmatmul.mubr.msk.bf16.vlgmr.msra.gmra.mxu0 %vm307_vm3, %v16056_v56 }
0x3bcd   :  { %9068 = vmatpush1.bf16.msra.mxu1 %v11412_v23  ;;  %9111 = vmatpush1.bf16.msra.mxu0 %v11414_v26  ;;  %v11364_v23 = vld [vmem:[%s16637_s14 + $0x138] sm:$0xff]  ;;  %v11422_v26 = vcombine.low %v11380_v40, %v11388_v38 }
0x3bce   :  { %9069 = vmatprep.subr.bf16.mxu1 %v11397_v57  ;;  %9112 = vmatprep.subr.bf16.mxu0 %v11399_v36  ;;  %v11407_v32 = vcombine.high %v11364_v23, %v11372_v11  ;;  %v11406_v37 = vcombine.low %v11364_v23, %v11372_v11  ;;  %v13410_v57 = vld [vmem:[%s16639_s16 + $0x4d8] sm:$0xff]  }
0x3bcf   :  { %9087 = vmatprep.mubr.bf16.mxu1 %v13870_v12  ;;  %9130 = vmatprep.mubr.bf16.mxu0 %v13870_v12  ;;  %v13411_v36 = vld [vmem:[%s16639_s16 + $0x418] sm:$0xff]  }
0x3bd1   :  { %9070 = vmatpush1.bf16.msra.mxu1 %v11396_v16  ;;  %9113 = vmatpush1.bf16.msra.mxu0 %v11398_v39  ;;  %v13416_v16 = vld [vmem:[%s16639_s16 + $0x490] sm:$0xff]   ;;  %v13417_v39 = vld [vmem:[%s16639_s16 + $0x448] sm:$0xff]  }
0x3bd2   :  { %9153 = vmatprep.subr.bf16.mxu1 %v11417_v63  ;;  %9196 = vmatprep.subr.bf16.mxu0 %v11419_v47  ;;  %v13418_v63 = vld [vmem:[%s16639_s16 + $0x4c8] sm:$0xff]  }
0x3bd3   :  { %v13419_v47 = vld [vmem:[%s16639_s16 + $0x408] sm:$0xff]  }
0x3bd4   :  { %11426 = vmatmul.mubr.msk.bf16.vlgmr.msra.gmra.mxu1 %vm307_vm3, %v16056_v56  ;;  %11427 = vmatmul.mubr.msk.bf16.vlgmr.msra.gmra.mxu0 %vm307_vm3, %v16056_v56 }
0x3bd5   :  { %9154 = vmatpush1.bf16.msra.mxu1 %v11416_v9  ;;  %9197 = vmatpush1.bf16.msra.mxu0 %v11418_v41  ;;  %v13424_v9 = vld [vmem:[%s16639_s16 + $0x480] sm:$0xff]   ;;  %v13425_v41 = vld [vmem:[%s16639_s16 + $0x578] sm:$0xff]  }
0x3bd6   :  { %9155 = vmatprep.subr.bf16.mxu1 %v11401_v13  ;;  %9198 = vmatprep.subr.bf16.mxu0 %v11403_v29  ;;  %v13426_v13 = vld [vmem:[%s16639_s16 + $0x5f8] sm:$0xff]   ;;  %v16233_v29 = vld [vmem:[%s16638_s15 + $0x10] sm:$0xff] }
0x3bd7   :  { %9173 = vmatprep.mubr.bf16.mxu1 %v13870_v12  ;;  %9216 = vmatprep.mubr.bf16.mxu0 %v13870_v12  ;;  %v8728_v40 = vrot.slane %v16233_v29, %v15159_v22  ;;  %v8736_v38 = vrot.slane %v16233_v29, %v15162_v31 }
0x3bd9   :  { %9156 = vmatpush1.bf16.msra.mxu1 %v11400_v53  ;;  %9199 = vmatpush1.bf16.msra.mxu0 %v11402_v48  ;;  %v8724_v53 = vrot.slane %v16233_v29, %v15165_v6  ;;  %v8732_v48 = vrot.slane %v16233_v29, %v15168_v25 }
0x3bda   :  { %9239 = vmatprep.subr.bf16.mxu1 %v11421_v20  ;;  %9282 = vmatprep.subr.bf16.mxu0 %v11423_v10 }
0x3bdc   :  { %11428 = vmatmul.mubr.msk.bf16.vlgmr.msra.gmra.mxu1 %vm307_vm3, %v16056_v56  ;;  %11429 = vmatmul.mubr.msk.bf16.vlgmr.msra.gmra.mxu0 %vm307_vm3, %v16056_v56 }
0x3bdd   :  { %9240 = vmatpush1.bf16.msra.mxu1 %v11420_v14  ;;  %9283 = vmatpush1.bf16.msra.mxu0 %v11422_v26 }
0x3bde   :  { %9241 = vmatprep.subr.bf16.mxu1 %v11405_v30  ;;  %9284 = vmatprep.subr.bf16.mxu0 %v11407_v32 }
0x3bdf   :  { %9259 = vmatprep.mubr.bf16.mxu1 %v13870_v12  ;;  %9302 = vmatprep.mubr.bf16.mxu0 %v13870_v12  ;;  %v13398_v12 = vld [vmem:[%s16639_s16 + $0x4f0] sm:$0xff]  }
0x3be1   :  { %9242 = vmatpush1.bf16.msra.mxu1 %v11404_v60  ;;  %9285 = vmatpush1.bf16.msra.mxu0 %v11406_v37 }
0x3be2   :  { %12299 = vmatprep.subr.bf16.mxu1 %v13393_v50  ;;  %12321 = vmatprep.subr.bf16.mxu0 %v13394_v42 }
0x3be4   :  { %11430 = vmatmul.mubr.msk.bf16.vlgmr.msra.gmra.mxu1 %vm307_vm3, %v16056_v56  ;;  %11431 = vmatmul.mubr.msk.bf16.vlgmr.msra.gmra.mxu0 %vm307_vm3, %v16056_v56  ;;  %v13409_v56 = vld [vmem:[%s16639_s16 + $0x458] sm:$0xff]  }
0x3be5   :  { %12300 = vmatpush3.bf16.msra.mxu1 %v13395_v34  ;;  %12322 = vmatpush3.bf16.msra.mxu0 %v13396_v35 }
0x3be6   :  { %12301 = vmatprep.subr.bf16.mxu1 %v13397_v55  ;;  %12323 = vmatprep.subr.bf16.mxu0 %v13398_v12 }
0x3be9   :  { %12302 = vmatpush3.bf16.msra.mxu1 %v13399_v24  ;;  %12324 = vmatpush3.bf16.msra.mxu0 %v13400_v46  ;;  %v8744_v24 = vrot.slane %v16233_v29, %v15184_v5  ;;  %v8752_v46 = vrot.slane %v16233_v29, %v15187_v15 }
0x3bea   :  { %12303 = vmatprep.subr.bf16.mxu1 %v13401_v44  ;;  %12325 = vmatprep.subr.bf16.mxu0 %v13402_v17 }
0x3bed   :  { %12304 = vmatpush3.bf16.msra.mxu1 %v13403_v18  ;;  %12326 = vmatpush3.bf16.msra.mxu0 %v13404_v58 }
0x3bee   :  { %12305 = vmatprep.subr.bf16.mxu1 %v13405_v45  ;;  %12327 = vmatprep.subr.bf16.mxu0 %v13406_v51 }
0x3bf1   :  { %12306 = vmatpush3.bf16.msra.mxu1 %v13407_v52  ;;  %12328 = vmatpush3.bf16.msra.mxu0 %v13408_v33 }
0x3bf2   :  { %12307 = vmatprep.subr.bf16.mxu1 %v13409_v56  ;;  %12329 = vmatprep.subr.bf16.mxu0 %v13410_v57 }
0x3bf5   :  { %12308 = vmatpush3.bf16.msra.mxu1 %v13411_v36  ;;  %12330 = vmatpush3.bf16.msra.mxu0 %v13412_v27  ;;  %v13427_v36 = vld [vmem:[%s16639_s16 + $0x538] sm:$0xff]  }
0x3bf6   :  { %12309 = vmatprep.subr.bf16.mxu1 %v13413_v61  ;;  %12331 = vmatprep.subr.bf16.mxu0 %v13414_v62  ;;  %v13428_v27 = vld [vmem:[%s16639_s16 + $0x5b8] sm:$0xff]  }
0x3bf9   :  { %12310 = vmatpush3.bf16.msra.mxu1 %v13415_v4  ;;  %12332 = vmatpush3.bf16.msra.mxu0 %v13416_v16 }
0x3bfa   :  { %12311 = vmatprep.subr.bf16.mxu1 %v13417_v39  ;;  %12333 = vmatprep.subr.bf16.mxu0 %v13418_v63  ;;  %v13429_v39 = vld [vmem:[%s16639_s16 + $0x570] sm:$0xff]  }
0x3bfb   :  { %v13430_v63 = vld [vmem:[%s16639_s16 + $0x5f0] sm:$0xff]  }
0x3bfd   :  { %12312 = vmatpush3.bf16.msra.mxu1 %v13419_v47  ;;  %12334 = vmatpush3.bf16.msra.mxu0 %v13420_v2 }
0x3bfe   :  { %12313 = vmatprep.subr.bf16.mxu1 %v13421_v43  ;;  %12335 = vmatprep.subr.bf16.mxu0 %v13422_v54 }
0x3c01   :  { %12314 = vmatpush3.bf16.msra.mxu1 %v13423_v59  ;;  %12336 = vmatpush3.bf16.msra.mxu0 %v13424_v9 }
0x3c02   :  { %12343 = vmatprep.subr.bf16.mxu1 %v13425_v41  ;;  %12365 = vmatprep.subr.bf16.mxu0 %v13426_v13  ;;  %v13431_v41 = vld [vmem:[%s16639_s16 + $0x530] sm:$0xff]  }
0x3c03   :  { %v13432_v13 = vld [vmem:[%s16639_s16 + $0x5b0] sm:$0xff]  }
0x3c8c   :  { %v9003_v49 = vpop.f32.mrf.mxu1  ;;  %v9046_v19 = vpop.f32.mrf.mxu0 }
0x3c8d   :  { %v9004_v30 = vadd.f32 %v9003_v49, %v8724_v53  ;;  %v9047_v32 = vadd.f32 %v9046_v19, %v8732_v48  ;;  %v13433_v49 = vld [vmem:[%s16639_s16 + $0x568] sm:$0xff]  }
0x3c8e   :  { %v9005_v20 = vpop.f32.mrf.mxu1  ;;  %v9048_v10 = vpop.f32.mrf.mxu0 }
0x3c8f   :  { %v9006_v23 = vadd.f32 %v9005_v20, %v8728_v40  ;;  %v9049_v11 = vadd.f32 %v9048_v10, %v8736_v38  ;;  %v9313_v45 = vmax.f32 %v9004_v30, 0.0  ;;  %v9315_v51 = vmax.f32 %v9047_v32, 0.0  ;;  %v13440_v32 = vld [vmem:[%s16639_s16 + $0x5a0] sm:$0xff]  }
0x3c90   :  { %v9007_v28 = vpop.f32.mrf.mxu1  ;;  %v9050_v8 = vpop.f32.mrf.mxu0 }
0x3c91   :  { %v9008_v14 = vadd.f32 %v9007_v28, %v8724_v53  ;;  %v9051_v26 = vadd.f32 %v9050_v8, %v8732_v48  ;;  %v9314_v44 = vmax.f32 %v9006_v23, 0.0  ;;  %v9316_v17 = vmax.f32 %v9049_v11, 0.0  ;;  %v13434_v48 = vld [vmem:[%s16639_s16 + $0x5e8] sm:$0xff]   ;;  %v13437_v23 = vld [vmem:[%s16639_s16 + $0x560] sm:$0xff]  }
0x3c92   :  { %v9009_v60 = vpop.f32.mrf.mxu1  ;;  %v9052_v37 = vpop.f32.mrf.mxu0  ;;  %v13435_v28 = vld [vmem:[%s16639_s16 + $0x528] sm:$0xff]   ;;  %v13438_v11 = vld [vmem:[%s16639_s16 + $0x5e0] sm:$0xff]  }
0x3c93   :  { %v9010_v50 = vadd.f32 %v9009_v60, %v8728_v40  ;;  %v9053_v42 = vadd.f32 %v9052_v37, %v8736_v38  ;;  %v9329_v34 = vmax.f32 %v9008_v14, 0.0  ;;  %v9331_v35 = vmax.f32 %v9051_v26, 0.0  ;;  %v13436_v8 = vld [vmem:[%s16639_s16 + $0x5a8] sm:$0xff]   ;;  %v13439_v26 = vld [vmem:[%s16639_s16 + $0x520] sm:$0xff]   ;;  %v13441_v60 = vld [vmem:[%s16639_s16 + $0x558] sm:$0xff]  }
0x3c94   :  { %v16243_v55 = vpop.f32.mrf.mxu1  ;;  %v16245_v12 = vpop.f32.mrf.mxu0  ;;  %v13442_v37 = vld [vmem:[%s16639_s16 + $0x5d8] sm:$0xff]  }
0x3c95   :  { %v9330_v18 = vmax.f32 %v9010_v50, 0.0  ;;  %v9332_v58 = vmax.f32 %v9053_v42, 0.0  ;;  %v11870_v61 = vpack.c.bf16 %v9329_v34, %v9313_v45  ;;  %v11872_v62 = vpack.c.bf16 %v9331_v35, %v9315_v51  ;;  %v13443_v42 = vld [vmem:[%s16639_s16 + $0x518] sm:$0xff]   ;;  %v13449_v45 = vld [vmem:[%s16639_s16 + $0x548] sm:$0xff]  }
0x3c96   :  { %v9091_v52 = vpop.f32.mrf.mxu1  ;;  %v9134_v33 = vpop.f32.mrf.mxu0  ;;  %v13444_v35 = vld [vmem:[%s16639_s16 + $0x598] sm:$0xff]   ;;  %v13450_v51 = vld [vmem:[%s16639_s16 + $0x5c8] sm:$0xff]  }
0x3c97   :  { %v11871_v56 = vpack.c.bf16 %v9330_v18, %v9314_v44  ;;  %v11873_v57 = vpack.c.bf16 %v9332_v58, %v9316_v17  ;;  %v9092_v47 = vadd.f32 %v9091_v52, %v8744_v24  ;;  %v9135_v2 = vadd.f32 %v9134_v33, %v8752_v46  ;;  %v13447_v17 = vld [vmem:[%s16639_s16 + $0x510] sm:$0xff]  }
0x3c98   :  { %v16257_v4 = vpop.f32.mrf.mxu1  ;;  %v16259_v16 = vpop.f32.mrf.mxu0  ;;  %v13448_v58 = vld [vmem:[%s16639_s16 + $0x590] sm:$0xff]   ;;  %v8740_v52 = vrot.slane %v16233_v29, %v15266_v21  ;;  %v8748_v33 = vrot.slane %v16233_v29, %v15269_v7  ;;  %v13452_v29 = vld [vmem:[%s16639_s16 + $0x588] sm:$0xff]  }
0x3c99   :  { %10538 = vmatprep.mubr.bf16.mxu1 %v11871_v56  ;;  %10579 = vmatprep.mubr.bf16.mxu0 %v11873_v57  ;;  %v9318_v19 = vmax.f32 %v9092_v47, 0.0  ;;  %v9320_v40 = vmax.f32 %v9135_v2, 0.0  ;;  %v16342_v56 = vld [vmem:[%s16638_s15 + $0x18] sm:$0xff] }
0x3c9a   :  { %v9095_v43 = vpop.f32.mrf.mxu1  ;;  %v9138_v54 = vpop.f32.mrf.mxu0  ;;  %10539 = vmatmul.mubr.bf16.vlgmr.msra.gmra.mxu1 %v11870_v61  ;;  %10580 = vmatmul.mubr.bf16.vlgmr.msra.gmra.mxu0 %v11872_v62  ;;  %v8760_v61 = vrot.slane %v16342_v56, %v15159_v22  ;;  %v8768_v47 = vrot.slane %v16342_v56, %v15162_v31  ;;  %v13454_v22 = vld [vmem:[%s16639_s16 + $0x5c0] sm:$0xff]  }
0x3c9b   :  { %v9096_v59 = vadd.f32 %v9095_v43, %v8744_v24  ;;  %v9139_v9 = vadd.f32 %v9138_v54, %v8752_v46  ;;  %12344 = vmatpush3.bf16.msra.mxu1 %v13427_v36  ;;  %12366 = vmatpush3.bf16.msra.mxu0 %v13428_v27  ;;  %v13445_v24 = vld [vmem:[%s16639_s16 + $0x550] sm:$0xff]   ;;  %v13451_v36 = vld [vmem:[%s16639_s16 + $0x508] sm:$0xff]   ;;  %v9094_v27 = vadd.f32 %v16257_v4, %v8740_v52  ;;  %v13456_v31 = vld [vmem:[%s16639_s16 + $0x580] sm:$0xff]  }
0x3c9c   :  { %12345 = vmatprep.subr.bf16.mxu1 %v13429_v39  ;;  %12367 = vmatprep.subr.bf16.mxu0 %v13430_v63  ;;  %v16291_v14 = vpop.f32.mrf.mxu1  ;;  %v16296_v30 = vpop.f32.mrf.mxu0  ;;  %v13446_v46 = vld [vmem:[%s16639_s16 + $0x5d0] sm:$0xff]   ;;  %v13453_v39 = vld [vmem:[%s16639_s16 + $0x540] sm:$0xff]   ;;  %v9137_v63 = vadd.f32 %v16259_v16, %v8748_v33  ;;  %v9090_v4 = vadd.f32 %v16243_v55, %v8740_v52  ;;  %v9133_v43 = vadd.f32 %v16245_v12, %v8748_v33  ;;  %v13457_v55 = vld [vmem:[%s16639_s16 + $0x678] sm:$0xff]  }
0x3c9d   :  { %v9334_v38 = vmax.f32 %v9096_v59, 0.0  ;;  %v9336_v53 = vmax.f32 %v9139_v9, 0.0  ;;  %v13455_v59 = vld [vmem:[%s16639_s16 + $0x500] sm:$0xff]   ;;  %v9333_v16 = vmax.f32 %v9094_v27, 0.0  ;;  %v13473_v52 = vld [vmem:[%s16639_s16 + $0x658] sm:$0xff]  }
0x3c9e   :  { %v9177_v50 = vpop.f32.mrf.mxu1  ;;  %v9220_v34 = vpop.f32.mrf.mxu0  ;;  %v13474_v33 = vld [vmem:[%s16639_s16 + $0x6d8] sm:$0xff]  }
0x3c9f   :  { %v11875_v20 = vpack.c.bf16 %v9334_v38, %v9318_v19  ;;  %v11877_v10 = vpack.c.bf16 %v9336_v53, %v9320_v40  ;;  %12346 = vmatpush3.bf16.msra.mxu1 %v13431_v41  ;;  %12368 = vmatpush3.bf16.msra.mxu0 %v13432_v13  ;;  %v9178_v9 = vadd.f32 %v9177_v50, %v8760_v61  ;;  %v9335_v41 = vmax.f32 %v9137_v63, 0.0  ;;  %v13458_v13 = vld [vmem:[%s16639_s16 + $0x6f8] sm:$0xff]   ;;  %v13465_v50 = vld [vmem:[%s16639_s16 + $0x668] sm:$0xff]   ;;  %v13479_v63 = vld [vmem:[%s16639_s16 + $0x610] sm:$0xff]  }
0x3ca0   :  { %12347 = vmatprep.subr.bf16.mxu1 %v13433_v49  ;;  %12369 = vmatprep.subr.bf16.mxu0 %v13434_v48  ;;  %v16319_v44 = vpop.f32.mrf.mxu1  ;;  %v16324_v18 = vpop.f32.mrf.mxu0  ;;  %v9221_v12 = vadd.f32 %v9220_v34, %v8768_v47  ;;  %v9317_v49 = vmax.f32 %v9090_v4, 0.0  ;;  %v9319_v40 = vmax.f32 %v9133_v43, 0.0  ;;  %v13459_v53 = vld [vmem:[%s16639_s16 + $0x638] sm:$0xff]   ;;  %v13467_v34 = vld [vmem:[%s16639_s16 + $0x628] sm:$0xff]   ;;  %v8756_v43 = vrot.slane %v16342_v56, %v15165_v6 }
0x3ca1   :  { %10620 = vmatprep.mubr.bf16.mxu1 %v11875_v20  ;;  %10661 = vmatprep.mubr.bf16.mxu0 %v11877_v10  ;;  %v9322_v20 = vmax.f32 %v9178_v9, 0.0  ;;  %v13460_v10 = vld [vmem:[%s16639_s16 + $0x6b8] sm:$0xff]   ;;  %v13481_v4 = vld [vmem:[%s16639_s16 + $0x648] sm:$0xff]  }
0x3ca2   :  { %v9181_v57 = vpop.f32.mrf.mxu1  ;;  %v9224_v62 = vpop.f32.mrf.mxu0  ;;  %v11874_v48 = vpack.c.bf16 %v9333_v16, %v9317_v49  ;;  %v13483_v16 = vld [vmem:[%s16639_s16 + $0x608] sm:$0xff]   ;;  %v9180_v9 = vadd.f32 %v16319_v44, %v8756_v43  ;;  %v9176_v44 = vadd.f32 %v16291_v14, %v8756_v43  ;;  %v13489_v14 = vld [vmem:[%s16639_s16 + $0x778] sm:$0xff]   ;;  %v13511_v43 = vld [vmem:[%s16639_s16 + $0x710] sm:$0xff]  }
0x3ca3   :  { %12348 = vmatpush3.bf16.msra.mxu1 %v13435_v28  ;;  %12370 = vmatpush3.bf16.msra.mxu0 %v13436_v8  ;;  %v9182_v2 = vadd.f32 %v9181_v57, %v8760_v61  ;;  %v9225_v54 = vadd.f32 %v9224_v62, %v8768_v47  ;;  %v11876_v28 = vpack.c.bf16 %v9335_v41, %v9319_v40  ;;  %v9324_v8 = vmax.f32 %v9221_v12, 0.0  ;;  %v13476_v61 = vld [vmem:[%s16639_s16 + $0x698] sm:$0xff]   ;;  %v13477_v62 = vld [vmem:[%s16639_s16 + $0x650] sm:$0xff]   ;;  %v13484_v6 = vld [vmem:[%s16639_s16 + $0x688] sm:$0xff]  }
0x3ca4   :  { %12349 = vmatprep.subr.bf16.mxu1 %v13437_v23  ;;  %12371 = vmatprep.subr.bf16.mxu0 %v13438_v11  ;;  %v13461_v23 = vld [vmem:[%s16639_s16 + $0x670] sm:$0xff]   ;;  %v8784_v12 = vrot.slane %v16342_v56, %v15187_v15  ;;  %v13487_v40 = vld [vmem:[%s16639_s16 + $0x600] sm:$0xff]  }
0x3ca5   :  { %v9338_v19 = vmax.f32 %v9182_v2, 0.0  ;;  %v9340_v38 = vmax.f32 %v9225_v54, 0.0  ;;  %v13482_v2 = vld [vmem:[%s16639_s16 + $0x6c8] sm:$0xff]   ;;  %v8764_v54 = vrot.slane %v16342_v56, %v15168_v25  ;;  %v13485_v25 = vld [vmem:[%s16639_s16 + $0x640] sm:$0xff]  }
0x3ca6   :  { %v13488_v15 = vld [vmem:[%s16639_s16 + $0x680] sm:$0xff]  }
0x3ca7   :  { %12350 = vmatpush3.bf16.msra.mxu1 %v13439_v26  ;;  %12372 = vmatpush3.bf16.msra.mxu0 %v13440_v32  ;;  %v11879_v11 = vpack.c.bf16 %v9338_v19, %v9322_v20  ;;  %v13462_v26 = vld [vmem:[%s16639_s16 + $0x6f0] sm:$0xff]   ;;  %v11881_v32 = vpack.c.bf16 %v9340_v38, %v9324_v8  ;;  %v9223_v41 = vadd.f32 %v16324_v18, %v8764_v54  ;;  %v9337_v18 = vmax.f32 %v9180_v9, 0.0 }
0x3ca8   :  { %12351 = vmatprep.subr.bf16.mxu1 %v13441_v60  ;;  %12373 = vmatprep.subr.bf16.mxu0 %v13442_v37  ;;  %v13463_v60 = vld [vmem:[%s16639_s16 + $0x630] sm:$0xff]   ;;  %v9219_v49 = vadd.f32 %v16296_v30, %v8764_v54  ;;  %v9321_v20 = vmax.f32 %v9176_v44, 0.0  ;;  %v8772_v9 = vrot.slane %v16342_v56, %v15266_v21  ;;  %v13517_v21 = vld [vmem:[%s16639_s16 + $0x740] sm:$0xff]  }
0x3ca9   :  { %v13464_v37 = vld [vmem:[%s16639_s16 + $0x6b0] sm:$0xff]  }
0x3caa   :  { %v13512_v54 = vld [vmem:[%s16639_s16 + $0x790] sm:$0xff]  }
0x3cab   :  { %12352 = vmatpush3.bf16.msra.mxu1 %v13443_v42  ;;  %12374 = vmatpush3.bf16.msra.mxu0 %v13444_v35  ;;  %v13466_v42 = vld [vmem:[%s16639_s16 + $0x6e8] sm:$0xff]  }
0x3cac   :  { %12353 = vmatprep.subr.bf16.mxu1 %v13445_v24  ;;  %12375 = vmatprep.subr.bf16.mxu0 %v13446_v46  ;;  %v13468_v35 = vld [vmem:[%s16639_s16 + $0x6a8] sm:$0xff]   ;;  %v13469_v24 = vld [vmem:[%s16639_s16 + $0x660] sm:$0xff]  }
0x3cad   :  { %v13470_v46 = vld [vmem:[%s16639_s16 + $0x6e0] sm:$0xff]  }
0x3caf   :  { %12354 = vmatpush3.bf16.msra.mxu1 %v13447_v17  ;;  %12376 = vmatpush3.bf16.msra.mxu0 %v13448_v58  ;;  %v16412_v17 = vpop.f32.mrf.mxu1  ;;  %v13471_v58 = vld [vmem:[%s16639_s16 + $0x620] sm:$0xff]  }
0x3cb0   :  { %12355 = vmatprep.subr.bf16.mxu1 %v13449_v45  ;;  %12377 = vmatprep.subr.bf16.mxu0 %v13450_v51  ;;  %v16417_v45 = vpop.f32.mrf.mxu0  ;;  %v13472_v51 = vld [vmem:[%s16639_s16 + $0x6a0] sm:$0xff]  }
0x3cb1   :  { %v9263_v57 = vpop.f32.mrf.mxu1 }
0x3cb2   :  { %v9306_v27 = vpop.f32.mrf.mxu0 }
0x3cb3   :  { %12356 = vmatpush3.bf16.msra.mxu1 %v13451_v36  ;;  %12378 = vmatpush3.bf16.msra.mxu0 %v13452_v29  ;;  %v13475_v36 = vld [vmem:[%s16639_s16 + $0x618] sm:$0xff]   ;;  %v13478_v29 = vld [vmem:[%s16639_s16 + $0x6d0] sm:$0xff]   ;;  %v9307_v30 = vadd.f32 %v9306_v27, %v8784_v12  ;;  %v13503_v27 = vld [vmem:[%s16639_s16 + $0x720] sm:$0xff]  }
0x3cb4   :  { %12357 = vmatprep.subr.bf16.mxu1 %v13453_v39  ;;  %12379 = vmatprep.subr.bf16.mxu0 %v13454_v22  ;;  %v16440_v39 = vpop.f32.mrf.mxu1  ;;  %v16445_v47 = vpop.f32.mrf.mxu0  ;;  %v13480_v22 = vld [vmem:[%s16639_s16 + $0x690] sm:$0xff]  }
0x3cb7   :  { %12358 = vmatpush3.bf16.msra.mxu1 %v13455_v59  ;;  %12380 = vmatpush3.bf16.msra.mxu0 %v13456_v31  ;;  %v9267_v59 = vpop.f32.mrf.mxu1  ;;  %v8776_v31 = vrot.slane %v16342_v56, %v15184_v5  ;;  %v13486_v5 = vld [vmem:[%s16639_s16 + $0x6c0] sm:$0xff]  }
0x3cb8   :  { %12387 = vmatprep.subr.bf16.mxu1 %v13457_v55  ;;  %12409 = vmatprep.subr.bf16.mxu0 %v13458_v13  ;;  %v9310_v55 = vpop.f32.mrf.mxu0 }
0x3cb9   :  { %v9268_v13 = vadd.f32 %v9267_v59, %v8776_v31  ;;  %v9311_v19 = vadd.f32 %v9310_v55, %v8784_v12  ;;  %v9264_v38 = vadd.f32 %v9263_v57, %v8776_v31  ;;  %v13501_v57 = vld [vmem:[%s16639_s16 + $0x760] sm:$0xff]   ;;  %v13513_v59 = vld [vmem:[%s16639_s16 + $0x748] sm:$0xff]   ;;  %v8780_v31 = vrot.slane %v16342_v56, %v15269_v7 }
0x3cba   :  { %10621 = vmatmul.mubr.bf16.vlgmr.msra.gmra.mxu1 %v11874_v48  ;;  %10662 = vmatmul.mubr.bf16.vlgmr.msra.gmra.mxu0 %v11876_v28  ;;  %v13490_v48 = vld [vmem:[%s16639_s16 + $0x7f8] sm:$0xff]   ;;  %v9323_v28 = vmax.f32 %v9219_v49, 0.0  ;;  %v13515_v55 = vld [vmem:[%s16639_s16 + $0x708] sm:$0xff]   ;;  %v13518_v7 = vld [vmem:[%s16639_s16 + $0x7c0] sm:$0xff]   ;;  %v9262_v56 = vadd.f32 %v16412_v17, %v8772_v9 }
0x3cbb   :  { %12388 = vmatpush3.bf16.msra.mxu1 %v13459_v53  ;;  %10702 = vmatprep.mubr.bf16.mxu1 %v11879_v11  ;;  %v9339_v53 = vmax.f32 %v9223_v41, 0.0  ;;  %v9344_v8 = vmax.f32 %v9311_v19, 0.0  ;;  %v11878_v11 = vpack.c.bf16 %v9337_v18, %v9321_v20  ;;  %v9309_v41 = vadd.f32 %v16445_v47, %v8780_v31  ;;  %v13519_v12 = vld [vmem:[%s16639_s16 + $0x700] sm:$0xff]  }
0x3cbc   :  { %12410 = vmatpush3.bf16.msra.mxu0 %v13460_v10  ;;  %10743 = vmatprep.mubr.bf16.mxu0 %v11881_v32  ;;  %v9342_v10 = vmax.f32 %v9268_v13, 0.0  ;;  %v13492_v32 = vld [vmem:[%s16639_s16 + $0x7b8] sm:$0xff]   ;;  %v13520_v47 = vld [vmem:[%s16639_s16 + $0x780] sm:$0xff]   ;;  %v9325_v13 = vmax.f32 %v9262_v56, 0.0 }
0x3cbd   :  { %12389 = vmatprep.subr.bf16.mxu1 %v13461_v23  ;;  %12411 = vmatprep.subr.bf16.mxu0 %v13462_v26  ;;  %v13491_v23 = vld [vmem:[%s16639_s16 + $0x738] sm:$0xff]   ;;  %v9326_v26 = vmax.f32 %v9264_v38, 0.0  ;;  %v9343_v44 = vmax.f32 %v9309_v41, 0.0 }
0x3cbf   :  { %12390 = vmatpush3.bf16.msra.mxu1 %v13463_v60  ;;  %v11880_v60 = vpack.c.bf16 %v9339_v53, %v9323_v28 }
0x3cc0   :  { %12412 = vmatpush3.bf16.msra.mxu0 %v13464_v37  ;;  %12391 = vmatprep.subr.bf16.mxu1 %v13465_v50  ;;  %v9328_v37 = vmax.f32 %v9307_v30, 0.0  ;;  %v13493_v50 = vld [vmem:[%s16639_s16 + $0x770] sm:$0xff]  }
0x3cc1   :  { %12413 = vmatprep.subr.bf16.mxu0 %v13466_v42  ;;  %v11883_v42 = vpack.c.bf16 %v9342_v10, %v9326_v26 }
0x3cc3   :  { %12392 = vmatpush3.bf16.msra.mxu1 %v13467_v34  ;;  %v13494_v34 = vld [vmem:[%s16639_s16 + $0x7f0] sm:$0xff]  }
0x3cc4   :  { %12414 = vmatpush3.bf16.msra.mxu0 %v13468_v35  ;;  %12393 = vmatprep.subr.bf16.mxu1 %v13469_v24  ;;  %v11885_v35 = vpack.c.bf16 %v9344_v8, %v9328_v37  ;;  %v13495_v24 = vld [vmem:[%s16639_s16 + $0x730] sm:$0xff]  }
0x3cc5   :  { %12415 = vmatprep.subr.bf16.mxu0 %v13470_v46  ;;  %v13496_v46 = vld [vmem:[%s16639_s16 + $0x7b0] sm:$0xff]  }
0x3cc7   :  { %12394 = vmatpush3.bf16.msra.mxu1 %v13471_v58  ;;  %v13497_v58 = vld [vmem:[%s16639_s16 + $0x768] sm:$0xff]  }
0x3cc8   :  { %12416 = vmatpush3.bf16.msra.mxu0 %v13472_v51  ;;  %12395 = vmatprep.subr.bf16.mxu1 %v13473_v52  ;;  %v13498_v51 = vld [vmem:[%s16639_s16 + $0x7e8] sm:$0xff]  }
0x3cc9   :  { %12417 = vmatprep.subr.bf16.mxu0 %v13474_v33  ;;  %v13499_v52 = vld [vmem:[%s16639_s16 + $0x728] sm:$0xff]  }
0x3cca   :  { %v13500_v33 = vld [vmem:[%s16639_s16 + $0x7a8] sm:$0xff]  }
0x3ccb   :  { %12396 = vmatpush3.bf16.msra.mxu1 %v13475_v36  ;;  %v13502_v36 = vld [vmem:[%s16639_s16 + $0x7e0] sm:$0xff]  }
0x3ccc   :  { %12418 = vmatpush3.bf16.msra.mxu0 %v13476_v61  ;;  %12397 = vmatprep.subr.bf16.mxu1 %v13477_v62  ;;  %v13504_v61 = vld [vmem:[%s16639_s16 + $0x7a0] sm:$0xff]   ;;  %v13505_v62 = vld [vmem:[%s16639_s16 + $0x758] sm:$0xff]  }
0x3ccd   :  { %12419 = vmatprep.subr.bf16.mxu0 %v13478_v29  ;;  %v13506_v29 = vld [vmem:[%s16639_s16 + $0x7d8] sm:$0xff]  }
0x3ccf   :  { %12398 = vmatpush3.bf16.msra.mxu1 %v13479_v63  ;;  %v13507_v63 = vld [vmem:[%s16639_s16 + $0x718] sm:$0xff]  }
0x3cd0   :  { %12420 = vmatpush3.bf16.msra.mxu0 %v13480_v22  ;;  %12399 = vmatprep.subr.bf16.mxu1 %v13481_v4  ;;  %v13508_v22 = vld [vmem:[%s16639_s16 + $0x798] sm:$0xff]   ;;  %v13509_v4 = vld [vmem:[%s16639_s16 + $0x750] sm:$0xff]  }
0x3cd1   :  { %12421 = vmatprep.subr.bf16.mxu0 %v13482_v2  ;;  %v13510_v2 = vld [vmem:[%s16639_s16 + $0x7d0] sm:$0xff]  }
0x3cd3   :  { %12400 = vmatpush3.bf16.msra.mxu1 %v13483_v16  ;;  %v13514_v16 = vld [vmem:[%s16639_s16 + $0x7c8] sm:$0xff]  }
0x3cd4   :  { %12422 = vmatpush3.bf16.msra.mxu0 %v13484_v6  ;;  %12401 = vmatprep.subr.bf16.mxu1 %v13485_v25  ;;  %v9266_v6 = vadd.f32 %v16440_v39, %v8772_v9  ;;  %v13516_v25 = vld [vmem:[%s16639_s16 + $0x788] sm:$0xff]   ;;  %v9305_v39 = vadd.f32 %v16417_v45, %v8780_v31 }
0x3cd5   :  { %12423 = vmatprep.subr.bf16.mxu0 %v13486_v5 }
0x3cd6   :  { %v9341_v5 = vmax.f32 %v9266_v6, 0.0  ;;  %v9327_v49 = vmax.f32 %v9305_v39, 0.0 }
0x3cd7   :  { %12402 = vmatpush3.bf16.msra.mxu1 %v13487_v40 }
0x3cd8   :  { %12424 = vmatpush3.bf16.msra.mxu0 %v13488_v15  ;;  %12431 = vmatprep.subr.bf16.mxu1 %v13489_v14  ;;  %v11882_v17 = vpack.c.bf16 %v9341_v5, %v9325_v13  ;;  %v11884_v45 = vpack.c.bf16 %v9343_v44, %v9327_v49 }
0x3cd9   :  { %12453 = vmatprep.subr.bf16.mxu0 %v13490_v48 }
0x3cda   :  { %10703 = vmatmul.mubr.bf16.vlgmr.msra.gmra.mxu1 %v11878_v11 }
0x3cdb   :  { %10744 = vmatmul.mubr.bf16.vlgmr.msra.gmra.mxu0 %v11880_v60  ;;  %12432 = vmatpush3.bf16.msra.mxu1 %v13491_v23 }
0x3cdc   :  { %10784 = vmatprep.mubr.bf16.mxu1 %v11883_v42  ;;  %12454 = vmatpush3.bf16.msra.mxu0 %v13492_v32  ;;  %v11689_v32 = vld [vmem:[%s16640_s17 + $0x1] ss:$0 sm:$0xff] }
0x3cdd   :  { %10825 = vmatprep.mubr.bf16.mxu0 %v11885_v35  ;;  %12433 = vmatprep.subr.bf16.mxu1 %v13493_v50 }
0x3cde   :  { %12455 = vmatprep.subr.bf16.mxu0 %v13494_v34 }
0x3cdf   :  { %12434 = vmatpush3.bf16.msra.mxu1 %v13495_v24 }
0x3ce0   :  { %12456 = vmatpush3.bf16.msra.mxu0 %v13496_v46  ;;  %12435 = vmatprep.subr.bf16.mxu1 %v13497_v58 }
0x3ce1   :  { %12457 = vmatprep.subr.bf16.mxu0 %v13498_v51 }
0x3ce3   :  { %12436 = vmatpush3.bf16.msra.mxu1 %v13499_v52 }
0x3ce4   :  { %12458 = vmatpush3.bf16.msra.mxu0 %v13500_v33  ;;  %12437 = vmatprep.subr.bf16.mxu1 %v13501_v57 }
0x3ce5   :  { %12459 = vmatprep.subr.bf16.mxu0 %v13502_v36 }
0x3ce7   :  { %12438 = vmatpush3.bf16.msra.mxu1 %v13503_v27 }
0x3ce8   :  { %12460 = vmatpush3.bf16.msra.mxu0 %v13504_v61  ;;  %12439 = vmatprep.subr.bf16.mxu1 %v13505_v62 }
0x3ce9   :  { %12461 = vmatprep.subr.bf16.mxu0 %v13506_v29 }
0x3ceb   :  { %12440 = vmatpush3.bf16.msra.mxu1 %v13507_v63 }
0x3cec   :  { %12462 = vmatpush3.bf16.msra.mxu0 %v13508_v22  ;;  %12441 = vmatprep.subr.bf16.mxu1 %v13509_v4 }
0x3ced   :  { %12463 = vmatprep.subr.bf16.mxu0 %v13510_v2 }
0x3cef   :  { %12442 = vmatpush3.bf16.msra.mxu1 %v13511_v43 }
0x3cf0   :  { %12464 = vmatpush3.bf16.msra.mxu0 %v13512_v54  ;;  %12443 = vmatprep.subr.bf16.mxu1 %v13513_v59 }
0x3cf1   :  { %12465 = vmatprep.subr.bf16.mxu0 %v13514_v16 }
0x3cf3   :  { %12444 = vmatpush3.bf16.msra.mxu1 %v13515_v55 }
0x3cf4   :  { %12466 = vmatpush3.bf16.msra.mxu0 %v13516_v25  ;;  %12445 = vmatprep.subr.bf16.mxu1 %v13517_v21 }
0x3cf5   :  { %12467 = vmatprep.subr.bf16.mxu0 %v13518_v7 }
0x3cf7   :  { %12446 = vmatpush3.bf16.msra.mxu1 %v13519_v12 }
0x3cf8   :  { %12468 = vmatpush3.bf16.msra.mxu0 %v13520_v47  ;;  %13152 = vmatprep.subr.bf16.mxu1 %v13868_v1 }
0x3cfa   :  { %10785 = vmatmul.mubr.bf16.vlgmr.msra.gmra.mxu1 %v11882_v17 }
0x3cfb   :  { %10826 = vmatmul.mubr.bf16.vlgmr.msra.gmra.mxu0 %v11884_v45  ;;  %13156 = vmatprep.mubr.msk.bf16.mxu1 %vm13869_vm0, %v13868_v1 }
0x3d5a   :  { %v12315_v19 = vpop.f32.mrf.mxu1  ;;  %v12337_v40 = vpop.f32.mrf.mxu0 }
0x3d5c   :  { %v12316_v18 = vpop.f32.mrf.mxu1  ;;  %v12338_v38 = vpop.f32.mrf.mxu0 }
0x3d5d   :  { %v12317_v26 = vadd.f32 %v12316_v18, %v12315_v19  ;;  %v12339_v24 = vadd.f32 %v12338_v38, %v12337_v40 }
0x3d5e   :  { %v12318_v15 = vpop.f32.mrf.mxu1  ;;  %v12340_v14 = vpop.f32.mrf.mxu0 }
0x3d5f   :  { %v10541_v50 = vadd.f32 %v12317_v26, %v11689_v32 }
0x3d60   :  { %v12319_v53 = vpop.f32.mrf.mxu1  ;;  %v12341_v48 = vpop.f32.mrf.mxu0 }
0x3d61   :  { %v12320_v42 = vadd.f32 %v12319_v53, %v12318_v15  ;;  %v10582_v58 = vadd.f32 %v12339_v24, %v10541_v50  ;;  %v12342_v57 = vadd.f32 %v12341_v48, %v12340_v14 }
0x3d63   :  { %v10544_v51 = vadd.f32 %v12320_v42, %v11689_v32 }
0x3d65   :  { %v10585_v61 = vadd.f32 %v12342_v57, %v10544_v51  ;;  %v11836_v51 = vld [vmem:[%s16645_s22 + $0x1] ss:$0 sm:$0xff]  ;;  %s13886_s22 = smov [#allocation3]  }
0x3d66   :  { %v11837_v57 = vld [vmem:[%s16646_s23 + $0x1] ss:$0 sm:$0xff]  ;;  %s10963_s25 = sshll.u32 %s13886_s22, 4  ;;  %s10964_s25 = int_to_ptr.vmem [resolvable:$true] %s10963_s25 }
0x3d67   :  { %s13846_s23 = scalar_lea.vmem %s10964_s25, 256  ;;  %p13851_p1 = scmp.lt.s32.totalorder %s10964_s25, %s10964_s25 }
0x3d68   :  { %p13847_p0 = scmp.ne.s32.totalorder %s10964_s25, %s13846_s23  ;;  %p13852_p2 = scmp.lt.s32.totalorder %s13846_s23, %s13846_s23 }
0x3d6a   :  { %p13853_p3 = por %p13852_p2, %p13851_p1 }
0x3d6c   :  { %p13854_p4 = pnand %p13853_p3, %p13847_p0 }
0x3d7a   :  { %v12359_v30 = vpop.f32.mrf.mxu1  ;;  %v12381_v20 = vpop.f32.mrf.mxu0 }
0x3d7c   :  { %v12360_v10 = vpop.f32.mrf.mxu1  ;;  %v12382_v28 = vpop.f32.mrf.mxu0 }
0x3d7d   :  { %v12361_v46 = vadd.f32 %v12360_v10, %v12359_v30  ;;  %v12383_v62 = vadd.f32 %v12382_v28, %v12381_v20 }
0x3d7e   :  { %v12362_v8 = vpop.f32.mrf.mxu1  ;;  %v12384_v23 = vpop.f32.mrf.mxu0 }
0x3d7f   :  { %v10623_v36 = vadd.f32 %v12361_v46, %v10582_v58 }
0x3d80   :  { %v12363_v11 = vpop.f32.mrf.mxu1  ;;  %v12385_v37 = vpop.f32.mrf.mxu0 }
0x3d81   :  { %v12364_v27 = vadd.f32 %v12363_v11, %v12362_v8  ;;  %v10664_v4 = vadd.f32 %v12383_v62, %v10623_v36  ;;  %v12386_v43 = vadd.f32 %v12385_v37, %v12384_v23 }
0x3d83   :  { %v10626_v2 = vadd.f32 %v12364_v27, %v10585_v61 }
0x3d85   :  { %v10667_v31 = vadd.f32 %v12386_v43, %v10626_v2 }
0x3d9a   :  { %v12403_v60 = vpop.f32.mrf.mxu1 }
0x3d9b   :  { %v12425_v34 = vpop.f32.mrf.mxu0 }
0x3d9c   :  { %v12404_v35 = vpop.f32.mrf.mxu1 }
0x3d9d   :  { %v12426_v52 = vpop.f32.mrf.mxu0  ;;  %v12405_v29 = vadd.f32 %v12404_v35, %v12403_v60  ;;  %v13522_v60 = vld [vmem:[%s16732_s1] sm:$0xff]  }
0x3d9e   :  { %v12406_v33 = vpop.f32.mrf.mxu1  ;;  %v12427_v55 = vadd.f32 %v12426_v52, %v12425_v34 }
0x3d9f   :  { %v12428_v63 = vpop.f32.mrf.mxu0  ;;  %v10705_v54 = vadd.f32 %v12405_v29, %v10664_v4  ;;  %v11838_v29 = vld [vmem:[%s16733_s20] ss:$0 sm:$0xff] }
0x3da0   :  { %v12407_v22 = vpop.f32.mrf.mxu1 }
0x3da1   :  { %v12408_v59 = vadd.f32 %v12407_v22, %v12406_v33  ;;  %v12429_v16 = vpop.f32.mrf.mxu0  ;;  %v10746_v21 = vadd.f32 %v12427_v55, %v10705_v54 }
0x3da2   :  { %v12430_v12 = vadd.f32 %v12429_v16, %v12428_v63 }
0x3da3   :  { %v10708_v41 = vadd.f32 %v12408_v59, %v10667_v31 }
0x3da5   :  { %v10749_v49 = vadd.f32 %v12430_v12, %v10708_v41 }
0x3dba   :  { %v12447_v9 = vpop.f32.mrf.mxu1 }
0x3dbb   :  { %v12469_v6 = vpop.f32.mrf.mxu0 }
0x3dbc   :  { %v12448_v25 = vpop.f32.mrf.mxu1 }
0x3dbd   :  { %v12449_v7 = vadd.f32 %v12448_v25, %v12447_v9  ;;  %v12470_v56 = vpop.f32.mrf.mxu0 }
0x3dbe   :  { %v12450_v39 = vpop.f32.mrf.mxu1  ;;  %v12471_v47 = vadd.f32 %v12470_v56, %v12469_v6 }
0x3dbf   :  { %v10787_v5 = vadd.f32 %v12449_v7, %v10746_v21  ;;  %v12472_v44 = vpop.f32.mrf.mxu0 }
0x3dc0   :  { %v12451_v13 = vpop.f32.mrf.mxu1 }
0x3dc1   :  { %v10828_v17 = vadd.f32 %v12471_v47, %v10787_v5  ;;  %v12452_v45 = vadd.f32 %v12451_v13, %v12450_v39  ;;  %v12473_v19 = vpop.f32.mrf.mxu0 }
0x3dc2   :  { %v12474_v18 = vadd.f32 %v12473_v19, %v12472_v44 }
0x3dc3   :  { %v10790_v40 = vadd.f32 %v12452_v45, %v10749_v49  ;;  %v10834_v38 = vadd.f32 %v10828_v17, %v16050_v3 }
0x3dc5   :  { %v10831_v15 = vadd.f32 %v12474_v18, %v10790_v40  ;;  %v10840_v14 = vsel %vm307_vm3, %v10834_v38, 0.0 }
0x3dc6   :  { %10841 = vadd.xlane.f32.xlu1 %v10840_v14 }
0x3dc7   :  { %v10835_v53 = vadd.f32 %v10831_v15, %v16052_v0  ;;  %v13521_v0 = vld [vmem:[%s16732_s1 + $0x8] sm:$0xff]  }
0x3dc8   :  { %13153 = vmatpush3.bf16.msra.mxu1 %v13521_v0 }
0x3dc9   :  { %v10843_v30 = vsel %vm307_vm3, %v10835_v53, 0.0  ;;  %13154 = vmatprep.subr.bf16.mxu1 %v13868_v1 }
0x3dca   :  { %10844 = vadd.xlane.f32.xlu0 %v10843_v30 }
0x3dcc   :  { %13155 = vmatpush3.bf16.msra.mxu1 %v13522_v60 }
0x3e4f   :  { %v10842_v48 = vpop.xlane.xlu1 %10841 }
0x3e50   :  { %v10846_v20 = vmul.f32 0.03125, %v10842_v48 }
0x3e52   :  { %v10848_v10 = vsub.f32 %v10834_v38, %v10846_v20 }
0x3e53   :  { %v10845_v28 = vpop.xlane.xlu0 %10844 }
0x3e54   :  { %v10847_v8 = vmul.f32 0.03125, %v10845_v28  ;;  %v10850_v23 = vmul.f32 %v10848_v10, %v10848_v10 }
0x3e56   :  { %v10849_v11 = vsub.f32 %v10835_v53, %v10847_v8  ;;  %v10852_v26 = vsel %vm307_vm3, %v10850_v23, 0.0 }
0x3e57   :  { %10853 = vadd.xlane.f32.xlu1 %v10852_v26 }
0x3e58   :  { %v10851_v3 = vmul.f32 %v10849_v11, %v10849_v11 }
0x3e5a   :  { %v10855_v32 = vsel %vm307_vm3, %v10851_v3, 0.0 }
0x3e5b   :  { %10856 = vadd.xlane.f32.xlu0 %v10855_v32 }
0x3ee0   :  { %v10854_v37 = vpop.xlane.xlu1 %10853 }
0x3ee1   :  { %v10858_v50 = vmul.f32 0.03125, %v10854_v37 }
0x3ee3   :  { %v10860_v42 = vadd.f32 1e-05, %v10858_v50 }
0x3ee4   :  { %v10857_v34 = vpop.xlane.xlu0 %10856 }
0x3ee5   :  { %13831 = vrsqrt.f32 %v10860_v42  ;;  %v10859_v35 = vmul.f32 0.03125, %v10857_v34 }
0x3ee7   :  { %v10861_v24 = vadd.f32 1e-05, %v10859_v35 }
0x3ee9   :  { %13833 = vrsqrt.f32 %v10861_v24 }
0x3ef2   :  { %v13832_v46 = vpop.eup %13831 }
0x3ef3   :  { %v10864_v58 = vmul.f32 %v13832_v46, %v10848_v10 }
0x3ef5   :  { %v10872_v52 = vmul.f32 %v11836_v51, %v10864_v58 }
0x3ef6   :  { %v13834_v1 = vpop.eup %13833 }
0x3ef7   :  { %v10865_v33 = vmul.f32 %v13834_v1, %v10849_v11  ;;  %v10880_v27 = vadd.f32 %v11837_v57, %v10872_v52 }
0x3ef9   :  { %v10873_v36 = vmul.f32 %v11836_v51, %v10865_v33 }
0x3efb   :  { %v10881_v61 = vadd.f32 %v11837_v57, %v10873_v36 }
0x3efd   :  { %v11886_v62 = vpack.c.bf16 %v10881_v61, %v10880_v27 }
0x3eff   :  { %13157 = vmatmul.mubr.msk.bf16.vlgmr.msra.gmra.mxu1 %vm307_vm3, %v11886_v62 }
0x3fbf   :  { %v10949_v63 = vpop.f32.mrf.mxu1 }
0x3fc0   :  { %v10950_v22 = vadd.f32 %v11838_v29, %v10949_v63 }
0x3fc1   :  { %v13158_v4 = vpop.f32.mrf.mxu1 }
0x3fc2   :  { %10956 = vst [vmem:[#allocation3] sm:$0xff] %v10950_v22 }
0x3fc3   :  { %v10952_v2 = vpop.f32.mrf.mxu1 }
0x3fc4   :  { %v10953_v43 = vadd.f32 %v11838_v29, %v10952_v2 }
0x3fc5   :  { %v13159_v54 = vpop.f32.mrf.mxu1 }
0x3fc6   :  { %10957 = vst [vmem:[#allocation3 + $0x8] sm:$0xff] %v10953_v43 }
0x3fc7   :  { %13857 = shalt.err (!%p13854_p4)
}
0x3fc8   :  { %s13887_s21 = smov 128   ;;  %s16734_s18 = sld [smem:[#allocation20_spill]] }
0x3fce   :  { %10969 = dma.vmem_to_hbm [thread:$0]  %s10964_s25, 256, %s16734_s18, [#allocation4], %s13887_s21, %s13887_s21, %s16718_s5  }
0x3fcf   :  { %13866 = dma.done.wait [#allocation4], 256  }
0x3fd0   :  { %13867 = vsyncadd [#allocation4], 4294967040 }
0x3fd1   :  { %10973 = vsyncpa [#allocation4], 1 }

</bundles_post_ra>
